<compile_context>
chip_gen: v7x
topology: tpu7x:2x2x1
jax: 0.10.0
libtpu: 0.0.40
codegen_flags: <defaults>
</compile_context>

<pallas_src>
import jax
import jax.numpy as jnp
from jax.experimental import pallas as pl
from jax.experimental.pallas import tpu as pltpu


# ------------------------------ fused kernel ------------------------------ #

def _fused_forward_kernel(x_ref, w1_ref, b1_ref, w2_ref, b2_ref, w3_ref,
                          b3_ref, wfc_ref, bfc_ref, o_ref,
                          pad_buf, patch_buf, act_a, act_b):
    # x_ref:   (1, H*W, CP) f32       per-image activation slab
    # w*_ref:  (9*CP, CP)   bf16      im2col conv weights
    # b*_ref:  (1, CP)      f32       conv biases
    # wfc_ref: (CP, NP)     bf16      FC weight (classes padded to NP lanes)
    # bfc_ref: (1, NP)      f32
    # o_ref:   (1, 1, NP)   f32       padded logits
    # scratch: pad_buf  (H+2, W+2, CP) f32   spatially padded activation
    #          patch_buf (H*W, 9*CP)   bf16  im2col patch matrix (MXU input)
    #          act_a/act_b (H*W, CP)   f32   inter-conv activations
    Hp, Wp, CP = pad_buf.shape
    H, W = Hp - 2, Wp - 2
    HW = H * W

    # Zero the halo once per image; the interior is fully rewritten by each
    # conv, so the border stays zero across all three convs.
    pad_buf[...] = jnp.zeros(pad_buf.shape, pad_buf.dtype)

    def conv3x3(src, w_ref, b_ref, residual=None):
        # src: (HW, CP) f32 value -> (HW, CP) f32 post-ReLU value.
        pad_buf[1:H + 1, 1:W + 1, :] = src.astype(pad_buf.dtype).reshape(H, W, CP)
        # Build the im2col patch matrix in VMEM (bf16 for the MXU).
        for dy in range(3):
            for dx in range(3):
                t = dy * 3 + dx
                patch_buf[:, t * CP:(t + 1) * CP] = (
                    pad_buf[dy:dy + H, dx:dx + W, :]
                    .reshape(HW, CP).astype(jnp.bfloat16))
        # One MXU matmul per conv: (HW, 9*CP) x (9*CP, CP), f32 accumulation.
        acc = jnp.dot(patch_buf[...], w_ref[...],
                      preferred_element_type=jnp.float32)
        acc = acc + b_ref[...]
        if residual is not None:
            acc = acc + residual
        return jnp.maximum(acc, 0.0)

    # stem
    act_a[...] = conv3x3(x_ref[0], w1_ref, b1_ref)
    # residual block, conv 1
    act_b[...] = conv3x3(act_a[...], w2_ref, b2_ref)
    # residual block, conv 2 + skip connection
    act_b[...] = conv3x3(act_b[...], w3_ref, b3_ref, residual=act_a[...])

    # GAP + Linear head, fused:  mean_hw(x) @ W + b == (1/HW) * sum_hw(x @ W) + b
    scores = jnp.dot(act_b[...].astype(jnp.bfloat16), wfc_ref[...],
                     preferred_element_type=jnp.float32)           # (HW, NP)
    logits = jnp.sum(scores, axis=0, keepdims=True) * (1.0 / HW) + bfc_ref[...]
    o_ref[0, :, :] = logits


# ------------------------------- The model -------------------------------- #

class PallasClassifier:
    """Minimal ResNet-style backbone + replaced Linear(n_features, n_classes)."""

    CP = 128        # channel lane padding
    NCLS_PAD = 128  # padded class dim (lane-dense logits store)

    def __init__(self, n_classes: int, in_ch: int = 3, width: int = 16,
                 key=jax.random.PRNGKey(42)):
        CP, NP = self.CP, self.NCLS_PAD
        assert in_ch <= CP and width <= CP and n_classes <= NP
        self.n_classes = n_classes
        k = jax.random.split(key, 8)

        def he_conv(k_, cin, cout):
            scale = (2.0 / (9 * cin)) ** 0.5
            return scale * jax.random.normal(k_, (3, 3, cin, cout), jnp.float32)

        def pad_conv_w(w):
            # (3,3,cin,cout) -> zero-padded (3,3,CP,CP) -> im2col (9*CP, CP) bf16
            cin, cout = w.shape[2], w.shape[3]
            wp = jnp.zeros((3, 3, CP, CP), jnp.float32)
            wp = wp.at[:, :, :cin, :cout].set(w)
            return wp.reshape(9 * CP, CP).astype(jnp.bfloat16)

        # stem
        self.w_stem = pad_conv_w(he_conv(k[0], in_ch, width))
        self.b_stem = jnp.zeros((1, CP), jnp.float32)
        # residual block
        self.w_b1 = pad_conv_w(he_conv(k[1], width, width))
        self.b_b1 = jnp.zeros((1, CP), jnp.float32)
        self.w_b2 = pad_conv_w(he_conv(k[2], width, width))
        self.b_b2 = jnp.zeros((1, CP), jnp.float32)
        # replaced classifier head: nn.Linear(n_features, n_classes)
        fc_scale = (1.0 / width) ** 0.5
        w_fc = fc_scale * jax.random.normal(k[3], (width, n_classes), jnp.float32)
        b_fc = fc_scale * jax.random.normal(k[4], (n_classes,), jnp.float32)
        self.w_fc = (jnp.zeros((CP, NP), jnp.float32)
                     .at[:width, :n_classes].set(w_fc).astype(jnp.bfloat16))
        self.b_fc = jnp.zeros((1, NP), jnp.float32).at[0, :n_classes].set(b_fc)

        self._fwd = jax.jit(self._forward)

    def _forward(self, x_nchw):
        CP, NP = self.CP, self.NCLS_PAD
        # PyTorch NCHW -> NHWC, channel-pad to 128 lanes, flatten to (N, H*W, CP)
        x = jnp.transpose(x_nchw.astype(jnp.float32), (0, 2, 3, 1))
        N, H, W, cin = x.shape
        HW = H * W
        x = jnp.pad(x, ((0, 0), (0, 0), (0, 0), (0, CP - cin))).reshape(N, HW, CP)

        # TODO(synk): at realistic image sizes (e.g. 224x224) tile H into row
        # strips with a halo via index_map (and a second parallel grid axis for
        # v7x's 2 TensorCores / 64 MiB VMEM); at 16x16 the whole image fits.
        out = pl.pallas_call(
            _fused_forward_kernel,
            out_shape=jax.ShapeDtypeStruct((N, 1, NP), jnp.float32),
            grid=(N,),
            in_specs=[
                pl.BlockSpec((1, HW, CP), lambda n: (n, 0, 0)),      # x
                pl.BlockSpec((9 * CP, CP), lambda n: (0, 0)),        # w_stem
                pl.BlockSpec((1, CP), lambda n: (0, 0)),             # b_stem
                pl.BlockSpec((9 * CP, CP), lambda n: (0, 0)),        # w_b1
                pl.BlockSpec((1, CP), lambda n: (0, 0)),             # b_b1
                pl.BlockSpec((9 * CP, CP), lambda n: (0, 0)),        # w_b2
                pl.BlockSpec((1, CP), lambda n: (0, 0)),             # b_b2
                pl.BlockSpec((CP, NP), lambda n: (0, 0)),            # w_fc
                pl.BlockSpec((1, NP), lambda n: (0, 0)),             # b_fc
            ],
            out_specs=pl.BlockSpec((1, 1, NP), lambda n: (n, 0, 0)),
            scratch_shapes=[
                pltpu.VMEM((H + 2, W + 2, CP), jnp.float32),  # padded activation
                pltpu.VMEM((HW, 9 * CP), jnp.bfloat16),       # im2col patches
                pltpu.VMEM((HW, CP), jnp.float32),            # stem out / residual
                pltpu.VMEM((HW, CP), jnp.float32),            # block activations
            ],
            compiler_params=pltpu.CompilerParams(
                dimension_semantics=("parallel",)),
        )(x, self.w_stem, self.b_stem, self.w_b1, self.b_b1,
          self.w_b2, self.b_b2, self.w_fc, self.b_fc)

        return out[:, 0, :self.n_classes]

    def __call__(self, x_nchw):
        return self._fwd(x_nchw)


# TODO(synk): timm.create_model(model_name, pretrained=...) has no Pallas
# equivalent; the backbone above is a deterministic synthetic stand-in with
# the same forward structure (conv stack -> pool -> replaced Linear head).


if __name__ == "__main__":
    n_classes = 5
    model = PallasClassifier(n_classes=n_classes)

    x = jax.random.normal(jax.random.PRNGKey(0), (2, 3, 16, 16), jnp.float32)
    logits = model(x)
    logits = jax.block_until_ready(logits)

    assert logits.shape == (2, n_classes), logits.shape
    assert logits.dtype == jnp.float32
    assert bool(jnp.all(jnp.isfinite(logits)))
    print("KERNEL_OK")
</pallas_src>

<mosaic_0001>
module attributes {stable_mosaic.version = 11 : i64} {
  func.func @_fused_forward_kernel(%arg0: i32, %arg1: memref<1x256x128xf32, #tpu.memory_space<vmem>>, %arg2: memref<1152x128xbf16, #tpu.memory_space<vmem>>, %arg3: memref<1x128xf32, #tpu.memory_space<vmem>>, %arg4: memref<1152x128xbf16, #tpu.memory_space<vmem>>, %arg5: memref<1x128xf32, #tpu.memory_space<vmem>>, %arg6: memref<1152x128xbf16, #tpu.memory_space<vmem>>, %arg7: memref<1x128xf32, #tpu.memory_space<vmem>>, %arg8: memref<128x128xbf16, #tpu.memory_space<vmem>>, %arg9: memref<1x128xf32, #tpu.memory_space<vmem>>, %arg10: memref<1x1x128xf32, #tpu.memory_space<vmem>>, %arg11: memref<18x18x128xf32, #tpu.memory_space<vmem>>, %arg12: memref<256x1152xbf16, #tpu.memory_space<vmem>>, %arg13: memref<256x128xf32, #tpu.memory_space<vmem>>, %arg14: memref<256x128xf32, #tpu.memory_space<vmem>>) attributes {dimension_semantics = [#tpu.dimension_semantics<parallel>], iteration_bounds = array<i64: 2>, scalar_prefetch = 0 : i64, scratch_operands = 4 : i64, tpu.core_type = #tpu.core_type<tc>, window_params = [{transform_indices = @transform_0, window_bounds = array<i64: 1, 256, 128>}, {pipeline_mode = #tpu.pipeline_mode<synchronous>, transform_indices = @transform_1, window_bounds = array<i64: 1152, 128>}, {pipeline_mode = #tpu.pipeline_mode<synchronous>, transform_indices = @transform_2, window_bounds = array<i64: 1, 128>}, {pipeline_mode = #tpu.pipeline_mode<synchronous>, transform_indices = @transform_3, window_bounds = array<i64: 1152, 128>}, {pipeline_mode = #tpu.pipeline_mode<synchronous>, transform_indices = @transform_4, window_bounds = array<i64: 1, 128>}, {pipeline_mode = #tpu.pipeline_mode<synchronous>, transform_indices = @transform_5, window_bounds = array<i64: 1152, 128>}, {pipeline_mode = #tpu.pipeline_mode<synchronous>, transform_indices = @transform_6, window_bounds = array<i64: 1, 128>}, {pipeline_mode = #tpu.pipeline_mode<synchronous>, transform_indices = @transform_7, window_bounds = array<i64: 128, 128>}, {pipeline_mode = #tpu.pipeline_mode<synchronous>, transform_indices = @transform_8, window_bounds = array<i64: 1, 128>}, {transform_indices = @transform_9, window_bounds = array<i64: 1, 1, 128>}]} {
    %cst = arith.constant 0.000000e+00 : f32
    %0 = vector.broadcast %cst : f32 to vector<18x18x128xf32>
    %c0 = arith.constant 0 : index
    %c0_0 = arith.constant 0 : index
    %c0_1 = arith.constant 0 : index
    %1 = vector.load %arg11[%c0, %c0_0, %c0_1] : memref<18x18x128xf32, #tpu.memory_space<vmem>>, vector<18x18x128xf32>
    tpu.vector_store %arg11[%c0, %c0_0, %c0_1], %0 {strides = array<i32>} : memref<18x18x128xf32, #tpu.memory_space<vmem>>, vector<18x18x128xf32>,
    %c0_2 = arith.constant 0 : index
    %c0_3 = arith.constant 0 : index
    %c0_4 = arith.constant 0 : index
    %2 = vector.load %arg1[%c0_2, %c0_3, %c0_4] : memref<1x256x128xf32, #tpu.memory_space<vmem>>, vector<1x256x128xf32>
    %3 = vector.shape_cast %2 : vector<1x256x128xf32> to vector<256x128xf32>
    %4 = vector.shape_cast %3 : vector<256x128xf32> to vector<16x16x128xf32>
    %c1 = arith.constant 1 : index
    %c1_5 = arith.constant 1 : index
    %c0_6 = arith.constant 0 : index
    %5 = vector.load %arg11[%c1, %c1_5, %c0_6] : memref<18x18x128xf32, #tpu.memory_space<vmem>>, vector<16x16x128xf32>
    tpu.vector_store %arg11[%c1, %c1_5, %c0_6], %4 {strides = array<i32>} : memref<18x18x128xf32, #tpu.memory_space<vmem>>, vector<16x16x128xf32>,
    %c0_7 = arith.constant 0 : index
    %c0_8 = arith.constant 0 : index
    %c0_9 = arith.constant 0 : index
    %6 = vector.load %arg11[%c0_7, %c0_8, %c0_9] : memref<18x18x128xf32, #tpu.memory_space<vmem>>, vector<16x16x128xf32>
    %7 = vector.shape_cast %6 : vector<16x16x128xf32> to vector<256x128xf32>
    %8 = arith.truncf %7 : vector<256x128xf32> to vector<256x128xbf16>
    %c0_10 = arith.constant 0 : index
    %c0_11 = arith.constant 0 : index
    %9 = vector.load %arg12[%c0_10, %c0_11] : memref<256x1152xbf16, #tpu.memory_space<vmem>>, vector<256x128xbf16>
    tpu.vector_store %arg12[%c0_10, %c0_11], %8 {strides = array<i32>} : memref<256x1152xbf16, #tpu.memory_space<vmem>>, vector<256x128xbf16>,
    %c0_12 = arith.constant 0 : index
    %c1_13 = arith.constant 1 : index
    %c0_14 = arith.constant 0 : index
    %10 = vector.load %arg11[%c0_12, %c1_13, %c0_14] : memref<18x18x128xf32, #tpu.memory_space<vmem>>, vector<16x16x128xf32>
    %11 = vector.shape_cast %10 : vector<16x16x128xf32> to vector<256x128xf32>
    %12 = arith.truncf %11 : vector<256x128xf32> to vector<256x128xbf16>
    %c0_15 = arith.constant 0 : index
    %c128 = arith.constant 128 : index
    %13 = vector.load %arg12[%c0_15, %c128] : memref<256x1152xbf16, #tpu.memory_space<vmem>>, vector<256x128xbf16>
    tpu.vector_store %arg12[%c0_15, %c128], %12 {strides = array<i32>} : memref<256x1152xbf16, #tpu.memory_space<vmem>>, vector<256x128xbf16>,
    %c0_16 = arith.constant 0 : index
    %c2 = arith.constant 2 : index
    %c0_17 = arith.constant 0 : index
    %14 = vector.load %arg11[%c0_16, %c2, %c0_17] : memref<18x18x128xf32, #tpu.memory_space<vmem>>, vector<16x16x128xf32>
    %15 = vector.shape_cast %14 : vector<16x16x128xf32> to vector<256x128xf32>
    %16 = arith.truncf %15 : vector<256x128xf32> to vector<256x128xbf16>
    %c0_18 = arith.constant 0 : index
    %c256 = arith.constant 256 : index
    %17 = vector.load %arg12[%c0_18, %c256] : memref<256x1152xbf16, #tpu.memory_space<vmem>>, vector<256x128xbf16>
    tpu.vector_store %arg12[%c0_18, %c256], %16 {strides = array<i32>} : memref<256x1152xbf16, #tpu.memory_space<vmem>>, vector<256x128xbf16>,
    %c1_19 = arith.constant 1 : index
    %c0_20 = arith.constant 0 : index
    %c0_21 = arith.constant 0 : index
    %18 = vector.load %arg11[%c1_19, %c0_20, %c0_21] : memref<18x18x128xf32, #tpu.memory_space<vmem>>, vector<16x16x128xf32>
    %19 = vector.shape_cast %18 : vector<16x16x128xf32> to vector<256x128xf32>
    %20 = arith.truncf %19 : vector<256x128xf32> to vector<256x128xbf16>
    %c0_22 = arith.constant 0 : index
    %c384 = arith.constant 384 : index
    %21 = vector.load %arg12[%c0_22, %c384] : memref<256x1152xbf16, #tpu.memory_space<vmem>>, vector<256x128xbf16>
    tpu.vector_store %arg12[%c0_22, %c384], %20 {strides = array<i32>} : memref<256x1152xbf16, #tpu.memory_space<vmem>>, vector<256x128xbf16>,
    %c1_23 = arith.constant 1 : index
    %c1_24 = arith.constant 1 : index
    %c0_25 = arith.constant 0 : index
    %22 = vector.load %arg11[%c1_23, %c1_24, %c0_25] : memref<18x18x128xf32, #tpu.memory_space<vmem>>, vector<16x16x128xf32>
    %23 = vector.shape_cast %22 : vector<16x16x128xf32> to vector<256x128xf32>
    %24 = arith.truncf %23 : vector<256x128xf32> to vector<256x128xbf16>
    %c0_26 = arith.constant 0 : index
    %c512 = arith.constant 512 : index
    %25 = vector.load %arg12[%c0_26, %c512] : memref<256x1152xbf16, #tpu.memory_space<vmem>>, vector<256x128xbf16>
    tpu.vector_store %arg12[%c0_26, %c512], %24 {strides = array<i32>} : memref<256x1152xbf16, #tpu.memory_space<vmem>>, vector<256x128xbf16>,
    %c1_27 = arith.constant 1 : index
    %c2_28 = arith.constant 2 : index
    %c0_29 = arith.constant 0 : index
    %26 = vector.load %arg11[%c1_27, %c2_28, %c0_29] : memref<18x18x128xf32, #tpu.memory_space<vmem>>, vector<16x16x128xf32>
    %27 = vector.shape_cast %26 : vector<16x16x128xf32> to vector<256x128xf32>
    %28 = arith.truncf %27 : vector<256x128xf32> to vector<256x128xbf16>
    %c0_30 = arith.constant 0 : index
    %c640 = arith.constant 640 : index
    %29 = vector.load %arg12[%c0_30, %c640] : memref<256x1152xbf16, #tpu.memory_space<vmem>>, vector<256x128xbf16>
    tpu.vector_store %arg12[%c0_30, %c640], %28 {strides = array<i32>} : memref<256x1152xbf16, #tpu.memory_space<vmem>>, vector<256x128xbf16>,
    %c2_31 = arith.constant 2 : index
    %c0_32 = arith.constant 0 : index
    %c0_33 = arith.constant 0 : index
    %30 = vector.load %arg11[%c2_31, %c0_32, %c0_33] : memref<18x18x128xf32, #tpu.memory_space<vmem>>, vector<16x16x128xf32>
    %31 = vector.shape_cast %30 : vector<16x16x128xf32> to vector<256x128xf32>
    %32 = arith.truncf %31 : vector<256x128xf32> to vector<256x128xbf16>
    %c0_34 = arith.constant 0 : index
    %c768 = arith.constant 768 : index
    %33 = vector.load %arg12[%c0_34, %c768] : memref<256x1152xbf16, #tpu.memory_space<vmem>>, vector<256x128xbf16>
    tpu.vector_store %arg12[%c0_34, %c768], %32 {strides = array<i32>} : memref<256x1152xbf16, #tpu.memory_space<vmem>>, vector<256x128xbf16>,
    %c2_35 = arith.constant 2 : index
    %c1_36 = arith.constant 1 : index
    %c0_37 = arith.constant 0 : index
    %34 = vector.load %arg11[%c2_35, %c1_36, %c0_37] : memref<18x18x128xf32, #tpu.memory_space<vmem>>, vector<16x16x128xf32>
    %35 = vector.shape_cast %34 : vector<16x16x128xf32> to vector<256x128xf32>
    %36 = arith.truncf %35 : vector<256x128xf32> to vector<256x128xbf16>
    %c0_38 = arith.constant 0 : index
    %c896 = arith.constant 896 : index
    %37 = vector.load %arg12[%c0_38, %c896] : memref<256x1152xbf16, #tpu.memory_space<vmem>>, vector<256x128xbf16>
    tpu.vector_store %arg12[%c0_38, %c896], %36 {strides = array<i32>} : memref<256x1152xbf16, #tpu.memory_space<vmem>>, vector<256x128xbf16>,
    %c2_39 = arith.constant 2 : index
    %c2_40 = arith.constant 2 : index
    %c0_41 = arith.constant 0 : index
    %38 = vector.load %arg11[%c2_39, %c2_40, %c0_41] : memref<18x18x128xf32, #tpu.memory_space<vmem>>, vector<16x16x128xf32>
    %39 = vector.shape_cast %38 : vector<16x16x128xf32> to vector<256x128xf32>
    %40 = arith.truncf %39 : vector<256x128xf32> to vector<256x128xbf16>
    %c0_42 = arith.constant 0 : index
    %c1024 = arith.constant 1024 : index
    %41 = vector.load %arg12[%c0_42, %c1024] : memref<256x1152xbf16, #tpu.memory_space<vmem>>, vector<256x128xbf16>
    tpu.vector_store %arg12[%c0_42, %c1024], %40 {strides = array<i32>} : memref<256x1152xbf16, #tpu.memory_space<vmem>>, vector<256x128xbf16>,
    %c0_43 = arith.constant 0 : index
    %c0_44 = arith.constant 0 : index
    %42 = vector.load %arg12[%c0_43, %c0_44] : memref<256x1152xbf16, #tpu.memory_space<vmem>>, vector<256x1152xbf16>
    %c0_45 = arith.constant 0 : index
    %c0_46 = arith.constant 0 : index
    %43 = vector.load %arg2[%c0_45, %c0_46] : memref<1152x128xbf16, #tpu.memory_space<vmem>>, vector<1152x128xbf16>
    %cst_47 = arith.constant dense<0.000000e+00> : vector<256x128xf32>
    %44 = tpu.matmul %42, %43, %cst_47 {dimension_numbers = #tpu.dot_dimension_numbers<[1], [0], [0], [1], [0, 0, 1, 1], [], []>} : vector<256x1152xbf16>, vector<1152x128xbf16>, vector<256x128xf32> -> vector<256x128xf32>
    %c0_48 = arith.constant 0 : index
    %c0_49 = arith.constant 0 : index
    %45 = vector.load %arg3[%c0_48, %c0_49] : memref<1x128xf32, #tpu.memory_space<vmem>>, vector<1x128xf32>
    %46 = vector.broadcast %45 : vector<1x128xf32> to vector<256x128xf32>
    %47 = arith.addf %44, %46 : vector<256x128xf32>
    %cst_50 = arith.constant 0.000000e+00 : f32
    %48 = vector.broadcast %cst_50 : f32 to vector<256x128xf32>
    %49 = arith.maximumf %47, %48 : vector<256x128xf32>
    %c0_51 = arith.constant 0 : index
    %c0_52 = arith.constant 0 : index
    %50 = vector.load %arg13[%c0_51, %c0_52] : memref<256x128xf32, #tpu.memory_space<vmem>>, vector<256x128xf32>
    tpu.vector_store %arg13[%c0_51, %c0_52], %49 {strides = array<i32>} : memref<256x128xf32, #tpu.memory_space<vmem>>, vector<256x128xf32>,
    %c0_53 = arith.constant 0 : index
    %c0_54 = arith.constant 0 : index
    %51 = vector.load %arg13[%c0_53, %c0_54] : memref<256x128xf32, #tpu.memory_space<vmem>>, vector<256x128xf32>
    %52 = vector.shape_cast %51 : vector<256x128xf32> to vector<16x16x128xf32>
    %c1_55 = arith.constant 1 : index
    %c1_56 = arith.constant 1 : index
    %c0_57 = arith.constant 0 : index
    %53 = vector.load %arg11[%c1_55, %c1_56, %c0_57] : memref<18x18x128xf32, #tpu.memory_space<vmem>>, vector<16x16x128xf32>
    tpu.vector_store %arg11[%c1_55, %c1_56, %c0_57], %52 {strides = array<i32>} : memref<18x18x128xf32, #tpu.memory_space<vmem>>, vector<16x16x128xf32>,
    %c0_58 = arith.constant 0 : index
    %c0_59 = arith.constant 0 : index
    %c0_60 = arith.constant 0 : index
    %54 = vector.load %arg11[%c0_58, %c0_59, %c0_60] : memref<18x18x128xf32, #tpu.memory_space<vmem>>, vector<16x16x128xf32>
    %55 = vector.shape_cast %54 : vector<16x16x128xf32> to vector<256x128xf32>
    %56 = arith.truncf %55 : vector<256x128xf32> to vector<256x128xbf16>
    %c0_61 = arith.constant 0 : index
    %c0_62 = arith.constant 0 : index
    %57 = vector.load %arg12[%c0_61, %c0_62] : memref<256x1152xbf16, #tpu.memory_space<vmem>>, vector<256x128xbf16>
    tpu.vector_store %arg12[%c0_61, %c0_62], %56 {strides = array<i32>} : memref<256x1152xbf16, #tpu.memory_space<vmem>>, vector<256x128xbf16>,
    %c0_63 = arith.constant 0 : index
    %c1_64 = arith.constant 1 : index
    %c0_65 = arith.constant 0 : index
    %58 = vector.load %arg11[%c0_63, %c1_64, %c0_65] : memref<18x18x128xf32, #tpu.memory_space<vmem>>, vector<16x16x128xf32>
    %59 = vector.shape_cast %58 : vector<16x16x128xf32> to vector<256x128xf32>
    %60 = arith.truncf %59 : vector<256x128xf32> to vector<256x128xbf16>
    %c0_66 = arith.constant 0 : index
    %c128_67 = arith.constant 128 : index
    %61 = vector.load %arg12[%c0_66, %c128_67] : memref<256x1152xbf16, #tpu.memory_space<vmem>>, vector<256x128xbf16>
    tpu.vector_store %arg12[%c0_66, %c128_67], %60 {strides = array<i32>} : memref<256x1152xbf16, #tpu.memory_space<vmem>>, vector<256x128xbf16>,
    %c0_68 = arith.constant 0 : index
    %c2_69 = arith.constant 2 : index
    %c0_70 = arith.constant 0 : index
    %62 = vector.load %arg11[%c0_68, %c2_69, %c0_70] : memref<18x18x128xf32, #tpu.memory_space<vmem>>, vector<16x16x128xf32>
    %63 = vector.shape_cast %62 : vector<16x16x128xf32> to vector<256x128xf32>
    %64 = arith.truncf %63 : vector<256x128xf32> to vector<256x128xbf16>
    %c0_71 = arith.constant 0 : index
    %c256_72 = arith.constant 256 : index
    %65 = vector.load %arg12[%c0_71, %c256_72] : memref<256x1152xbf16, #tpu.memory_space<vmem>>, vector<256x128xbf16>
    tpu.vector_store %arg12[%c0_71, %c256_72], %64 {strides = array<i32>} : memref<256x1152xbf16, #tpu.memory_space<vmem>>, vector<256x128xbf16>,
    %c1_73 = arith.constant 1 : index
    %c0_74 = arith.constant 0 : index
    %c0_75 = arith.constant 0 : index
    %66 = vector.load %arg11[%c1_73, %c0_74, %c0_75] : memref<18x18x128xf32, #tpu.memory_space<vmem>>, vector<16x16x128xf32>
    %67 = vector.shape_cast %66 : vector<16x16x128xf32> to vector<256x128xf32>
    %68 = arith.truncf %67 : vector<256x128xf32> to vector<256x128xbf16>
    %c0_76 = arith.constant 0 : index
    %c384_77 = arith.constant 384 : index
    %69 = vector.load %arg12[%c0_76, %c384_77] : memref<256x1152xbf16, #tpu.memory_space<vmem>>, vector<256x128xbf16>
    tpu.vector_store %arg12[%c0_76, %c384_77], %68 {strides = array<i32>} : memref<256x1152xbf16, #tpu.memory_space<vmem>>, vector<256x128xbf16>,
    %c1_78 = arith.constant 1 : index
    %c1_79 = arith.constant 1 : index
    %c0_80 = arith.constant 0 : index
    %70 = vector.load %arg11[%c1_78, %c1_79, %c0_80] : memref<18x18x128xf32, #tpu.memory_space<vmem>>, vector<16x16x128xf32>
    %71 = vector.shape_cast %70 : vector<16x16x128xf32> to vector<256x128xf32>
    %72 = arith.truncf %71 : vector<256x128xf32> to vector<256x128xbf16>
    %c0_81 = arith.constant 0 : index
    %c512_82 = arith.constant 512 : index
    %73 = vector.load %arg12[%c0_81, %c512_82] : memref<256x1152xbf16, #tpu.memory_space<vmem>>, vector<256x128xbf16>
    tpu.vector_store %arg12[%c0_81, %c512_82], %72 {strides = array<i32>} : memref<256x1152xbf16, #tpu.memory_space<vmem>>, vector<256x128xbf16>,
    %c1_83 = arith.constant 1 : index
    %c2_84 = arith.constant 2 : index
    %c0_85 = arith.constant 0 : index
    %74 = vector.load %arg11[%c1_83, %c2_84, %c0_85] : memref<18x18x128xf32, #tpu.memory_space<vmem>>, vector<16x16x128xf32>
    %75 = vector.shape_cast %74 : vector<16x16x128xf32> to vector<256x128xf32>
    %76 = arith.truncf %75 : vector<256x128xf32> to vector<256x128xbf16>
    %c0_86 = arith.constant 0 : index
    %c640_87 = arith.constant 640 : index
    %77 = vector.load %arg12[%c0_86, %c640_87] : memref<256x1152xbf16, #tpu.memory_space<vmem>>, vector<256x128xbf16>
    tpu.vector_store %arg12[%c0_86, %c640_87], %76 {strides = array<i32>} : memref<256x1152xbf16, #tpu.memory_space<vmem>>, vector<256x128xbf16>,
    %c2_88 = arith.constant 2 : index
    %c0_89 = arith.constant 0 : index
    %c0_90 = arith.constant 0 : index
    %78 = vector.load %arg11[%c2_88, %c0_89, %c0_90] : memref<18x18x128xf32, #tpu.memory_space<vmem>>, vector<16x16x128xf32>
    %79 = vector.shape_cast %78 : vector<16x16x128xf32> to vector<256x128xf32>
    %80 = arith.truncf %79 : vector<256x128xf32> to vector<256x128xbf16>
    %c0_91 = arith.constant 0 : index
    %c768_92 = arith.constant 768 : index
    %81 = vector.load %arg12[%c0_91, %c768_92] : memref<256x1152xbf16, #tpu.memory_space<vmem>>, vector<256x128xbf16>
    tpu.vector_store %arg12[%c0_91, %c768_92], %80 {strides = array<i32>} : memref<256x1152xbf16, #tpu.memory_space<vmem>>, vector<256x128xbf16>,
    %c2_93 = arith.constant 2 : index
    %c1_94 = arith.constant 1 : index
    %c0_95 = arith.constant 0 : index
    %82 = vector.load %arg11[%c2_93, %c1_94, %c0_95] : memref<18x18x128xf32, #tpu.memory_space<vmem>>, vector<16x16x128xf32>
    %83 = vector.shape_cast %82 : vector<16x16x128xf32> to vector<256x128xf32>
    %84 = arith.truncf %83 : vector<256x128xf32> to vector<256x128xbf16>
    %c0_96 = arith.constant 0 : index
    %c896_97 = arith.constant 896 : index
    %85 = vector.load %arg12[%c0_96, %c896_97] : memref<256x1152xbf16, #tpu.memory_space<vmem>>, vector<256x128xbf16>
    tpu.vector_store %arg12[%c0_96, %c896_97], %84 {strides = array<i32>} : memref<256x1152xbf16, #tpu.memory_space<vmem>>, vector<256x128xbf16>,
    %c2_98 = arith.constant 2 : index
    %c2_99 = arith.constant 2 : index
    %c0_100 = arith.constant 0 : index
    %86 = vector.load %arg11[%c2_98, %c2_99, %c0_100] : memref<18x18x128xf32, #tpu.memory_space<vmem>>, vector<16x16x128xf32>
    %87 = vector.shape_cast %86 : vector<16x16x128xf32> to vector<256x128xf32>
    %88 = arith.truncf %87 : vector<256x128xf32> to vector<256x128xbf16>
    %c0_101 = arith.constant 0 : index
    %c1024_102 = arith.constant 1024 : index
    %89 = vector.load %arg12[%c0_101, %c1024_102] : memref<256x1152xbf16, #tpu.memory_space<vmem>>, vector<256x128xbf16>
    tpu.vector_store %arg12[%c0_101, %c1024_102], %88 {strides = array<i32>} : memref<256x1152xbf16, #tpu.memory_space<vmem>>, vector<256x128xbf16>,
    %c0_103 = arith.constant 0 : index
    %c0_104 = arith.constant 0 : index
    %90 = vector.load %arg12[%c0_103, %c0_104] : memref<256x1152xbf16, #tpu.memory_space<vmem>>, vector<256x1152xbf16>
    %c0_105 = arith.constant 0 : index
    %c0_106 = arith.constant 0 : index
    %91 = vector.load %arg4[%c0_105, %c0_106] : memref<1152x128xbf16, #tpu.memory_space<vmem>>, vector<1152x128xbf16>
    %cst_107 = arith.constant dense<0.000000e+00> : vector<256x128xf32>
    %92 = tpu.matmul %90, %91, %cst_107 {dimension_numbers = #tpu.dot_dimension_numbers<[1], [0], [0], [1], [0, 0, 1, 1], [], []>} : vector<256x1152xbf16>, vector<1152x128xbf16>, vector<256x128xf32> -> vector<256x128xf32>
    %c0_108 = arith.constant 0 : index
    %c0_109 = arith.constant 0 : index
    %93 = vector.load %arg5[%c0_108, %c0_109] : memref<1x128xf32, #tpu.memory_space<vmem>>, vector<1x128xf32>
    %94 = vector.broadcast %93 : vector<1x128xf32> to vector<256x128xf32>
    %95 = arith.addf %92, %94 : vector<256x128xf32>
    %cst_110 = arith.constant 0.000000e+00 : f32
    %96 = vector.broadcast %cst_110 : f32 to vector<256x128xf32>
    %97 = arith.maximumf %95, %96 : vector<256x128xf32>
    %c0_111 = arith.constant 0 : index
    %c0_112 = arith.constant 0 : index
    %98 = vector.load %arg14[%c0_111, %c0_112] : memref<256x128xf32, #tpu.memory_space<vmem>>, vector<256x128xf32>
    tpu.vector_store %arg14[%c0_111, %c0_112], %97 {strides = array<i32>} : memref<256x128xf32, #tpu.memory_space<vmem>>, vector<256x128xf32>,
    %c0_113 = arith.constant 0 : index
    %c0_114 = arith.constant 0 : index
    %99 = vector.load %arg14[%c0_113, %c0_114] : memref<256x128xf32, #tpu.memory_space<vmem>>, vector<256x128xf32>
    %c0_115 = arith.constant 0 : index
    %c0_116 = arith.constant 0 : index
    %100 = vector.load %arg13[%c0_115, %c0_116] : memref<256x128xf32, #tpu.memory_space<vmem>>, vector<256x128xf32>
    %101 = vector.shape_cast %99 : vector<256x128xf32> to vector<16x16x128xf32>
    %c1_117 = arith.constant 1 : index
    %c1_118 = arith.constant 1 : index
    %c0_119 = arith.constant 0 : index
    %102 = vector.load %arg11[%c1_117, %c1_118, %c0_119] : memref<18x18x128xf32, #tpu.memory_space<vmem>>, vector<16x16x128xf32>
    tpu.vector_store %arg11[%c1_117, %c1_118, %c0_119], %101 {strides = array<i32>} : memref<18x18x128xf32, #tpu.memory_space<vmem>>, vector<16x16x128xf32>,
    %c0_120 = arith.constant 0 : index
    %c0_121 = arith.constant 0 : index
    %c0_122 = arith.constant 0 : index
    %103 = vector.load %arg11[%c0_120, %c0_121, %c0_122] : memref<18x18x128xf32, #tpu.memory_space<vmem>>, vector<16x16x128xf32>
    %104 = vector.shape_cast %103 : vector<16x16x128xf32> to vector<256x128xf32>
    %105 = arith.truncf %104 : vector<256x128xf32> to vector<256x128xbf16>
    %c0_123 = arith.constant 0 : index
    %c0_124 = arith.constant 0 : index
    %106 = vector.load %arg12[%c0_123, %c0_124] : memref<256x1152xbf16, #tpu.memory_space<vmem>>, vector<256x128xbf16>
    tpu.vector_store %arg12[%c0_123, %c0_124], %105 {strides = array<i32>} : memref<256x1152xbf16, #tpu.memory_space<vmem>>, vector<256x128xbf16>,
    %c0_125 = arith.constant 0 : index
    %c1_126 = arith.constant 1 : index
    %c0_127 = arith.constant 0 : index
    %107 = vector.load %arg11[%c0_125, %c1_126, %c0_127] : memref<18x18x128xf32, #tpu.memory_space<vmem>>, vector<16x16x128xf32>
    %108 = vector.shape_cast %107 : vector<16x16x128xf32> to vector<256x128xf32>
    %109 = arith.truncf %108 : vector<256x128xf32> to vector<256x128xbf16>
    %c0_128 = arith.constant 0 : index
    %c128_129 = arith.constant 128 : index
    %110 = vector.load %arg12[%c0_128, %c128_129] : memref<256x1152xbf16, #tpu.memory_space<vmem>>, vector<256x128xbf16>
    tpu.vector_store %arg12[%c0_128, %c128_129], %109 {strides = array<i32>} : memref<256x1152xbf16, #tpu.memory_space<vmem>>, vector<256x128xbf16>,
    %c0_130 = arith.constant 0 : index
    %c2_131 = arith.constant 2 : index
    %c0_132 = arith.constant 0 : index
    %111 = vector.load %arg11[%c0_130, %c2_131, %c0_132] : memref<18x18x128xf32, #tpu.memory_space<vmem>>, vector<16x16x128xf32>
    %112 = vector.shape_cast %111 : vector<16x16x128xf32> to vector<256x128xf32>
    %113 = arith.truncf %112 : vector<256x128xf32> to vector<256x128xbf16>
    %c0_133 = arith.constant 0 : index
    %c256_134 = arith.constant 256 : index
    %114 = vector.load %arg12[%c0_133, %c256_134] : memref<256x1152xbf16, #tpu.memory_space<vmem>>, vector<256x128xbf16>
    tpu.vector_store %arg12[%c0_133, %c256_134], %113 {strides = array<i32>} : memref<256x1152xbf16, #tpu.memory_space<vmem>>, vector<256x128xbf16>,
    %c1_135 = arith.constant 1 : index
    %c0_136 = arith.constant 0 : index
    %c0_137 = arith.constant 0 : index
    %115 = vector.load %arg11[%c1_135, %c0_136, %c0_137] : memref<18x18x128xf32, #tpu.memory_space<vmem>>, vector<16x16x128xf32>
    %116 = vector.shape_cast %115 : vector<16x16x128xf32> to vector<256x128xf32>
    %117 = arith.truncf %116 : vector<256x128xf32> to vector<256x128xbf16>
    %c0_138 = arith.constant 0 : index
    %c384_139 = arith.constant 384 : index
    %118 = vector.load %arg12[%c0_138, %c384_139] : memref<256x1152xbf16, #tpu.memory_space<vmem>>, vector<256x128xbf16>
    tpu.vector_store %arg12[%c0_138, %c384_139], %117 {strides = array<i32>} : memref<256x1152xbf16, #tpu.memory_space<vmem>>, vector<256x128xbf16>,
    %c1_140 = arith.constant 1 : index
    %c1_141 = arith.constant 1 : index
    %c0_142 = arith.constant 0 : index
    %119 = vector.load %arg11[%c1_140, %c1_141, %c0_142] : memref<18x18x128xf32, #tpu.memory_space<vmem>>, vector<16x16x128xf32>
    %120 = vector.shape_cast %119 : vector<16x16x128xf32> to vector<256x128xf32>
    %121 = arith.truncf %120 : vector<256x128xf32> to vector<256x128xbf16>
    %c0_143 = arith.constant 0 : index
    %c512_144 = arith.constant 512 : index
    %122 = vector.load %arg12[%c0_143, %c512_144] : memref<256x1152xbf16, #tpu.memory_space<vmem>>, vector<256x128xbf16>
    tpu.vector_store %arg12[%c0_143, %c512_144], %121 {strides = array<i32>} : memref<256x1152xbf16, #tpu.memory_space<vmem>>, vector<256x128xbf16>,
    %c1_145 = arith.constant 1 : index
    %c2_146 = arith.constant 2 : index
    %c0_147 = arith.constant 0 : index
    %123 = vector.load %arg11[%c1_145, %c2_146, %c0_147] : memref<18x18x128xf32, #tpu.memory_space<vmem>>, vector<16x16x128xf32>
    %124 = vector.shape_cast %123 : vector<16x16x128xf32> to vector<256x128xf32>
    %125 = arith.truncf %124 : vector<256x128xf32> to vector<256x128xbf16>
    %c0_148 = arith.constant 0 : index
    %c640_149 = arith.constant 640 : index
    %126 = vector.load %arg12[%c0_148, %c640_149] : memref<256x1152xbf16, #tpu.memory_space<vmem>>, vector<256x128xbf16>
    tpu.vector_store %arg12[%c0_148, %c640_149], %125 {strides = array<i32>} : memref<256x1152xbf16, #tpu.memory_space<vmem>>, vector<256x128xbf16>,
    %c2_150 = arith.constant 2 : index
    %c0_151 = arith.constant 0 : index
    %c0_152 = arith.constant 0 : index
    %127 = vector.load %arg11[%c2_150, %c0_151, %c0_152] : memref<18x18x128xf32, #tpu.memory_space<vmem>>, vector<16x16x128xf32>
    %128 = vector.shape_cast %127 : vector<16x16x128xf32> to vector<256x128xf32>
    %129 = arith.truncf %128 : vector<256x128xf32> to vector<256x128xbf16>
    %c0_153 = arith.constant 0 : index
    %c768_154 = arith.constant 768 : index
    %130 = vector.load %arg12[%c0_153, %c768_154] : memref<256x1152xbf16, #tpu.memory_space<vmem>>, vector<256x128xbf16>
    tpu.vector_store %arg12[%c0_153, %c768_154], %129 {strides = array<i32>} : memref<256x1152xbf16, #tpu.memory_space<vmem>>, vector<256x128xbf16>,
    %c2_155 = arith.constant 2 : index
    %c1_156 = arith.constant 1 : index
    %c0_157 = arith.constant 0 : index
    %131 = vector.load %arg11[%c2_155, %c1_156, %c0_157] : memref<18x18x128xf32, #tpu.memory_space<vmem>>, vector<16x16x128xf32>
    %132 = vector.shape_cast %131 : vector<16x16x128xf32> to vector<256x128xf32>
    %133 = arith.truncf %132 : vector<256x128xf32> to vector<256x128xbf16>
    %c0_158 = arith.constant 0 : index
    %c896_159 = arith.constant 896 : index
    %134 = vector.load %arg12[%c0_158, %c896_159] : memref<256x1152xbf16, #tpu.memory_space<vmem>>, vector<256x128xbf16>
    tpu.vector_store %arg12[%c0_158, %c896_159], %133 {strides = array<i32>} : memref<256x1152xbf16, #tpu.memory_space<vmem>>, vector<256x128xbf16>,
    %c2_160 = arith.constant 2 : index
    %c2_161 = arith.constant 2 : index
    %c0_162 = arith.constant 0 : index
    %135 = vector.load %arg11[%c2_160, %c2_161, %c0_162] : memref<18x18x128xf32, #tpu.memory_space<vmem>>, vector<16x16x128xf32>
    %136 = vector.shape_cast %135 : vector<16x16x128xf32> to vector<256x128xf32>
    %137 = arith.truncf %136 : vector<256x128xf32> to vector<256x128xbf16>
    %c0_163 = arith.constant 0 : index
    %c1024_164 = arith.constant 1024 : index
    %138 = vector.load %arg12[%c0_163, %c1024_164] : memref<256x1152xbf16, #tpu.memory_space<vmem>>, vector<256x128xbf16>
    tpu.vector_store %arg12[%c0_163, %c1024_164], %137 {strides = array<i32>} : memref<256x1152xbf16, #tpu.memory_space<vmem>>, vector<256x128xbf16>,
    %c0_165 = arith.constant 0 : index
    %c0_166 = arith.constant 0 : index
    %139 = vector.load %arg12[%c0_165, %c0_166] : memref<256x1152xbf16, #tpu.memory_space<vmem>>, vector<256x1152xbf16>
    %c0_167 = arith.constant 0 : index
    %c0_168 = arith.constant 0 : index
    %140 = vector.load %arg6[%c0_167, %c0_168] : memref<1152x128xbf16, #tpu.memory_space<vmem>>, vector<1152x128xbf16>
    %cst_169 = arith.constant dense<0.000000e+00> : vector<256x128xf32>
    %141 = tpu.matmul %139, %140, %cst_169 {dimension_numbers = #tpu.dot_dimension_numbers<[1], [0], [0], [1], [0, 0, 1, 1], [], []>} : vector<256x1152xbf16>, vector<1152x128xbf16>, vector<256x128xf32> -> vector<256x128xf32>
    %c0_170 = arith.constant 0 : index
    %c0_171 = arith.constant 0 : index
    %142 = vector.load %arg7[%c0_170, %c0_171] : memref<1x128xf32, #tpu.memory_space<vmem>>, vector<1x128xf32>
    %143 = vector.broadcast %142 : vector<1x128xf32> to vector<256x128xf32>
    %144 = arith.addf %141, %143 : vector<256x128xf32>
    %145 = arith.addf %144, %100 : vector<256x128xf32>
    %cst_172 = arith.constant 0.000000e+00 : f32
    %146 = vector.broadcast %cst_172 : f32 to vector<256x128xf32>
    %147 = arith.maximumf %145, %146 : vector<256x128xf32>
    %c0_173 = arith.constant 0 : index
    %c0_174 = arith.constant 0 : index
    %148 = vector.load %arg14[%c0_173, %c0_174] : memref<256x128xf32, #tpu.memory_space<vmem>>, vector<256x128xf32>
    tpu.vector_store %arg14[%c0_173, %c0_174], %147 {strides = array<i32>} : memref<256x128xf32, #tpu.memory_space<vmem>>, vector<256x128xf32>,
    %c0_175 = arith.constant 0 : index
    %c0_176 = arith.constant 0 : index
    %149 = vector.load %arg14[%c0_175, %c0_176] : memref<256x128xf32, #tpu.memory_space<vmem>>, vector<256x128xf32>
    %150 = arith.truncf %149 : vector<256x128xf32> to vector<256x128xbf16>
    %c0_177 = arith.constant 0 : index
    %c0_178 = arith.constant 0 : index
    %151 = vector.load %arg8[%c0_177, %c0_178] : memref<128x128xbf16, #tpu.memory_space<vmem>>, vector<128x128xbf16>
    %cst_179 = arith.constant dense<0.000000e+00> : vector<256x128xf32>
    %152 = tpu.matmul %150, %151, %cst_179 {dimension_numbers = #tpu.dot_dimension_numbers<[1], [0], [0], [1], [0, 0, 1, 1], [], []>} : vector<256x128xbf16>, vector<128x128xbf16>, vector<256x128xf32> -> vector<256x128xf32>
    %cst_180 = arith.constant dense<0.000000e+00> : vector<128xf32>
    %153 = vector.multi_reduction <add>, %152, %cst_180 [0] : vector<256x128xf32> to vector<128xf32>
    %154 = vector.shape_cast %153 : vector<128xf32> to vector<1x128xf32>
    %cst_181 = arith.constant 3.906250e-03 : f32
    %155 = vector.broadcast %cst_181 : f32 to vector<1x128xf32>
    %156 = arith.mulf %154, %155 : vector<1x128xf32>
    %c0_182 = arith.constant 0 : index
    %c0_183 = arith.constant 0 : index
    %157 = vector.load %arg9[%c0_182, %c0_183] : memref<1x128xf32, #tpu.memory_space<vmem>>, vector<1x128xf32>
    %158 = arith.addf %156, %157 : vector<1x128xf32>
    %c0_184 = arith.constant 0 : index
    %c0_185 = arith.constant 0 : index
    %c0_186 = arith.constant 0 : index
    %159 = vector.load %arg10[%c0_184, %c0_185, %c0_186] : memref<1x1x128xf32, #tpu.memory_space<vmem>>, vector<1x1x128xf32>
    %160 = vector.shape_cast %159 : vector<1x1x128xf32> to vector<1x128xf32>
    %161 = vector.shape_cast %158 : vector<1x128xf32> to vector<1x1x128xf32>
    tpu.vector_store %arg10[%c0_184, %c0_185, %c0_186], %161 {strides = array<i32>} : memref<1x1x128xf32, #tpu.memory_space<vmem>>, vector<1x1x128xf32>,
    return
  }
  func.func @transform_0(%arg0: i32) -> (i32, i32, i32) {
    %c0_i32 = arith.constant 0 : i32
    %c0_i32_0 = arith.constant 0 : i32
    %c0_i32_1 = arith.constant 0 : i32
    return %arg0, %c0_i32, %c0_i32_0 : i32, i32, i32
  }
  func.func @transform_1(%arg0: i32) -> (i32, i32) {
    %c0_i32 = arith.constant 0 : i32
    %c0_i32_0 = arith.constant 0 : i32
    %c0_i32_1 = arith.constant 0 : i32
    return %c0_i32, %c0_i32_0 : i32, i32
  }
  func.func @transform_2(%arg0: i32) -> (i32, i32) {
    %c0_i32 = arith.constant 0 : i32
    %c0_i32_0 = arith.constant 0 : i32
    %c0_i32_1 = arith.constant 0 : i32
    return %c0_i32, %c0_i32_0 : i32, i32
  }
  func.func @transform_3(%arg0: i32) -> (i32, i32) {
    %c0_i32 = arith.constant 0 : i32
    %c0_i32_0 = arith.constant 0 : i32
    %c0_i32_1 = arith.constant 0 : i32
    return %c0_i32, %c0_i32_0 : i32, i32
  }
  func.func @transform_4(%arg0: i32) -> (i32, i32) {
    %c0_i32 = arith.constant 0 : i32
    %c0_i32_0 = arith.constant 0 : i32
    %c0_i32_1 = arith.constant 0 : i32
    return %c0_i32, %c0_i32_0 : i32, i32
  }
  func.func @transform_5(%arg0: i32) -> (i32, i32) {
    %c0_i32 = arith.constant 0 : i32
    %c0_i32_0 = arith.constant 0 : i32
    %c0_i32_1 = arith.constant 0 : i32
    return %c0_i32, %c0_i32_0 : i32, i32
  }
  func.func @transform_6(%arg0: i32) -> (i32, i32) {
    %c0_i32 = arith.constant 0 : i32
    %c0_i32_0 = arith.constant 0 : i32
    %c0_i32_1 = arith.constant 0 : i32
    return %c0_i32, %c0_i32_0 : i32, i32
  }
  func.func @transform_7(%arg0: i32) -> (i32, i32) {
    %c0_i32 = arith.constant 0 : i32
    %c0_i32_0 = arith.constant 0 : i32
    %c0_i32_1 = arith.constant 0 : i32
    return %c0_i32, %c0_i32_0 : i32, i32
  }
  func.func @transform_8(%arg0: i32) -> (i32, i32) {
    %c0_i32 = arith.constant 0 : i32
    %c0_i32_0 = arith.constant 0 : i32
    %c0_i32_1 = arith.constant 0 : i32
    return %c0_i32, %c0_i32_0 : i32, i32
  }
  func.func @transform_9(%arg0: i32) -> (i32, i32, i32) {
    %c0_i32 = arith.constant 0 : i32
    %c0_i32_0 = arith.constant 0 : i32
    %c0_i32_1 = arith.constant 0 : i32
    return %arg0, %c0_i32, %c0_i32_0 : i32, i32, i32
  }
}

</mosaic_0001>

<bundles_post_ra>
// kernel: _forward.1
= control target key start
LH: loop header
LB: loop body
LE: loop exit
PB: predicated region body
PF: predicated region fallthrough
CT: control target
= control target key end

     0   :  { %14 = vsyncpa [#allocation7], 0  ;;  %s12006_s0 = inlined_call_operand.vmem [shape: f32[2,256,128], index: 0, kind: input, shape index: {}]   ;;  %s12007_s1 = inlined_call_operand.vmem [shape: bf16[1152,128], index: 1, kind: input, shape index: {}]   ;;  %s12008_s2 = inlined_call_operand.vmem [shape: f32[1,128], index: 2, kind: input, shape index: {}, may-alias: {2,4,6}]   ;;  %s12009_s3 = inlined_call_operand.vmem [shape: bf16[1152,128], index: 3, kind: input, shape index: {}]   ;;  %s12010_s4 = inlined_call_operand.vmem [shape: f32[1,128], index: 4, kind: input, shape index: {}, may-alias: {2,4,6}]   ;;  %s12011_s5 = inlined_call_operand.hbm [shape: bf16[1152,128], index: 5, kind: input, shape index: {}]   ;;  %s12012_s6 = inlined_call_operand.vmem [shape: f32[1,128], index: 6, kind: input, shape index: {}, may-alias: {2,4,6}]   ;;  %s12013_s7 = inlined_call_operand.vmem [shape: bf16[128,128], index: 7, kind: input, shape index: {}]   ;;  %s12014_s8 = inlined_call_operand.vmem [shape: f32[1,128], index: 8, kind: input, shape index: {}]   ;;  %s12015_s9 = inlined_call_operand.hbm [shape: f32[2,1,128], index: 9, kind: output, shape index: {}]  }
   0x1   :  { %15 = vsyncpa [#allocation8], 0 }
   0x2   :  { %17 = vsyncpa [#allocation8 + $0x1], 0  ;;  %s9871_s30 = smov 0   ;;  %s9873_s10 = smov 0  }
   0x3   :  { %s9875_s11 = smov 0   ;;  %s9877_s12 = smov 0  }
   0x4 LB: > { %s9892_s13 = sadd.s32 4294967295, %s9813_s12   ;;  %s7568_s14 = sadd.s32 4294967294, %s9813_s12   ;;  %s9813_s12 = sphi %s9877_s12, %s12101_s12   ;;  %s9809_s11 = sphi %s9875_s11, %s12100_s11   ;;  %s9805_s10 = sphi %s9873_s10, %s12099_s10   ;;  %s9801_s30 = sphi %s9871_s30, %s12098_s30  }
   0x5   : > { %s9896_s15 = sadd.s32 1, %s9813_s12   ;;  %s224_s16 = sadd.s32 1, %s9809_s11 }
   0x6   : > { %s221_s17 = ssub.s32 %s9813_s12, %s9896_s15  ;;  %p234_p0 = scmp.ne.s32.totalorder %s9809_s11, %s9805_s10 }
   0x7   : > { %p222_p1 = scmp.eq.s32.totalorder %s221_s17, 0  ;;  %p235_p2 = scmp.eq.s32.totalorder %s9892_s13, 1 }
   0x8   : > { %p240_p3 = scmp.ne.s32.totalorder %s9805_s10, %s9801_s30  ;;  %p241_p4 = scmp.eq.s32.totalorder %s7568_s14, 1 }
   0x9   : > { %s9907_s18 = scalar_select %p222_p1, %s9809_s11, %s224_s16  }
   0xa   : > { %p9909_p5 = por %p235_p2, %p234_p0  ;;  %p9913_p6 = por %p241_p4, %p240_p3 }
   0xb   : > { %p7569_p7 = scmp.ge.s32.totalorder %s9813_s12, 1  ;;  %p248_p8 = scmp.lt.s32.totalorder %s9813_s12, 3 }
   0xc   : > { %s12043_s19 = scalar_select %p9909_p5, 1, 0 }
   0xd   : > { %s12044_s20 = scalar_select %p9913_p6, 1, 0 }
   0xe   : > { %p12016_p9 = scmp.eq.s32.totalorder %s9892_s13, 0  ;;  %p9920_p10 = pnand %p7569_p7, %p248_p8 }
   0xf   : > { %s9815_s22 = smov [#allocation6]   ;;  %s9719_s27 = scalar_lea.hbm %s12011_s5, 9216 }
  0x10   : > { %s12045_s21 = scalar_select %p9920_p10, 1, 0 }
  0x11   : > { %s272_s23 = sshll.u32 %s9815_s22, 4  ;;  %p9445_p11 = pneg %p9920_p10  ;;  %s273_s23 = int_to_ptr.vmem [resolvable:$true] %s272_s23 }
  0x12   : > { %p9720_p13 = scmp.ne.s32.totalorder %s12011_s5, %s9719_s27  ;;  %p9726_p3 = scmp.lt.u32.totalorder %s9719_s27, %s12011_s5 }
  0x13   : > { %p9928_p12 = pnand %p12016_p9, %p9445_p11 }
  0x15   : > { %p9721_p0 = pneg %p9928_p12 }
  0x17   : > { %p9722_p1 = pnand %p9721_p0, %p9720_p13 }
  0x19   : > { %p9723_p2 = pneg %p9722_p1 }
  0x1b   : > { %p9728_p4 = pnand %p9726_p3, %p9723_p2 }
  0x1d   : > { %9731 = shalt.err (!%p9728_p4)
}
  0x1e   : > { %s9732_s17 = scalar_lea.vmem %s273_s23, 9216  ;;  %p9740_p9 = scmp.lt.s32.totalorder %s273_s23, %s273_s23 }
  0x1f   : > { %p9733_p7 = scmp.ne.s32.totalorder %s273_s23, %s9732_s17  ;;  %p9741_p6 = scmp.lt.s32.totalorder %s9732_s17, %s9732_s17 }
  0x21   : > { %p9735_p8 = pnand %p9733_p7, %p9721_p0  ;;  %p9742_p5 = por %p9741_p6, %p9740_p9 }
  0x23   : > { %p9736_p11 = pneg %p9735_p8 }
  0x25   : > { %p9743_p10 = pnand %p9742_p5, %p9736_p11 }
  0x27   : > { %9746 = shalt.err (!%p9743_p10)
}
  0x28   : > { %s9816_s22 = smov 64   ;;  %s9817_s25 = smov 4  }
  0x29   : > { %9448 = dma.hbm_to_vmem [thread:$0]  (!%p9928_p12), %s12011_s5, 9216, %s273_s23, [#allocation7], %s9816_s22, %s9816_s22, %s9817_s25  }
  0x2a   : > { %p12047_p13 = scmp.ne.s32.totalorder %s12045_s21, 0 }
  0x2c   : > { %305 = sbr.rel (%p12047_p13) target bundleno = 1828 (0x724), region = 56 }
  0x33   : > { %p12048_p1 = scmp.eq.s32.totalorder %s9892_s13, 0 }
  0x35   : > { %9792 = dma.done.wait (%p12048_p1), [#allocation7], 9216   ;;  %p12049_p0 = pmov %p12048_p1 }
  0x36   : > { %v9818_v0 = vmov 0.0   ;;  %v9492_v1 = vld [vmem:[%s12007_s1 + $0x40] sm:$0xff]   ;;  %v9496_v5 = vld [vmem:[%s12007_s1 + $0x48] sm:$0xff]   ;;  %v9500_v9 = vld [vmem:[%s12007_s1 + $0x50] sm:$0xff]   ;;  %p340_p5 = scmp.lt.s32.totalorder %s9892_s13, 1  ;;  %v9819_v39 = vmov 0.0|0.0  }
  0x37   : > { %9794 = vsyncadd (%p12049_p0), [#allocation7], 4294958080  ;;  %346 = vst [vmem:[#allocation2] sm:$0xff] %v9818_v0  ;;  %v9493_v2 = vld [vmem:[%s12007_s1] sm:$0xff]   ;;  %7807 = vmatprep.subr.bf16.mxu0 %v9492_v1  ;;  %v9497_v6 = vld [vmem:[%s12007_s1 + $0x8] sm:$0xff]   ;;  %s338_s22 = sand.u32 1, %s9805_s10  }
  0x38   : > { %347 = vst [vmem:[#allocation2 + $0x8] sm:$0xff] %v9818_v0  ;;  %348 = vst [vmem:[#allocation2 + $0x10] sm:$0x3] %v9818_v0  ;;  %v9494_v3 = vld [vmem:[%s12007_s1 + $0xc0] sm:$0xff]   ;;  %7808 = vmatpush3.bf16.msra.mxu0 %v9493_v2  ;;  %v9498_v7 = vld [vmem:[%s12007_s1 + $0xc8] sm:$0xff]   ;;  %s341_s21 = scalar_select %p340_p5, %s9892_s13, 1 }
  0x39   : > { %349 = vst [vmem:[#allocation2 + $0x18] sm:$0xff] %v9818_v0  ;;  %350 = vst [vmem:[#allocation2 + $0x20] sm:$0xff] %v9818_v0  ;;  %v9495_v4 = vld [vmem:[%s12007_s1 + $0x80] sm:$0xff]   ;;  %7919 = vmatprep.subr.bf16.mxu1 %v9494_v3  ;;  %7809 = vmatprep.subr.bf16.mxu0 %v9496_v5  ;;  %v9499_v8 = vld [vmem:[%s12007_s1 + $0x88] sm:$0xff]   ;;  %s7489_s14 = scalar_lea.sflag [#allocation8], %s338_s22  ;;  %p12096_p9 = scmp.ne.s32.totalorder %s12043_s19, 0 }
  0x3a   : > { %351 = vst [vmem:[#allocation2 + $0x28] sm:$0x3] %v9818_v0  ;;  %352 = vst [vmem:[#allocation2 + $0x30] sm:$0xff] %v9818_v0  ;;  %7920 = vmatpush3.bf16.msra.mxu1 %v9495_v4  ;;  %v9501_v10 = vld [vmem:[%s12007_s1 + $0x10] sm:$0xff]   ;;  %v9504_v13 = vld [vmem:[%s12007_s1 + $0x58] sm:$0xff]   ;;  %s7806_s25 = sshll.u32 %s341_s21, 8 }
  0x3b   : > { %353 = vst [vmem:[#allocation2 + $0x38] sm:$0xff] %v9818_v0  ;;  %354 = vst [vmem:[#allocation2 + $0x40] sm:$0x3] %v9818_v0  ;;  %7921 = vmatprep.subr.bf16.mxu1 %v9498_v7  ;;  %v9502_v11 = vld [vmem:[%s12007_s1 + $0xd0] sm:$0xff]   ;;  %v9505_v14 = vld [vmem:[%s12007_s1 + $0x18] sm:$0xff]   ;;  %s10052_s17 = scalar_lea.vmem %s12006_s0, %s7806_s25  ;;  %s7803_s25 = sshll.u32 %s9892_s13, 4 }
  0x3c   : > { %355 = vst [vmem:[#allocation2 + $0x48] sm:$0xff] %v9818_v0  ;;  %356 = vst [vmem:[#allocation2 + $0x50] sm:$0xff] %v9818_v0  ;;  %7810 = vmatpush3.bf16.msra.mxu0 %v9497_v6  ;;  %v9503_v12 = vld [vmem:[%s12007_s1 + $0x90] sm:$0xff]   ;;  %v9506_v15 = vld [vmem:[%s12007_s1 + $0xd8] sm:$0xff]   ;;  %s11964_s29 = scalar_lea.hbm %s12015_s9, %s7803_s25  ;;  %s9820_s13 = smov [#allocation9]  }
  0x3d   : > { %357 = vst [vmem:[#allocation2 + $0x58] sm:$0x3] %v9818_v0  ;;  %358 = vst [vmem:[#allocation2 + $0x60] sm:$0xff] %v9818_v0  ;;  %7811 = vmatprep.subr.bf16.mxu0 %v9500_v9  ;;  %v9507_v16 = vld [vmem:[%s12007_s1 + $0x98] sm:$0xff]   ;;  %v9508_v17 = vld [vmem:[%s12007_s1 + $0x60] sm:$0xff]   ;;  %s9751_s21 = sshll.u32 %s9820_s13, 4  ;;  %s9752_s21 = int_to_ptr.vmem [resolvable:$false] %s9751_s21 }
  0x3e   : > { %359 = vst [vmem:[#allocation2 + $0x68] sm:$0xff] %v9818_v0  ;;  %360 = vst [vmem:[#allocation2 + $0x70] sm:$0x3] %v9818_v0  ;;  %7922 = vmatpush3.bf16.msra.mxu1 %v9499_v8  ;;  %v9509_v18 = vld [vmem:[%s12007_s1 + $0x20] sm:$0xff]   ;;  %v9512_v21 = vld [vmem:[%s12007_s1 + $0x68] sm:$0xff]   ;;  %s9753_s26 = scalar_lea.vmem %s9752_s21, 32 }
  0x3f   : > { %361 = vst [vmem:[#allocation2 + $0x78] sm:$0xff] %v9818_v0  ;;  %362 = vst [vmem:[#allocation2 + $0x80] sm:$0xff] %v9818_v0  ;;  %7923 = vmatprep.subr.bf16.mxu1 %v9502_v11  ;;  %v9510_v19 = vld [vmem:[%s12007_s1 + $0xe0] sm:$0xff]   ;;  %v9513_v22 = vld [vmem:[%s12007_s1 + $0x28] sm:$0xff]  }
  0x40   : > { %363 = vst [vmem:[#allocation2 + $0x88] sm:$0x3] %v9818_v0  ;;  %364 = vst [vmem:[#allocation2 + $0x90] sm:$0xff] %v9818_v0  ;;  %7812 = vmatpush3.bf16.msra.mxu0 %v9501_v10  ;;  %v9511_v20 = vld [vmem:[%s12007_s1 + $0xa0] sm:$0xff]   ;;  %v9514_v23 = vld [vmem:[%s12007_s1 + $0xe8] sm:$0xff]  }
  0x41   : > { %365 = vst [vmem:[#allocation2 + $0x98] sm:$0xff] %v9818_v0  ;;  %366 = vst [vmem:[#allocation2 + $0xa0] sm:$0x3] %v9818_v0  ;;  %7813 = vmatprep.subr.bf16.mxu0 %v9504_v13  ;;  %v9515_v24 = vld [vmem:[%s12007_s1 + $0xa8] sm:$0xff]   ;;  %v9516_v25 = vld [vmem:[%s12007_s1 + $0x70] sm:$0xff]  }
  0x42   : > { %367 = vst [vmem:[#allocation2 + $0xa8] sm:$0xff] %v9818_v0  ;;  %368 = vst [vmem:[#allocation2 + $0xb0] sm:$0xff] %v9818_v0  ;;  %7924 = vmatpush3.bf16.msra.mxu1 %v9503_v12  ;;  %v9517_v26 = vld [vmem:[%s12007_s1 + $0x30] sm:$0xff]   ;;  %v9520_v29 = vld [vmem:[%s12007_s1 + $0x78] sm:$0xff]  }
  0x43   : > { %369 = vst [vmem:[#allocation2 + $0xb8] sm:$0x3] %v9818_v0  ;;  %370 = vst [vmem:[#allocation2 + $0xc0] sm:$0xff] %v9818_v0  ;;  %7925 = vmatprep.subr.bf16.mxu1 %v9506_v15  ;;  %v9518_v27 = vld [vmem:[%s12007_s1 + $0xf0] sm:$0xff]   ;;  %v9521_v30 = vld [vmem:[%s12007_s1 + $0x38] sm:$0xff]  }
  0x44   : > { %371 = vst [vmem:[#allocation2 + $0xc8] sm:$0xff] %v9818_v0  ;;  %372 = vst [vmem:[#allocation2 + $0xd0] sm:$0x3] %v9818_v0  ;;  %7814 = vmatpush3.bf16.msra.mxu0 %v9505_v14  ;;  %v9519_v28 = vld [vmem:[%s12007_s1 + $0xb0] sm:$0xff]   ;;  %v9522_v31 = vld [vmem:[%s12007_s1 + $0xf8] sm:$0xff]  }
  0x45   : > { %373 = vst [vmem:[#allocation2 + $0xd8] sm:$0xff] %v9818_v0  ;;  %374 = vst [vmem:[#allocation2 + $0xe0] sm:$0xff] %v9818_v0  ;;  %7815 = vmatprep.subr.bf16.mxu0 %v9508_v17  ;;  %v529_v32 = vld [vmem:[#allocation2 + $0x1] sm:$0xff]  ;;  %v530_v33 = vld [vmem:[#allocation2 + $0x9] sm:$0xff] }
  0x46   : > { %375 = vst [vmem:[#allocation2 + $0xe8] sm:$0x3] %v9818_v0  ;;  %376 = vst [vmem:[#allocation2 + $0xf0] sm:$0xff] %v9818_v0  ;;  %7926 = vmatpush3.bf16.msra.mxu1 %v9507_v16  ;;  %v561_v34 = vpack.c.bf16 %v530_v33, %v529_v32  ;;  %v9523_v35 = vld [vmem:[%s12007_s1 + $0xb8] sm:$0xff]   ;;  %v9524_v36 = vld [vmem:[%s12007_s1 + $0x140] sm:$0xff]  }
  0x47   : > { %377 = vst [vmem:[#allocation2 + $0xf8] sm:$0xff] %v9818_v0  ;;  %378 = vst [vmem:[#allocation2 + $0x100] sm:$0x3] %v9818_v0  ;;  %7927 = vmatprep.subr.bf16.mxu1 %v9510_v19  ;;  %v400_v37 = vld [vmem:[%s10052_s17] sm:$0xff]  ;;  %v401_v38 = vld [vmem:[%s10052_s17 + $0x8] sm:$0xff] }
  0x48   : > { %379 = vst [vmem:[#allocation2 + $0x108] sm:$0xff] %v9818_v0  ;;  %380 = vst [vmem:[#allocation2 + $0x110] sm:$0xff] %v9818_v0  ;;  %7816 = vmatpush3.bf16.msra.mxu0 %v9509_v18  ;;  %1801 = vmatprep.mubr.bf16.mxu0 %v561_v34  ;;  %v9525_v40 = vld [vmem:[%s12007_s1 + $0x100] sm:$0xff]   ;;  %v10065_v41 = vpack.c.bf16 %v401_v38, %v400_v37  ;;  %v402_v42 = vld [vmem:[%s10052_s17 + $0x10] sm:$0xff] }
  0x49   : > { %381 = vst [vmem:[#allocation2 + $0x118] sm:$0x3] %v9818_v0  ;;  %382 = vst [vmem:[#allocation2 + $0x120] sm:$0xff] %v9818_v0  ;;  %7817 = vmatprep.subr.bf16.mxu0 %v9512_v21  ;;  %v403_v43 = vld [vmem:[%s10052_s17 + $0x18] sm:$0xff]  ;;  %v593_v44 = vld [vmem:[#allocation2 + $0x2] sm:$0xff] }
  0x4a   : > { %383 = vst [vmem:[#allocation2 + $0x128] sm:$0xff] %v9818_v0  ;;  %384 = vst [vmem:[#allocation2 + $0x130] sm:$0x3] %v9818_v0  ;;  %7928 = vmatpush3.bf16.msra.mxu1 %v9511_v20  ;;  %v594_v45 = vld [vmem:[#allocation2 + $0xa] sm:$0xff]  ;;  %v404_v47 = vld [vmem:[%s10052_s17 + $0x20] sm:$0xff]  ;;  %v10095_v58 = vpack.c.bf16 %v403_v43, %v402_v42 }
  0x4b   : > { %385 = vst [vmem:[#allocation2 + $0x138] sm:$0xff] %v9818_v0  ;;  %386 = vst [vmem:[#allocation2 + $0x140] sm:$0xff] %v9818_v0  ;;  %7929 = vmatprep.subr.bf16.mxu1 %v9514_v23  ;;  %v9526_v46 = vld [vmem:[%s12007_s1 + $0x148] sm:$0xff]   ;;  %v10079_v50 = vld [vmem:[%s10052_s17 + $0x30] sm:$0xff]  ;;  %v625_v57 = vpack.c.bf16 %v594_v45, %v593_v44 }
  0x4c   : > { %387 = vst [vmem:[#allocation2 + $0x148] sm:$0x3] %v9818_v0  ;;  %388 = vst [vmem:[#allocation2 + $0x150] sm:$0xff] %v9818_v0  ;;  %7818 = vmatpush3.bf16.msra.mxu0 %v9513_v22  ;;  %v405_v48 = vld [vmem:[%s10052_s17 + $0x28] sm:$0xff]  ;;  %v10082_v51 = vld [vmem:[%s10052_s17 + $0x38] sm:$0xff] }
  0x4d   : > { %389 = vst [vmem:[#allocation2 + $0x158] sm:$0xff] %v9818_v0  ;;  %390 = vst [vmem:[#allocation2 + $0x160] sm:$0x3] %v9818_v0  ;;  %7819 = vmatprep.subr.bf16.mxu0 %v9516_v25  ;;  %v9527_v49 = vld [vmem:[%s12007_s1 + $0x108] sm:$0xff]   ;;  %v9528_v52 = vld [vmem:[%s12007_s1 + $0x150] sm:$0xff]   ;;  %v10116_v7 = vpack.c.bf16 %v405_v48, %v404_v47 }
  0x4e   : > { %391 = vst [vmem:[#allocation2 + $0x168] sm:$0xff] %v9818_v0  ;;  %392 = vst [vmem:[#allocation2 + $0x170] sm:$0xff] %v9818_v0  ;;  %7930 = vmatpush3.bf16.msra.mxu1 %v9515_v24  ;;  %v10090_v54 = vld [vmem:[%s10052_s17 + $0x40] sm:$0xff]  ;;  %v10093_v55 = vld [vmem:[%s10052_s17 + $0x48] sm:$0xff] }
  0x4f   : > { %393 = vst [vmem:[#allocation2 + $0x178] sm:$0x3] %v9818_v0  ;;  %394 = vst [vmem:[#allocation2 + $0x180] sm:$0xff] %v9818_v0  ;;  %7931 = vmatprep.subr.bf16.mxu1 %v9518_v27  ;;  %v9529_v60 = vld [vmem:[%s12007_s1 + $0x110] sm:$0xff]   ;;  %v10111_v5 = vld [vmem:[%s10052_s17 + $0x58] sm:$0xff] }
  0x50   : > { %395 = vst [vmem:[#allocation2 + $0x188] sm:$0xff] %v9818_v0  ;;  %396 = vst [vmem:[#allocation2 + $0x190] sm:$0x3] %v9818_v0  ;;  %7820 = vmatpush3.bf16.msra.mxu0 %v9517_v26  ;;  %v9530_v8 = vld [vmem:[%s12007_s1 + $0x158] sm:$0xff]   ;;  %v10124_v10 = vld [vmem:[%s10052_s17 + $0x60] sm:$0xff]  ;;  %v10170_v26 = vpack.c.bf16 %v10082_v51, %v10079_v50 }
  0x51   : > { %397 = vst [vmem:[#allocation2 + $0x198] sm:$0xff] %v9818_v0  ;;  %398 = vst [vmem:[#allocation2 + $0x1a0] sm:$0xff] %v9818_v0  ;;  %7821 = vmatprep.subr.bf16.mxu0 %v9520_v29  ;;  %v10127_v11 = vld [vmem:[%s10052_s17 + $0x68] sm:$0xff]  ;;  %v9531_v12 = vld [vmem:[%s12007_s1 + $0x118] sm:$0xff]  }
  0x52   : > { %399 = vst [vmem:[#allocation2 + $0x1a8] sm:$0x3] %v9818_v0  ;;  %7932 = vmatpush3.bf16.msra.mxu1 %v9519_v28  ;;  %433 = vst [vmem:[#allocation2 + $0x19] sm:$0xff] %v400_v37  ;;  %v10105_v0 = vld [vmem:[%s10052_s17 + $0x50] sm:$0xff]  ;;  %v10139_v16 = vld [vmem:[%s10052_s17 + $0x78] sm:$0xff] }
  0x53   : > { %7933 = vmatprep.subr.bf16.mxu1 %v9522_v31  ;;  %434 = vst [vmem:[#allocation2 + $0x21] sm:$0xff] %v401_v38  ;;  %435 = vst [vmem:[#allocation2 + $0x31] sm:$0xff] %v402_v42  ;;  %v10135_v13 = vld [vmem:[%s10052_s17 + $0x70] sm:$0xff]  ;;  %v9532_v17 = vld [vmem:[%s12007_s1 + $0x160] sm:$0xff]   ;;  %v10202_v38 = vpack.c.bf16 %v10093_v55, %v10090_v54 }
  0x54   : > { %7822 = vmatpush3.bf16.msra.mxu0 %v9521_v30  ;;  %436 = vst [vmem:[#allocation2 + $0x39] sm:$0xff] %v403_v43  ;;  %437 = vst [vmem:[#allocation2 + $0x49] sm:$0xff] %v404_v47  ;;  %v10149_v18 = vld [vmem:[%s10052_s17 + $0x80] sm:$0xff]  ;;  %v10153_v19 = vld [vmem:[%s10052_s17 + $0x88] sm:$0xff] }
  0x55   : > { %8031 = vmatprep.subr.bf16.mxu0 %v9524_v36  ;;  %438 = vst [vmem:[#allocation2 + $0x51] sm:$0xff] %v405_v48  ;;  %439 = vst [vmem:[#allocation2 + $0x61] sm:$0xff] %v10079_v50  ;;  %v9533_v22 = vld [vmem:[%s12007_s1 + $0x120] sm:$0xff]   ;;  %v10161_v23 = vld [vmem:[%s10052_s17 + $0x90] sm:$0xff] }
  0x56   : > { %7934 = vmatpush3.bf16.msra.mxu1 %v9523_v35  ;;  %440 = vst [vmem:[#allocation2 + $0x69] sm:$0xff] %v10082_v51  ;;  %441 = vst [vmem:[#allocation2 + $0x79] sm:$0xff] %v10090_v54  ;;  %v10164_v24 = vld [vmem:[%s10052_s17 + $0x98] sm:$0xff]  ;;  %v9534_v27 = vld [vmem:[%s12007_s1 + $0x168] sm:$0xff]   ;;  %v10241_v54 = vpack.c.bf16 %v10111_v5, %v10105_v0 }
  0x57   : > { %1802 = vmatmul.mubr.bf16.vlgmr.msra.gmra.mrb[0].mxu0 %v9819_v39  ;;  %442 = vst [vmem:[#allocation2 + $0x81] sm:$0xff] %v10093_v55  ;;  %443 = vst [vmem:[#allocation2 + $0x91] sm:$0xff] %v10105_v0  ;;  %v10180_v29 = vld [vmem:[%s10052_s17 + $0xa0] sm:$0xff]  ;;  %v10187_v31 = vld [vmem:[%s10052_s17 + $0xa8] sm:$0xff] }
  0x58   : > { %8032 = vmatpush3.bf16.msra.mxu0 %v9525_v40  ;;  %1809 = vmatprep.mubr.bf16.mxu0 %v10065_v41  ;;  %444 = vst [vmem:[#allocation2 + $0x99] sm:$0xff] %v10111_v5  ;;  %445 = vst [vmem:[#allocation2 + $0xa9] sm:$0xff] %v10124_v10  ;;  %v9535_v35 = vld [vmem:[%s12007_s1 + $0x128] sm:$0xff]   ;;  %v10195_v36 = vld [vmem:[%s10052_s17 + $0xb0] sm:$0xff] }
  0x59   : > { %8033 = vmatprep.subr.bf16.mxu0 %v9526_v46  ;;  %v657_v53 = vld [vmem:[#allocation2 + $0x18] sm:$0xff]  ;;  %446 = vst [vmem:[#allocation2 + $0xb1] sm:$0xff] %v10127_v11  ;;  %447 = vst [vmem:[#allocation2 + $0xc1] sm:$0xff] %v10135_v13  ;;  %v9536_v42 = vld [vmem:[%s12007_s1 + $0x170] sm:$0xff]  }
  0x5a   : > { %v658_v56 = vld [vmem:[#allocation2 + $0x20] sm:$0xff]  ;;  %v659_v61 = vld [vmem:[#allocation2 + $0x30] sm:$0xff]  ;;  %448 = vst [vmem:[#allocation2 + $0xc9] sm:$0xff] %v10139_v16  ;;  %449 = vst [vmem:[#allocation2 + $0xd9] sm:$0xff] %v10149_v18 }
  0x5b   : > { %v689_v59 = vpack.c.bf16 %v658_v56, %v657_v53  ;;  %v660_v62 = vld [vmem:[#allocation2 + $0x38] sm:$0xff]  ;;  %v596_v2 = vld [vmem:[#allocation2 + $0x22] sm:$0xff]  ;;  %450 = vst [vmem:[#allocation2 + $0xe1] sm:$0xff] %v10153_v19  ;;  %451 = vst [vmem:[#allocation2 + $0xf1] sm:$0xff] %v10161_v23 }
  0x5c   : > { %8034 = vmatpush3.bf16.msra.mxu0 %v9527_v49  ;;  %v10102_v63 = vpack.c.bf16 %v660_v62, %v659_v61  ;;  %v595_v1 = vld [vmem:[#allocation2 + $0x1a] sm:$0xff]  ;;  %v661_v3 = vld [vmem:[#allocation2 + $0x48] sm:$0xff]  ;;  %v662_v4 = vld [vmem:[#allocation2 + $0x50] sm:$0xff]  ;;  %452 = vst [vmem:[#allocation2 + $0xf9] sm:$0xff] %v10164_v24 }
  0x5d   : > { %8035 = vmatprep.subr.bf16.mxu0 %v9528_v52  ;;  %1962 = vmatprep.mubr.bf16.mxu1 %v689_v59  ;;  %v10114_v6 = vpack.c.bf16 %v596_v2, %v595_v1  ;;  %v10121_v9 = vpack.c.bf16 %v662_v4, %v661_v3  ;;  %v597_v14 = vld [vmem:[#allocation2 + $0x32] sm:$0xff]  ;;  %v598_v15 = vld [vmem:[#allocation2 + $0x3a] sm:$0xff]  ;;  %v664_v21 = vld [vmem:[#allocation2 + $0x68] sm:$0xff]  ;;  %453 = vst [vmem:[#allocation2 + $0x109] sm:$0xff] %v10180_v29 }
  0x5e   : > { %1963 = vmatmul.mubr.bf16.vlgmr.msra.gmra.mrb[0].mxu1 %v625_v57  ;;  %v663_v20 = vld [vmem:[#allocation2 + $0x60] sm:$0xff]  ;;  %v10166_v25 = vpack.c.bf16 %v598_v15, %v597_v14  ;;  %v599_v30 = vld [vmem:[#allocation2 + $0x4a] sm:$0xff]  ;;  %v600_v32 = vld [vmem:[#allocation2 + $0x52] sm:$0xff]  ;;  %454 = vst [vmem:[#allocation2 + $0x111] sm:$0xff] %v10187_v31 }
  0x5f   : > { %1810 = vmatmul.mubr.bf16.gmra.mrb[4].mxu0 %v689_v59  ;;  %1970 = vmatprep.mubr.bf16.mxu1 %v10102_v63  ;;  %v10177_v28 = vpack.c.bf16 %v664_v21, %v663_v20  ;;  %v665_v33 = vld [vmem:[#allocation2 + $0x78] sm:$0xff]  ;;  %v666_v34 = vld [vmem:[#allocation2 + $0x80] sm:$0xff]  ;;  %455 = vst [vmem:[#allocation2 + $0x121] sm:$0xff] %v10195_v36  ;;  %v10198_v37 = vpack.c.bf16 %v600_v32, %v599_v30  ;;  %v10217_v44 = vld [vmem:[%s10052_s17 + $0xc8] sm:$0xff] }
  0x60   : > { %1817 = vmatprep.mubr.bf16.mxu0 %v10095_v58  ;;  %8036 = vmatpush3.bf16.msra.mxu0 %v9529_v60  ;;  %v10205_v39 = vld [vmem:[%s10052_s17 + $0xb8] sm:$0xff]  ;;  %v10207_v40 = vpack.c.bf16 %v666_v34, %v665_v33  ;;  %v10214_v43 = vld [vmem:[%s10052_s17 + $0xc0] sm:$0xff]  ;;  %458 = vst [vmem:[#allocation2 + $0x141] sm:$0xff] %v10217_v44  ;;  %v9537_v45 = vld [vmem:[%s12007_s1 + $0x130] sm:$0xff]  }
  0x61   : > { %8037 = vmatprep.subr.bf16.mxu0 %v9530_v8  ;;  %456 = vst [vmem:[#allocation2 + $0x129] sm:$0xff] %v10205_v39  ;;  %457 = vst [vmem:[#allocation2 + $0x139] sm:$0xff] %v10214_v43  ;;  %v601_v46 = vld [vmem:[#allocation2 + $0x62] sm:$0xff]  ;;  %v602_v47 = vld [vmem:[#allocation2 + $0x6a] sm:$0xff]  ;;  %v10276_v8 = vpack.c.bf16 %v10127_v11, %v10124_v10 }
  0x62   : > { %v667_v48 = vld [vmem:[#allocation2 + $0x90] sm:$0xff]  ;;  %v9538_v49 = vld [vmem:[%s12007_s1 + $0x1c0] sm:$0xff]   ;;  %v668_v50 = vld [vmem:[#allocation2 + $0x98] sm:$0xff]  ;;  %v10237_v53 = vpack.c.bf16 %v602_v47, %v601_v46 }
  0x63   : > { %v9539_v51 = vld [vmem:[%s12007_s1 + $0x180] sm:$0xff]   ;;  %8143 = vmatprep.subr.bf16.mxu1 %v9538_v49  ;;  %v9540_v52 = vld [vmem:[%s12007_s1 + $0x1c8] sm:$0xff]   ;;  %v10243_v55 = vpack.c.bf16 %v668_v50, %v667_v48  ;;  %v10249_v57 = vld [vmem:[%s10052_s17 + $0xd0] sm:$0xff] }
  0x64   : > { %8038 = vmatpush3.bf16.msra.mxu0 %v9531_v12  ;;  %8144 = vmatpush3.bf16.msra.mxu1 %v9539_v51  ;;  %v9541_v56 = vld [vmem:[%s12007_s1 + $0x188] sm:$0xff]   ;;  %v603_v59 = vld [vmem:[#allocation2 + $0x7a] sm:$0xff]  ;;  %459 = vst [vmem:[#allocation2 + $0x151] sm:$0xff] %v10249_v57  ;;  %v670_v0 = vld [vmem:[#allocation2 + $0xb0] sm:$0xff] }
  0x65   : > { %8039 = vmatprep.subr.bf16.mxu0 %v9532_v17  ;;  %8145 = vmatprep.subr.bf16.mxu1 %v9540_v52  ;;  %v604_v60 = vld [vmem:[#allocation2 + $0x82] sm:$0xff]  ;;  %v10253_v61 = vld [vmem:[%s10052_s17 + $0xd8] sm:$0xff]  ;;  %v9542_v1 = vld [vmem:[%s12007_s1 + $0x1d0] sm:$0xff]  }
  0x66   : > { %1971 = vmatmul.mubr.bf16.gmra.mrb[4].mxu1 %v10114_v6  ;;  %v669_v62 = vld [vmem:[#allocation2 + $0xa8] sm:$0xff]  ;;  %460 = vst [vmem:[#allocation2 + $0x159] sm:$0xff] %v10253_v61  ;;  %v9543_v2 = vld [vmem:[%s12007_s1 + $0x190] sm:$0xff]   ;;  %v9544_v3 = vld [vmem:[%s12007_s1 + $0x1d8] sm:$0xff]   ;;  %v10272_v5 = vpack.c.bf16 %v604_v60, %v603_v59  ;;  %v10344_v60 = vpack.c.bf16 %v10153_v19, %v10149_v18 }
  0x67   : > { %1818 = vmatmul.mubr.bf16.gmra.mrb[8].mxu0 %v10102_v63  ;;  %1978 = vmatprep.mubr.bf16.mxu1 %v10121_v9  ;;  %v9545_v4 = vld [vmem:[%s12007_s1 + $0x198] sm:$0xff]   ;;  %v10281_v14 = vpack.c.bf16 %v670_v0, %v669_v62  ;;  %v428_v15 = vld [vmem:[%s10052_s17 + $0xe0] sm:$0xff]  ;;  %v429_v17 = vld [vmem:[%s10052_s17 + $0xe8] sm:$0xff] }
  0x68   : > { %1825 = vmatprep.mubr.bf16.mxu0 %v10116_v7  ;;  %8040 = vmatpush3.bf16.msra.mxu0 %v9533_v22  ;;  %v9546_v12 = vld [vmem:[%s12007_s1 + $0x178] sm:$0xff]   ;;  %461 = vst [vmem:[#allocation2 + $0x169] sm:$0xff] %v428_v15  ;;  %462 = vst [vmem:[#allocation2 + $0x171] sm:$0xff] %v429_v17  ;;  %v10288_v21 = vpack.c.bf16 %v429_v17, %v428_v15  ;;  %v671_v22 = vld [vmem:[#allocation2 + $0xc0] sm:$0xff] }
  0x69   : > { %8041 = vmatprep.subr.bf16.mxu0 %v9534_v27  ;;  %8146 = vmatpush3.bf16.msra.mxu1 %v9541_v56  ;;  %v9547_v20 = vld [vmem:[%s12007_s1 + $0x138] sm:$0xff]   ;;  %v672_v27 = vld [vmem:[#allocation2 + $0xc8] sm:$0xff]  ;;  %v9548_v30 = vld [vmem:[%s12007_s1 + $0x1e0] sm:$0xff]  }
  0x6a   : > { %8147 = vmatprep.subr.bf16.mxu1 %v9542_v1  ;;  %v605_v10 = vld [vmem:[#allocation2 + $0x92] sm:$0xff]  ;;  %v606_v11 = vld [vmem:[#allocation2 + $0x9a] sm:$0xff]  ;;  %v9550_v33 = vld [vmem:[%s12007_s1 + $0x1e8] sm:$0xff]   ;;  %v10315_v46 = vpack.c.bf16 %v672_v27, %v671_v22 }
  0x6b   : > { %v9549_v32 = vld [vmem:[%s12007_s1 + $0x1a0] sm:$0xff]   ;;  %v10303_v34 = vpack.c.bf16 %v606_v11, %v605_v10  ;;  %v9551_v47 = vld [vmem:[%s12007_s1 + $0x1a8] sm:$0xff]   ;;  %v608_v48 = vld [vmem:[#allocation2 + $0xb2] sm:$0xff] }
  0x6c   : > { %8042 = vmatpush3.bf16.msra.mxu0 %v9535_v35  ;;  %v10307_v35 = vpack.c.bf16 %v10139_v16, %v10135_v13  ;;  %v9552_v13 = vld [vmem:[%s12007_s1 + $0x1f0] sm:$0xff]   ;;  %v673_v49 = vld [vmem:[#allocation2 + $0xd8] sm:$0xff]  ;;  %v674_v50 = vld [vmem:[#allocation2 + $0xe0] sm:$0xff] }
  0x6d   : > { %8043 = vmatprep.subr.bf16.mxu0 %v9536_v42  ;;  %8148 = vmatpush3.bf16.msra.mxu1 %v9543_v2  ;;  %v10310_v42 = vld [vmem:[%s10052_s17 + $0xf0] sm:$0xff]  ;;  %v9554_v52 = vld [vmem:[%s12007_s1 + $0x1f8] sm:$0xff]   ;;  %v10338_v56 = vld [vmem:[%s12007_s1 + $0x200] sm:$0xff]   ;;  %v10347_v62 = vpack.c.bf16 %v674_v50, %v673_v49 }
  0x6e   : > { %1979 = vmatmul.mubr.bf16.gmra.mrb[8].mxu1 %v10166_v25  ;;  %8149 = vmatprep.subr.bf16.mxu1 %v9544_v3  ;;  %463 = vst [vmem:[#allocation2 + $0x181] sm:$0xff] %v10310_v42  ;;  %v607_v16 = vld [vmem:[#allocation2 + $0xaa] sm:$0xff]  ;;  %v9555_v0 = vld [vmem:[%s12007_s1 + $0x1b8] sm:$0xff]   ;;  %v609_v1 = vld [vmem:[#allocation2 + $0xc2] sm:$0xff] }
  0x6f   : > { %1826 = vmatmul.mubr.bf16.gmra.mrb[12].mxu0 %v10121_v9  ;;  %1986 = vmatprep.mubr.bf16.mxu1 %v10177_v28  ;;  %v9553_v51 = vld [vmem:[%s12007_s1 + $0x1b0] sm:$0xff]   ;;  %v10340_v59 = vpack.c.bf16 %v608_v48, %v607_v16  ;;  %v676_v19 = vld [vmem:[#allocation2 + $0xf8] sm:$0xff]  ;;  %v612_v17 = vld [vmem:[#allocation2 + $0xe2] sm:$0xff] }
  0x70   : > { %1833 = vmatprep.mubr.bf16.mxu0 %v10170_v26  ;;  %8044 = vmatpush3.bf16.msra.mxu0 %v9537_v45  ;;  %v10313_v45 = vld [vmem:[%s10052_s17 + $0xf8] sm:$0xff]  ;;  %v610_v2 = vld [vmem:[#allocation2 + $0xca] sm:$0xff]  ;;  %v682_v48 = vld [vmem:[#allocation2 + $0x140] sm:$0xff]  ;;  %s339_s17 = scalar_lea.vmem [#allocation9], %s338_s22 }
  0x71   : > { %8045 = vmatprep.subr.bf16.mxu0 %v9546_v12  ;;  %8150 = vmatpush3.bf16.msra.mxu1 %v9545_v4  ;;  %464 = vst [vmem:[#allocation2 + $0x189] sm:$0xff] %v10313_v45  ;;  %v675_v18 = vld [vmem:[#allocation2 + $0xf0] sm:$0xff]  ;;  %v10356_v3 = vpack.c.bf16 %v610_v2, %v609_v1  ;;  %v10360_v4 = vpack.c.bf16 %v10164_v24, %v10161_v23  ;;  %v611_v15 = vld [vmem:[#allocation2 + $0xda] sm:$0xff]  ;;  %v617_v50 = vld [vmem:[#allocation2 + $0x122] sm:$0xff]  ;;  %s7501_s23 = sshll.u32 %s339_s17, 4  ;;  %s11966_s23 = int_to_ptr.vmem [resolvable:$true] %s7501_s23 }
  0x72   : > { %8151 = vmatprep.subr.bf16.mxu1 %v9548_v30  ;;  %v10362_v12 = vpack.c.bf16 %v676_v19, %v675_v18  ;;  %v678_v10 = vld [vmem:[#allocation2 + $0x110] sm:$0xff]  ;;  %v10368_v11 = vpack.c.bf16 %v612_v17, %v611_v15  ;;  %v10372_v23 = vpack.c.bf16 %v10187_v31, %v10180_v29  ;;  %v614_v27 = vld [vmem:[#allocation2 + $0xfa] sm:$0xff]  ;;  %v10384_v29 = vpack.c.bf16 %v10205_v39, %v10195_v36  ;;  %v620_v18 = vld [vmem:[#allocation2 + $0x142] sm:$0xff]  ;;  %s9747_s16 = scalar_lea.vmem %s11966_s23, 16  ;;  %p9754_p2 = scmp.lt.s32.totalorder %s11966_s23, %s9752_s21 }
  0x73   : > { %v613_v22 = vld [vmem:[#allocation2 + $0xf2] sm:$0xff]  ;;  %v679_v30 = vld [vmem:[#allocation2 + $0x120] sm:$0xff]  ;;  %v10396_v36 = vpack.c.bf16 %v10217_v44, %v10214_v43  ;;  %v10408_v43 = vpack.c.bf16 %v10253_v61, %v10249_v57  ;;  %v685_v19 = vld [vmem:[#allocation2 + $0x168] sm:$0xff]  ;;  %p9748_p6 = scmp.ne.s32.totalorder %s11966_s23, %s9747_s16  ;;  %p9755_p3 = scmp.lt.s32.totalorder %s9753_s26, %s9747_s16 }
  0x74   : > { %8046 = vmatpush3.bf16.msra.mxu0 %v9547_v20  ;;  %v677_v20 = vld [vmem:[#allocation2 + $0x108] sm:$0xff]  ;;  %v681_v16 = vld [vmem:[#allocation2 + $0x138] sm:$0xff]  ;;  %v686_v15 = vld [vmem:[#allocation2 + $0x170] sm:$0xff] }
  0x75   : > { %8152 = vmatpush3.bf16.msra.mxu1 %v9549_v32  ;;  %9247 = vmatprep.subr.bf16.mxu0 %v10338_v56  ;;  %v10374_v24 = vpack.c.bf16 %v678_v10, %v677_v20  ;;  %v680_v32 = vld [vmem:[#allocation2 + $0x128] sm:$0xff]  ;;  %v10398_v39 = vpack.c.bf16 %v682_v48, %v681_v16  ;;  %v619_v2 = vld [vmem:[#allocation2 + $0x13a] sm:$0xff]  ;;  %v10418_v20 = vpack.c.bf16 %v686_v15, %v685_v19  ;;  %v621_v57 = vld [vmem:[#allocation2 + $0x152] sm:$0xff]  ;;  %p9749_p10 = pnand %p9748_p6, %p12096_p9  ;;  %p9756_p4 = por %p9755_p3, %p9754_p2 }
  0x76   : > { %1987 = vmatmul.mubr.bf16.gmra.mrb[12].mxu1 %v10198_v37  ;;  %8153 = vmatprep.subr.bf16.mxu1 %v9550_v33  ;;  %v10380_v33 = vpack.c.bf16 %v614_v27, %v613_v22  ;;  %v10386_v31 = vpack.c.bf16 %v680_v32, %v679_v30  ;;  %v10416_v17 = vpack.c.bf16 %v620_v18, %v619_v2  ;;  %v622_v61 = vld [vmem:[#allocation2 + $0x15a] sm:$0xff]  ;;  %v9557_v48 = vld [vmem:[%s12007_s1 + $0x208] sm:$0xff]  }
  0x77   : > { %1834 = vmatmul.mubr.bf16.gmra.mrb[16].mxu0 %v10177_v28  ;;  %1994 = vmatprep.mubr.bf16.mxu1 %v10207_v40  ;;  %v687_v10 = vld [vmem:[#allocation2 + $0x180] sm:$0xff]  ;;  %v10424_v27 = vpack.c.bf16 %v622_v61, %v621_v57  ;;  %v10430_v32 = vpack.c.bf16 %v10313_v45, %v10310_v42  ;;  %v9558_v42 = vld [vmem:[%s12007_s1 + $0x210] sm:$0xff]   ;;  %p9750_p12 = pneg %p9749_p10 }
  0x78   : > { %1841 = vmatprep.mubr.bf16.mxu0 %v10202_v38  ;;  %v688_v22 = vld [vmem:[#allocation2 + $0x188] sm:$0xff] }
  0x79   : > { %8154 = vmatpush3.bf16.msra.mxu1 %v9551_v47  ;;  %v615_v47 = vld [vmem:[#allocation2 + $0x10a] sm:$0xff]  ;;  %v10426_v30 = vpack.c.bf16 %v688_v22, %v687_v10  ;;  %v815_v15 = vld [vmem:[#allocation2 + $0x182] sm:$0xff]  ;;  %p9757_p7 = pnand %p9756_p4, %p9750_p12 }
  0x7a   : > { %8155 = vmatprep.subr.bf16.mxu1 %v9552_v13  ;;  %v616_v13 = vld [vmem:[#allocation2 + $0x112] sm:$0xff] }
  0x7b   : > { %v10392_v49 = vpack.c.bf16 %v616_v13, %v615_v47  ;;  %v623_v47 = vld [vmem:[#allocation2 + $0x16a] sm:$0xff]  ;;  %v624_v13 = vld [vmem:[#allocation2 + $0x172] sm:$0xff] }
  0x7c   : > { %v10436_v16 = vpack.c.bf16 %v624_v13, %v623_v47 }
  0x7d   : > { %8156 = vmatpush3.bf16.msra.mxu1 %v9553_v51  ;;  %v618_v51 = vld [vmem:[#allocation2 + $0x12a] sm:$0xff] }
  0x7e   : > { %1995 = vmatmul.mubr.bf16.gmra.mrb[16].mxu1 %v10237_v53  ;;  %8157 = vmatprep.subr.bf16.mxu1 %v9554_v52  ;;  %v683_v52 = vld [vmem:[#allocation2 + $0x150] sm:$0xff]  ;;  %v10404_v1 = vpack.c.bf16 %v618_v51, %v617_v50 }
  0x7f   : > { %1842 = vmatmul.mubr.bf16.gmra.mrb[20].mxu0 %v10207_v40  ;;  %2002 = vmatprep.mubr.bf16.mxu1 %v10243_v55 }
  0x80   : > { %1849 = vmatprep.mubr.bf16.mxu0 %v10241_v54 }
  0x81   : > { %8158 = vmatpush3.bf16.msra.mxu1 %v9555_v0  ;;  %v684_v0 = vld [vmem:[#allocation2 + $0x158] sm:$0xff] }
  0x82   : > { %v10410_v44 = vpack.c.bf16 %v684_v0, %v683_v52  ;;  %v9565_v52 = vld [vmem:[%s12009_s3] sm:$0xff]  }
  0x86   : > { %2003 = vmatmul.mubr.bf16.gmra.mrb[20].mxu1 %v10272_v5 }
  0x87   : > { %1850 = vmatmul.mubr.bf16.gmra.mrb[24].mxu0 %v10243_v55  ;;  %2010 = vmatprep.mubr.bf16.mxu1 %v10281_v14 }
  0x88   : > { %1857 = vmatprep.mubr.bf16.mxu0 %v10276_v8 }
  0x8e   : > { %2011 = vmatmul.mubr.bf16.gmra.mrb[24].mxu1 %v10303_v34 }
  0x8f   : > { %1858 = vmatmul.mubr.bf16.gmra.mrb[28].mxu0 %v10281_v14  ;;  %2018 = vmatprep.mubr.bf16.mxu1 %v10315_v46 }
  0x90   : > { %1865 = vmatprep.mubr.bf16.mxu0 %v10307_v35 }
  0x96   : > { %2019 = vmatmul.mubr.bf16.gmra.mrb[28].mxu1 %v10340_v59 }
  0x97   : > { %1866 = vmatmul.mubr.bf16.gmra.mrb[32].mxu0 %v10315_v46  ;;  %2026 = vmatprep.mubr.bf16.mxu1 %v10347_v62 }
  0x98   : > { %1873 = vmatprep.mubr.bf16.mxu0 %v10344_v60 }
  0x9e   : > { %2027 = vmatmul.mubr.bf16.gmra.mrb[32].mxu1 %v10356_v3 }
  0x9f   : > { %1874 = vmatmul.mubr.bf16.gmra.mrb[36].mxu0 %v10347_v62  ;;  %2034 = vmatprep.mubr.bf16.mxu1 %v10362_v12 }
  0xa0   : > { %1881 = vmatprep.mubr.bf16.mxu0 %v10360_v4 }
  0xa6   : > { %2035 = vmatmul.mubr.bf16.gmra.mrb[36].mxu1 %v10368_v11 }
  0xa7   : > { %1882 = vmatmul.mubr.bf16.gmra.mrb[40].mxu0 %v10362_v12  ;;  %2042 = vmatprep.mubr.bf16.mxu1 %v10374_v24 }
  0xa8   : > { %1889 = vmatprep.mubr.bf16.mxu0 %v10372_v23 }
  0xae   : > { %2043 = vmatmul.mubr.bf16.gmra.mrb[40].mxu1 %v10380_v33 }
  0xaf   : > { %1890 = vmatmul.mubr.bf16.gmra.mrb[44].mxu0 %v10374_v24  ;;  %2050 = vmatprep.mubr.bf16.mxu1 %v10386_v31 }
  0xb0   : > { %1897 = vmatprep.mubr.bf16.mxu0 %v10384_v29 }
  0xb6   : > { %2051 = vmatmul.mubr.bf16.gmra.mrb[44].mxu1 %v10392_v49 }
  0xb7   : > { %1898 = vmatmul.mubr.bf16.gmra.mrb[48].mxu0 %v10386_v31  ;;  %2058 = vmatprep.mubr.bf16.mxu1 %v10398_v39 }
  0xb8   : > { %1905 = vmatprep.mubr.bf16.mxu0 %v10396_v36 }
  0xbe   : > { %2059 = vmatmul.mubr.bf16.gmra.mrb[48].mxu1 %v10404_v1 }
  0xbf   : > { %1906 = vmatmul.mubr.bf16.gmra.mrb[52].mxu0 %v10398_v39  ;;  %2066 = vmatprep.mubr.bf16.mxu1 %v10410_v44 }
  0xc0   : > { %1913 = vmatprep.mubr.bf16.mxu0 %v10408_v43 }
  0xc6   : > { %2067 = vmatmul.mubr.bf16.gmra.mrb[52].mxu1 %v10416_v17 }
  0xc7   : > { %1914 = vmatmul.mubr.bf16.gmra.mrb[56].mxu0 %v10410_v44  ;;  %2074 = vmatprep.mubr.bf16.mxu1 %v10418_v20 }
  0xc8   : > { %1921 = vmatprep.mubr.bf16.mxu0 %v10288_v21 }
  0xce   : > { %2075 = vmatmul.mubr.bf16.gmra.mrb[56].mxu1 %v10424_v27 }
  0xcf   : > { %1922 = vmatmul.mubr.bf16.gmra.mrb[60].mxu0 %v10418_v20  ;;  %2082 = vmatprep.mubr.bf16.mxu1 %v10426_v30 }
  0xd0   : > { %2123 = vmatprep.mubr.bf16.mxu0 %v10114_v6  ;;  %v9559_v6 = vld [vmem:[%s12007_s1 + $0x218] sm:$0xff]  }
  0xd6   : > { %2083 = vmatmul.mubr.bf16.gmra.mrb[60].mxu1 %v10436_v16 }
  0xd7   : > { %2124 = vmatmul.mubr.bf16.vlgmr.msra.gmra.mrb[64].mxu0 %v10065_v41  ;;  %2284 = vmatprep.mubr.bf16.mxu1 %v10095_v58  ;;  %v9560_v41 = vld [vmem:[%s12007_s1 + $0x220] sm:$0xff]  }
  0xd8   : > { %9248 = vmatpush3.bf16.msra.mxu0 %v10338_v56  ;;  %2131 = vmatprep.mubr.bf16.mxu0 %v10166_v25  ;;  %v9561_v25 = vld [vmem:[%s12007_s1 + $0x228] sm:$0xff]  }
  0xd9   : > { %9249 = vmatprep.subr.bf16.mxu0 %v9557_v48 }
  0xdc   : > { %9250 = vmatpush3.bf16.msra.mxu0 %v9557_v48 }
  0xdd   : > { %9251 = vmatprep.subr.bf16.mxu0 %v9558_v42 }
  0xde   : > { %2285 = vmatmul.mubr.bf16.vlgmr.msra.gmra.mrb[64].mxu1 %v10102_v63  ;;  %v9563_v63 = vld [vmem:[%s12007_s1 + $0x238] sm:$0xff]  }
  0xdf   : > { %2132 = vmatmul.mubr.bf16.gmra.mrb[68].mxu0 %v10095_v58  ;;  %2292 = vmatprep.mubr.bf16.mxu1 %v10116_v7  ;;  %v9562_v58 = vld [vmem:[%s12007_s1 + $0x230] sm:$0xff]  }
  0xe0   : > { %2139 = vmatprep.mubr.bf16.mxu0 %v10198_v37  ;;  %9252 = vmatpush3.bf16.msra.mxu0 %v9558_v42 }
  0xe1   : > { %9253 = vmatprep.subr.bf16.mxu0 %v9559_v6 }
  0xe4   : > { %9254 = vmatpush3.bf16.msra.mxu0 %v9559_v6 }
  0xe5   : > { %9255 = vmatprep.subr.bf16.mxu0 %v9560_v41 }
  0xe6   : > { %2293 = vmatmul.mubr.bf16.gmra.mrb[68].mxu1 %v10121_v9 }
  0xe7   : > { %2140 = vmatmul.mubr.bf16.gmra.mrb[72].mxu0 %v10116_v7  ;;  %2300 = vmatprep.mubr.bf16.mxu1 %v10170_v26 }
  0xe8   : > { %2147 = vmatprep.mubr.bf16.mxu0 %v10237_v53  ;;  %9256 = vmatpush3.bf16.msra.mxu0 %v9560_v41 }
  0xe9   : > { %9257 = vmatprep.subr.bf16.mxu0 %v9561_v25 }
  0xec   : > { %9258 = vmatpush3.bf16.msra.mxu0 %v9561_v25 }
  0xed   : > { %9259 = vmatprep.subr.bf16.mxu0 %v9562_v58 }
  0xee   : > { %2301 = vmatmul.mubr.bf16.gmra.mrb[72].mxu1 %v10177_v28 }
  0xef   : > { %2148 = vmatmul.mubr.bf16.gmra.mrb[76].mxu0 %v10170_v26  ;;  %2308 = vmatprep.mubr.bf16.mxu1 %v10202_v38 }
  0xf0   : > { %2155 = vmatprep.mubr.bf16.mxu0 %v10272_v5  ;;  %9260 = vmatpush3.bf16.msra.mxu0 %v9562_v58 }
  0xf1   : > { %9261 = vmatprep.subr.bf16.mxu0 %v9563_v63 }
  0xf4   : > { %9262 = vmatpush3.bf16.msra.mxu0 %v9563_v63 }
  0xf6   : > { %2309 = vmatmul.mubr.bf16.gmra.mrb[76].mxu1 %v10207_v40  ;;  %v10509_v40 = vld [vmem:[%s12008_s2] ss:$0 sm:$0xff] }
  0xf7   : > { %2156 = vmatmul.mubr.bf16.gmra.mrb[80].mxu0 %v10202_v38  ;;  %2316 = vmatprep.mubr.bf16.mxu1 %v10241_v54 }
  0xf8   : > { %2163 = vmatprep.mubr.bf16.mxu0 %v10303_v34 }
  0xfe   : > { %2317 = vmatmul.mubr.bf16.gmra.mrb[80].mxu1 %v10243_v55 }
  0xff   : > { %2164 = vmatmul.mubr.bf16.gmra.mrb[84].mxu0 %v10241_v54  ;;  %2324 = vmatprep.mubr.bf16.mxu1 %v10276_v8 }
 0x100   : > { %2171 = vmatprep.mubr.bf16.mxu0 %v10340_v59 }
 0x106   : > { %2325 = vmatmul.mubr.bf16.gmra.mrb[84].mxu1 %v10281_v14 }
 0x107   : > { %2172 = vmatmul.mubr.bf16.gmra.mrb[88].mxu0 %v10276_v8  ;;  %2332 = vmatprep.mubr.bf16.mxu1 %v10307_v35 }
 0x108   : > { %2179 = vmatprep.mubr.bf16.mxu0 %v10356_v3 }
 0x10e   : > { %2333 = vmatmul.mubr.bf16.gmra.mrb[88].mxu1 %v10315_v46 }
 0x10f   : > { %2180 = vmatmul.mubr.bf16.gmra.mrb[92].mxu0 %v10307_v35  ;;  %2340 = vmatprep.mubr.bf16.mxu1 %v10344_v60 }
 0x110   : > { %2187 = vmatprep.mubr.bf16.mxu0 %v10368_v11 }
 0x116   : > { %2341 = vmatmul.mubr.bf16.gmra.mrb[92].mxu1 %v10347_v62 }
 0x117   : > { %2188 = vmatmul.mubr.bf16.gmra.mrb[96].mxu0 %v10344_v60  ;;  %2348 = vmatprep.mubr.bf16.mxu1 %v10360_v4 }
 0x118   : > { %2195 = vmatprep.mubr.bf16.mxu0 %v10380_v33 }
 0x11e   : > { %2349 = vmatmul.mubr.bf16.gmra.mrb[96].mxu1 %v10362_v12 }
 0x11f   : > { %2196 = vmatmul.mubr.bf16.gmra.mrb[100].mxu0 %v10360_v4  ;;  %2356 = vmatprep.mubr.bf16.mxu1 %v10372_v23 }
 0x120   : > { %2203 = vmatprep.mubr.bf16.mxu0 %v10392_v49 }
 0x126   : > { %2357 = vmatmul.mubr.bf16.gmra.mrb[100].mxu1 %v10374_v24 }
 0x127   : > { %2204 = vmatmul.mubr.bf16.gmra.mrb[104].mxu0 %v10372_v23  ;;  %2364 = vmatprep.mubr.bf16.mxu1 %v10384_v29 }
 0x128   : > { %2211 = vmatprep.mubr.bf16.mxu0 %v10404_v1 }
 0x12a   : > { %v7823_v7 = vpop.f32.mrb[0].mxu0 }
 0x12b   : > { %v7824_v9 = vpop.f32.mrb[1].mxu0 }
 0x12c   : > { %v7825_v26 = vadd.f32 %v7824_v9, %v7823_v7  ;;  %v7826_v28 = vpop.f32.mrb[2].mxu0  ;;  %v978_v7 = vld [vmem:[#allocation2 + $0x32] sm:$0xff]  ;;  %v979_v9 = vld [vmem:[#allocation2 + $0x3a] sm:$0xff] }
 0x12d   : > { %v7827_v37 = vpop.f32.mrb[3].mxu0 }
 0x12e   : > { %v7828_v38 = vadd.f32 %v7827_v37, %v7826_v28  ;;  %2365 = vmatmul.mubr.bf16.gmra.mrb[104].mxu1 %v10386_v31  ;;  %v1804_v54 = vadd.f32 %v7825_v26, %v10509_v40  ;;  %v944_v28 = vld [vmem:[#allocation2 + $0x199] sm:$0xff]  ;;  %v945_v37 = vld [vmem:[#allocation2 + $0x1a1] sm:$0xff] }
 0x12f   : > { %2212 = vmatmul.mubr.bf16.gmra.mrb[108].mxu0 %v10384_v29  ;;  %2372 = vmatprep.mubr.bf16.mxu1 %v10396_v36 }
 0x130   : > { %2219 = vmatprep.mubr.bf16.mxu0 %v10416_v17  ;;  %v1807_v35 = vadd.f32 %v7828_v38, %v10509_v40  ;;  %v816_v17 = vld [vmem:[#allocation2 + $0x18a] sm:$0xff] }
 0x131   : > { %v7935_v55 = vpop.f32.mrb[0].mxu1  ;;  %v10540_v13 = vpack.c.bf16 %v816_v17, %v815_v15 }
 0x132   : > { %v7829_v53 = vpop.f32.mrb[4].mxu0  ;;  %v7936_v8 = vpop.f32.mrb[1].mxu1 }
 0x133   : > { %v7830_v5 = vpop.f32.mrb[5].mxu0  ;;  %v7937_v45 = vadd.f32 %v7936_v8, %v7935_v55  ;;  %v7938_v46 = vpop.f32.mrb[2].mxu1  ;;  %v1010_v8 = vpack.c.bf16 %v979_v9, %v978_v7 }
 0x134   : > { %v7831_v14 = vadd.f32 %v7830_v5, %v7829_v53  ;;  %v7832_v34 = vpop.f32.mrb[6].mxu0  ;;  %v7939_v59 = vpop.f32.mrb[3].mxu1 }
 0x135   : > { %v7833_v56 = vpop.f32.mrb[7].mxu0  ;;  %v10515_v62 = vadd.f32 %v7937_v45, %v1804_v54  ;;  %v7940_v3 = vadd.f32 %v7939_v59, %v7938_v46  ;;  %v961_v45 = vpack.c.bf16 %v945_v37, %v944_v28  ;;  %v9566_v46 = vld [vmem:[%s12009_s3 + $0x48] sm:$0xff]  }
 0x136   : > { %v7834_v60 = vadd.f32 %v7833_v56, %v7832_v34  ;;  %2373 = vmatmul.mubr.bf16.gmra.mrb[108].mxu1 %v10398_v39  ;;  %v1812_v11 = vadd.f32 %v7831_v14, %v10509_v40  ;;  %v9564_v39 = vld [vmem:[%s12009_s3 + $0x40] sm:$0xff]   ;;  %v9567_v56 = vld [vmem:[%s12009_s3 + $0x8] sm:$0xff]  }
 0x137   : > { %2220 = vmatmul.mubr.bf16.gmra.mrb[112].mxu0 %v10396_v36  ;;  %v10520_v4 = vadd.f32 %v7940_v3, %v1807_v35  ;;  %2380 = vmatprep.mubr.bf16.mxu1 %v10408_v43 }
 0x138   : > { %2227 = vmatprep.mubr.bf16.mxu0 %v10424_v27  ;;  %v1815_v49 = vadd.f32 %v7834_v60, %v10509_v40  ;;  %8279 = vmatprep.subr.bf16.mxu1 %v9564_v39 }
 0x139   : > { %v7941_v23 = vpop.f32.mrb[4].mxu1  ;;  %8280 = vmatpush3.bf16.msra.mxu1 %v9565_v52 }
 0x13a   : > { %v7835_v12 = vpop.f32.mrb[8].mxu0  ;;  %v7942_v33 = vpop.f32.mrb[5].mxu1  ;;  %8281 = vmatprep.subr.bf16.mxu1 %v9566_v46 }
 0x13b   : > { %v7836_v24 = vpop.f32.mrb[9].mxu0  ;;  %v7943_v50 = vadd.f32 %v7942_v33, %v7941_v23  ;;  %v7944_v36 = vpop.f32.mrb[6].mxu1  ;;  %v981_v23 = vld [vmem:[#allocation2 + $0x52] sm:$0xff]  ;;  %v982_v33 = vld [vmem:[#allocation2 + $0x62] sm:$0xff] }
 0x13c   : > { %v7837_v29 = vadd.f32 %v7836_v24, %v7835_v12  ;;  %v7838_v31 = vpop.f32.mrb[10].mxu0  ;;  %v7945_v0 = vpop.f32.mrb[7].mxu1 }
 0x13d   : > { %v7839_v51 = vpop.f32.mrb[11].mxu0  ;;  %v10531_v2 = vadd.f32 %v7943_v50, %v1812_v11  ;;  %v7946_v18 = vadd.f32 %v7945_v0, %v7944_v36  ;;  %v980_v11 = vld [vmem:[#allocation2 + $0x4a] sm:$0xff]  ;;  %8282 = vmatpush3.bf16.msra.mxu1 %v9567_v56  ;;  %v990_v56 = vld [vmem:[#allocation2 + $0xc2] sm:$0xff] }
 0x13e   : > { %v7840_v1 = vadd.f32 %v7839_v51, %v7838_v31  ;;  %2381 = vmatmul.mubr.bf16.gmra.mrb[112].mxu1 %v10410_v44  ;;  %v1820_v61 = vadd.f32 %v7837_v29, %v10509_v40  ;;  %v983_v29 = vld [vmem:[#allocation2 + $0x6a] sm:$0xff]  ;;  %v1011_v51 = vpack.c.bf16 %v981_v23, %v980_v11 }
 0x13f   : > { %2228 = vmatmul.mubr.bf16.gmra.mrb[116].mxu0 %v10408_v43  ;;  %v10536_v19 = vadd.f32 %v7946_v18, %v1815_v49  ;;  %2388 = vmatprep.mubr.bf16.mxu1 %v10288_v21 }
 0x140   : > { %2235 = vmatprep.mubr.bf16.mxu0 %v10436_v16  ;;  %v1823_v44 = vadd.f32 %v7840_v1, %v10509_v40  ;;  %v1012_v1 = vpack.c.bf16 %v983_v29, %v982_v33 }
 0x141   : > { %v7947_v10 = vpop.f32.mrb[8].mxu1 }
 0x142   : > { %v7841_v57 = vpop.f32.mrb[12].mxu0  ;;  %v7948_v27 = vpop.f32.mrb[9].mxu1 }
 0x143   : > { %v7842_v22 = vpop.f32.mrb[13].mxu0  ;;  %v7949_v16 = vadd.f32 %v7948_v27, %v7947_v10  ;;  %v7950_v48 = vpop.f32.mrb[10].mxu1 }
 0x144   : > { %v7843_v47 = vadd.f32 %v7842_v22, %v7841_v57  ;;  %v7844_v43 = vpop.f32.mrb[14].mxu0  ;;  %v7951_v6 = vpop.f32.mrb[11].mxu1 }
 0x145   : > { %v7845_v42 = vpop.f32.mrb[15].mxu0  ;;  %v10543_v25 = vadd.f32 %v7949_v16, %v1820_v61  ;;  %v7952_v58 = vadd.f32 %v7951_v6, %v7950_v48  ;;  %v986_v16 = vld [vmem:[#allocation2 + $0x92] sm:$0xff]  ;;  %v987_v48 = vld [vmem:[#allocation2 + $0x9a] sm:$0xff] }
 0x146   : > { %v7846_v41 = vadd.f32 %v7845_v42, %v7844_v43  ;;  %2389 = vmatmul.mubr.bf16.gmra.mrb[116].mxu1 %v10418_v20  ;;  %v1828_v38 = vadd.f32 %v7843_v47, %v10509_v40  ;;  %v984_v47 = vld [vmem:[#allocation2 + $0x7a] sm:$0xff]  ;;  %v985_v43 = vld [vmem:[#allocation2 + $0x82] sm:$0xff]  ;;  %v1014_v37 = vpack.c.bf16 %v987_v48, %v986_v16 }
 0x147   : > { %2236 = vmatmul.mubr.bf16.gmra.mrb[120].mxu0 %v10288_v21  ;;  %v10548_v63 = vadd.f32 %v7952_v58, %v1823_v44  ;;  %2396 = vmatprep.mubr.bf16.mxu1 %v10430_v32  ;;  %v1013_v7 = vpack.c.bf16 %v985_v43, %v984_v47 }
 0x148   : > { %2243 = vmatprep.mubr.bf16.mxu0 %v10540_v13  ;;  %v1831_v20 = vadd.f32 %v7846_v41, %v10509_v40 }
 0x149   : > { %v7953_v53 = vpop.f32.mrb[12].mxu1 }
 0x14a   : > { %v7847_v26 = vpop.f32.mrb[16].mxu0  ;;  %v7954_v55 = vpop.f32.mrb[13].mxu1 }
 0x14b   : > { %v7848_v54 = vpop.f32.mrb[17].mxu0  ;;  %v7955_v14 = vadd.f32 %v7954_v55, %v7953_v53  ;;  %v7956_v34 = vpop.f32.mrb[14].mxu1 }
 0x14c   : > { %v7849_v5 = vadd.f32 %v7848_v54, %v7847_v26  ;;  %v7850_v21 = vpop.f32.mrb[18].mxu0  ;;  %v7957_v59 = vpop.f32.mrb[15].mxu1 }
 0x14d   : > { %v7851_v35 = vpop.f32.mrb[19].mxu0  ;;  %v10559_v3 = vadd.f32 %v7955_v14, %v1828_v38  ;;  %v7958_v12 = vadd.f32 %v7957_v59, %v7956_v34  ;;  %v991_v59 = vld [vmem:[#allocation2 + $0xca] sm:$0xff] }
 0x14e   : > { %v7852_v60 = vadd.f32 %v7851_v35, %v7850_v21  ;;  %2397 = vmatmul.mubr.bf16.gmra.mrb[120].mxu1 %v10426_v30  ;;  %v1836_v49 = vadd.f32 %v7849_v5, %v10509_v40  ;;  %v9568_v5 = vld [vmem:[%s12009_s3 + $0x50] sm:$0xff]  }
 0x14f   : > { %2244 = vmatmul.mubr.bf16.gmra.mrb[124].mxu0 %v10430_v32  ;;  %v10563_v24 = vadd.f32 %v7958_v12, %v1831_v20  ;;  %2404 = vmatprep.mubr.bf16.mxu1 %v961_v45  ;;  %v9716_v32 = vld [vmem:[#allocation2] sm:$0xff]  ;;  %v9569_v21 = vld [vmem:[%s12009_s3 + $0x10] sm:$0xff]  }
 0x150   : > { %9263 = vmatprep.mubr.bf16.mxu0 %v1010_v8  ;;  %v10566_v52 = vpack.c.bf16 %v9716_v32, %v9716_v32  ;;  %v1839_v18 = vadd.f32 %v7852_v60, %v10509_v40  ;;  %8283 = vmatprep.subr.bf16.mxu1 %v9568_v5  ;;  %v988_v35 = vld [vmem:[#allocation2 + $0xaa] sm:$0xff]  ;;  %v989_v45 = vld [vmem:[#allocation2 + $0xb2] sm:$0xff] }
 0x151   : > { %v7959_v50 = vpop.f32.mrb[16].mxu1  ;;  %8284 = vmatpush3.bf16.msra.mxu1 %v9569_v21  ;;  %v1015_v33 = vpack.c.bf16 %v989_v45, %v988_v35  ;;  %v996_v21 = vld [vmem:[#allocation2 + $0x10a] sm:$0xff] }
 0x152   : > { %v7853_v31 = vpop.f32.mrb[20].mxu0  ;;  %v7960_v39 = vpop.f32.mrb[17].mxu1  ;;  %v999_v35 = vld [vmem:[#allocation2 + $0x12a] sm:$0xff] }
 0x153   : > { %v7854_v36 = vpop.f32.mrb[21].mxu0  ;;  %v7961_v15 = vadd.f32 %v7960_v39, %v7959_v50  ;;  %v7962_v17 = vpop.f32.mrb[18].mxu1  ;;  %v1016_v50 = vpack.c.bf16 %v991_v59, %v990_v56 }
 0x154   : > { %v7855_v30 = vadd.f32 %v7854_v36, %v7853_v31  ;;  %v7856_v0 = vpop.f32.mrb[22].mxu0  ;;  %v7963_v61 = vpop.f32.mrb[19].mxu1 }
 0x155   : > { %v7857_v57 = vpop.f32.mrb[23].mxu0  ;;  %v10569_v22 = vadd.f32 %v7961_v15, %v1836_v49  ;;  %v7964_v27 = vadd.f32 %v7963_v61, %v7962_v17  ;;  %v992_v15 = vld [vmem:[#allocation2 + $0xda] sm:$0xff]  ;;  %v993_v17 = vld [vmem:[#allocation2 + $0xe2] sm:$0xff]  ;;  %v994_v61 = vld [vmem:[#allocation2 + $0xf2] sm:$0xff] }
 0x156   : > { %v7858_v10 = vadd.f32 %v7857_v57, %v7856_v0  ;;  %2405 = vmatmul.mubr.bf16.gmra.mrb[124].mxu1 %v10566_v52  ;;  %v1844_v6 = vadd.f32 %v7855_v30, %v10509_v40  ;;  %v1017_v48 = vpack.c.bf16 %v993_v17, %v992_v15  ;;  %v1002_v17 = vld [vmem:[#allocation2 + $0x152] sm:$0xff] }
 0x157   : > { %9264 = vmatmul.mubr.bf16.vlgmr.msra.gmra.mrb[128].mxu0 %v1011_v51  ;;  %v10572_v44 = vadd.f32 %v7964_v27, %v1839_v18 }
 0x158   : > { %9267 = vmatprep.mubr.bf16.mxu0 %v1012_v1  ;;  %v1847_v38 = vadd.f32 %v7858_v10, %v10509_v40  ;;  %v995_v10 = vld [vmem:[#allocation2 + $0xfa] sm:$0xff] }
 0x159   : > { %v7965_v41 = vpop.f32.mrb[20].mxu1 }
 0x15a   : > { %v7859_v42 = vpop.f32.mrb[24].mxu0  ;;  %v7966_v9 = vpop.f32.mrb[21].mxu1 }
 0x15b   : > { %v7860_v58 = vpop.f32.mrb[25].mxu0  ;;  %v7967_v53 = vadd.f32 %v7966_v9, %v7965_v41  ;;  %v7968_v54 = vpop.f32.mrb[22].mxu1 }
 0x15c   : > { %v7861_v26 = vadd.f32 %v7860_v58, %v7859_v42  ;;  %v7862_v28 = vpop.f32.mrb[26].mxu0  ;;  %v7969_v8 = vpop.f32.mrb[23].mxu1  ;;  %v1018_v58 = vpack.c.bf16 %v995_v10, %v994_v61  ;;  %v1003_v61 = vld [vmem:[#allocation2 + $0x15a] sm:$0xff] }
 0x15d   : > { %v7863_v55 = vpop.f32.mrb[27].mxu0  ;;  %v10582_v14 = vadd.f32 %v7967_v53, %v1844_v6  ;;  %v7970_v34 = vadd.f32 %v7969_v8, %v7968_v54  ;;  %v997_v8 = vld [vmem:[#allocation2 + $0x112] sm:$0xff] }
 0x15e   : > { %v7864_v20 = vadd.f32 %v7863_v55, %v7862_v28  ;;  %v1852_v12 = vadd.f32 %v7861_v26, %v10509_v40 }
 0x15f   : > { %9268 = vmatmul.mubr.bf16.gmra.mrb[132].mxu0 %v1013_v7  ;;  %v10584_v46 = vadd.f32 %v7970_v34, %v1847_v38  ;;  %v9571_v38 = vld [vmem:[%s12009_s3 + $0x18] sm:$0xff]   ;;  %v998_v34 = vld [vmem:[#allocation2 + $0x122] sm:$0xff] }
 0x160   : > { %9271 = vmatprep.mubr.bf16.mxu0 %v1014_v37  ;;  %v1855_v36 = vadd.f32 %v7864_v20, %v10509_v40  ;;  %v9570_v37 = vld [vmem:[%s12009_s3 + $0x58] sm:$0xff]  }
 0x161   : > { %v7971_v11 = vpop.f32.mrb[24].mxu1  ;;  %8285 = vmatprep.subr.bf16.mxu1 %v9570_v37  ;;  %v9573_v37 = vld [vmem:[%s12009_s3 + $0x20] sm:$0xff]  }
 0x162   : > { %v7865_v60 = vpop.f32.mrb[28].mxu0  ;;  %v7972_v29 = vpop.f32.mrb[25].mxu1  ;;  %8286 = vmatpush3.bf16.msra.mxu1 %v9571_v38 }
 0x163   : > { %v7866_v23 = vpop.f32.mrb[29].mxu0  ;;  %v7973_v51 = vadd.f32 %v7972_v29, %v7971_v11  ;;  %v7974_v39 = vpop.f32.mrb[26].mxu1  ;;  %v1020_v29 = vpack.c.bf16 %v999_v35, %v998_v34 }
 0x164   : > { %v7867_v31 = vadd.f32 %v7866_v23, %v7865_v60  ;;  %v7868_v49 = vpop.f32.mrb[30].mxu0  ;;  %v7975_v30 = vpop.f32.mrb[27].mxu1 }
 0x165   : > { %v7869_v32 = vpop.f32.mrb[31].mxu0  ;;  %v10588_v1 = vadd.f32 %v7973_v51, %v1852_v12  ;;  %v7976_v18 = vadd.f32 %v7975_v30, %v7974_v39  ;;  %v1019_v12 = vpack.c.bf16 %v997_v8, %v996_v21  ;;  %v1004_v21 = vld [vmem:[#allocation2 + $0x16a] sm:$0xff]  ;;  %v1005_v8 = vld [vmem:[#allocation2 + $0x172] sm:$0xff] }
 0x166   : > { %v7870_v0 = vadd.f32 %v7869_v32, %v7868_v49  ;;  %v1860_v47 = vadd.f32 %v7867_v31, %v10509_v40 }
 0x167   : > { %9272 = vmatmul.mubr.bf16.gmra.mrb[136].mxu0 %v1015_v33  ;;  %v10590_v57 = vadd.f32 %v7976_v18, %v1855_v36  ;;  %v1001_v18 = vld [vmem:[#allocation2 + $0x142] sm:$0xff] }
 0x168   : > { %9275 = vmatprep.mubr.bf16.mxu0 %v1016_v50  ;;  %v1863_v7 = vadd.f32 %v7870_v0, %v10509_v40  ;;  %v1000_v0 = vld [vmem:[#allocation2 + $0x13a] sm:$0xff] }
 0x169   : > { %v7977_v43 = vpop.f32.mrb[28].mxu1 }
 0x16a   : > { %v7871_v27 = vpop.f32.mrb[32].mxu0  ;;  %v7978_v42 = vpop.f32.mrb[29].mxu1 }
 0x16b   : > { %v7872_v16 = vpop.f32.mrb[33].mxu0  ;;  %v7979_v9 = vadd.f32 %v7978_v42, %v7977_v43  ;;  %v7980_v26 = vpop.f32.mrb[30].mxu1 }
 0x16c   : > { %v7873_v6 = vadd.f32 %v7872_v16, %v7871_v27  ;;  %v7874_v41 = vpop.f32.mrb[34].mxu0  ;;  %v7981_v53 = vpop.f32.mrb[31].mxu1  ;;  %v1021_v16 = vpack.c.bf16 %v1001_v18, %v1000_v0  ;;  %v1009_v0 = vld [vmem:[#allocation2 + $0x1a2] sm:$0xff] }
 0x16d   : > { %v7875_v28 = vpop.f32.mrb[35].mxu0  ;;  %v10600_v55 = vadd.f32 %v7979_v9, %v1860_v47  ;;  %v7982_v5 = vadd.f32 %v7981_v53, %v7980_v26 }
 0x16e   : > { %v7876_v54 = vadd.f32 %v7875_v28, %v7874_v41  ;;  %v1868_v56 = vadd.f32 %v7873_v6, %v10509_v40  ;;  %v1022_v41 = vpack.c.bf16 %v1003_v61, %v1002_v17  ;;  %v9572_v28 = vld [vmem:[%s12009_s3 + $0x60] sm:$0xff]  }
 0x16f   : > { %9276 = vmatmul.mubr.bf16.gmra.mrb[140].mxu0 %v1017_v48  ;;  %v10602_v20 = vadd.f32 %v7982_v5, %v1863_v7  ;;  %8287 = vmatprep.subr.bf16.mxu1 %v9572_v28 }
 0x170   : > { %9279 = vmatprep.mubr.bf16.mxu0 %v1018_v58  ;;  %v1871_v31 = vadd.f32 %v7876_v54, %v10509_v40  ;;  %8288 = vmatpush3.bf16.msra.mxu1 %v9573_v37 }
 0x171   : > { %v7983_v59 = vpop.f32.mrb[32].mxu1 }
 0x172   : > { %v7877_v45 = vpop.f32.mrb[36].mxu0  ;;  %v7984_v11 = vpop.f32.mrb[33].mxu1 }
 0x173   : > { %v7878_v60 = vpop.f32.mrb[37].mxu0  ;;  %v7985_v49 = vadd.f32 %v7984_v11, %v7983_v59  ;;  %v7986_v50 = vpop.f32.mrb[34].mxu1 }
 0x174   : > { %v7879_v23 = vadd.f32 %v7878_v60, %v7877_v45  ;;  %v7880_v33 = vpop.f32.mrb[38].mxu0  ;;  %v7987_v51 = vpop.f32.mrb[35].mxu1  ;;  %v1023_v60 = vpack.c.bf16 %v1005_v8, %v1004_v21 }
 0x175   : > { %v7881_v36 = vpop.f32.mrb[39].mxu0  ;;  %v10606_v32 = vadd.f32 %v7985_v49, %v1868_v56  ;;  %v7988_v30 = vadd.f32 %v7987_v51, %v7986_v50 }
 0x176   : > { %v7882_v39 = vadd.f32 %v7881_v36, %v7880_v33  ;;  %v1876_v27 = vadd.f32 %v7879_v23, %v10509_v40 }
 0x177   : > { %9280 = vmatmul.mubr.bf16.gmra.mrb[144].mxu0 %v1019_v12  ;;  %v10608_v15 = vadd.f32 %v7988_v30, %v1871_v31  ;;  %v1008_v30 = vld [vmem:[#allocation2 + $0x19a] sm:$0xff] }
 0x178   : > { %9283 = vmatprep.mubr.bf16.mxu0 %v1020_v29  ;;  %v1879_v58 = vadd.f32 %v7882_v39, %v10509_v40 }
 0x179   : > { %v7989_v47 = vpop.f32.mrb[36].mxu1 }
 0x17a   : > { %v7883_v10 = vpop.f32.mrb[40].mxu0  ;;  %v7990_v48 = vpop.f32.mrb[37].mxu1 }
 0x17b   : > { %v7884_v43 = vpop.f32.mrb[41].mxu0  ;;  %v7991_v7 = vadd.f32 %v7990_v48, %v7989_v47  ;;  %v7992_v9 = vpop.f32.mrb[38].mxu1  ;;  %v1025_v47 = vpack.c.bf16 %v1009_v0, %v1008_v30 }
 0x17c   : > { %v7885_v42 = vadd.f32 %v7884_v43, %v7883_v10  ;;  %v7886_v6 = vpop.f32.mrb[42].mxu0  ;;  %v7993_v38 = vpop.f32.mrb[39].mxu1 }
 0x17d   : > { %v7887_v26 = vpop.f32.mrb[43].mxu0  ;;  %v10618_v54 = vadd.f32 %v7991_v7, %v1876_v27  ;;  %v7994_v5 = vadd.f32 %v7993_v38, %v7992_v9  ;;  %v9575_v7 = vld [vmem:[%s12009_s3 + $0x28] sm:$0xff]  }
 0x17e   : > { %v7888_v53 = vadd.f32 %v7887_v26, %v7886_v6  ;;  %v1884_v45 = vadd.f32 %v7885_v42, %v10509_v40 }
 0x17f   : > { %9284 = vmatmul.mubr.bf16.gmra.mrb[148].mxu0 %v1021_v16  ;;  %v10620_v34 = vadd.f32 %v7994_v5, %v1879_v58 }
 0x180   : > { %9287 = vmatprep.mubr.bf16.mxu0 %v1022_v41  ;;  %v1887_v33 = vadd.f32 %v7888_v53, %v10509_v40 }
 0x181   : > { %v7995_v56 = vpop.f32.mrb[40].mxu1 }
 0x182   : > { %v7889_v35 = vpop.f32.mrb[44].mxu0  ;;  %v7996_v12 = vpop.f32.mrb[41].mxu1 }
 0x183   : > { %v7890_v59 = vpop.f32.mrb[45].mxu0  ;;  %v7997_v29 = vadd.f32 %v7996_v12, %v7995_v56  ;;  %v7998_v31 = vpop.f32.mrb[42].mxu1 }
 0x184   : > { %v7891_v11 = vadd.f32 %v7890_v59, %v7889_v35  ;;  %v7892_v23 = vpop.f32.mrb[46].mxu0  ;;  %v7999_v50 = vpop.f32.mrb[43].mxu1 }
 0x185   : > { %v7893_v49 = vpop.f32.mrb[47].mxu0  ;;  %v10624_v51 = vadd.f32 %v7997_v29, %v1884_v45  ;;  %v8000_v39 = vadd.f32 %v7999_v50, %v7998_v31 }
 0x186   : > { %v7894_v36 = vadd.f32 %v7893_v49, %v7892_v23  ;;  %v1892_v61 = vadd.f32 %v7891_v11, %v10509_v40 }
 0x187   : > { %9288 = vmatmul.mubr.bf16.gmra.mrb[152].mxu0 %v1023_v60  ;;  %v10627_v18 = vadd.f32 %v8000_v39, %v1887_v33 }
 0x188   : > { %9291 = vmatprep.mubr.bf16.mxu0 %v10540_v13  ;;  %v1895_v42 = vadd.f32 %v7894_v36, %v10509_v40  ;;  %v9574_v13 = vld [vmem:[%s12009_s3 + $0x68] sm:$0xff]  }
 0x189   : > { %v8001_v10 = vpop.f32.mrb[44].mxu1  ;;  %8289 = vmatprep.subr.bf16.mxu1 %v9574_v13 }
 0x18a   : > { %v7895_v17 = vpop.f32.mrb[48].mxu0  ;;  %v8002_v43 = vpop.f32.mrb[45].mxu1  ;;  %8290 = vmatpush3.bf16.msra.mxu1 %v9575_v7 }
 0x18b   : > { %v7896_v27 = vpop.f32.mrb[49].mxu0  ;;  %v8003_v6 = vadd.f32 %v8002_v43, %v8001_v10  ;;  %v8004_v41 = vpop.f32.mrb[46].mxu1 }
 0x18c   : > { %v7897_v16 = vadd.f32 %v7896_v27, %v7895_v17  ;;  %v7898_v48 = vpop.f32.mrb[50].mxu0  ;;  %v8005_v9 = vpop.f32.mrb[47].mxu1 }
 0x18d   : > { %v7899_v58 = vpop.f32.mrb[51].mxu0  ;;  %v10637_v28 = vadd.f32 %v8003_v6, %v1892_v61  ;;  %v8006_v37 = vadd.f32 %v8005_v9, %v8004_v41  ;;  %v9578_v9 = vld [vmem:[%s12009_s3 + $0xc0] sm:$0xff]  }
 0x18e   : > { %v7900_v26 = vadd.f32 %v7899_v58, %v7898_v48  ;;  %v1900_v5 = vadd.f32 %v7897_v16, %v10509_v40  ;;  %v9576_v16 = vld [vmem:[%s12009_s3 + $0x70] sm:$0xff]   ;;  %8391 = vmatprep.subr.bf16.mxu0 %v9578_v9 }
 0x18f   : > { %9292 = vmatmul.mubr.bf16.gmra.mrb[156].mxu0 %v1025_v47  ;;  %v10639_v38 = vadd.f32 %v8006_v37, %v1895_v42  ;;  %v9577_v48 = vld [vmem:[%s12009_s3 + $0x30] sm:$0xff]   ;;  %8291 = vmatprep.subr.bf16.mxu1 %v9576_v16 }
 0x190   : > { %v1903_v59 = vadd.f32 %v7900_v26, %v10509_v40  ;;  %8292 = vmatpush3.bf16.msra.mxu1 %v9577_v48 }
 0x191   : > { %v8007_v21 = vpop.f32.mrb[48].mxu1 }
 0x192   : > { %v7901_v53 = vpop.f32.mrb[52].mxu0  ;;  %v8008_v35 = vpop.f32.mrb[49].mxu1 }
 0x193   : > { %v7902_v8 = vpop.f32.mrb[53].mxu0  ;;  %v8009_v60 = vadd.f32 %v8008_v35, %v8007_v21  ;;  %v8010_v12 = vpop.f32.mrb[50].mxu1 }
 0x194   : > { %v7903_v45 = vadd.f32 %v7902_v8, %v7901_v53  ;;  %v7904_v56 = vpop.f32.mrb[54].mxu0  ;;  %v8011_v23 = vpop.f32.mrb[51].mxu1 }
 0x195   : > { %v7905_v11 = vpop.f32.mrb[55].mxu0  ;;  %v10643_v29 = vadd.f32 %v8009_v60, %v1900_v5  ;;  %v8012_v31 = vadd.f32 %v8011_v23, %v8010_v12  ;;  %v9579_v5 = vld [vmem:[%s12009_s3 + $0x80] sm:$0xff]   ;;  %v9580_v23 = vld [vmem:[%s12009_s3 + $0xc8] sm:$0xff]  }
 0x196   : > { %v7906_v33 = vadd.f32 %v7905_v11, %v7904_v56  ;;  %v1908_v36 = vadd.f32 %v7903_v45, %v10509_v40  ;;  %8392 = vmatpush3.bf16.msra.mxu0 %v9579_v5 }
 0x197   : > { %v10645_v49 = vadd.f32 %v8012_v31, %v1903_v59  ;;  %8393 = vmatprep.subr.bf16.mxu0 %v9580_v23 }
 0x198   : > { %v1911_v10 = vadd.f32 %v7906_v33, %v10509_v40 }
 0x199   : > { %v8013_v39 = vpop.f32.mrb[52].mxu1 }
 0x19a   : > { %v7907_v50 = vpop.f32.mrb[56].mxu0  ;;  %v8014_v0 = vpop.f32.mrb[53].mxu1 }
 0x19b   : > { %v7908_v30 = vpop.f32.mrb[57].mxu0  ;;  %v8015_v27 = vadd.f32 %v8014_v0, %v8013_v39  ;;  %v8016_v47 = vpop.f32.mrb[54].mxu1 }
 0x19c   : > { %v7909_v17 = vadd.f32 %v7908_v30, %v7907_v50  ;;  %v7910_v61 = vpop.f32.mrb[58].mxu0  ;;  %v8017_v42 = vpop.f32.mrb[55].mxu1  ;;  %v9581_v50 = vld [vmem:[%s12009_s3 + $0x88] sm:$0xff]   ;;  %v9583_v30 = vld [vmem:[%s12009_s3 + $0xd0] sm:$0xff]  }
 0x19d   : > { %v7911_v43 = vpop.f32.mrb[59].mxu0  ;;  %v10655_v41 = vadd.f32 %v8015_v27, %v1908_v36  ;;  %v8018_v58 = vadd.f32 %v8017_v42, %v8016_v47  ;;  %8394 = vmatpush3.bf16.msra.mxu0 %v9581_v50  ;;  %v2767_v50 = vld [vmem:[#allocation2 + $0x9] sm:$0xff] }
 0x19e   : > { %v7912_v6 = vadd.f32 %v7911_v43, %v7910_v61  ;;  %v1916_v26 = vadd.f32 %v7909_v17, %v10509_v40  ;;  %8395 = vmatprep.subr.bf16.mxu0 %v9583_v30 }
 0x19f   : > { %v10657_v13 = vadd.f32 %v8018_v58, %v1911_v10  ;;  %v9585_v10 = vld [vmem:[%s12009_s3 + $0x90] sm:$0xff]   ;;  %v9582_v58 = vld [vmem:[%s12009_s3 + $0x78] sm:$0xff]  }
 0x1a0   : > { %v1919_v45 = vadd.f32 %v7912_v6, %v10509_v40  ;;  %8293 = vmatprep.subr.bf16.mxu1 %v9582_v58  ;;  %v9593_v58 = vld [vmem:[%s12009_s3 + $0x140] sm:$0xff]  }
 0x1a1   : > { %v8019_v37 = vpop.f32.mrb[56].mxu1  ;;  %8396 = vmatpush3.bf16.msra.mxu0 %v9585_v10 }
 0x1a2   : > { %v7913_v7 = vpop.f32.mrb[60].mxu0  ;;  %v8020_v21 = vpop.f32.mrb[57].mxu1 }
 0x1a3   : > { %v7914_v53 = vpop.f32.mrb[61].mxu0  ;;  %v8021_v56 = vadd.f32 %v8020_v21, %v8019_v37  ;;  %v8022_v59 = vpop.f32.mrb[58].mxu1  ;;  %v9587_v21 = vld [vmem:[%s12009_s3 + $0x98] sm:$0xff]  }
 0x1a4   : > { %v7915_v8 = vadd.f32 %v7914_v53, %v7913_v7  ;;  %v7916_v35 = vpop.f32.mrb[62].mxu0  ;;  %v8023_v12 = vpop.f32.mrb[59].mxu1  ;;  %v9584_v7 = vld [vmem:[%s12009_s3 + $0x38] sm:$0xff]  }
 0x1a5   : > { %v7917_v60 = vpop.f32.mrb[63].mxu0  ;;  %v10670_v33 = vadd.f32 %v8021_v56, %v1916_v26  ;;  %v8024_v31 = vadd.f32 %v8023_v12, %v8022_v59  ;;  %8294 = vmatpush3.bf16.msra.mxu1 %v9584_v7  ;;  %v9589_v56 = vld [vmem:[%s12009_s3 + $0xa0] sm:$0xff]   ;;  %v9590_v59 = vld [vmem:[%s12009_s3 + $0xe8] sm:$0xff]   ;;  %v9594_v7 = vld [vmem:[%s12009_s3 + $0xb0] sm:$0xff]  }
 0x1a6   : > { %v7918_v11 = vadd.f32 %v7917_v60, %v7916_v35  ;;  %v1924_v0 = vadd.f32 %v7915_v8, %v10509_v40  ;;  %8503 = vmatprep.subr.bf16.mxu1 %v9593_v58 }
 0x1a7   : > { %v10675_v36 = vadd.f32 %v8024_v31, %v1919_v45  ;;  %v9588_v45 = vld [vmem:[%s12009_s3 + $0xe0] sm:$0xff]  }
 0x1a8   : > { %v1927_v16 = vadd.f32 %v7918_v11, %v10509_v40  ;;  %v9586_v40 = vld [vmem:[%s12009_s3 + $0xd8] sm:$0xff]   ;;  %v2766_v31 = vld [vmem:[#allocation2 + $0x1] sm:$0xff] }
 0x1a9   : > { %v8025_v17 = vpop.f32.mrb[60].mxu1  ;;  %8397 = vmatprep.subr.bf16.mxu0 %v9586_v40 }
 0x1aa   : > { %v8047_v39 = vpop.f32.mrb[64].mxu0  ;;  %v8026_v27 = vpop.f32.mrb[61].mxu1  ;;  %8398 = vmatpush3.bf16.msra.mxu0 %v9587_v21 }
 0x1ab   : > { %v8048_v61 = vpop.f32.mrb[65].mxu0  ;;  %v8027_v48 = vadd.f32 %v8026_v27, %v8025_v17  ;;  %v8028_v42 = vpop.f32.mrb[62].mxu1  ;;  %8399 = vmatprep.subr.bf16.mxu0 %v9588_v45  ;;  %v2798_v17 = vpack.c.bf16 %v2767_v50, %v2766_v31 }
 0x1ac   : > { %v8049_v47 = vadd.f32 %v8048_v61, %v8047_v39  ;;  %v8050_v43 = vpop.f32.mrb[66].mxu0  ;;  %v8029_v9 = vpop.f32.mrb[63].mxu1 }
 0x1ad   : > { %v8051_v6 = vpop.f32.mrb[67].mxu0  ;;  %v10695_v53 = vadd.f32 %v8027_v48, %v1924_v0  ;;  %v8030_v5 = vadd.f32 %v8029_v9, %v8028_v42  ;;  %4037 = vmatprep.mubr.bf16.mxu1 %v2798_v17 }
 0x1ae   : > { %v2126_v26 = vadd.f32 %v8049_v47, %v10515_v62  ;;  %v8052_v37 = vadd.f32 %v8051_v6, %v8050_v43  ;;  %8400 = vmatpush3.bf16.msra.mxu0 %v9589_v56  ;;  %4038 = vmatmul.mubr.bf16.vlgmr.msra.gmra.mrb[128].mxu1 %v10566_v52  ;;  %v9595_v52 = vld [vmem:[%s12009_s3 + $0x100] sm:$0xff]  }
 0x1af   : > { %v10701_v35 = vadd.f32 %v8030_v5, %v1927_v16  ;;  %8401 = vmatprep.subr.bf16.mxu0 %v9590_v59  ;;  %v9591_v16 = vld [vmem:[%s12009_s3 + $0xa8] sm:$0xff]   ;;  %8504 = vmatpush3.bf16.msra.mxu1 %v9595_v52 }
 0x1b0   : > { %v2129_v8 = vadd.f32 %v8052_v37, %v10520_v4 }
 0x1b1   : > { %v8159_v60 = vpop.f32.mrb[64].mxu1 }
 0x1b2   : > { %v8053_v62 = vpop.f32.mrb[68].mxu0  ;;  %v8160_v12 = vpop.f32.mrb[65].mxu1  ;;  %8402 = vmatpush3.bf16.msra.mxu0 %v9591_v16 }
 0x1b3   : > { %v8054_v4 = vpop.f32.mrb[69].mxu0  ;;  %v8161_v39 = vadd.f32 %v8160_v12, %v8159_v60  ;;  %v8162_v30 = vpop.f32.mrb[66].mxu1  ;;  %v9597_v12 = vld [vmem:[%s12009_s3 + $0xb8] sm:$0xff]  }
 0x1b4   : > { %v8055_v11 = vadd.f32 %v8054_v4, %v8053_v62  ;;  %v8056_v23 = vpop.f32.mrb[70].mxu0  ;;  %v8163_v61 = vpop.f32.mrb[67].mxu1 }
 0x1b5   : > { %v8057_v0 = vpop.f32.mrb[71].mxu0  ;;  %v8164_v47 = vadd.f32 %v8163_v61, %v8162_v30  ;;  %v10713_v43 = vadd.f32 %v8161_v39, %v2126_v26  ;;  %v9596_v26 = vld [vmem:[%s12009_s3 + $0xf8] sm:$0xff]  }
 0x1b6   : > { %v2134_v10 = vadd.f32 %v8055_v11, %v10531_v2  ;;  %v8058_v27 = vadd.f32 %v8057_v0, %v8056_v23  ;;  %v9592_v2 = vld [vmem:[%s12009_s3 + $0xf0] sm:$0xff]  }
 0x1b7   : > { %v10720_v42 = vadd.f32 %v8164_v47, %v2129_v8  ;;  %8403 = vmatprep.subr.bf16.mxu0 %v9592_v2 }
 0x1b8   : > { %v2137_v48 = vadd.f32 %v8058_v27, %v10536_v19  ;;  %8404 = vmatpush3.bf16.msra.mxu0 %v9594_v7  ;;  %v9598_v7 = vld [vmem:[%s12009_s3 + $0x148] sm:$0xff]  }
 0x1b9   : > { %v8165_v9 = vpop.f32.mrb[68].mxu1  ;;  %8405 = vmatprep.subr.bf16.mxu0 %v9596_v26  ;;  %8505 = vmatprep.subr.bf16.mxu1 %v9598_v7 }
 0x1ba   : > { %v8059_v6 = vpop.f32.mrb[72].mxu0  ;;  %v8166_v37 = vpop.f32.mrb[69].mxu1 }
 0x1bb   : > { %v8060_v19 = vpop.f32.mrb[73].mxu0  ;;  %v8167_v21 = vadd.f32 %v8166_v37, %v8165_v9  ;;  %v8168_v8 = vpop.f32.mrb[70].mxu1  ;;  %v9599_v9 = vld [vmem:[%s12009_s3 + $0x108] sm:$0xff]  }
 0x1bc   : > { %v8061_v40 = vadd.f32 %v8060_v19, %v8059_v6  ;;  %v8062_v5 = vpop.f32.mrb[74].mxu0  ;;  %v8169_v45 = vpop.f32.mrb[71].mxu1  ;;  %8406 = vmatpush3.bf16.msra.mxu0 %v9597_v12  ;;  %8506 = vmatpush3.bf16.msra.mxu1 %v9599_v9 }
 0x1bd   : > { %v8063_v62 = vpop.f32.mrb[75].mxu0  ;;  %v8170_v60 = vadd.f32 %v8169_v45, %v8168_v8  ;;  %v10738_v4 = vadd.f32 %v8167_v21, %v2134_v10 }
 0x1be   : > { %v2142_v56 = vadd.f32 %v8061_v40, %v10543_v25  ;;  %v8064_v59 = vadd.f32 %v8063_v62, %v8062_v5 }
 0x1bf   : > { %v10744_v23 = vadd.f32 %v8170_v60, %v2137_v48 }
 0x1c0   : > { %v2145_v11 = vadd.f32 %v8064_v59, %v10548_v63 }
 0x1c1   : > { %v8171_v50 = vpop.f32.mrb[72].mxu1 }
 0x1c2   : > { %v8065_v31 = vpop.f32.mrb[76].mxu0  ;;  %v8172_v30 = vpop.f32.mrb[73].mxu1 }
 0x1c3   : > { %v8066_v39 = vpop.f32.mrb[77].mxu0  ;;  %v8173_v17 = vadd.f32 %v8172_v30, %v8171_v50  ;;  %v8174_v61 = vpop.f32.mrb[74].mxu1 }
 0x1c4   : > { %v8067_v0 = vadd.f32 %v8066_v39, %v8065_v31  ;;  %v8068_v25 = vpop.f32.mrb[78].mxu0  ;;  %v8175_v10 = vpop.f32.mrb[75].mxu1 }
 0x1c5   : > { %v8069_v27 = vpop.f32.mrb[79].mxu0  ;;  %v8176_v6 = vadd.f32 %v8175_v10, %v8174_v61  ;;  %v10747_v2 = vadd.f32 %v8173_v17, %v2142_v56 }
 0x1c6   : > { %v2150_v47 = vadd.f32 %v8067_v0, %v10559_v3  ;;  %v8070_v16 = vadd.f32 %v8069_v27, %v8068_v25 }
 0x1c7   : > { %v10750_v48 = vadd.f32 %v8176_v6, %v2145_v11 }
 0x1c8   : > { %v2153_v63 = vadd.f32 %v8070_v16, %v10563_v24 }
 0x1c9   : > { %v8177_v19 = vpop.f32.mrb[76].mxu1 }
 0x1ca   : > { %v8071_v58 = vpop.f32.mrb[80].mxu0  ;;  %v8178_v3 = vpop.f32.mrb[77].mxu1 }
 0x1cb   : > { %v8072_v52 = vpop.f32.mrb[81].mxu0  ;;  %v8179_v40 = vadd.f32 %v8178_v3, %v8177_v19  ;;  %v8180_v5 = vpop.f32.mrb[78].mxu1 }
 0x1cc   : > { %v8073_v26 = vadd.f32 %v8072_v52, %v8071_v58  ;;  %v8074_v37 = vpop.f32.mrb[82].mxu0  ;;  %v8181_v21 = vpop.f32.mrb[79].mxu1  ;;  %v9601_v58 = vld [vmem:[%s12009_s3 + $0x110] sm:$0xff]  }
 0x1cd   : > { %v8075_v24 = vpop.f32.mrb[83].mxu0  ;;  %v8182_v45 = vadd.f32 %v8181_v21, %v8180_v5  ;;  %v10759_v56 = vadd.f32 %v8179_v40, %v2150_v47 }
 0x1ce   : > { %v2158_v8 = vadd.f32 %v8073_v26, %v10569_v22  ;;  %v8076_v62 = vadd.f32 %v8075_v24, %v8074_v37 }
 0x1cf   : > { %v10762_v60 = vadd.f32 %v8182_v45, %v2153_v63  ;;  %v9600_v63 = vld [vmem:[%s12009_s3 + $0x150] sm:$0xff]  }
 0x1d0   : > { %v2161_v59 = vadd.f32 %v8076_v62, %v10572_v44  ;;  %8507 = vmatprep.subr.bf16.mxu1 %v9600_v63 }
 0x1d1   : > { %v8183_v11 = vpop.f32.mrb[80].mxu1  ;;  %8508 = vmatpush3.bf16.msra.mxu1 %v9601_v58 }
 0x1d2   : > { %v8077_v12 = vpop.f32.mrb[84].mxu0  ;;  %v8184_v50 = vpop.f32.mrb[81].mxu1 }
 0x1d3   : > { %v8078_v31 = vpop.f32.mrb[85].mxu0  ;;  %v8185_v0 = vadd.f32 %v8184_v50, %v8183_v11  ;;  %v8186_v25 = vpop.f32.mrb[82].mxu1 }
 0x1d4   : > { %v8079_v39 = vadd.f32 %v8078_v31, %v8077_v12  ;;  %v8080_v30 = vpop.f32.mrb[86].mxu0  ;;  %v8187_v61 = vpop.f32.mrb[83].mxu1 }
 0x1d5   : > { %v8081_v17 = vpop.f32.mrb[87].mxu0  ;;  %v8188_v10 = vadd.f32 %v8187_v61, %v8186_v25  ;;  %v10765_v47 = vadd.f32 %v8185_v0, %v2158_v8 }
 0x1d6   : > { %v2166_v22 = vadd.f32 %v8079_v39, %v10582_v14  ;;  %v8082_v27 = vadd.f32 %v8081_v17, %v8080_v30 }
 0x1d7   : > { %v10768_v16 = vadd.f32 %v8188_v10, %v2161_v59 }
 0x1d8   : > { %v2169_v44 = vadd.f32 %v8082_v27, %v10584_v46 }
 0x1d9   : > { %v8189_v7 = vpop.f32.mrb[84].mxu1 }
 0x1da   : > { %v8083_v6 = vpop.f32.mrb[88].mxu0  ;;  %v8190_v14 = vpop.f32.mrb[85].mxu1 }
 0x1db   : > { %v8084_v9 = vpop.f32.mrb[89].mxu0  ;;  %v8191_v3 = vadd.f32 %v8190_v14, %v8189_v7  ;;  %v8192_v26 = vpop.f32.mrb[86].mxu1 }
 0x1dc   : > { %v8085_v19 = vadd.f32 %v8084_v9, %v8083_v6  ;;  %v8086_v52 = vpop.f32.mrb[90].mxu0  ;;  %v8193_v37 = vpop.f32.mrb[87].mxu1  ;;  %v9603_v6 = vld [vmem:[%s12009_s3 + $0x118] sm:$0xff]  }
 0x1dd   : > { %v8087_v46 = vpop.f32.mrb[91].mxu0  ;;  %v8194_v24 = vadd.f32 %v8193_v37, %v8192_v26  ;;  %v10777_v21 = vadd.f32 %v8191_v3, %v2166_v22 }
 0x1de   : > { %v2174_v40 = vadd.f32 %v8085_v19, %v10588_v1  ;;  %v8088_v5 = vadd.f32 %v8087_v46, %v8086_v52 }
 0x1df   : > { %v10780_v62 = vadd.f32 %v8194_v24, %v2169_v44  ;;  %v9602_v44 = vld [vmem:[%s12009_s3 + $0x158] sm:$0xff]  }
 0x1e0   : > { %v2177_v8 = vadd.f32 %v8088_v5, %v10590_v57  ;;  %8509 = vmatprep.subr.bf16.mxu1 %v9602_v44 }
 0x1e1   : > { %v8195_v59 = vpop.f32.mrb[88].mxu1  ;;  %8510 = vmatpush3.bf16.msra.mxu1 %v9603_v6 }
 0x1e2   : > { %v8089_v45 = vpop.f32.mrb[92].mxu0  ;;  %v8196_v11 = vpop.f32.mrb[89].mxu1 }
 0x1e3   : > { %v8090_v12 = vpop.f32.mrb[93].mxu0  ;;  %v8197_v39 = vadd.f32 %v8196_v11, %v8195_v59  ;;  %v8198_v30 = vpop.f32.mrb[90].mxu1 }
 0x1e4   : > { %v8091_v31 = vadd.f32 %v8090_v12, %v8089_v45  ;;  %v8092_v50 = vpop.f32.mrb[94].mxu0  ;;  %v8199_v25 = vpop.f32.mrb[91].mxu1 }
 0x1e5   : > { %v8093_v0 = vpop.f32.mrb[95].mxu0  ;;  %v8200_v61 = vadd.f32 %v8199_v25, %v8198_v30  ;;  %v10783_v22 = vadd.f32 %v8197_v39, %v2174_v40 }
 0x1e6   : > { %v2182_v1 = vadd.f32 %v8091_v31, %v10600_v55  ;;  %v8094_v17 = vadd.f32 %v8093_v0, %v8092_v50 }
 0x1e7   : > { %v10786_v27 = vadd.f32 %v8200_v61, %v2177_v8 }
 0x1e8   : > { %v2185_v57 = vadd.f32 %v8094_v17, %v10602_v20 }
 0x1e9   : > { %v8201_v63 = vpop.f32.mrb[92].mxu1 }
 0x1ea   : > { %v8095_v10 = vpop.f32.mrb[96].mxu0  ;;  %v8202_v55 = vpop.f32.mrb[93].mxu1 }
 0x1eb   : > { %v8096_v58 = vpop.f32.mrb[97].mxu0  ;;  %v8203_v14 = vadd.f32 %v8202_v55, %v8201_v63  ;;  %v8204_v19 = vpop.f32.mrb[94].mxu1 }
 0x1ec   : > { %v8097_v7 = vadd.f32 %v8096_v58, %v8095_v10  ;;  %v8098_v9 = vpop.f32.mrb[98].mxu0  ;;  %v8205_v52 = vpop.f32.mrb[95].mxu1 }
 0x1ed   : > { %v8099_v20 = vpop.f32.mrb[99].mxu0  ;;  %v8206_v46 = vadd.f32 %v8205_v52, %v8204_v19  ;;  %v10795_v37 = vadd.f32 %v8203_v14, %v2182_v1 }
 0x1ee   : > { %v2190_v3 = vadd.f32 %v8097_v7, %v10606_v32  ;;  %v8100_v26 = vadd.f32 %v8099_v20, %v8098_v9  ;;  %v9604_v32 = vld [vmem:[%s12009_s3 + $0x160] sm:$0xff]  }
 0x1ef   : > { %v10798_v5 = vadd.f32 %v8206_v46, %v2185_v57  ;;  %8511 = vmatprep.subr.bf16.mxu1 %v9604_v32 }
 0x1f0   : > { %v2193_v40 = vadd.f32 %v8100_v26, %v10608_v15  ;;  %v9605_v15 = vld [vmem:[%s12009_s3 + $0x120] sm:$0xff]  }
 0x1f1   : > { %v8207_v8 = vpop.f32.mrb[96].mxu1  ;;  %8512 = vmatpush3.bf16.msra.mxu1 %v9605_v15 }
 0x1f2   : > { %v8101_v24 = vpop.f32.mrb[100].mxu0  ;;  %v8208_v59 = vpop.f32.mrb[97].mxu1 }
 0x1f3   : > { %v8102_v45 = vpop.f32.mrb[101].mxu0  ;;  %v8209_v31 = vadd.f32 %v8208_v59, %v8207_v8  ;;  %v8210_v50 = vpop.f32.mrb[98].mxu1 }
 0x1f4   : > { %v8103_v12 = vadd.f32 %v8102_v45, %v8101_v24  ;;  %v8104_v11 = vpop.f32.mrb[102].mxu0  ;;  %v8211_v30 = vpop.f32.mrb[99].mxu1 }
 0x1f5   : > { %v8105_v39 = vpop.f32.mrb[103].mxu0  ;;  %v8212_v1 = vadd.f32 %v8211_v30, %v8210_v50  ;;  %v10807_v17 = vadd.f32 %v8209_v31, %v2190_v3 }
 0x1f6   : > { %v2198_v0 = vadd.f32 %v8103_v12, %v10618_v54  ;;  %v8106_v25 = vadd.f32 %v8105_v39, %v8104_v11 }
 0x1f7   : > { %v10810_v57 = vadd.f32 %v8212_v1, %v2193_v40 }
 0x1f8   : > { %v2201_v61 = vadd.f32 %v8106_v25, %v10620_v34 }
 0x1f9   : > { %v8213_v44 = vpop.f32.mrb[100].mxu1 }
 0x1fa   : > { %v8107_v10 = vpop.f32.mrb[104].mxu0  ;;  %v8214_v63 = vpop.f32.mrb[101].mxu1 }
 0x1fb   : > { %v8108_v6 = vpop.f32.mrb[105].mxu0  ;;  %v8215_v55 = vadd.f32 %v8214_v63, %v8213_v44  ;;  %v8216_v7 = vpop.f32.mrb[102].mxu1 }
 0x1fc   : > { %v8109_v58 = vadd.f32 %v8108_v6, %v8107_v10  ;;  %v8110_v54 = vpop.f32.mrb[106].mxu0  ;;  %v8217_v14 = vpop.f32.mrb[103].mxu1 }
 0x1fd   : > { %v8111_v9 = vpop.f32.mrb[107].mxu0  ;;  %v8218_v52 = vadd.f32 %v8217_v14, %v8216_v7  ;;  %v10813_v3 = vadd.f32 %v8215_v55, %v2198_v0 }
 0x1fe   : > { %v2206_v19 = vadd.f32 %v8109_v58, %v10624_v51  ;;  %v8112_v20 = vadd.f32 %v8111_v9, %v8110_v54  ;;  %v9606_v51 = vld [vmem:[%s12009_s3 + $0x168] sm:$0xff]  }
 0x1ff   : > { %v10816_v26 = vadd.f32 %v8218_v52, %v2201_v61  ;;  %8513 = vmatprep.subr.bf16.mxu1 %v9606_v51 }
 0x200   : > { %v2209_v34 = vadd.f32 %v8112_v20, %v10627_v18  ;;  %v9607_v18 = vld [vmem:[%s12009_s3 + $0x128] sm:$0xff]  }
 0x201   : > { %v8219_v40 = vpop.f32.mrb[104].mxu1  ;;  %8514 = vmatpush3.bf16.msra.mxu1 %v9607_v18 }
 0x202   : > { %v8113_v46 = vpop.f32.mrb[108].mxu0  ;;  %v8220_v8 = vpop.f32.mrb[105].mxu1 }
 0x203   : > { %v8114_v24 = vpop.f32.mrb[109].mxu0  ;;  %v8221_v12 = vadd.f32 %v8220_v8, %v8219_v40  ;;  %v8222_v11 = vpop.f32.mrb[106].mxu1 }
 0x204   : > { %v8115_v45 = vadd.f32 %v8114_v24, %v8113_v46  ;;  %v8116_v59 = vpop.f32.mrb[110].mxu0  ;;  %v8223_v50 = vpop.f32.mrb[107].mxu1 }
 0x205   : > { %v8117_v31 = vpop.f32.mrb[111].mxu0  ;;  %v8224_v30 = vadd.f32 %v8223_v50, %v8222_v11  ;;  %v10825_v0 = vadd.f32 %v8221_v12, %v2206_v19 }
 0x206   : > { %v2214_v39 = vadd.f32 %v8115_v45, %v10637_v28  ;;  %v8118_v32 = vadd.f32 %v8117_v31, %v8116_v59 }
 0x207   : > { %v10828_v15 = vadd.f32 %v8224_v30, %v2209_v34 }
 0x208   : > { %v2217_v25 = vadd.f32 %v8118_v32, %v10639_v38 }
 0x209   : > { %v8225_v61 = vpop.f32.mrb[108].mxu1 }
 0x20a   : > { %v8119_v1 = vpop.f32.mrb[112].mxu0  ;;  %v8226_v44 = vpop.f32.mrb[109].mxu1 }
 0x20b   : > { %v8120_v10 = vpop.f32.mrb[113].mxu0  ;;  %v8227_v63 = vadd.f32 %v8226_v44, %v8225_v61  ;;  %v8228_v58 = vpop.f32.mrb[110].mxu1 }
 0x20c   : > { %v8121_v6 = vadd.f32 %v8120_v10, %v8119_v1  ;;  %v8122_v28 = vpop.f32.mrb[114].mxu0  ;;  %v8229_v55 = vpop.f32.mrb[111].mxu1 }
 0x20d   : > { %v8123_v54 = vpop.f32.mrb[115].mxu0  ;;  %v8230_v14 = vadd.f32 %v8229_v55, %v8228_v58  ;;  %v10831_v19 = vadd.f32 %v8227_v63, %v2214_v39  ;;  %v9610_v63 = vld [vmem:[%s12009_s3 + $0x1c0] sm:$0xff]  }
 0x20e   : > { %v2222_v7 = vadd.f32 %v8121_v6, %v10643_v29  ;;  %v8124_v9 = vadd.f32 %v8123_v54, %v8122_v28  ;;  %v9608_v29 = vld [vmem:[%s12009_s3 + $0x170] sm:$0xff]   ;;  %8615 = vmatprep.subr.bf16.mxu0 %v9610_v63 }
 0x20f   : > { %v10834_v20 = vadd.f32 %v8230_v14, %v2217_v25  ;;  %8515 = vmatprep.subr.bf16.mxu1 %v9608_v29 }
 0x210   : > { %v2225_v38 = vadd.f32 %v8124_v9, %v10645_v49  ;;  %v9609_v49 = vld [vmem:[%s12009_s3 + $0x130] sm:$0xff]  }
 0x211   : > { %v8231_v34 = vpop.f32.mrb[112].mxu1  ;;  %8516 = vmatpush3.bf16.msra.mxu1 %v9609_v49 }
 0x212   : > { %v8125_v52 = vpop.f32.mrb[116].mxu0  ;;  %v8232_v40 = vpop.f32.mrb[113].mxu1 }
 0x213   : > { %v8126_v46 = vpop.f32.mrb[117].mxu0  ;;  %v8233_v45 = vadd.f32 %v8232_v40, %v8231_v34  ;;  %v8234_v59 = vpop.f32.mrb[114].mxu1 }
 0x214   : > { %v8127_v24 = vadd.f32 %v8126_v46, %v8125_v52  ;;  %v8128_v8 = vpop.f32.mrb[118].mxu0  ;;  %v8235_v11 = vpop.f32.mrb[115].mxu1 }
 0x215   : > { %v8129_v12 = vpop.f32.mrb[119].mxu0  ;;  %v8236_v50 = vadd.f32 %v8235_v11, %v8234_v59  ;;  %v10843_v39 = vadd.f32 %v8233_v45, %v2222_v7 }
 0x216   : > { %v2230_v31 = vadd.f32 %v8127_v24, %v10655_v41  ;;  %v8130_v51 = vadd.f32 %v8129_v12, %v8128_v8 }
 0x217   : > { %v10846_v18 = vadd.f32 %v8236_v50, %v2225_v38 }
 0x218   : > { %v2233_v32 = vadd.f32 %v8130_v51, %v10657_v13 }
 0x219   : > { %v8237_v25 = vpop.f32.mrb[116].mxu1 }
 0x21a   : > { %v8131_v30 = vpop.f32.mrb[120].mxu0  ;;  %v8238_v61 = vpop.f32.mrb[117].mxu1 }
 0x21b   : > { %v8132_v1 = vpop.f32.mrb[121].mxu0  ;;  %v8239_v44 = vadd.f32 %v8238_v61, %v8237_v25  ;;  %v8240_v6 = vpop.f32.mrb[118].mxu1 }
 0x21c   : > { %v8133_v10 = vadd.f32 %v8132_v1, %v8131_v30  ;;  %v8134_v41 = vpop.f32.mrb[122].mxu0  ;;  %v8241_v58 = vpop.f32.mrb[119].mxu1 }
 0x21d   : > { %v8135_v28 = vpop.f32.mrb[123].mxu0  ;;  %v8242_v55 = vadd.f32 %v8241_v58, %v8240_v6  ;;  %v10852_v7 = vadd.f32 %v8239_v44, %v2230_v31 }
 0x21e   : > { %v2238_v54 = vadd.f32 %v8133_v10, %v10670_v33  ;;  %v8136_v13 = vadd.f32 %v8135_v28, %v8134_v41  ;;  %v9614_v33 = vld [vmem:[%s12009_s3 + $0x178] sm:$0xff]  }
 0x21f   : > { %v10855_v14 = vadd.f32 %v8242_v55, %v2233_v32  ;;  %8517 = vmatprep.subr.bf16.mxu1 %v9614_v33 }
 0x220   : > { %v2241_v9 = vadd.f32 %v8136_v13, %v10675_v36  ;;  %v9616_v36 = vld [vmem:[%s12009_s3 + $0x138] sm:$0xff]  }
 0x221   : > { %v8243_v52 = vpop.f32.mrb[120].mxu1  ;;  %8518 = vmatpush3.bf16.msra.mxu1 %v9616_v36 }
 0x222   : > { %v8137_v38 = vpop.f32.mrb[124].mxu0  ;;  %v8244_v46 = vpop.f32.mrb[121].mxu1 }
 0x223   : > { %v8138_v34 = vpop.f32.mrb[125].mxu0  ;;  %v8245_v8 = vadd.f32 %v8244_v46, %v8243_v52  ;;  %v8246_v45 = vpop.f32.mrb[122].mxu1 }
 0x224   : > { %v8139_v40 = vadd.f32 %v8138_v34, %v8137_v38  ;;  %v8140_v24 = vpop.f32.mrb[126].mxu0  ;;  %v8247_v12 = vpop.f32.mrb[123].mxu1 }
 0x225   : > { %v8141_v59 = vpop.f32.mrb[127].mxu0  ;;  %v8248_v31 = vadd.f32 %v8247_v12, %v8246_v45  ;;  %v10864_v51 = vadd.f32 %v8245_v8, %v2238_v54  ;;  %v10899_v45 = vld [vmem:[%s12009_s3 + $0x200] sm:$0xff]   ;;  %v2831_v12 = vld [vmem:[#allocation2 + $0xa] sm:$0xff] }
 0x226   : > { %v2246_v29 = vadd.f32 %v8139_v40, %v10695_v53  ;;  %v8142_v11 = vadd.f32 %v8141_v59, %v8140_v24  ;;  %9295 = vmatprep.subr.bf16.mxu1 %v10899_v45 }
 0x227   : > { %v10867_v50 = vadd.f32 %v8248_v31, %v2241_v9 }
 0x228   : > { %v2249_v49 = vadd.f32 %v8142_v11, %v10701_v35 }
 0x229   : > { %v8249_v30 = vpop.f32.mrb[124].mxu1 }
 0x22a   : > { %v9265_v32 = vpop.f32.mrb[128].mxu0  ;;  %v8250_v53 = vpop.f32.mrb[125].mxu1 }
 0x22b   : > { %v2456_v25 = vadd.f32 %v9265_v32, %v10738_v4  ;;  %v2447_v1 = vpop.f32.mrb[129].mxu0  ;;  %v8251_v41 = vadd.f32 %v8250_v53, %v8249_v30  ;;  %v8252_v44 = vpop.f32.mrb[126].mxu1  ;;  %v9611_v32 = vld [vmem:[%s12009_s3 + $0x180] sm:$0xff]  }
 0x22c   : > { %v2448_v61 = vadd.f32 %v2447_v1, %v10713_v43  ;;  %v9266_v10 = vpop.f32.mrb[130].mxu0  ;;  %v8253_v35 = vpop.f32.mrb[127].mxu1 }
 0x22d   : > { %v10871_v6 = vmax.f32 %v2456_v25, 0.0  ;;  %v2459_v28 = vadd.f32 %v9266_v10, %v10744_v23  ;;  %v2450_v63 = vpop.f32.mrb[131].mxu0  ;;  %v8254_v13 = vadd.f32 %v8253_v35, %v8252_v44  ;;  %v10880_v55 = vadd.f32 %v8251_v41, %v2246_v29 }
 0x22e   : > { %v10874_v58 = vmax.f32 %v2448_v61, 0.0  ;;  %v2451_v54 = vadd.f32 %v2450_v63, %v10720_v42  ;;  %v9612_v61 = vld [vmem:[%s12009_s3 + $0x1c8] sm:$0xff]  }
 0x22f   : > { %2672 = vst [vmem:[#allocation2 + $0x31] sm:$0xff] %v10871_v6  ;;  %v10878_v4 = vmax.f32 %v2459_v28, 0.0  ;;  %v10886_v23 = vadd.f32 %v8254_v13, %v2249_v49 }
 0x230   : > { %2670 = vst [vmem:[#allocation2 + $0x19] sm:$0xff] %v10874_v58  ;;  %v10883_v43 = vmax.f32 %v2451_v54, 0.0 }
 0x231   : > { %2673 = vst [vmem:[#allocation2 + $0x39] sm:$0xff] %v10878_v4  ;;  %v2800_v1 = vpack.c.bf16 %v10878_v4, %v10871_v6 }
 0x232   : > { %2671 = vst [vmem:[#allocation2 + $0x21] sm:$0xff] %v10883_v43  ;;  %v9269_v9 = vpop.f32.mrb[132].mxu0  ;;  %v2799_v42 = vpack.c.bf16 %v10883_v43, %v10874_v58 }
 0x233   : > { %v2472_v38 = vadd.f32 %v9269_v9, %v10759_v56  ;;  %v2463_v52 = vpop.f32.mrb[133].mxu0  ;;  %v2830_v56 = vld [vmem:[#allocation2 + $0x2] sm:$0xff] }
 0x234   : > { %v2464_v34 = vadd.f32 %v2463_v52, %v10747_v2  ;;  %v9270_v46 = vpop.f32.mrb[134].mxu0  ;;  %4045 = vmatprep.mubr.bf16.mxu1 %v2799_v42  ;;  %v2862_v36 = vpack.c.bf16 %v2831_v12, %v2830_v56  ;;  %v9618_v12 = vld [vmem:[%s12009_s3 + $0x1d8] sm:$0xff]  }
 0x235   : > { %v10893_v40 = vmax.f32 %v2472_v38, 0.0  ;;  %v2475_v24 = vadd.f32 %v9270_v46, %v10762_v60  ;;  %v2466_v8 = vpop.f32.mrb[135].mxu0 }
 0x236   : > { %v10901_v59 = vmax.f32 %v2464_v34, 0.0  ;;  %v2467_v33 = vadd.f32 %v2466_v8, %v10750_v48  ;;  %v2896_v53 = vld [vmem:[#allocation2 + $0x30] sm:$0xff] }
 0x237   : > { %2676 = vst [vmem:[#allocation2 + $0x61] sm:$0xff] %v10893_v40  ;;  %v10905_v2 = vmax.f32 %v2475_v24, 0.0  ;;  %v2894_v29 = vld [vmem:[#allocation2 + $0x18] sm:$0xff]  ;;  %v9617_v34 = vld [vmem:[%s12009_s3 + $0x190] sm:$0xff]  }
 0x238   : > { %2674 = vst [vmem:[#allocation2 + $0x49] sm:$0xff] %v10901_v59  ;;  %v10909_v60 = vmax.f32 %v2467_v33, 0.0  ;;  %v2897_v31 = vld [vmem:[#allocation2 + $0x38] sm:$0xff] }
 0x239   : > { %2677 = vst [vmem:[#allocation2 + $0x69] sm:$0xff] %v10905_v2  ;;  %v2895_v11 = vld [vmem:[#allocation2 + $0x20] sm:$0xff]  ;;  %v10923_v44 = vpack.c.bf16 %v2897_v31, %v2896_v53 }
 0x23a   : > { %2675 = vst [vmem:[#allocation2 + $0x51] sm:$0xff] %v10909_v60  ;;  %v9273_v48 = vpop.f32.mrb[136].mxu0  ;;  %v2926_v49 = vpack.c.bf16 %v2895_v11, %v2894_v29  ;;  %v2833_v42 = vld [vmem:[#allocation2 + $0x22] sm:$0xff]  ;;  %v2801_v33 = vpack.c.bf16 %v10909_v60, %v10901_v59 }
 0x23b   : > { %v2488_v30 = vadd.f32 %v9273_v48, %v10777_v21  ;;  %v2479_v25 = vpop.f32.mrb[137].mxu0 }
 0x23c   : > { %v2480_v10 = vadd.f32 %v2479_v25, %v10765_v47  ;;  %v9274_v41 = vpop.f32.mrb[138].mxu0  ;;  %4198 = vmatprep.mubr.bf16.mxu0 %v2926_v49  ;;  %4046 = vmatmul.mubr.bf16.gmra.mrb[132].mxu1 %v2926_v49  ;;  %v9613_v47 = vld [vmem:[%s12009_s3 + $0x188] sm:$0xff]  }
 0x23d   : > { %v10925_v28 = vmax.f32 %v2488_v30, 0.0  ;;  %v2491_v21 = vadd.f32 %v9274_v41, %v10780_v62  ;;  %v2482_v63 = vpop.f32.mrb[139].mxu0  ;;  %4199 = vmatmul.mubr.bf16.vlgmr.msra.gmra.mrb[160].mxu0 %v2862_v36  ;;  %4053 = vmatprep.mubr.bf16.mxu1 %v2800_v1  ;;  %v9615_v62 = vld [vmem:[%s12009_s3 + $0x1d0] sm:$0xff]   ;;  %v2835_v1 = vld [vmem:[#allocation2 + $0x3a] sm:$0xff] }
 0x23e   : > { %v10928_v35 = vmax.f32 %v2480_v10, 0.0  ;;  %v2483_v54 = vadd.f32 %v2482_v63, %v10768_v16  ;;  %4206 = vmatprep.mubr.bf16.mxu0 %v10923_v44  ;;  %8616 = vmatpush3.bf16.msra.mxu0 %v9611_v32  ;;  %v2832_v16 = vld [vmem:[#allocation2 + $0x1a] sm:$0xff] }
 0x23f   : > { %2680 = vst [vmem:[#allocation2 + $0x91] sm:$0xff] %v10925_v28  ;;  %v10936_v13 = vmax.f32 %v2491_v21, 0.0  ;;  %8617 = vmatprep.subr.bf16.mxu0 %v9612_v61  ;;  %v10950_v8 = vpack.c.bf16 %v2833_v42, %v2832_v16  ;;  %v2898_v56 = vld [vmem:[#allocation2 + $0x48] sm:$0xff]  ;;  %v9621_v10 = vld [vmem:[%s12009_s3 + $0x1a0] sm:$0xff]  }
 0x240   : > { %2678 = vst [vmem:[#allocation2 + $0x79] sm:$0xff] %v10928_v35  ;;  %v10942_v9 = vmax.f32 %v2483_v54, 0.0  ;;  %v2901_v53 = vld [vmem:[#allocation2 + $0x68] sm:$0xff]  ;;  %v2802_v54 = vpack.c.bf16 %v10905_v2, %v10893_v40 }
 0x241   : > { %12050 = vst [vmem:[#allocation12_spill] sm:$0xff] %v10936_v13  ;;  %2681 = vst [vmem:[#allocation2 + $0x99] sm:$0xff] %v10936_v13  ;;  %v2899_v38 = vld [vmem:[#allocation2 + $0x50] sm:$0xff] }
 0x242   : > { %12051 = vst [vmem:[#allocation13_spill] sm:$0xff] %v10942_v9  ;;  %2679 = vst [vmem:[#allocation2 + $0x81] sm:$0xff] %v10942_v9  ;;  %v9277_v52 = vpop.f32.mrb[140].mxu0  ;;  %8618 = vmatpush3.bf16.msra.mxu0 %v9613_v47  ;;  %v10959_v36 = vpack.c.bf16 %v2899_v38, %v2898_v56  ;;  %v2900_v47 = vld [vmem:[#allocation2 + $0x60] sm:$0xff] }
 0x243   : > { %v2504_v46 = vadd.f32 %v9277_v52, %v10795_v37  ;;  %v2495_v24 = vpop.f32.mrb[141].mxu0  ;;  %8619 = vmatprep.subr.bf16.mxu0 %v9615_v62  ;;  %v9622_v62 = vld [vmem:[%s12009_s3 + $0x1e8] sm:$0xff]   ;;  %v10996_v38 = vpack.c.bf16 %v2901_v53, %v2900_v47 }
 0x244   : > { %v2496_v29 = vadd.f32 %v2495_v24, %v10783_v22  ;;  %v9278_v11 = vpop.f32.mrb[142].mxu0  ;;  %4054 = vmatmul.mubr.bf16.gmra.mrb[136].mxu1 %v10923_v44  ;;  %v9619_v22 = vld [vmem:[%s12009_s3 + $0x198] sm:$0xff]  }
 0x245   : > { %v10961_v37 = vmax.f32 %v2504_v46, 0.0  ;;  %v2507_v31 = vadd.f32 %v9278_v11, %v10798_v5  ;;  %v2498_v48 = vpop.f32.mrb[143].mxu0  ;;  %4207 = vmatmul.mubr.bf16.gmra.mrb[164].mxu0 %v10950_v8  ;;  %4061 = vmatprep.mubr.bf16.mxu1 %v2801_v33  ;;  %v9620_v5 = vld [vmem:[%s12009_s3 + $0x1e0] sm:$0xff]  }
 0x246   : > { %v10965_v49 = vmax.f32 %v2496_v29, 0.0  ;;  %v2499_v32 = vadd.f32 %v2498_v48, %v10786_v27  ;;  %4214 = vmatprep.mubr.bf16.mxu0 %v10959_v36  ;;  %8620 = vmatpush3.bf16.msra.mxu0 %v9617_v34  ;;  %v2834_v27 = vld [vmem:[#allocation2 + $0x32] sm:$0xff] }
 0x247   : > { %12052 = vst [vmem:[#allocation14_spill] sm:$0xff] %v10961_v37  ;;  %2684 = vst [vmem:[#allocation2 + $0xc1] sm:$0xff] %v10961_v37  ;;  %v10973_v30 = vmax.f32 %v2507_v31, 0.0  ;;  %8621 = vmatprep.subr.bf16.mxu0 %v9618_v12  ;;  %v10987_v63 = vpack.c.bf16 %v2835_v1, %v2834_v27  ;;  %v2837_v12 = vld [vmem:[#allocation2 + $0x52] sm:$0xff] }
 0x248   : > { %12053 = vst [vmem:[#allocation15_spill] sm:$0xff] %v10965_v49  ;;  %2682 = vst [vmem:[#allocation2 + $0xa9] sm:$0xff] %v10965_v49  ;;  %v10979_v25 = vmax.f32 %v2499_v32, 0.0  ;;  %v9626_v31 = vld [vmem:[%s12009_s3 + $0x1b0] sm:$0xff]   ;;  %v2902_v27 = vld [vmem:[#allocation2 + $0x78] sm:$0xff] }
 0x249   : > { %12054 = vst [vmem:[#allocation16_spill] sm:$0xff] %v10973_v30  ;;  %2685 = vst [vmem:[#allocation2 + $0xc9] sm:$0xff] %v10973_v30  ;;  %v2903_v29 = vld [vmem:[#allocation2 + $0x80] sm:$0xff]  ;;  %v9627_v1 = vld [vmem:[%s12009_s3 + $0x1f8] sm:$0xff]  }
 0x24a   : > { %12055 = vst [vmem:[#allocation17_spill] sm:$0xff] %v10979_v25  ;;  %2683 = vst [vmem:[#allocation2 + $0xb1] sm:$0xff] %v10979_v25  ;;  %v9281_v61 = vpop.f32.mrb[144].mxu0  ;;  %8622 = vmatpush3.bf16.msra.mxu0 %v9619_v22 }
 0x24b   : > { %v2520_v41 = vadd.f32 %v9281_v61, %v10813_v3  ;;  %v2511_v21 = vpop.f32.mrb[145].mxu0  ;;  %8623 = vmatprep.subr.bf16.mxu0 %v9620_v5  ;;  %v2803_v5 = vpack.c.bf16 %v10942_v9, %v10928_v35 }
 0x24c   : > { %v2512_v16 = vadd.f32 %v2511_v21, %v10807_v17  ;;  %v9282_v42 = vpop.f32.mrb[146].mxu0  ;;  %4062 = vmatmul.mubr.bf16.gmra.mrb[140].mxu1 %v10959_v36  ;;  %v9623_v17 = vld [vmem:[%s12009_s3 + $0x1a8] sm:$0xff]  }
 0x24d   : > { %v10998_v3 = vmax.f32 %v2520_v41, 0.0  ;;  %v2523_v52 = vadd.f32 %v9282_v42, %v10816_v26  ;;  %v2514_v34 = vpop.f32.mrb[147].mxu0  ;;  %4215 = vmatmul.mubr.bf16.gmra.mrb[168].mxu0 %v10987_v63  ;;  %4069 = vmatprep.mubr.bf16.mxu1 %v2802_v54  ;;  %v9624_v26 = vld [vmem:[%s12009_s3 + $0x1f0] sm:$0xff]  }
 0x24e   : > { %v11002_v46 = vmax.f32 %v2512_v16, 0.0  ;;  %v2515_v24 = vadd.f32 %v2514_v34, %v10810_v57  ;;  %4222 = vmatprep.mubr.bf16.mxu0 %v10996_v38  ;;  %8624 = vmatpush3.bf16.msra.mxu0 %v9621_v10  ;;  %v2836_v57 = vld [vmem:[#allocation2 + $0x4a] sm:$0xff]  ;;  %v11033_v10 = vpack.c.bf16 %v2903_v29, %v2902_v27  ;;  %v2838_v16 = vld [vmem:[#allocation2 + $0x62] sm:$0xff] }
 0x24f   : > { %12056 = vst [vmem:[#allocation18_spill] sm:$0xff] %v10998_v3  ;;  %2688 = vst [vmem:[#allocation2 + $0xf1] sm:$0xff] %v10998_v3  ;;  %v11010_v33 = vmax.f32 %v2523_v52, 0.0  ;;  %8625 = vmatprep.subr.bf16.mxu0 %v9622_v62  ;;  %v11024_v22 = vpack.c.bf16 %v2837_v12, %v2836_v57  ;;  %v2839_v42 = vld [vmem:[#allocation2 + $0x6a] sm:$0xff] }
 0x250   : > { %12057 = vst [vmem:[#allocation19_spill] sm:$0xff] %v11002_v46  ;;  %2686 = vst [vmem:[#allocation2 + $0xd9] sm:$0xff] %v11002_v46  ;;  %v11016_v56 = vmax.f32 %v2515_v24, 0.0  ;;  %v2904_v57 = vld [vmem:[#allocation2 + $0x90] sm:$0xff] }
 0x251   : > { %12058 = vst [vmem:[#allocation20_spill] sm:$0xff] %v11010_v33  ;;  %2689 = vst [vmem:[#allocation2 + $0xf9] sm:$0xff] %v11010_v33 }
 0x252   : > { %12059 = vst [vmem:[#allocation21_spill] sm:$0xff] %v11016_v56  ;;  %2687 = vst [vmem:[#allocation2 + $0xe1] sm:$0xff] %v11016_v56  ;;  %v9285_v11 = vpop.f32.mrb[148].mxu0  ;;  %8626 = vmatpush3.bf16.msra.mxu0 %v9623_v17  ;;  %v11055_v17 = vpack.c.bf16 %v2839_v42, %v2838_v16 }
 0x253   : > { %v2536_v48 = vadd.f32 %v9285_v11, %v10831_v19  ;;  %v2527_v32 = vpop.f32.mrb[149].mxu0  ;;  %8627 = vmatprep.subr.bf16.mxu0 %v9624_v26  ;;  %v2804_v26 = vpack.c.bf16 %v10936_v13, %v10925_v28 }
 0x254   : > { %v2528_v53 = vadd.f32 %v2527_v32, %v10825_v0  ;;  %v9286_v61 = vpop.f32.mrb[150].mxu0  ;;  %4070 = vmatmul.mubr.bf16.gmra.mrb[144].mxu1 %v10996_v38  ;;  %v9628_v0 = vld [vmem:[%s12009_s3 + $0x1b8] sm:$0xff]  }
 0x255   : > { %v11035_v19 = vmax.f32 %v2536_v48, 0.0  ;;  %v2539_v41 = vadd.f32 %v9286_v61, %v10834_v20  ;;  %v2530_v21 = vpop.f32.mrb[151].mxu0  ;;  %4223 = vmatmul.mubr.bf16.gmra.mrb[172].mxu0 %v11024_v22  ;;  %4077 = vmatprep.mubr.bf16.mxu1 %v2803_v5 }
 0x256   : > { %v11039_v54 = vmax.f32 %v2528_v53, 0.0  ;;  %v2531_v47 = vadd.f32 %v2530_v21, %v10828_v15  ;;  %4230 = vmatprep.mubr.bf16.mxu0 %v11033_v10  ;;  %8628 = vmatpush3.bf16.msra.mxu0 %v9626_v31  ;;  %v2905_v15 = vld [vmem:[#allocation2 + $0x98] sm:$0xff]  ;;  %v2907_v53 = vld [vmem:[#allocation2 + $0xb0] sm:$0xff] }
 0x257   : > { %12060 = vst [vmem:[#allocation22_spill] sm:$0xff] %v11035_v19  ;;  %2692 = vst [vmem:[#allocation2 + $0x121] sm:$0xff] %v11035_v19  ;;  %v11047_v62 = vmax.f32 %v2539_v41, 0.0  ;;  %8629 = vmatprep.subr.bf16.mxu0 %v9627_v1  ;;  %v11061_v11 = vpack.c.bf16 %v2905_v15, %v2904_v57  ;;  %v2840_v1 = vld [vmem:[#allocation2 + $0x7a] sm:$0xff] }
 0x258   : > { %12061 = vst [vmem:[#allocation23_spill] sm:$0xff] %v11039_v54  ;;  %2690 = vst [vmem:[#allocation2 + $0x109] sm:$0xff] %v11039_v54  ;;  %v11050_v20 = vmax.f32 %v2531_v47, 0.0  ;;  %v2805_v47 = vpack.c.bf16 %v10979_v25, %v10965_v49  ;;  %v9652_v25 = vld [vmem:[#allocation6 + $0xc8] sm:$0xff]  }
 0x259   : > { %12062 = vst [vmem:[#allocation24_spill] sm:$0xff] %v11047_v62  ;;  %2693 = vst [vmem:[#allocation2 + $0x129] sm:$0xff] %v11047_v62 }
 0x25a   : > { %12063 = vst [vmem:[#allocation25_spill] sm:$0xff] %v11050_v20  ;;  %2691 = vst [vmem:[#allocation2 + $0x111] sm:$0xff] %v11050_v20  ;;  %v9289_v52 = vpop.f32.mrb[152].mxu0  ;;  %8630 = vmatpush3.bf16.msra.mxu0 %v9628_v0  ;;  %v2906_v0 = vld [vmem:[#allocation2 + $0xa8] sm:$0xff] }
 0x25b   : > { %v2552_v34 = vadd.f32 %v9289_v52, %v10852_v7  ;;  %v2543_v24 = vpop.f32.mrb[153].mxu0  ;;  %v11088_v15 = vpack.c.bf16 %v2907_v53, %v2906_v0  ;;  %v2911_v53 = vld [vmem:[#allocation2 + $0xe0] sm:$0xff] }
 0x25c   : > { %v2544_v12 = vadd.f32 %v2543_v24, %v10843_v39  ;;  %v9290_v29 = vpop.f32.mrb[154].mxu0  ;;  %4078 = vmatmul.mubr.bf16.gmra.mrb[148].mxu1 %v11033_v10 }
 0x25d   : > { %v11063_v31 = vmax.f32 %v2552_v34, 0.0  ;;  %v2555_v48 = vadd.f32 %v9290_v29, %v10855_v14  ;;  %v2546_v32 = vpop.f32.mrb[155].mxu0  ;;  %4231 = vmatmul.mubr.bf16.gmra.mrb[176].mxu0 %v11055_v17  ;;  %4085 = vmatprep.mubr.bf16.mxu1 %v2804_v26  ;;  %v2841_v14 = vld [vmem:[#allocation2 + $0x82] sm:$0xff] }
 0x25e   : > { %v11067_v7 = vmax.f32 %v2544_v12, 0.0  ;;  %v2547_v5 = vadd.f32 %v2546_v32, %v10846_v18  ;;  %4238 = vmatprep.mubr.bf16.mxu0 %v11061_v11  ;;  %v11082_v21 = vpack.c.bf16 %v2841_v14, %v2840_v1  ;;  %v2843_v12 = vld [vmem:[#allocation2 + $0x9a] sm:$0xff]  ;;  %v2909_v29 = vld [vmem:[#allocation2 + $0xc8] sm:$0xff]  ;;  %v2845_v14 = vld [vmem:[#allocation2 + $0xb2] sm:$0xff] }
 0x25f   : > { %12064 = vst [vmem:[#allocation26_spill] sm:$0xff] %v11063_v31  ;;  %2696 = vst [vmem:[#allocation2 + $0x151] sm:$0xff] %v11063_v31  ;;  %v11072_v39 = vmax.f32 %v2555_v48, 0.0  ;;  %v2806_v48 = vpack.c.bf16 %v10973_v30, %v10961_v37  ;;  %v2908_v32 = vld [vmem:[#allocation2 + $0xc0] sm:$0xff]  ;;  %v2844_v1 = vld [vmem:[#allocation2 + $0xaa] sm:$0xff] }
 0x260   : > { %12065 = vst [vmem:[#allocation27_spill] sm:$0xff] %v11067_v7  ;;  %2694 = vst [vmem:[#allocation2 + $0x139] sm:$0xff] %v11067_v7  ;;  %v11075_v27 = vmax.f32 %v2547_v5, 0.0  ;;  %v11113_v5 = vpack.c.bf16 %v2909_v29, %v2908_v32  ;;  %v2849_v32 = vld [vmem:[#allocation2 + $0xe2] sm:$0xff] }
 0x261   : > { %12066 = vst [vmem:[#allocation28_spill] sm:$0xff] %v11072_v39  ;;  %2697 = vst [vmem:[#allocation2 + $0x159] sm:$0xff] %v11072_v39  ;;  %v9656_v37 = vld [vmem:[#allocation6 + $0x38] sm:$0xff]  }
 0x262   : > { %12067 = vst [vmem:[#allocation29_spill] sm:$0xff] %v11075_v27  ;;  %2695 = vst [vmem:[#allocation2 + $0x141] sm:$0xff] %v11075_v27  ;;  %v9293_v61 = vpop.f32.mrb[156].mxu0 }
 0x263   : > { %v11080_v18 = vadd.f32 %v9293_v61, %v10880_v55  ;;  %v2559_v41 = vpop.f32.mrb[157].mxu0  ;;  %v11117_v61 = vpack.c.bf16 %v2845_v14, %v2844_v1  ;;  %v2915_v1 = vld [vmem:[#allocation2 + $0x110] sm:$0xff] }
 0x264   : > { %v2560_v16 = vadd.f32 %v2559_v41, %v10864_v51  ;;  %v9294_v42 = vpop.f32.mrb[158].mxu0  ;;  %4086 = vmatmul.mubr.bf16.gmra.mrb[152].mxu1 %v11061_v11  ;;  %v2807_v41 = vpack.c.bf16 %v11016_v56, %v11002_v46 }
 0x265   : > { %12068 = vst [vmem:[#allocation30_spill] sm:$0xff] %v11080_v18  ;;  %v12020_v52 = vmax.f32 %v11080_v18, 0.0  ;;  %v11092_v34 = vadd.f32 %v9294_v42, %v10886_v23  ;;  %v2562_v55 = vpop.f32.mrb[159].mxu0  ;;  %4239 = vmatmul.mubr.bf16.gmra.mrb[180].mxu0 %v11082_v21  ;;  %4093 = vmatprep.mubr.bf16.mxu1 %v2805_v47  ;;  %v2842_v23 = vld [vmem:[#allocation2 + $0x92] sm:$0xff]  ;;  %v2847_v42 = vld [vmem:[#allocation2 + $0xca] sm:$0xff] }
 0x266   : > { %v11095_v24 = vmax.f32 %v2560_v16, 0.0  ;;  %v2563_v26 = vadd.f32 %v2562_v55, %v10867_v50  ;;  %4246 = vmatprep.mubr.bf16.mxu0 %v11088_v15  ;;  %v11108_v50 = vpack.c.bf16 %v2843_v12, %v2842_v23  ;;  %v2910_v47 = vld [vmem:[#allocation2 + $0xd8] sm:$0xff]  ;;  %v2846_v16 = vld [vmem:[#allocation2 + $0xc2] sm:$0xff]  ;;  %v2808_v23 = vpack.c.bf16 %v11010_v33, %v10998_v3  ;;  %v2912_v12 = vld [vmem:[#allocation2 + $0xf0] sm:$0xff] }
 0x267   : > { %12069 = vst [vmem:[#allocation31_spill] sm:$0xff] %v11092_v34  ;;  %2700 = vst [vmem:[#allocation2 + $0x181] sm:$0xff] %v12020_v52  ;;  %v12019_v51 = vmax.f32 %v11092_v34, 0.0  ;;  %v11122_v0 = vpack.c.bf16 %v2911_v53, %v2910_v47  ;;  %v2913_v55 = vld [vmem:[#allocation2 + $0xf8] sm:$0xff]  ;;  %v2809_v53 = vpack.c.bf16 %v11050_v20, %v11039_v54  ;;  %v2852_v52 = vld [vmem:[#allocation2 + $0x10a] sm:$0xff] }
 0x268   : > { %12070 = vst [vmem:[#allocation32_spill] sm:$0xff] %v11095_v24  ;;  %2698 = vst [vmem:[#allocation2 + $0x169] sm:$0xff] %v11095_v24  ;;  %v11103_v57 = vmax.f32 %v2563_v26, 0.0  ;;  %v11126_v26 = vpack.c.bf16 %v2847_v42, %v2846_v16  ;;  %v11131_v29 = vpack.c.bf16 %v2913_v55, %v2912_v12  ;;  %v2850_v16 = vld [vmem:[#allocation2 + $0xf2] sm:$0xff]  ;;  %v2851_v42 = vld [vmem:[#allocation2 + $0xfa] sm:$0xff]  ;;  %v2810_v12 = vpack.c.bf16 %v11047_v62, %v11035_v19 }
 0x269   : > { %2701 = vst [vmem:[#allocation2 + $0x189] sm:$0xff] %v12019_v51  ;;  %v2917_v55 = vld [vmem:[#allocation2 + $0x128] sm:$0xff]  ;;  %v2853_v34 = vld [vmem:[#allocation2 + $0x112] sm:$0xff]  ;;  %v2919_v18 = vld [vmem:[#allocation2 + $0x140] sm:$0xff] }
 0x26a   : > { %12071 = vst [vmem:[#allocation33_spill] sm:$0xff] %v11103_v57  ;;  %2699 = vst [vmem:[#allocation2 + $0x171] sm:$0xff] %v11103_v57  ;;  %v11157_v20 = vpack.c.bf16 %v2853_v34, %v2852_v52  ;;  %v2812_v52 = vpack.c.bf16 %v11072_v39, %v11063_v31  ;;  %v2920_v34 = vld [vmem:[#allocation2 + $0x150] sm:$0xff] }
 0x26c   : > { %4094 = vmatmul.mubr.bf16.gmra.mrb[156].mxu1 %v11088_v15 }
 0x26d   : > { %4247 = vmatmul.mubr.bf16.gmra.mrb[184].mxu0 %v11108_v50  ;;  %4101 = vmatprep.mubr.bf16.mxu1 %v2806_v48  ;;  %v2848_v48 = vld [vmem:[#allocation2 + $0xda] sm:$0xff] }
 0x26e   : > { %4254 = vmatprep.mubr.bf16.mxu0 %v11113_v5  ;;  %v11135_v14 = vpack.c.bf16 %v2849_v32, %v2848_v48  ;;  %v2916_v48 = vld [vmem:[#allocation2 + $0x120] sm:$0xff] }
 0x26f   : > { %v11149_v51 = vpack.c.bf16 %v2917_v55, %v2916_v48  ;;  %v2811_v55 = vpack.c.bf16 %v11075_v27, %v11067_v7  ;;  %v2918_v48 = vld [vmem:[#allocation2 + $0x138] sm:$0xff] }
 0x271   : > { %v3241_v33 = vld [vmem:[#allocation2 + $0x172] sm:$0xff] }
 0x274   : > { %4102 = vmatmul.mubr.bf16.gmra.mrb[160].mxu1 %v11113_v5 }
 0x275   : > { %4255 = vmatmul.mubr.bf16.gmra.mrb[188].mxu0 %v11117_v61  ;;  %4109 = vmatprep.mubr.bf16.mxu1 %v2807_v41  ;;  %v2914_v41 = vld [vmem:[#allocation2 + $0x108] sm:$0xff] }
 0x276   : > { %4262 = vmatprep.mubr.bf16.mxu0 %v11122_v0  ;;  %v11140_v47 = vpack.c.bf16 %v2915_v1, %v2914_v41 }
 0x27c   : > { %4110 = vmatmul.mubr.bf16.gmra.mrb[164].mxu1 %v11122_v0 }
 0x27d   : > { %4263 = vmatmul.mubr.bf16.gmra.mrb[192].mxu0 %v11126_v26  ;;  %4117 = vmatprep.mubr.bf16.mxu1 %v2808_v23  ;;  %v11144_v23 = vpack.c.bf16 %v2851_v42, %v2850_v16 }
 0x27e   : > { %4270 = vmatprep.mubr.bf16.mxu0 %v11131_v29 }
 0x281   : > { %v8295_v32 = vpop.f32.mrb[128].mxu1 }
 0x282   : > { %v8296_v1 = vpop.f32.mrb[129].mxu1 }
 0x283   : > { %v8298_v41 = vpop.f32.mrb[130].mxu1 }
 0x284   : > { %4118 = vmatmul.mubr.bf16.gmra.mrb[168].mxu1 %v11131_v29  ;;  %v8299_v16 = vpop.f32.mrb[131].mxu1 }
 0x285   : > { %4271 = vmatmul.mubr.bf16.gmra.mrb[196].mxu0 %v11135_v14  ;;  %4125 = vmatprep.mubr.bf16.mxu1 %v2809_v53  ;;  %v11152_v53 = vadd.f32 %v8296_v1, %v8295_v32  ;;  %v11155_v42 = vadd.f32 %v8299_v16, %v8298_v41  ;;  %v2854_v32 = vld [vmem:[#allocation2 + $0x122] sm:$0xff]  ;;  %v2855_v1 = vld [vmem:[#allocation2 + $0x12a] sm:$0xff]  ;;  %v2921_v41 = vld [vmem:[#allocation2 + $0x158] sm:$0xff] }
 0x286   : > { %4278 = vmatprep.mubr.bf16.mxu0 %v11140_v47  ;;  %v11166_v16 = vpack.c.bf16 %v2855_v1, %v2854_v32  ;;  %v11171_v27 = vpack.c.bf16 %v2921_v41, %v2920_v34  ;;  %v2813_v32 = vpack.c.bf16 %v11103_v57, %v11095_v24  ;;  %v2922_v1 = vld [vmem:[#allocation2 + $0x168] sm:$0xff]  ;;  %v2858_v41 = vld [vmem:[#allocation2 + $0x152] sm:$0xff] }
 0x287   : > { %v2925_v34 = vld [vmem:[#allocation2 + $0x188] sm:$0xff]  ;;  %v2958_v57 = vld [vmem:[#allocation2 + $0x19] sm:$0xff] }
 0x288   : > { %v3151_v24 = vld [vmem:[#allocation2 + $0x39] sm:$0xff] }
 0x28c   : > { %4126 = vmatmul.mubr.bf16.gmra.mrb[172].mxu1 %v11140_v47 }
 0x28d   : > { %4279 = vmatmul.mubr.bf16.gmra.mrb[200].mxu0 %v11144_v23  ;;  %4133 = vmatprep.mubr.bf16.mxu1 %v2810_v12  ;;  %v11162_v12 = vpack.c.bf16 %v2919_v18, %v2918_v48  ;;  %v2856_v18 = vld [vmem:[#allocation2 + $0x13a] sm:$0xff]  ;;  %v2923_v48 = vld [vmem:[#allocation2 + $0x170] sm:$0xff] }
 0x28e   : > { %4286 = vmatprep.mubr.bf16.mxu0 %v11149_v51  ;;  %v11180_v39 = vpack.c.bf16 %v2923_v48, %v2922_v1  ;;  %v2959_v48 = vld [vmem:[#allocation2 + $0x21] sm:$0xff]  ;;  %v2861_v1 = vld [vmem:[#allocation2 + $0x172] sm:$0xff] }
 0x28f   : > { %v2990_v62 = vpack.c.bf16 %v2959_v48, %v2958_v57  ;;  %v3153_v57 = vld [vmem:[#allocation2 + $0x51] sm:$0xff]  ;;  %v3154_v48 = vld [vmem:[#allocation2 + $0x61] sm:$0xff] }
 0x294   : > { %4134 = vmatmul.mubr.bf16.gmra.mrb[176].mxu1 %v11149_v51 }
 0x295   : > { %4287 = vmatmul.mubr.bf16.gmra.mrb[204].mxu0 %v11157_v20  ;;  %4141 = vmatprep.mubr.bf16.mxu1 %v2811_v55  ;;  %v2857_v55 = vld [vmem:[#allocation2 + $0x142] sm:$0xff] }
 0x296   : > { %4294 = vmatprep.mubr.bf16.mxu0 %v11162_v12  ;;  %v11175_v7 = vpack.c.bf16 %v2857_v55, %v2856_v18  ;;  %v2924_v18 = vld [vmem:[#allocation2 + $0x180] sm:$0xff] }
 0x297   : > { %v11187_v55 = vpack.c.bf16 %v2925_v34, %v2924_v18  ;;  %v3152_v18 = vld [vmem:[#allocation2 + $0x49] sm:$0xff] }
 0x29c   : > { %4142 = vmatmul.mubr.bf16.gmra.mrb[180].mxu1 %v11162_v12 }
 0x29d   : > { %4295 = vmatmul.mubr.bf16.gmra.mrb[208].mxu0 %v11166_v16  ;;  %4149 = vmatprep.mubr.bf16.mxu1 %v2812_v52  ;;  %v2859_v52 = vld [vmem:[#allocation2 + $0x15a] sm:$0xff] }
 0x29e   : > { %4302 = vmatprep.mubr.bf16.mxu0 %v11171_v27  ;;  %v11184_v31 = vpack.c.bf16 %v2859_v52, %v2858_v41  ;;  %v3150_v41 = vld [vmem:[#allocation2 + $0x31] sm:$0xff]  ;;  %v9629_v52 = vld [vmem:[%s12009_s3 + $0x208] sm:$0xff]  }
 0x29f   : > { %v3182_v34 = vpack.c.bf16 %v3151_v24, %v3150_v41  ;;  %v3183_v24 = vpack.c.bf16 %v3153_v57, %v3152_v18  ;;  %v3156_v41 = vld [vmem:[#allocation2 + $0x79] sm:$0xff]  ;;  %v3161_v57 = vld [vmem:[#allocation2 + $0xb1] sm:$0xff]  ;;  %v3160_v18 = vld [vmem:[#allocation2 + $0xa9] sm:$0xff] }
 0x2a4   : > { %4150 = vmatmul.mubr.bf16.gmra.mrb[184].mxu1 %v11171_v27 }
 0x2a5   : > { %4303 = vmatmul.mubr.bf16.gmra.mrb[212].mxu0 %v11175_v7  ;;  %4157 = vmatprep.mubr.bf16.mxu1 %v2813_v32  ;;  %v2860_v32 = vld [vmem:[#allocation2 + $0x16a] sm:$0xff] }
 0x2a6   : > { %4310 = vmatprep.mubr.bf16.mxu0 %v11180_v39  ;;  %v11192_v54 = vpack.c.bf16 %v2861_v1, %v2860_v32  ;;  %v9633_v32 = vld [vmem:[%s12009_s3 + $0x228] sm:$0xff]  }
 0x2ac   : > { %4158 = vmatmul.mubr.bf16.gmra.mrb[188].mxu1 %v11180_v39 }
 0x2ad   : > { %4311 = vmatmul.mubr.bf16.gmra.mrb[216].mxu0 %v11184_v31  ;;  %4359 = vmatprep.mubr.bf16.mxu1 %v10950_v8  ;;  %v9630_v8 = vld [vmem:[%s12009_s3 + $0x210] sm:$0xff]  }
 0x2ae   : > { %4318 = vmatprep.mubr.bf16.mxu0 %v11187_v55 }
 0x2b4   : > { %4360 = vmatmul.mubr.bf16.vlgmr.msra.gmra.mrb[192].mxu1 %v2990_v62  ;;  %v9631_v62 = vld [vmem:[%s12009_s3 + $0x218] sm:$0xff]  }
 0x2b5   : > { %4319 = vmatmul.mubr.bf16.gmra.mrb[220].mxu0 %v11192_v54  ;;  %4367 = vmatprep.mubr.bf16.mxu1 %v10987_v63  ;;  %v3155_v63 = vld [vmem:[#allocation2 + $0x69] sm:$0xff] }
 0x2b6   : > { %4520 = vmatprep.mubr.bf16.mxu0 %v3182_v34  ;;  %9296 = vmatpush3.bf16.msra.mxu1 %v10899_v45  ;;  %v9632_v45 = vld [vmem:[%s12009_s3 + $0x220] sm:$0xff]   ;;  %v3184_v1 = vpack.c.bf16 %v3155_v63, %v3154_v48 }
 0x2b7   : > { %9297 = vmatprep.subr.bf16.mxu1 %v9629_v52 }
 0x2ba   : > { %9298 = vmatpush3.bf16.msra.mxu1 %v9629_v52  ;;  %v9635_v52 = vld [vmem:[%s12009_s3 + $0x238] sm:$0xff]  }
 0x2bb   : > { %9299 = vmatprep.subr.bf16.mxu1 %v9630_v8 }
 0x2bc   : > { %4368 = vmatmul.mubr.bf16.gmra.mrb[196].mxu1 %v3182_v34 }
 0x2bd   : > { %4521 = vmatmul.mubr.bf16.vlgmr.msra.gmra.mrb[224].mxu0 %v10923_v44  ;;  %4375 = vmatprep.mubr.bf16.mxu1 %v11024_v22  ;;  %v9634_v44 = vld [vmem:[%s12009_s3 + $0x230] sm:$0xff]   ;;  %v3157_v22 = vld [vmem:[#allocation2 + $0x81] sm:$0xff] }
 0x2be   : > { %4528 = vmatprep.mubr.bf16.mxu0 %v3183_v24  ;;  %9300 = vmatpush3.bf16.msra.mxu1 %v9630_v8  ;;  %v3185_v34 = vpack.c.bf16 %v3157_v22, %v3156_v41 }
 0x2bf   : > { %9301 = vmatprep.subr.bf16.mxu1 %v9631_v62 }
 0x2c2   : > { %9302 = vmatpush3.bf16.msra.mxu1 %v9631_v62  ;;  %v3187_v62 = vpack.c.bf16 %v3161_v57, %v3160_v18  ;;  %v3174_v57 = vld [vmem:[#allocation2 + $0x151] sm:$0xff] }
 0x2c3   : > { %9303 = vmatprep.subr.bf16.mxu1 %v9632_v45 }
 0x2c4   : > { %4376 = vmatmul.mubr.bf16.gmra.mrb[200].mxu1 %v3183_v24 }
 0x2c5   : > { %4529 = vmatmul.mubr.bf16.gmra.mrb[228].mxu0 %v10959_v36  ;;  %4383 = vmatprep.mubr.bf16.mxu1 %v11055_v17  ;;  %v3159_v36 = vld [vmem:[#allocation2 + $0x99] sm:$0xff]  ;;  %v3158_v17 = vld [vmem:[#allocation2 + $0x91] sm:$0xff] }
 0x2c6   : > { %4536 = vmatprep.mubr.bf16.mxu0 %v3184_v1  ;;  %9304 = vmatpush3.bf16.msra.mxu1 %v9632_v45  ;;  %v3186_v8 = vpack.c.bf16 %v3159_v36, %v3158_v17 }
 0x2c7   : > { %9305 = vmatprep.subr.bf16.mxu1 %v9633_v32 }
 0x2ca   : > { %9306 = vmatpush3.bf16.msra.mxu1 %v9633_v32 }
 0x2cb   : > { %9307 = vmatprep.subr.bf16.mxu1 %v9634_v44 }
 0x2cc   : > { %4384 = vmatmul.mubr.bf16.gmra.mrb[204].mxu1 %v3184_v1 }
 0x2cd   : > { %4537 = vmatmul.mubr.bf16.gmra.mrb[232].mxu0 %v10996_v38  ;;  %4391 = vmatprep.mubr.bf16.mxu1 %v11082_v21  ;;  %v3163_v38 = vld [vmem:[#allocation2 + $0xc9] sm:$0xff]  ;;  %v3162_v21 = vld [vmem:[#allocation2 + $0xc1] sm:$0xff] }
 0x2ce   : > { %4544 = vmatprep.mubr.bf16.mxu0 %v3185_v34  ;;  %9308 = vmatpush3.bf16.msra.mxu1 %v9634_v44  ;;  %v3188_v24 = vpack.c.bf16 %v3163_v38, %v3162_v21 }
 0x2cf   : > { %9309 = vmatprep.subr.bf16.mxu1 %v9635_v52 }
 0x2d2   : > { %9310 = vmatpush3.bf16.msra.mxu1 %v9635_v52  ;;  %v3175_v52 = vld [vmem:[#allocation2 + $0x159] sm:$0xff] }
 0x2d3   : > { %v3194_v38 = vpack.c.bf16 %v3175_v52, %v3174_v57  ;;  %v3053_v52 = vld [vmem:[#allocation2 + $0x18a] sm:$0xff] }
 0x2d4   : > { %4392 = vmatmul.mubr.bf16.gmra.mrb[208].mxu1 %v3185_v34 }
 0x2d5   : > { %4545 = vmatmul.mubr.bf16.gmra.mrb[236].mxu0 %v11033_v10  ;;  %4399 = vmatprep.mubr.bf16.mxu1 %v11108_v50  ;;  %v3165_v10 = vld [vmem:[#allocation2 + $0xe1] sm:$0xff]  ;;  %v3164_v50 = vld [vmem:[#allocation2 + $0xd9] sm:$0xff] }
 0x2d6   : > { %4552 = vmatprep.mubr.bf16.mxu0 %v3186_v8  ;;  %v3189_v45 = vpack.c.bf16 %v3165_v10, %v3164_v50 }
 0x2dc   : > { %4400 = vmatmul.mubr.bf16.gmra.mrb[212].mxu1 %v3186_v8 }
 0x2dd   : > { %4553 = vmatmul.mubr.bf16.gmra.mrb[240].mxu0 %v11061_v11  ;;  %4407 = vmatprep.mubr.bf16.mxu1 %v11117_v61  ;;  %v3167_v11 = vld [vmem:[#allocation2 + $0xf9] sm:$0xff]  ;;  %v3166_v61 = vld [vmem:[#allocation2 + $0xf1] sm:$0xff] }
 0x2de   : > { %4560 = vmatprep.mubr.bf16.mxu0 %v3187_v62  ;;  %v3190_v63 = vpack.c.bf16 %v3167_v11, %v3166_v61 }
 0x2e4   : > { %4408 = vmatmul.mubr.bf16.gmra.mrb[216].mxu1 %v3187_v62 }
 0x2e5   : > { %4561 = vmatmul.mubr.bf16.gmra.mrb[244].mxu0 %v11088_v15  ;;  %4415 = vmatprep.mubr.bf16.mxu1 %v11126_v26  ;;  %v3169_v15 = vld [vmem:[#allocation2 + $0x111] sm:$0xff]  ;;  %v3168_v26 = vld [vmem:[#allocation2 + $0x109] sm:$0xff] }
 0x2e6   : > { %4568 = vmatprep.mubr.bf16.mxu0 %v3188_v24  ;;  %v3191_v48 = vpack.c.bf16 %v3169_v15, %v3168_v26  ;;  %v3177_v15 = vld [vmem:[#allocation2 + $0x171] sm:$0xff] }
 0x2ec   : > { %4416 = vmatmul.mubr.bf16.gmra.mrb[220].mxu1 %v3188_v24  ;;  %v9636_v24 = vld [vmem:[#allocation6 + $0x40] sm:$0xff]  }
 0x2ed   : > { %4569 = vmatmul.mubr.bf16.gmra.mrb[248].mxu0 %v11113_v5  ;;  %4423 = vmatprep.mubr.bf16.mxu1 %v11135_v14  ;;  %v3171_v5 = vld [vmem:[#allocation2 + $0x129] sm:$0xff]  ;;  %v3170_v14 = vld [vmem:[#allocation2 + $0x121] sm:$0xff] }
 0x2ee   : > { %4576 = vmatprep.mubr.bf16.mxu0 %v3189_v45  ;;  %v3192_v32 = vpack.c.bf16 %v3171_v5, %v3170_v14  ;;  %8751 = vmatprep.subr.bf16.mxu0 %v9636_v24 }
 0x2f4   : > { %4424 = vmatmul.mubr.bf16.gmra.mrb[224].mxu1 %v3189_v45 }
 0x2f5   : > { %4577 = vmatmul.mubr.bf16.gmra.mrb[252].mxu0 %v11122_v0  ;;  %4431 = vmatprep.mubr.bf16.mxu1 %v11144_v23  ;;  %v3173_v0 = vld [vmem:[#allocation2 + $0x141] sm:$0xff]  ;;  %v3172_v23 = vld [vmem:[#allocation2 + $0x139] sm:$0xff] }
 0x2f6   : > { %4584 = vmatprep.mubr.bf16.mxu0 %v3190_v63  ;;  %v3193_v1 = vpack.c.bf16 %v3173_v0, %v3172_v23 }
 0x2fc   : > { %4432 = vmatmul.mubr.bf16.gmra.mrb[228].mxu1 %v3190_v63 }
 0x2fd   : > { %4585 = vmatmul.mubr.bf16.gmra.mrb[0].mxu0 %v11131_v29  ;;  %4439 = vmatprep.mubr.bf16.mxu1 %v11157_v20  ;;  %v11243_v20 = vld [vmem:[%s12010_s4] ss:$0 sm:$0xff] }
 0x2fe   : > { %4592 = vmatprep.mubr.bf16.mxu0 %v3191_v48  ;;  %v4040_v34 = vadd.f32 %v11152_v53, %v11243_v20  ;;  %v4043_v18 = vadd.f32 %v11155_v42, %v11243_v20  ;;  %v9637_v53 = vld [vmem:[#allocation6] sm:$0xff]  }
 0x2ff   : > { %8752 = vmatpush3.bf16.msra.mxu0 %v9637_v53 }
 0x304   : > { %4440 = vmatmul.mubr.bf16.gmra.mrb[232].mxu1 %v3191_v48 }
 0x305   : > { %4593 = vmatmul.mubr.bf16.gmra.mrb[4].mxu0 %v11140_v47  ;;  %4447 = vmatprep.mubr.bf16.mxu1 %v11166_v16 }
 0x306   : > { %4600 = vmatprep.mubr.bf16.mxu0 %v3192_v32 }
 0x30c   : > { %4448 = vmatmul.mubr.bf16.gmra.mrb[236].mxu1 %v3192_v32  ;;  %v3176_v32 = vld [vmem:[#allocation2 + $0x169] sm:$0xff] }
 0x30d   : > { %4601 = vmatmul.mubr.bf16.gmra.mrb[8].mxu0 %v11149_v51  ;;  %4455 = vmatprep.mubr.bf16.mxu1 %v11175_v7 }
 0x30e   : > { %4608 = vmatprep.mubr.bf16.mxu0 %v3193_v1 }
 0x30f   : > { %v8301_v29 = vpop.f32.mrb[132].mxu1 }
 0x310   : > { %v8407_v44 = vpop.f32.mrb[160].mxu0  ;;  %v8302_v47 = vpop.f32.mrb[133].mxu1 }
 0x311   : > { %v8303_v22 = vadd.f32 %v8302_v47, %v8301_v29  ;;  %v8408_v16 = vpop.f32.mrb[161].mxu0  ;;  %v8304_v41 = vpop.f32.mrb[134].mxu1 }
 0x312   : > { %v8409_v36 = vadd.f32 %v8408_v16, %v8407_v44  ;;  %v8410_v51 = vpop.f32.mrb[162].mxu0  ;;  %v8305_v17 = vpop.f32.mrb[135].mxu1 }
 0x313   : > { %v8306_v7 = vadd.f32 %v8305_v17, %v8304_v41  ;;  %v8411_v8 = vpop.f32.mrb[163].mxu0  ;;  %v4048_v26 = vadd.f32 %v8303_v22, %v11243_v20  ;;  %v3052_v41 = vld [vmem:[#allocation2 + $0x182] sm:$0xff] }
 0x314   : > { %v8412_v62 = vadd.f32 %v8411_v8, %v8410_v51  ;;  %4456 = vmatmul.mubr.bf16.gmra.mrb[240].mxu1 %v3193_v1  ;;  %v11249_v21 = vadd.f32 %v8409_v36, %v4040_v34  ;;  %v3195_v1 = vpack.c.bf16 %v3177_v15, %v3176_v32  ;;  %v3179_v17 = vld [vmem:[#allocation2 + $0x189] sm:$0xff]  ;;  %v3180_v15 = vld [vmem:[#allocation2 + $0x199] sm:$0xff] }
 0x315   : > { %4609 = vmatmul.mubr.bf16.gmra.mrb[12].mxu0 %v11162_v12  ;;  %4463 = vmatprep.mubr.bf16.mxu1 %v11184_v31  ;;  %v4051_v0 = vadd.f32 %v8306_v7, %v11243_v20 }
 0x316   : > { %4616 = vmatprep.mubr.bf16.mxu0 %v3194_v38  ;;  %v11253_v10 = vadd.f32 %v8412_v62, %v4043_v18 }
 0x317   : > { %v8307_v50 = vpop.f32.mrb[136].mxu1 }
 0x318   : > { %v8413_v45 = vpop.f32.mrb[164].mxu0  ;;  %v8308_v11 = vpop.f32.mrb[137].mxu1 }
 0x319   : > { %v8309_v42 = vadd.f32 %v8308_v11, %v8307_v50  ;;  %v8414_v61 = vpop.f32.mrb[165].mxu0  ;;  %v8310_v63 = vpop.f32.mrb[138].mxu1  ;;  %v9638_v11 = vld [vmem:[#allocation6 + $0x48] sm:$0xff]  }
 0x31a   : > { %v8415_v48 = vadd.f32 %v8414_v61, %v8413_v45  ;;  %v8416_v12 = vpop.f32.mrb[166].mxu0  ;;  %v8311_v5 = vpop.f32.mrb[139].mxu1  ;;  %8753 = vmatprep.subr.bf16.mxu0 %v9638_v11 }
 0x31b   : > { %v8312_v31 = vadd.f32 %v8311_v5, %v8310_v63  ;;  %v8417_v14 = vpop.f32.mrb[167].mxu0  ;;  %v4056_v7 = vadd.f32 %v8309_v42, %v11243_v20  ;;  %v9639_v42 = vld [vmem:[#allocation6 + $0x8] sm:$0xff]  }
 0x31c   : > { %v8418_v23 = vadd.f32 %v8417_v14, %v8416_v12  ;;  %4464 = vmatmul.mubr.bf16.gmra.mrb[244].mxu1 %v3194_v38  ;;  %v11257_v29 = vadd.f32 %v8415_v48, %v4048_v26  ;;  %v3178_v38 = vld [vmem:[#allocation2 + $0x181] sm:$0xff]  ;;  %v3214_v5 = vld [vmem:[#allocation2 + $0x32] sm:$0xff]  ;;  %8754 = vmatpush3.bf16.msra.mxu0 %v9639_v42 }
 0x31d   : > { %4617 = vmatmul.mubr.bf16.gmra.mrb[16].mxu0 %v11171_v27  ;;  %4471 = vmatprep.mubr.bf16.mxu1 %v11192_v54  ;;  %v11264_v54 = vpack.c.bf16 %v3053_v52, %v3052_v41  ;;  %v4059_v24 = vadd.f32 %v8312_v31, %v11243_v20  ;;  %v3196_v50 = vpack.c.bf16 %v3179_v17, %v3178_v38  ;;  %v3181_v26 = vld [vmem:[#allocation2 + $0x1a1] sm:$0xff] }
 0x31e   : > { %4624 = vmatprep.mubr.bf16.mxu0 %v3195_v1  ;;  %v11261_v44 = vadd.f32 %v8418_v23, %v4051_v0  ;;  %v3215_v31 = vld [vmem:[#allocation2 + $0x3a] sm:$0xff]  ;;  %v3218_v38 = vld [vmem:[#allocation2 + $0x62] sm:$0xff] }
 0x31f   : > { %v8313_v47 = vpop.f32.mrb[140].mxu1  ;;  %v3246_v52 = vpack.c.bf16 %v3215_v31, %v3214_v5  ;;  %v9717_v42 = vld [vmem:[#allocation2] sm:$0xff] }
 0x320   : > { %v8419_v22 = vpop.f32.mrb[168].mxu0  ;;  %v8314_v16 = vpop.f32.mrb[141].mxu1 }
 0x321   : > { %v8315_v34 = vadd.f32 %v8314_v16, %v8313_v47  ;;  %v8420_v36 = vpop.f32.mrb[169].mxu0  ;;  %v8316_v51 = vpop.f32.mrb[142].mxu1 }
 0x322   : > { %v8421_v8 = vadd.f32 %v8420_v36, %v8419_v22  ;;  %v8422_v57 = vpop.f32.mrb[170].mxu0  ;;  %v8317_v18 = vpop.f32.mrb[143].mxu1  ;;  %v3197_v22 = vpack.c.bf16 %v3181_v26, %v3180_v15 }
 0x323   : > { %v8318_v27 = vadd.f32 %v8317_v18, %v8316_v51  ;;  %v8423_v62 = vpop.f32.mrb[171].mxu0 }
 0x324   : > { %v8424_v53 = vadd.f32 %v8423_v62, %v8422_v57  ;;  %4472 = vmatmul.mubr.bf16.gmra.mrb[248].mxu1 %v3195_v1  ;;  %v11267_v45 = vadd.f32 %v8421_v8, %v4056_v7  ;;  %v3216_v8 = vld [vmem:[#allocation2 + $0x4a] sm:$0xff]  ;;  %v3217_v57 = vld [vmem:[#allocation2 + $0x52] sm:$0xff] }
 0x325   : > { %4625 = vmatmul.mubr.bf16.gmra.mrb[20].mxu0 %v11180_v39  ;;  %4479 = vmatprep.mubr.bf16.mxu1 %v11264_v54  ;;  %v4064_v39 = vadd.f32 %v8315_v34, %v11243_v20  ;;  %v4067_v36 = vadd.f32 %v8318_v27, %v11243_v20 }
 0x326   : > { %4632 = vmatprep.mubr.bf16.mxu0 %v3196_v50  ;;  %v11271_v61 = vadd.f32 %v8424_v53, %v4059_v24  ;;  %v3219_v24 = vld [vmem:[#allocation2 + $0x6a] sm:$0xff] }
 0x327   : > { %v8319_v63 = vpop.f32.mrb[144].mxu1  ;;  %v3248_v31 = vpack.c.bf16 %v3219_v24, %v3218_v38 }
 0x328   : > { %v8425_v48 = vpop.f32.mrb[172].mxu0  ;;  %v8320_v12 = vpop.f32.mrb[145].mxu1 }
 0x329   : > { %v8321_v14 = vadd.f32 %v8320_v12, %v8319_v63  ;;  %v8426_v32 = vpop.f32.mrb[173].mxu0  ;;  %v8322_v0 = vpop.f32.mrb[146].mxu1 }
 0x32a   : > { %v8427_v23 = vadd.f32 %v8426_v32, %v8425_v48  ;;  %v8428_v1 = vpop.f32.mrb[174].mxu0  ;;  %v8323_v47 = vpop.f32.mrb[147].mxu1  ;;  %v3247_v48 = vpack.c.bf16 %v3217_v57, %v3216_v8 }
 0x32b   : > { %v8324_v16 = vadd.f32 %v8323_v47, %v8322_v0  ;;  %v8429_v41 = vpop.f32.mrb[175].mxu0  ;;  %v4072_v63 = vadd.f32 %v8321_v14, %v11243_v20 }
 0x32c   : > { %v8430_v51 = vadd.f32 %v8429_v41, %v8428_v1  ;;  %4480 = vmatmul.mubr.bf16.gmra.mrb[252].mxu1 %v3196_v50  ;;  %v11275_v17 = vadd.f32 %v8427_v23, %v4064_v39  ;;  %v11280_v50 = vpack.c.bf16 %v9717_v42, %v9717_v42  ;;  %v9640_v23 = vld [vmem:[#allocation6 + $0x50] sm:$0xff]  }
 0x32d   : > { %4633 = vmatmul.mubr.bf16.gmra.mrb[24].mxu0 %v11187_v55  ;;  %9311 = vmatprep.mubr.bf16.mxu1 %v3246_v52  ;;  %v4075_v32 = vadd.f32 %v8324_v16, %v11243_v20  ;;  %v9641_v1 = vld [vmem:[#allocation6 + $0x10] sm:$0xff]  }
 0x32e   : > { %4640 = vmatprep.mubr.bf16.mxu0 %v3197_v22  ;;  %v11278_v7 = vadd.f32 %v8430_v51, %v4067_v36  ;;  %v3220_v22 = vld [vmem:[#allocation2 + $0x7a] sm:$0xff]  ;;  %v3221_v41 = vld [vmem:[#allocation2 + $0x82] sm:$0xff]  ;;  %8755 = vmatprep.subr.bf16.mxu0 %v9640_v23  ;;  %v3222_v51 = vld [vmem:[#allocation2 + $0x92] sm:$0xff] }
 0x32f   : > { %v8325_v34 = vpop.f32.mrb[148].mxu1  ;;  %8756 = vmatpush3.bf16.msra.mxu0 %v9641_v1  ;;  %v3226_v23 = vld [vmem:[#allocation2 + $0xc2] sm:$0xff]  ;;  %v3227_v1 = vld [vmem:[#allocation2 + $0xca] sm:$0xff] }
 0x330   : > { %v8431_v18 = vpop.f32.mrb[176].mxu0  ;;  %v8326_v62 = vpop.f32.mrb[149].mxu1 }
 0x331   : > { %v8327_v53 = vadd.f32 %v8326_v62, %v8325_v34  ;;  %v8432_v11 = vpop.f32.mrb[177].mxu0  ;;  %v8328_v27 = vpop.f32.mrb[150].mxu1  ;;  %v3223_v34 = vld [vmem:[#allocation2 + $0x9a] sm:$0xff] }
 0x332   : > { %v8433_v55 = vadd.f32 %v8432_v11, %v8431_v18  ;;  %v8434_v15 = vpop.f32.mrb[178].mxu0  ;;  %v8329_v26 = vpop.f32.mrb[151].mxu1  ;;  %v3249_v11 = vpack.c.bf16 %v3221_v41, %v3220_v22 }
 0x333   : > { %v8330_v12 = vadd.f32 %v8329_v26, %v8328_v27  ;;  %v8435_v5 = vpop.f32.mrb[179].mxu0  ;;  %v4080_v18 = vadd.f32 %v8327_v53, %v11243_v20 }
 0x334   : > { %v8436_v0 = vadd.f32 %v8435_v5, %v8434_v15  ;;  %9312 = vmatmul.mubr.bf16.vlgmr.msra.gmra.mrb[0].mxu1 %v3247_v48  ;;  %v11284_v39 = vadd.f32 %v8433_v55, %v4072_v63  ;;  %v3250_v63 = vpack.c.bf16 %v3223_v34, %v3222_v51 }
 0x335   : > { %4641 = vmatmul.mubr.bf16.gmra.mrb[28].mxu0 %v11280_v50  ;;  %9315 = vmatprep.mubr.bf16.mxu1 %v3248_v31  ;;  %v4083_v55 = vadd.f32 %v8330_v12, %v11243_v20  ;;  %v3224_v31 = vld [vmem:[#allocation2 + $0xaa] sm:$0xff] }
 0x336   : > { %v11287_v47 = vadd.f32 %v8436_v0, %v4075_v32  ;;  %v3225_v32 = vld [vmem:[#allocation2 + $0xb2] sm:$0xff] }
 0x337   : > { %v8331_v14 = vpop.f32.mrb[152].mxu1  ;;  %v3251_v34 = vpack.c.bf16 %v3225_v32, %v3224_v31  ;;  %v3230_v32 = vld [vmem:[#allocation2 + $0xf2] sm:$0xff] }
 0x338   : > { %v8437_v52 = vpop.f32.mrb[180].mxu0  ;;  %v8332_v36 = vpop.f32.mrb[153].mxu1 }
 0x339   : > { %v8333_v16 = vadd.f32 %v8332_v36, %v8331_v14  ;;  %v8438_v8 = vpop.f32.mrb[181].mxu0  ;;  %v8334_v57 = vpop.f32.mrb[154].mxu1 }
 0x33a   : > { %v8439_v62 = vadd.f32 %v8438_v8, %v8437_v52  ;;  %v8440_v38 = vpop.f32.mrb[182].mxu0  ;;  %v8335_v24 = vpop.f32.mrb[155].mxu1 }
 0x33b   : > { %v8336_v27 = vadd.f32 %v8335_v24, %v8334_v57  ;;  %v8441_v42 = vpop.f32.mrb[183].mxu0  ;;  %v4088_v52 = vadd.f32 %v8333_v16, %v11243_v20  ;;  %v3228_v16 = vld [vmem:[#allocation2 + $0xda] sm:$0xff] }
 0x33c   : > { %v8442_v15 = vadd.f32 %v8441_v42, %v8440_v38  ;;  %9316 = vmatmul.mubr.bf16.gmra.mrb[4].mxu1 %v3249_v11  ;;  %v11291_v26 = vadd.f32 %v8439_v62, %v4080_v18  ;;  %v3252_v18 = vpack.c.bf16 %v3227_v1, %v3226_v23  ;;  %v9642_v11 = vld [vmem:[#allocation6 + $0x58] sm:$0xff]  }
 0x33d   : > { %9319 = vmatprep.mubr.bf16.mxu1 %v3250_v63  ;;  %v4091_v62 = vadd.f32 %v8336_v27, %v11243_v20  ;;  %v9643_v42 = vld [vmem:[#allocation6 + $0x18] sm:$0xff]   ;;  %8757 = vmatprep.subr.bf16.mxu0 %v9642_v11 }
 0x33e   : > { %v11293_v48 = vadd.f32 %v8442_v15, %v4083_v55  ;;  %v3229_v15 = vld [vmem:[#allocation2 + $0xe2] sm:$0xff]  ;;  %8758 = vmatpush3.bf16.msra.mxu0 %v9643_v42  ;;  %v3232_v42 = vld [vmem:[#allocation2 + $0x10a] sm:$0xff] }
 0x33f   : > { %v8337_v5 = vpop.f32.mrb[156].mxu1 }
 0x340   : > { %v8443_v53 = vpop.f32.mrb[184].mxu0  ;;  %v8338_v0 = vpop.f32.mrb[157].mxu1 }
 0x341   : > { %v8339_v14 = vadd.f32 %v8338_v0, %v8337_v5  ;;  %v8444_v22 = vpop.f32.mrb[185].mxu0  ;;  %v8340_v41 = vpop.f32.mrb[158].mxu1 }
 0x342   : > { %v8445_v12 = vadd.f32 %v8444_v22, %v8443_v53  ;;  %v8446_v36 = vpop.f32.mrb[186].mxu0  ;;  %v8341_v51 = vpop.f32.mrb[159].mxu1  ;;  %v3231_v53 = vld [vmem:[#allocation2 + $0xfa] sm:$0xff] }
 0x343   : > { %v8342_v8 = vadd.f32 %v8341_v51, %v8340_v41  ;;  %v8447_v57 = vpop.f32.mrb[187].mxu0  ;;  %v4096_v1 = vadd.f32 %v8339_v14, %v11243_v20 }
 0x344   : > { %v8448_v38 = vadd.f32 %v8447_v57, %v8446_v36  ;;  %9320 = vmatmul.mubr.bf16.gmra.mrb[8].mxu1 %v3251_v34  ;;  %v11297_v24 = vadd.f32 %v8445_v12, %v4088_v52  ;;  %v3253_v12 = vpack.c.bf16 %v3229_v15, %v3228_v16  ;;  %v3254_v34 = vpack.c.bf16 %v3231_v53, %v3230_v32 }
 0x345   : > { %9323 = vmatprep.mubr.bf16.mxu1 %v3252_v18  ;;  %v4099_v57 = vadd.f32 %v8342_v8, %v11243_v20 }
 0x346   : > { %v11299_v63 = vadd.f32 %v8448_v38, %v4091_v62 }
 0x347   : > { %v8343_v55 = vpop.f32.mrb[160].mxu1 }
 0x348   : > { %v8449_v5 = vpop.f32.mrb[188].mxu0  ;;  %v8344_v31 = vpop.f32.mrb[161].mxu1 }
 0x349   : > { %v8345_v0 = vadd.f32 %v8344_v31, %v8343_v55  ;;  %v8450_v27 = vpop.f32.mrb[189].mxu0  ;;  %v8346_v23 = vpop.f32.mrb[162].mxu1  ;;  %v3233_v55 = vld [vmem:[#allocation2 + $0x112] sm:$0xff]  ;;  %v3234_v31 = vld [vmem:[#allocation2 + $0x122] sm:$0xff] }
 0x34a   : > { %v8451_v22 = vadd.f32 %v8450_v27, %v8449_v5  ;;  %v8452_v41 = vpop.f32.mrb[190].mxu0  ;;  %v8347_v52 = vpop.f32.mrb[163].mxu1  ;;  %v3235_v27 = vld [vmem:[#allocation2 + $0x12a] sm:$0xff] }
 0x34b   : > { %v8348_v36 = vadd.f32 %v8347_v52, %v8346_v23  ;;  %v8453_v51 = vpop.f32.mrb[191].mxu0  ;;  %v4104_v32 = vadd.f32 %v8345_v0, %v11243_v20  ;;  %v3236_v0 = vld [vmem:[#allocation2 + $0x13a] sm:$0xff] }
 0x34c   : > { %v8454_v18 = vadd.f32 %v8453_v51, %v8452_v41  ;;  %9324 = vmatmul.mubr.bf16.gmra.mrb[12].mxu1 %v3253_v12  ;;  %v11303_v62 = vadd.f32 %v8451_v22, %v4096_v1  ;;  %v3255_v1 = vpack.c.bf16 %v3233_v55, %v3232_v42  ;;  %v3256_v12 = vpack.c.bf16 %v3235_v27, %v3234_v31  ;;  %v3238_v55 = vld [vmem:[#allocation2 + $0x152] sm:$0xff] }
 0x34d   : > { %9327 = vmatprep.mubr.bf16.mxu1 %v3254_v34  ;;  %v4107_v34 = vadd.f32 %v8348_v36, %v11243_v20 }
 0x34e   : > { %v11305_v38 = vadd.f32 %v8454_v18, %v4099_v57  ;;  %v9644_v18 = vld [vmem:[#allocation6 + $0x60] sm:$0xff]  }
 0x34f   : > { %v8349_v11 = vpop.f32.mrb[164].mxu1  ;;  %8759 = vmatprep.subr.bf16.mxu0 %v9644_v18 }
 0x350   : > { %v8455_v14 = vpop.f32.mrb[192].mxu0  ;;  %v8350_v5 = vpop.f32.mrb[165].mxu1 }
 0x351   : > { %v8351_v16 = vadd.f32 %v8350_v5, %v8349_v11  ;;  %v8456_v15 = vpop.f32.mrb[193].mxu0  ;;  %v8352_v23 = vpop.f32.mrb[166].mxu1  ;;  %v9645_v11 = vld [vmem:[#allocation6 + $0x20] sm:$0xff]  }
 0x352   : > { %v8457_v8 = vadd.f32 %v8456_v15, %v8455_v14  ;;  %v8458_v53 = vpop.f32.mrb[194].mxu0  ;;  %v8353_v41 = vpop.f32.mrb[167].mxu1  ;;  %v3237_v14 = vld [vmem:[#allocation2 + $0x142] sm:$0xff]  ;;  %8760 = vmatpush3.bf16.msra.mxu0 %v9645_v11 }
 0x353   : > { %v8354_v22 = vadd.f32 %v8353_v41, %v8352_v23  ;;  %v8459_v52 = vpop.f32.mrb[195].mxu0  ;;  %v3239_v23 = vld [vmem:[#allocation2 + $0x15a] sm:$0xff]  ;;  %v4112_v36 = vadd.f32 %v8351_v16, %v11243_v20 }
 0x354   : > { %v11308_v51 = vadd.f32 %v8457_v8, %v4104_v32  ;;  %v8460_v57 = vadd.f32 %v8459_v52, %v8458_v53  ;;  %9328 = vmatmul.mubr.bf16.gmra.mrb[16].mxu1 %v3255_v1  ;;  %v3257_v1 = vpack.c.bf16 %v3237_v14, %v3236_v0 }
 0x355   : > { %9331 = vmatprep.mubr.bf16.mxu1 %v3256_v12  ;;  %v4115_v18 = vadd.f32 %v8354_v22, %v11243_v20 }
 0x356   : > { %v11311_v5 = vadd.f32 %v8460_v57, %v4107_v34  ;;  %v3258_v34 = vpack.c.bf16 %v3239_v23, %v3238_v55 }
 0x357   : > { %v8355_v19 = vpop.f32.mrb[168].mxu1 }
 0x358   : > { %v8461_v15 = vpop.f32.mrb[196].mxu0  ;;  %v8356_v42 = vpop.f32.mrb[169].mxu1 }
 0x359   : > { %v8357_v31 = vadd.f32 %v8356_v42, %v8355_v19  ;;  %v8462_v27 = vpop.f32.mrb[197].mxu0  ;;  %v8358_v32 = vpop.f32.mrb[170].mxu1  ;;  %v3240_v42 = vld [vmem:[#allocation2 + $0x16a] sm:$0xff] }
 0x35a   : > { %v8463_v8 = vadd.f32 %v8462_v27, %v8461_v15  ;;  %v8464_v53 = vpop.f32.mrb[198].mxu0  ;;  %v8359_v41 = vpop.f32.mrb[171].mxu1 }
 0x35b   : > { %v8360_v52 = vadd.f32 %v8359_v41, %v8358_v32  ;;  %v8465_v12 = vpop.f32.mrb[199].mxu0  ;;  %v4120_v14 = vadd.f32 %v8357_v31, %v11243_v20 }
 0x35c   : > { %v11314_v57 = vadd.f32 %v8463_v8, %v4112_v36  ;;  %v8466_v56 = vadd.f32 %v8465_v12, %v8464_v53  ;;  %9332 = vmatmul.mubr.bf16.gmra.mrb[20].mxu1 %v3257_v1  ;;  %v3259_v36 = vpack.c.bf16 %v3241_v33, %v3240_v42  ;;  %v3244_v1 = vld [vmem:[#allocation2 + $0x19a] sm:$0xff]  ;;  %v3245_v12 = vld [vmem:[#allocation2 + $0x1a2] sm:$0xff] }
 0x35d   : > { %9335 = vmatprep.mubr.bf16.mxu1 %v3258_v34  ;;  %v9646_v34 = vld [vmem:[#allocation6 + $0x68] sm:$0xff]   ;;  %v3261_v42 = vpack.c.bf16 %v3245_v12, %v3244_v1 }
 0x35e   : > { %v11317_v11 = vadd.f32 %v8466_v56, %v4115_v18  ;;  %v4123_v56 = vadd.f32 %v8360_v52, %v11243_v20  ;;  %v9647_v18 = vld [vmem:[#allocation6 + $0x28] sm:$0xff]   ;;  %8761 = vmatprep.subr.bf16.mxu0 %v9646_v34 }
 0x35f   : > { %v8361_v19 = vpop.f32.mrb[172].mxu1  ;;  %8762 = vmatpush3.bf16.msra.mxu0 %v9647_v18 }
 0x360   : > { %v8467_v16 = vpop.f32.mrb[200].mxu0  ;;  %v8362_v15 = vpop.f32.mrb[173].mxu1 }
 0x361   : > { %v8363_v27 = vadd.f32 %v8362_v15, %v8361_v19  ;;  %v8468_v46 = vpop.f32.mrb[201].mxu0  ;;  %v8364_v0 = vpop.f32.mrb[174].mxu1 }
 0x362   : > { %v8469_v55 = vadd.f32 %v8468_v46, %v8467_v16  ;;  %v8470_v23 = vpop.f32.mrb[202].mxu0  ;;  %v8365_v32 = vpop.f32.mrb[175].mxu1 }
 0x363   : > { %v8366_v22 = vadd.f32 %v8365_v32, %v8364_v0  ;;  %v8471_v8 = vpop.f32.mrb[203].mxu0  ;;  %v4128_v52 = vadd.f32 %v8363_v27, %v11243_v20 }
 0x364   : > { %v11320_v53 = vadd.f32 %v8469_v55, %v4120_v14  ;;  %v8472_v41 = vadd.f32 %v8471_v8, %v8470_v23  ;;  %9336 = vmatmul.mubr.bf16.gmra.mrb[24].mxu1 %v3259_v36 }
 0x365   : > { %9339 = vmatprep.mubr.bf16.mxu1 %v11264_v54  ;;  %v4131_v8 = vadd.f32 %v8366_v22, %v11243_v20 }
 0x366   : > { %v11324_v19 = vadd.f32 %v8472_v41, %v4123_v56 }
 0x367   : > { %v8367_v46 = vpop.f32.mrb[176].mxu1 }
 0x368   : > { %v8473_v31 = vpop.f32.mrb[204].mxu0  ;;  %v8368_v33 = vpop.f32.mrb[177].mxu1 }
 0x369   : > { %v8369_v16 = vadd.f32 %v8368_v33, %v8367_v46  ;;  %v8474_v15 = vpop.f32.mrb[205].mxu0  ;;  %v8370_v0 = vpop.f32.mrb[178].mxu1 }
 0x36a   : > { %v8475_v14 = vadd.f32 %v8474_v15, %v8473_v31  ;;  %v8476_v55 = vpop.f32.mrb[206].mxu0  ;;  %v8371_v23 = vpop.f32.mrb[179].mxu1 }
 0x36b   : > { %v8372_v54 = vadd.f32 %v8371_v23, %v8370_v0  ;;  %v8477_v32 = vpop.f32.mrb[207].mxu0  ;;  %v4136_v27 = vadd.f32 %v8369_v16, %v11243_v20 }
 0x36c   : > { %v11327_v36 = vadd.f32 %v8475_v14, %v4128_v52  ;;  %v8478_v56 = vadd.f32 %v8477_v32, %v8476_v55  ;;  %9340 = vmatmul.mubr.bf16.gmra.mrb[28].mxu1 %v3261_v42  ;;  %v9648_v55 = vld [vmem:[#allocation6 + $0x70] sm:$0xff]  }
 0x36d   : > { %v4139_v22 = vadd.f32 %v8372_v54, %v11243_v20  ;;  %v9649_v32 = vld [vmem:[#allocation6 + $0x30] sm:$0xff]   ;;  %8763 = vmatprep.subr.bf16.mxu0 %v9648_v55  ;;  %v9651_v55 = vld [vmem:[#allocation6 + $0x80] sm:$0xff]  }
 0x36e   : > { %v11330_v41 = vadd.f32 %v8478_v56, %v4131_v8  ;;  %8764 = vmatpush3.bf16.msra.mxu0 %v9649_v32 }
 0x36f   : > { %v8373_v1 = vpop.f32.mrb[180].mxu1 }
 0x370   : > { %v8479_v12 = vpop.f32.mrb[208].mxu0  ;;  %v8374_v34 = vpop.f32.mrb[181].mxu1 }
 0x371   : > { %v8375_v18 = vadd.f32 %v8374_v34, %v8373_v1  ;;  %v8480_v46 = vpop.f32.mrb[209].mxu0  ;;  %v8376_v33 = vpop.f32.mrb[182].mxu1 }
 0x372   : > { %v8481_v31 = vadd.f32 %v8480_v46, %v8479_v12  ;;  %v8482_v15 = vpop.f32.mrb[210].mxu0  ;;  %v8377_v0 = vpop.f32.mrb[183].mxu1 }
 0x373   : > { %v8378_v23 = vadd.f32 %v8377_v0, %v8376_v33  ;;  %v8483_v52 = vpop.f32.mrb[211].mxu0  ;;  %v4144_v33 = vadd.f32 %v8375_v18, %v11243_v20  ;;  %v9653_v18 = vld [vmem:[#allocation6 + $0x88] sm:$0xff]  }
 0x374   : > { %v11333_v14 = vadd.f32 %v8481_v31, %v4136_v27  ;;  %v8484_v42 = vadd.f32 %v8483_v52, %v8482_v15 }
 0x375   : > { %v4147_v52 = vadd.f32 %v8378_v23, %v11243_v20 }
 0x376   : > { %v11336_v8 = vadd.f32 %v8484_v42, %v4139_v22  ;;  %v9650_v42 = vld [vmem:[#allocation6 + $0xc0] sm:$0xff]  }
 0x377   : > { %v8379_v56 = vpop.f32.mrb[184].mxu1  ;;  %8863 = vmatprep.subr.bf16.mxu1 %v9650_v42  ;;  %v9654_v42 = vld [vmem:[#allocation6 + $0x78] sm:$0xff]  }
 0x378   : > { %v8485_v1 = vpop.f32.mrb[212].mxu0  ;;  %v8380_v34 = vpop.f32.mrb[185].mxu1  ;;  %8864 = vmatpush3.bf16.msra.mxu1 %v9651_v55  ;;  %v9655_v55 = vld [vmem:[#allocation6 + $0xd0] sm:$0xff]   ;;  %8765 = vmatprep.subr.bf16.mxu0 %v9654_v42 }
 0x379   : > { %v8381_v16 = vadd.f32 %v8380_v34, %v8379_v56  ;;  %v8486_v12 = vpop.f32.mrb[213].mxu0  ;;  %v8382_v46 = vpop.f32.mrb[186].mxu1  ;;  %8865 = vmatprep.subr.bf16.mxu1 %v9652_v25  ;;  %v9658_v25 = vld [vmem:[#allocation6 + $0xd8] sm:$0xff]   ;;  %8766 = vmatpush3.bf16.msra.mxu0 %v9656_v37 }
 0x37a   : > { %v8487_v0 = vadd.f32 %v8486_v12, %v8485_v1  ;;  %v8488_v27 = vpop.f32.mrb[214].mxu0  ;;  %v8383_v31 = vpop.f32.mrb[187].mxu1  ;;  %v9659_v37 = vld [vmem:[#allocation6 + $0x98] sm:$0xff]  }
 0x37b   : > { %v8384_v3 = vadd.f32 %v8383_v31, %v8382_v46  ;;  %v8489_v54 = vpop.f32.mrb[215].mxu0 }
 0x37c   : > { %v11339_v15 = vadd.f32 %v8487_v0, %v4144_v33  ;;  %v8490_v22 = vadd.f32 %v8489_v54, %v8488_v27  ;;  %v4152_v33 = vadd.f32 %v8381_v16, %v11243_v20  ;;  %8866 = vmatpush3.bf16.msra.mxu1 %v9653_v18 }
 0x37d   : > { %8867 = vmatprep.subr.bf16.mxu1 %v9655_v55 }
 0x37e   : > { %v11342_v30 = vadd.f32 %v8490_v22, %v4147_v52  ;;  %v4155_v52 = vadd.f32 %v8384_v3, %v11243_v20 }
 0x37f   : > { %v8385_v32 = vpop.f32.mrb[188].mxu1 }
 0x380   : > { %v8491_v56 = vpop.f32.mrb[216].mxu0  ;;  %v8386_v34 = vpop.f32.mrb[189].mxu1 }
 0x381   : > { %v8387_v1 = vadd.f32 %v8386_v34, %v8385_v32  ;;  %v8492_v12 = vpop.f32.mrb[217].mxu0  ;;  %v8388_v46 = vpop.f32.mrb[190].mxu1  ;;  %v9657_v34 = vld [vmem:[#allocation6 + $0x90] sm:$0xff]  }
 0x382   : > { %v8493_v0 = vadd.f32 %v8492_v12, %v8491_v56  ;;  %v8494_v23 = vpop.f32.mrb[218].mxu0  ;;  %v8389_v27 = vpop.f32.mrb[191].mxu1  ;;  %8868 = vmatpush3.bf16.msra.mxu1 %v9657_v34 }
 0x383   : > { %v8390_v31 = vadd.f32 %v8389_v27, %v8388_v46  ;;  %v8495_v54 = vpop.f32.mrb[219].mxu0  ;;  %8869 = vmatprep.subr.bf16.mxu1 %v9658_v25  ;;  %v4160_v3 = vadd.f32 %v8387_v1, %v11243_v20  ;;  %v9660_v1 = vld [vmem:[#allocation6 + $0xe0] sm:$0xff]  }
 0x384   : > { %v11345_v49 = vadd.f32 %v8493_v0, %v4152_v33  ;;  %v8496_v22 = vadd.f32 %v8495_v54, %v8494_v23 }
 0x385   : > { %v4163_v42 = vadd.f32 %v8390_v31, %v11243_v20 }
 0x386   : > { %v11348_v32 = vadd.f32 %v8496_v22, %v4155_v52  ;;  %8870 = vmatpush3.bf16.msra.mxu1 %v9659_v37 }
 0x387   : > { %v8519_v9 = vpop.f32.mrb[192].mxu1  ;;  %8871 = vmatprep.subr.bf16.mxu1 %v9660_v1 }
 0x388   : > { %v8497_v16 = vpop.f32.mrb[220].mxu0  ;;  %v8520_v56 = vpop.f32.mrb[193].mxu1 }
 0x389   : > { %v8498_v12 = vpop.f32.mrb[221].mxu0  ;;  %v8521_v46 = vadd.f32 %v8520_v56, %v8519_v9  ;;  %v8522_v33 = vpop.f32.mrb[194].mxu1  ;;  %v9662_v56 = vld [vmem:[#allocation6 + $0xe8] sm:$0xff]  }
 0x38a   : > { %v8499_v18 = vadd.f32 %v8498_v12, %v8497_v16  ;;  %v8500_v0 = vpop.f32.mrb[222].mxu0  ;;  %v8523_v23 = vpop.f32.mrb[195].mxu1  ;;  %v9661_v16 = vld [vmem:[#allocation6 + $0xa0] sm:$0xff]  }
 0x38b   : > { %v4362_v27 = vadd.f32 %v8521_v46, %v11249_v21  ;;  %v8501_v54 = vpop.f32.mrb[223].mxu0  ;;  %v8524_v52 = vadd.f32 %v8523_v23, %v8522_v33  ;;  %8872 = vmatpush3.bf16.msra.mxu1 %v9661_v16  ;;  %v9664_v16 = vld [vmem:[#allocation6 + $0xf0] sm:$0xff]  }
 0x38c   : > { %v11352_v22 = vadd.f32 %v8499_v18, %v4160_v3  ;;  %v8502_v55 = vadd.f32 %v8501_v54, %v8500_v0  ;;  %v5034_v3 = vld [vmem:[#allocation2 + $0x1] sm:$0xff]  ;;  %v5035_v18 = vld [vmem:[#allocation2 + $0x9] sm:$0xff]  ;;  %8873 = vmatprep.subr.bf16.mxu1 %v9662_v56 }
 0x38d   : > { %v4365_v34 = vadd.f32 %v8524_v52, %v11253_v10  ;;  %v5066_v10 = vpack.c.bf16 %v5035_v18, %v5034_v3  ;;  %v9668_v56 = vld [vmem:[#allocation6 + $0xf8] sm:$0xff]  }
 0x38e   : > { %v11356_v9 = vadd.f32 %v8502_v55, %v4163_v42 }
 0x38f   : > { %v8525_v25 = vpop.f32.mrb[196].mxu1  ;;  %6305 = vmatprep.mubr.bf16.mxu0 %v5066_v10 }
 0x390   : > { %v8631_v12 = vpop.f32.mrb[224].mxu0  ;;  %v8526_v13 = vpop.f32.mrb[197].mxu1  ;;  %6306 = vmatmul.mubr.bf16.vlgmr.msra.gmra.mrb[32].mxu0 %v11280_v50 }
 0x391   : > { %v8527_v21 = vadd.f32 %v8526_v13, %v8525_v25  ;;  %v8632_v46 = vpop.f32.mrb[225].mxu0  ;;  %v8528_v33 = vpop.f32.mrb[198].mxu1  ;;  %v9663_v13 = vld [vmem:[#allocation6 + $0xa8] sm:$0xff]  }
 0x392   : > { %v8633_v20 = vadd.f32 %v8632_v46, %v8631_v12  ;;  %v8634_v31 = vpop.f32.mrb[226].mxu0  ;;  %v8529_v0 = vpop.f32.mrb[199].mxu1  ;;  %8874 = vmatpush3.bf16.msra.mxu1 %v9663_v13  ;;  %v9665_v12 = vld [vmem:[#allocation6 + $0x140] sm:$0xff]   ;;  %v9666_v46 = vld [vmem:[#allocation6 + $0xb0] sm:$0xff]  }
 0x393   : > { %v4370_v23 = vadd.f32 %v8527_v21, %v11257_v29  ;;  %v8530_v54 = vadd.f32 %v8529_v0, %v8528_v33  ;;  %v8635_v52 = vpop.f32.mrb[227].mxu0  ;;  %v9667_v33 = vld [vmem:[#allocation6 + $0x100] sm:$0xff]   ;;  %8875 = vmatprep.subr.bf16.mxu1 %v9664_v16  ;;  %8975 = vmatprep.subr.bf16.mxu0 %v9665_v12 }
 0x394   : > { %v8636_v42 = vadd.f32 %v8635_v52, %v8634_v31  ;;  %v11359_v55 = vadd.f32 %v8633_v20, %v4362_v27  ;;  %8976 = vmatpush3.bf16.msra.mxu0 %v9667_v33  ;;  %v9669_v52 = vld [vmem:[#allocation6 + $0xb8] sm:$0xff]  }
 0x395   : > { %v4373_v37 = vadd.f32 %v8530_v54, %v11261_v44 }
 0x396   : > { %v11363_v25 = vadd.f32 %v8636_v42, %v4365_v34  ;;  %8876 = vmatpush3.bf16.msra.mxu1 %v9666_v46 }
 0x397   : > { %v8531_v1 = vpop.f32.mrb[200].mxu1  ;;  %8877 = vmatprep.subr.bf16.mxu1 %v9668_v56 }
 0x398   : > { %v8637_v29 = vpop.f32.mrb[228].mxu0  ;;  %v8532_v21 = vpop.f32.mrb[201].mxu1 }
 0x399   : > { %v8533_v3 = vadd.f32 %v8532_v21, %v8531_v1  ;;  %v8638_v27 = vpop.f32.mrb[229].mxu0  ;;  %v8534_v18 = vpop.f32.mrb[202].mxu1 }
 0x39a   : > { %v8639_v20 = vadd.f32 %v8638_v27, %v8637_v29  ;;  %v8640_v44 = vpop.f32.mrb[230].mxu0  ;;  %v8535_v31 = vpop.f32.mrb[203].mxu1  ;;  %8878 = vmatpush3.bf16.msra.mxu1 %v9669_v52 }
 0x39b   : > { %v4378_v50 = vadd.f32 %v8533_v3, %v11267_v45  ;;  %v8536_v34 = vadd.f32 %v8535_v31, %v8534_v18  ;;  %v8641_v0 = vpop.f32.mrb[231].mxu0  ;;  %v9670_v31 = vld [vmem:[#allocation6 + $0x148] sm:$0xff]  }
 0x39c   : > { %v8642_v10 = vadd.f32 %v8641_v0, %v8640_v44  ;;  %v11366_v54 = vadd.f32 %v8639_v20, %v4370_v23  ;;  %8977 = vmatprep.subr.bf16.mxu0 %v9670_v31 }
 0x39d   : > { %v4381_v42 = vadd.f32 %v8536_v34, %v11271_v61  ;;  %v9671_v34 = vld [vmem:[#allocation6 + $0x108] sm:$0xff]  }
 0x39e   : > { %v11369_v13 = vadd.f32 %v8642_v10, %v4373_v37  ;;  %8978 = vmatpush3.bf16.msra.mxu0 %v9671_v34 }
 0x39f   : > { %v8537_v1 = vpop.f32.mrb[204].mxu1 }
 0x3a0   : > { %v8643_v16 = vpop.f32.mrb[232].mxu0  ;;  %v8538_v12 = vpop.f32.mrb[205].mxu1 }
 0x3a1   : > { %v8539_v29 = vadd.f32 %v8538_v12, %v8537_v1  ;;  %v8644_v46 = vpop.f32.mrb[233].mxu0  ;;  %v8540_v21 = vpop.f32.mrb[206].mxu1 }
 0x3a2   : > { %v8645_v33 = vadd.f32 %v8644_v46, %v8643_v16  ;;  %v8646_v45 = vpop.f32.mrb[234].mxu0  ;;  %v8541_v3 = vpop.f32.mrb[207].mxu1 }
 0x3a3   : > { %v4386_v56 = vadd.f32 %v8539_v29, %v11275_v17  ;;  %v8542_v27 = vadd.f32 %v8541_v3, %v8540_v21  ;;  %v8647_v23 = vpop.f32.mrb[235].mxu0 }
 0x3a4   : > { %v8648_v18 = vadd.f32 %v8647_v23, %v8646_v45  ;;  %v11372_v20 = vadd.f32 %v8645_v33, %v4378_v50 }
 0x3a5   : > { %v4389_v61 = vadd.f32 %v8542_v27, %v11278_v7 }
 0x3a6   : > { %v11375_v37 = vadd.f32 %v8648_v18, %v4381_v42 }
 0x3a7   : > { %v8543_v44 = vpop.f32.mrb[208].mxu1 }
 0x3a8   : > { %v8649_v0 = vpop.f32.mrb[236].mxu0  ;;  %v8544_v10 = vpop.f32.mrb[209].mxu1 }
 0x3a9   : > { %v8545_v52 = vadd.f32 %v8544_v10, %v8543_v44  ;;  %v8650_v1 = vpop.f32.mrb[237].mxu0  ;;  %v8546_v16 = vpop.f32.mrb[210].mxu1 }
 0x3aa   : > { %v8651_v12 = vadd.f32 %v8650_v1, %v8649_v0  ;;  %v8652_v17 = vpop.f32.mrb[238].mxu0  ;;  %v8547_v29 = vpop.f32.mrb[211].mxu1 }
 0x3ab   : > { %v4394_v50 = vadd.f32 %v8545_v52, %v11284_v39  ;;  %v8548_v46 = vadd.f32 %v8547_v29, %v8546_v16  ;;  %v8653_v21 = vpop.f32.mrb[239].mxu0  ;;  %v9673_v29 = vld [vmem:[#allocation6 + $0x110] sm:$0xff]  }
 0x3ac   : > { %v8654_v7 = vadd.f32 %v8653_v21, %v8652_v17  ;;  %v11378_v42 = vadd.f32 %v8651_v12, %v4386_v56  ;;  %v9672_v17 = vld [vmem:[#allocation6 + $0x150] sm:$0xff]  }
 0x3ad   : > { %v4397_v33 = vadd.f32 %v8548_v46, %v11287_v47  ;;  %8979 = vmatprep.subr.bf16.mxu0 %v9672_v17 }
 0x3ae   : > { %v11381_v45 = vadd.f32 %v8654_v7, %v4389_v61  ;;  %8980 = vmatpush3.bf16.msra.mxu0 %v9673_v29 }
 0x3af   : > { %v8549_v3 = vpop.f32.mrb[212].mxu1 }
 0x3b0   : > { %v8655_v27 = vpop.f32.mrb[240].mxu0  ;;  %v8550_v23 = vpop.f32.mrb[213].mxu1 }
 0x3b1   : > { %v8551_v18 = vadd.f32 %v8550_v23, %v8549_v3  ;;  %v8656_v44 = vpop.f32.mrb[241].mxu0  ;;  %v8552_v31 = vpop.f32.mrb[214].mxu1 }
 0x3b2   : > { %v8657_v0 = vadd.f32 %v8656_v44, %v8655_v27  ;;  %v8658_v10 = vpop.f32.mrb[242].mxu0  ;;  %v8553_v34 = vpop.f32.mrb[215].mxu1 }
 0x3b3   : > { %v4402_v39 = vadd.f32 %v8551_v18, %v11291_v26  ;;  %v8554_v52 = vadd.f32 %v8553_v34, %v8552_v31  ;;  %v8659_v1 = vpop.f32.mrb[243].mxu0 }
 0x3b4   : > { %v8660_v16 = vadd.f32 %v8659_v1, %v8658_v10  ;;  %v11384_v56 = vadd.f32 %v8657_v0, %v4394_v50 }
 0x3b5   : > { %v4405_v47 = vadd.f32 %v8554_v52, %v11293_v48 }
 0x3b6   : > { %v11387_v61 = vadd.f32 %v8660_v16, %v4397_v33 }
 0x3b7   : > { %v8555_v12 = vpop.f32.mrb[216].mxu1 }
 0x3b8   : > { %v8661_v46 = vpop.f32.mrb[244].mxu0  ;;  %v8556_v21 = vpop.f32.mrb[217].mxu1 }
 0x3b9   : > { %v8557_v7 = vadd.f32 %v8556_v21, %v8555_v12  ;;  %v8662_v3 = vpop.f32.mrb[245].mxu0  ;;  %v8558_v27 = vpop.f32.mrb[218].mxu1 }
 0x3ba   : > { %v8663_v23 = vadd.f32 %v8662_v3, %v8661_v46  ;;  %v8664_v26 = vpop.f32.mrb[246].mxu0  ;;  %v8559_v18 = vpop.f32.mrb[219].mxu1 }
 0x3bb   : > { %v4410_v50 = vadd.f32 %v8557_v7, %v11297_v24  ;;  %v8560_v44 = vadd.f32 %v8559_v18, %v8558_v27  ;;  %v8665_v31 = vpop.f32.mrb[247].mxu0  ;;  %v9675_v18 = vld [vmem:[#allocation6 + $0x118] sm:$0xff]  }
 0x3bc   : > { %v8666_v48 = vadd.f32 %v8665_v31, %v8664_v26  ;;  %v11390_v33 = vadd.f32 %v8663_v23, %v4402_v39  ;;  %v9674_v26 = vld [vmem:[#allocation6 + $0x158] sm:$0xff]  }
 0x3bd   : > { %v4413_v0 = vadd.f32 %v8560_v44, %v11299_v63  ;;  %8981 = vmatprep.subr.bf16.mxu0 %v9674_v26 }
 0x3be   : > { %v11393_v10 = vadd.f32 %v8666_v48, %v4405_v47  ;;  %8982 = vmatpush3.bf16.msra.mxu0 %v9675_v18 }
 0x3bf   : > { %v8561_v34 = vpop.f32.mrb[220].mxu1 }
 0x3c0   : > { %v8667_v52 = vpop.f32.mrb[248].mxu0  ;;  %v8562_v1 = vpop.f32.mrb[221].mxu1 }
 0x3c1   : > { %v8563_v16 = vadd.f32 %v8562_v1, %v8561_v34  ;;  %v8668_v12 = vpop.f32.mrb[249].mxu0  ;;  %v8564_v17 = vpop.f32.mrb[222].mxu1 }
 0x3c2   : > { %v8669_v46 = vadd.f32 %v8668_v12, %v8667_v52  ;;  %v8670_v21 = vpop.f32.mrb[250].mxu0  ;;  %v8565_v29 = vpop.f32.mrb[223].mxu1 }
 0x3c3   : > { %v4418_v24 = vadd.f32 %v8563_v16, %v11303_v62  ;;  %v8566_v7 = vadd.f32 %v8565_v29, %v8564_v17  ;;  %v8671_v3 = vpop.f32.mrb[251].mxu0 }
 0x3c4   : > { %v8672_v27 = vadd.f32 %v8671_v3, %v8670_v21  ;;  %v11396_v39 = vadd.f32 %v8669_v46, %v4410_v50 }
 0x3c5   : > { %v4421_v63 = vadd.f32 %v8566_v7, %v11305_v38  ;;  %v9676_v38 = vld [vmem:[#allocation6 + $0x1c0] sm:$0xff]  }
 0x3c6   : > { %v11399_v47 = vadd.f32 %v8672_v27, %v4413_v0  ;;  %9087 = vmatprep.subr.bf16.mxu1 %v9676_v38 }
 0x3c7   : > { %v8567_v23 = vpop.f32.mrb[224].mxu1 }
 0x3c8   : > { %v8673_v44 = vpop.f32.mrb[252].mxu0  ;;  %v8568_v31 = vpop.f32.mrb[225].mxu1 }
 0x3c9   : > { %v8569_v48 = vadd.f32 %v8568_v31, %v8567_v23  ;;  %v8674_v34 = vpop.f32.mrb[253].mxu0  ;;  %v8570_v52 = vpop.f32.mrb[226].mxu1 }
 0x3ca   : > { %v8675_v1 = vadd.f32 %v8674_v34, %v8673_v44  ;;  %v8676_v62 = vpop.f32.mrb[254].mxu0  ;;  %v8571_v16 = vpop.f32.mrb[227].mxu1 }
 0x3cb   : > { %v4426_v50 = vadd.f32 %v8569_v48, %v11308_v51  ;;  %v8572_v12 = vadd.f32 %v8571_v16, %v8570_v52  ;;  %v8677_v17 = vpop.f32.mrb[255].mxu0  ;;  %v9678_v48 = vld [vmem:[#allocation6 + $0x160] sm:$0xff]  }
 0x3cc   : > { %v8678_v0 = vadd.f32 %v8677_v17, %v8676_v62  ;;  %v11402_v46 = vadd.f32 %v8675_v1, %v4418_v24  ;;  %v9679_v1 = vld [vmem:[#allocation6 + $0x120] sm:$0xff]   ;;  %8983 = vmatprep.subr.bf16.mxu0 %v9678_v48 }
 0x3cd   : > { %v4429_v21 = vadd.f32 %v8572_v12, %v11311_v5  ;;  %8984 = vmatpush3.bf16.msra.mxu0 %v9679_v1 }
 0x3ce   : > { %v11405_v29 = vadd.f32 %v8678_v0, %v4421_v63 }
 0x3cf   : > { %v8573_v7 = vpop.f32.mrb[228].mxu1 }
 0x3d0   : > { %v8679_v3 = vpop.f32.mrb[0].mxu0  ;;  %v8574_v27 = vpop.f32.mrb[229].mxu1 }
 0x3d1   : > { %v8575_v23 = vadd.f32 %v8574_v27, %v8573_v7  ;;  %v8680_v26 = vpop.f32.mrb[1].mxu0  ;;  %v8576_v44 = vpop.f32.mrb[230].mxu1 }
 0x3d2   : > { %v8681_v18 = vadd.f32 %v8680_v26, %v8679_v3  ;;  %v8682_v31 = vpop.f32.mrb[2].mxu0  ;;  %v8577_v51 = vpop.f32.mrb[231].mxu1 }
 0x3d3   : > { %v4434_v34 = vadd.f32 %v8575_v23, %v11314_v57  ;;  %v8578_v52 = vadd.f32 %v8577_v51, %v8576_v44  ;;  %v8683_v24 = vpop.f32.mrb[3].mxu0 }
 0x3d4   : > { %v8684_v62 = vadd.f32 %v8683_v24, %v8682_v31  ;;  %v11408_v5 = vadd.f32 %v8681_v18, %v4426_v50 }
 0x3d5   : > { %v4437_v63 = vadd.f32 %v8578_v52, %v11317_v11 }
 0x3d6   : > { %v11411_v16 = vadd.f32 %v8684_v62, %v4429_v21 }
 0x3d7   : > { %v8579_v12 = vpop.f32.mrb[232].mxu1 }
 0x3d8   : > { %v8685_v17 = vpop.f32.mrb[4].mxu0  ;;  %v8580_v38 = vpop.f32.mrb[233].mxu1 }
 0x3d9   : > { %v8581_v0 = vadd.f32 %v8580_v38, %v8579_v12  ;;  %v8686_v7 = vpop.f32.mrb[5].mxu0  ;;  %v8582_v3 = vpop.f32.mrb[234].mxu1 }
 0x3da   : > { %v8687_v27 = vadd.f32 %v8686_v7, %v8685_v17  ;;  %v8688_v57 = vpop.f32.mrb[6].mxu0  ;;  %v8583_v23 = vpop.f32.mrb[235].mxu1  ;;  %v9682_v7 = vld [vmem:[#allocation6 + $0x168] sm:$0xff]  }
 0x3db   : > { %v4442_v26 = vadd.f32 %v8581_v0, %v11320_v53  ;;  %v8584_v44 = vadd.f32 %v8583_v23, %v8582_v3  ;;  %v8689_v50 = vpop.f32.mrb[7].mxu0  ;;  %8985 = vmatprep.subr.bf16.mxu0 %v9682_v7 }
 0x3dc   : > { %v8690_v18 = vadd.f32 %v8689_v50, %v8688_v57  ;;  %v11414_v31 = vadd.f32 %v8687_v27, %v4434_v34  ;;  %v9683_v34 = vld [vmem:[#allocation6 + $0x128] sm:$0xff]  }
 0x3dd   : > { %v4445_v11 = vadd.f32 %v8584_v44, %v11324_v19  ;;  %8986 = vmatpush3.bf16.msra.mxu0 %v9683_v34 }
 0x3de   : > { %v11417_v21 = vadd.f32 %v8690_v18, %v4437_v63 }
 0x3df   : > { %v8585_v51 = vpop.f32.mrb[236].mxu1 }
 0x3e0   : > { %v8691_v48 = vpop.f32.mrb[8].mxu0  ;;  %v8586_v52 = vpop.f32.mrb[237].mxu1 }
 0x3e1   : > { %v8587_v24 = vadd.f32 %v8586_v52, %v8585_v51  ;;  %v8692_v1 = vpop.f32.mrb[9].mxu0  ;;  %v8588_v62 = vpop.f32.mrb[238].mxu1 }
 0x3e2   : > { %v8693_v12 = vadd.f32 %v8692_v1, %v8691_v48  ;;  %v8694_v17 = vpop.f32.mrb[10].mxu0  ;;  %v8589_v38 = vpop.f32.mrb[239].mxu1 }
 0x3e3   : > { %v4450_v53 = vadd.f32 %v8587_v24, %v11327_v36  ;;  %v8590_v0 = vadd.f32 %v8589_v38, %v8588_v62  ;;  %v8695_v3 = vpop.f32.mrb[11].mxu0 }
 0x3e4   : > { %v8696_v27 = vadd.f32 %v8695_v3, %v8694_v17  ;;  %v11420_v57 = vadd.f32 %v8693_v12, %v4442_v26 }
 0x3e5   : > { %v4453_v19 = vadd.f32 %v8590_v0, %v11330_v41 }
 0x3e6   : > { %v11423_v63 = vadd.f32 %v8696_v27, %v4445_v11 }
 0x3e7   : > { %v8591_v23 = vpop.f32.mrb[240].mxu1 }
 0x3e8   : > { %v8697_v44 = vpop.f32.mrb[12].mxu0  ;;  %v8592_v50 = vpop.f32.mrb[241].mxu1 }
 0x3e9   : > { %v8593_v18 = vadd.f32 %v8592_v50, %v8591_v23  ;;  %v8698_v51 = vpop.f32.mrb[13].mxu0  ;;  %v8594_v48 = vpop.f32.mrb[242].mxu1 }
 0x3ea   : > { %v8699_v52 = vadd.f32 %v8698_v51, %v8697_v44  ;;  %v8700_v36 = vpop.f32.mrb[14].mxu0  ;;  %v8595_v24 = vpop.f32.mrb[243].mxu1  ;;  %v9686_v51 = vld [vmem:[#allocation6 + $0x170] sm:$0xff]  }
 0x3eb   : > { %v4458_v1 = vadd.f32 %v8593_v18, %v11333_v14  ;;  %v8596_v62 = vadd.f32 %v8595_v24, %v8594_v48  ;;  %v8701_v26 = vpop.f32.mrb[15].mxu0  ;;  %8987 = vmatprep.subr.bf16.mxu0 %v9686_v51 }
 0x3ec   : > { %v8702_v12 = vadd.f32 %v8701_v26, %v8700_v36  ;;  %v11426_v17 = vadd.f32 %v8699_v52, %v4450_v53  ;;  %v9687_v53 = vld [vmem:[#allocation6 + $0x130] sm:$0xff]  }
 0x3ed   : > { %v4461_v41 = vadd.f32 %v8596_v62, %v11336_v8  ;;  %8988 = vmatpush3.bf16.msra.mxu0 %v9687_v53 }
 0x3ee   : > { %v11429_v11 = vadd.f32 %v8702_v12, %v4453_v19 }
 0x3ef   : > { %v8597_v38 = vpop.f32.mrb[244].mxu1 }
 0x3f0   : > { %v8703_v7 = vpop.f32.mrb[16].mxu0  ;;  %v8598_v0 = vpop.f32.mrb[245].mxu1 }
 0x3f1   : > { %v8599_v3 = vadd.f32 %v8598_v0, %v8597_v38  ;;  %v8704_v34 = vpop.f32.mrb[17].mxu0  ;;  %v8600_v27 = vpop.f32.mrb[246].mxu1 }
 0x3f2   : > { %v8705_v23 = vadd.f32 %v8704_v34, %v8703_v7  ;;  %v8706_v44 = vpop.f32.mrb[18].mxu0  ;;  %v8601_v50 = vpop.f32.mrb[247].mxu1 }
 0x3f3   : > { %v4466_v14 = vadd.f32 %v8599_v3, %v11339_v15  ;;  %v8602_v18 = vadd.f32 %v8601_v50, %v8600_v27  ;;  %v8707_v48 = vpop.f32.mrb[19].mxu0 }
 0x3f4   : > { %v8708_v52 = vadd.f32 %v8707_v48, %v8706_v44  ;;  %v11432_v36 = vadd.f32 %v8705_v23, %v4458_v1 }
 0x3f5   : > { %v4469_v8 = vadd.f32 %v8602_v18, %v11342_v30 }
 0x3f6   : > { %v11435_v19 = vadd.f32 %v8708_v52, %v4461_v41 }
 0x3f7   : > { %v8603_v24 = vpop.f32.mrb[248].mxu1 }
 0x3f8   : > { %v8709_v62 = vpop.f32.mrb[20].mxu0  ;;  %v8604_v26 = vpop.f32.mrb[249].mxu1 }
 0x3f9   : > { %v8605_v12 = vadd.f32 %v8604_v26, %v8603_v24  ;;  %v8710_v38 = vpop.f32.mrb[21].mxu0  ;;  %v8606_v7 = vpop.f32.mrb[250].mxu1 }
 0x3fa   : > { %v8711_v0 = vadd.f32 %v8710_v38, %v8709_v62  ;;  %v8712_v15 = vpop.f32.mrb[22].mxu0  ;;  %v8607_v3 = vpop.f32.mrb[251].mxu1  ;;  %v9690_v38 = vld [vmem:[#allocation6 + $0x178] sm:$0xff]  }
 0x3fb   : > { %v4474_v34 = vadd.f32 %v8605_v12, %v11345_v49  ;;  %v8608_v27 = vadd.f32 %v8607_v3, %v8606_v7  ;;  %v8713_v1 = vpop.f32.mrb[23].mxu0  ;;  %8989 = vmatprep.subr.bf16.mxu0 %v9690_v38 }
 0x3fc   : > { %v8714_v23 = vadd.f32 %v8713_v1, %v8712_v15  ;;  %v11438_v44 = vadd.f32 %v8711_v0, %v4466_v14  ;;  %v9691_v14 = vld [vmem:[#allocation6 + $0x138] sm:$0xff]  }
 0x3fd   : > { %v4477_v30 = vadd.f32 %v8608_v27, %v11348_v32  ;;  %8990 = vmatpush3.bf16.msra.mxu0 %v9691_v14 }
 0x3fe   : > { %v11441_v41 = vadd.f32 %v8714_v23, %v4469_v8 }
 0x3ff   : > { %v8609_v50 = vpop.f32.mrb[252].mxu1 }
 0x400   : > { %v8715_v51 = vpop.f32.mrb[24].mxu0  ;;  %v8610_v18 = vpop.f32.mrb[253].mxu1 }
 0x401   : > { %v8611_v48 = vadd.f32 %v8610_v18, %v8609_v50  ;;  %v8716_v53 = vpop.f32.mrb[25].mxu0  ;;  %v8612_v52 = vpop.f32.mrb[254].mxu1 }
 0x402   : > { %v8717_v24 = vadd.f32 %v8716_v53, %v8715_v51  ;;  %v8718_v62 = vpop.f32.mrb[26].mxu0  ;;  %v8613_v26 = vpop.f32.mrb[255].mxu1 }
 0x403   : > { %v4482_v49 = vadd.f32 %v8611_v48, %v11352_v22  ;;  %v8614_v12 = vadd.f32 %v8613_v26, %v8612_v52  ;;  %v8719_v7 = vpop.f32.mrb[27].mxu0 }
 0x404   : > { %v8720_v0 = vadd.f32 %v8719_v7, %v8718_v62  ;;  %v11444_v15 = vadd.f32 %v8717_v24, %v4474_v34 }
 0x405   : > { %v4485_v32 = vadd.f32 %v8614_v12, %v11356_v9 }
 0x406   : > { %v11447_v8 = vadd.f32 %v8720_v0, %v4477_v30 }
 0x407   : > { %v9313_v3 = vpop.f32.mrb[0].mxu1 }
 0x408   : > { %v8721_v27 = vpop.f32.mrb[28].mxu0  ;;  %v4692_v1 = vadd.f32 %v9313_v3, %v11366_v54  ;;  %v4683_v23 = vpop.f32.mrb[1].mxu1 }
 0x409   : > { %v8722_v50 = vpop.f32.mrb[29].mxu0  ;;  %v4684_v22 = vadd.f32 %v4683_v23, %v11359_v55  ;;  %v9314_v51 = vpop.f32.mrb[2].mxu1  ;;  %v11460_v23 = vld [vmem:[#allocation6 + $0x200] sm:$0xff]  }
 0x40a   : > { %v4812_v18 = vmax.f32 %v4692_v1, 0.0  ;;  %v8723_v48 = vadd.f32 %v8722_v50, %v8721_v27  ;;  %v8724_v53 = vpop.f32.mrb[30].mxu0  ;;  %v4695_v34 = vadd.f32 %v9314_v51, %v11369_v13  ;;  %v4686_v52 = vpop.f32.mrb[3].mxu1  ;;  %v5099_v51 = vld [vmem:[#allocation2 + $0xa] sm:$0xff]  ;;  %9343 = vmatprep.subr.bf16.mxu0 %v11460_v23 }
 0x40b   : > { %v4810_v24 = vmax.f32 %v4684_v22, 0.0  ;;  %v8725_v9 = vpop.f32.mrb[31].mxu0  ;;  %v4687_v30 = vadd.f32 %v4686_v52, %v11363_v25  ;;  %v5098_v22 = vld [vmem:[#allocation2 + $0x2] sm:$0xff] }
 0x40c   : > { %4940 = vst [vmem:[#allocation2 + $0x31] sm:$0xff] %v4812_v18  ;;  %v4813_v62 = vmax.f32 %v4695_v34, 0.0  ;;  %v8726_v26 = vadd.f32 %v8725_v9, %v8724_v53  ;;  %v11453_v38 = vadd.f32 %v8723_v48, %v4482_v49  ;;  %v5130_v53 = vpack.c.bf16 %v5099_v51, %v5098_v22 }
 0x40d   : > { %4938 = vst [vmem:[#allocation2 + $0x19] sm:$0xff] %v4810_v24  ;;  %v4811_v54 = vmax.f32 %v4687_v30, 0.0 }
 0x40e   : > { %4941 = vst [vmem:[#allocation2 + $0x39] sm:$0xff] %v4813_v62  ;;  %v5068_v55 = vpack.c.bf16 %v4813_v62, %v4812_v18  ;;  %v11455_v12 = vadd.f32 %v8726_v26, %v4485_v32 }
 0x40f   : > { %4939 = vst [vmem:[#allocation2 + $0x21] sm:$0xff] %v4811_v54  ;;  %v9317_v7 = vpop.f32.mrb[4].mxu1  ;;  %v5067_v14 = vpack.c.bf16 %v4811_v54, %v4810_v24  ;;  %v9680_v54 = vld [vmem:[#allocation6 + $0x1c8] sm:$0xff]  }
 0x410   : > { %v4708_v13 = vadd.f32 %v9317_v7, %v11378_v42  ;;  %v4699_v0 = vpop.f32.mrb[5].mxu1 }
 0x411   : > { %v4700_v3 = vadd.f32 %v4699_v0, %v11372_v20  ;;  %v9318_v25 = vpop.f32.mrb[6].mxu1  ;;  %6313 = vmatprep.mubr.bf16.mxu0 %v5067_v14 }
 0x412   : > { %v4816_v27 = vmax.f32 %v4708_v13, 0.0  ;;  %v4711_v49 = vadd.f32 %v9318_v25, %v11381_v45  ;;  %v4702_v1 = vpop.f32.mrb[7].mxu1 }
 0x413   : > { %v4814_v50 = vmax.f32 %v4700_v3, 0.0  ;;  %v4703_v32 = vadd.f32 %v4702_v1, %v11375_v37  ;;  %v9677_v37 = vld [vmem:[#allocation6 + $0x180] sm:$0xff]   ;;  %v9684_v1 = vld [vmem:[#allocation6 + $0x1d0] sm:$0xff]  }
 0x414   : > { %4944 = vst [vmem:[#allocation2 + $0x61] sm:$0xff] %v4816_v27  ;;  %v4817_v18 = vmax.f32 %v4711_v49, 0.0  ;;  %v5162_v20 = vld [vmem:[#allocation2 + $0x18] sm:$0xff]  ;;  %v5164_v26 = vld [vmem:[#allocation2 + $0x30] sm:$0xff] }
 0x415   : > { %4942 = vst [vmem:[#allocation2 + $0x49] sm:$0xff] %v4814_v50  ;;  %v4815_v42 = vmax.f32 %v4703_v32, 0.0  ;;  %v5165_v34 = vld [vmem:[#allocation2 + $0x38] sm:$0xff] }
 0x416   : > { %4945 = vst [vmem:[#allocation2 + $0x69] sm:$0xff] %v4817_v18  ;;  %v5163_v48 = vld [vmem:[#allocation2 + $0x20] sm:$0xff]  ;;  %v11464_v45 = vpack.c.bf16 %v4817_v18, %v4816_v27  ;;  %v11468_v13 = vpack.c.bf16 %v5165_v34, %v5164_v26  ;;  %v9688_v34 = vld [vmem:[#allocation6 + $0x1d8] sm:$0xff]  }
 0x417   : > { %4943 = vst [vmem:[#allocation2 + $0x51] sm:$0xff] %v4815_v42  ;;  %v9321_v52 = vpop.f32.mrb[8].mxu1  ;;  %v5194_v24 = vpack.c.bf16 %v5163_v48, %v5162_v20  ;;  %v5069_v9 = vpack.c.bf16 %v4815_v42, %v4814_v50  ;;  %v5100_v32 = vld [vmem:[#allocation2 + $0x1a] sm:$0xff]  ;;  %v5101_v22 = vld [vmem:[#allocation2 + $0x22] sm:$0xff] }
 0x418   : > { %v4724_v30 = vadd.f32 %v9321_v52, %v11390_v33  ;;  %v4715_v62 = vpop.f32.mrb[9].mxu1  ;;  %v9681_v33 = vld [vmem:[#allocation6 + $0x188] sm:$0xff]   ;;  %v11478_v48 = vpack.c.bf16 %v5101_v22, %v5100_v32 }
 0x419   : > { %v4716_v7 = vadd.f32 %v4715_v62, %v11384_v56  ;;  %v9322_v14 = vpop.f32.mrb[10].mxu1  ;;  %6466 = vmatprep.mubr.bf16.mxu1 %v5194_v24  ;;  %6314 = vmatmul.mubr.bf16.gmra.mrb[36].mxu0 %v5194_v24  ;;  %v9694_v32 = vld [vmem:[#allocation6 + $0x1e8] sm:$0xff]  }
 0x41a   : > { %v4820_v0 = vmax.f32 %v4724_v30, 0.0  ;;  %v4727_v3 = vadd.f32 %v9322_v14, %v11393_v10  ;;  %v4718_v25 = vpop.f32.mrb[11].mxu1  ;;  %6467 = vmatmul.mubr.bf16.vlgmr.msra.gmra.mrb[32].mxu1 %v5130_v53  ;;  %6321 = vmatprep.mubr.bf16.mxu0 %v5068_v55  ;;  %v9692_v14 = vld [vmem:[#allocation6 + $0x1e0] sm:$0xff]  }
 0x41b   : > { %v4818_v27 = vmax.f32 %v4716_v7, 0.0  ;;  %v4719_v49 = vadd.f32 %v4718_v25, %v11387_v61  ;;  %6474 = vmatprep.mubr.bf16.mxu1 %v11468_v13  ;;  %9088 = vmatpush3.bf16.msra.mxu1 %v9677_v37  ;;  %v9685_v61 = vld [vmem:[#allocation6 + $0x190] sm:$0xff]   ;;  %v9689_v7 = vld [vmem:[#allocation6 + $0x198] sm:$0xff]  }
 0x41c   : > { %4948 = vst [vmem:[#allocation2 + $0x91] sm:$0xff] %v4820_v0  ;;  %v4821_v56 = vmax.f32 %v4727_v3, 0.0  ;;  %9089 = vmatprep.subr.bf16.mxu1 %v9680_v54  ;;  %v5166_v53 = vld [vmem:[#allocation2 + $0x48] sm:$0xff]  ;;  %v5102_v3 = vld [vmem:[#allocation2 + $0x32] sm:$0xff]  ;;  %v5103_v25 = vld [vmem:[#allocation2 + $0x3a] sm:$0xff] }
 0x41d   : > { %4946 = vst [vmem:[#allocation2 + $0x79] sm:$0xff] %v4818_v27  ;;  %v4819_v50 = vmax.f32 %v4719_v49, 0.0 }
 0x41e   : > { %4949 = vst [vmem:[#allocation2 + $0x99] sm:$0xff] %v4821_v56  ;;  %v5167_v10 = vld [vmem:[#allocation2 + $0x50] sm:$0xff]  ;;  %v11473_v51 = vpack.c.bf16 %v4821_v56, %v4820_v0 }
 0x41f   : > { %4947 = vst [vmem:[#allocation2 + $0x81] sm:$0xff] %v4819_v50  ;;  %v9325_v55 = vpop.f32.mrb[12].mxu1  ;;  %v11475_v18 = vpack.c.bf16 %v4819_v50, %v4818_v27  ;;  %9090 = vmatpush3.bf16.msra.mxu1 %v9681_v33  ;;  %v11482_v37 = vpack.c.bf16 %v5167_v10, %v5166_v53  ;;  %v5168_v50 = vld [vmem:[#allocation2 + $0x60] sm:$0xff] }
 0x420   : > { %v4740_v42 = vadd.f32 %v9325_v55, %v11402_v46  ;;  %v4731_v20 = vpop.f32.mrb[13].mxu1  ;;  %9091 = vmatprep.subr.bf16.mxu1 %v9684_v1  ;;  %v11493_v1 = vpack.c.bf16 %v5103_v25, %v5102_v3 }
 0x421   : > { %v4732_v52 = vadd.f32 %v4731_v20, %v11396_v39  ;;  %v9326_v24 = vpop.f32.mrb[14].mxu1  ;;  %6322 = vmatmul.mubr.bf16.gmra.mrb[40].mxu0 %v11468_v13 }
 0x422   : > { %v4824_v30 = vmax.f32 %v4740_v42, 0.0  ;;  %v4743_v62 = vadd.f32 %v9326_v24, %v11405_v29  ;;  %v4734_v26 = vpop.f32.mrb[15].mxu1  ;;  %6475 = vmatmul.mubr.bf16.gmra.mrb[36].mxu1 %v11478_v48  ;;  %6329 = vmatprep.mubr.bf16.mxu0 %v5069_v9  ;;  %v5169_v29 = vld [vmem:[#allocation2 + $0x68] sm:$0xff] }
 0x423   : > { %v4822_v46 = vmax.f32 %v4732_v52, 0.0  ;;  %v4735_v54 = vadd.f32 %v4734_v26, %v11399_v47  ;;  %6482 = vmatprep.mubr.bf16.mxu1 %v11482_v37  ;;  %9092 = vmatpush3.bf16.msra.mxu1 %v9685_v61  ;;  %v9693_v47 = vld [vmem:[#allocation6 + $0x1a0] sm:$0xff]   ;;  %v11497_v55 = vpack.c.bf16 %v5169_v29, %v5168_v50  ;;  %v9696_v52 = vld [vmem:[#allocation6 + $0x1f0] sm:$0xff]  }
 0x424   : > { %4952 = vst [vmem:[#allocation2 + $0xc1] sm:$0xff] %v4824_v30  ;;  %v4825_v39 = vmax.f32 %v4743_v62, 0.0  ;;  %9093 = vmatprep.subr.bf16.mxu1 %v9688_v34 }
 0x425   : > { %4950 = vst [vmem:[#allocation2 + $0xa9] sm:$0xff] %v4822_v46  ;;  %v4823_v0 = vmax.f32 %v4735_v54, 0.0 }
 0x426   : > { %4953 = vst [vmem:[#allocation2 + $0xc9] sm:$0xff] %v4825_v39  ;;  %v11488_v27 = vpack.c.bf16 %v4825_v39, %v4824_v30  ;;  %v5104_v30 = vld [vmem:[#allocation2 + $0x4a] sm:$0xff]  ;;  %v5171_v62 = vld [vmem:[#allocation2 + $0x80] sm:$0xff] }
 0x427   : > { %4951 = vst [vmem:[#allocation2 + $0xb1] sm:$0xff] %v4823_v0  ;;  %v9329_v9 = vpop.f32.mrb[16].mxu1  ;;  %v11490_v49 = vpack.c.bf16 %v4823_v0, %v4822_v46  ;;  %9094 = vmatpush3.bf16.msra.mxu1 %v9689_v7  ;;  %v9699_v0 = vld [vmem:[#allocation6 + $0x1f8] sm:$0xff]  }
 0x428   : > { %v4756_v33 = vadd.f32 %v9329_v9, %v11414_v31  ;;  %v4747_v56 = vpop.f32.mrb[17].mxu1  ;;  %9095 = vmatprep.subr.bf16.mxu1 %v9692_v14  ;;  %v5170_v14 = vld [vmem:[#allocation2 + $0x78] sm:$0xff] }
 0x429   : > { %v4748_v22 = vadd.f32 %v4747_v56, %v11408_v5  ;;  %v9330_v10 = vpop.f32.mrb[18].mxu1  ;;  %6330 = vmatmul.mubr.bf16.gmra.mrb[44].mxu0 %v11482_v37  ;;  %v9695_v5 = vld [vmem:[#allocation6 + $0x1a8] sm:$0xff]   ;;  %v11513_v29 = vpack.c.bf16 %v5171_v62, %v5170_v14 }
 0x42a   : > { %v4828_v61 = vmax.f32 %v4756_v33, 0.0  ;;  %v4759_v42 = vadd.f32 %v9330_v10, %v11417_v21  ;;  %v4750_v20 = vpop.f32.mrb[19].mxu1  ;;  %6483 = vmatmul.mubr.bf16.gmra.mrb[40].mxu1 %v11493_v1  ;;  %6337 = vmatprep.mubr.bf16.mxu0 %v11464_v45  ;;  %v5105_v21 = vld [vmem:[#allocation2 + $0x52] sm:$0xff]  ;;  %v5107_v10 = vld [vmem:[#allocation2 + $0x6a] sm:$0xff] }
 0x42b   : > { %v4826_v31 = vmax.f32 %v4748_v22, 0.0  ;;  %v4751_v53 = vadd.f32 %v4750_v20, %v11411_v16  ;;  %6490 = vmatprep.mubr.bf16.mxu1 %v11497_v55  ;;  %9096 = vmatpush3.bf16.msra.mxu1 %v9693_v47  ;;  %v9698_v16 = vld [vmem:[#allocation6 + $0x1b0] sm:$0xff]   ;;  %v11509_v39 = vpack.c.bf16 %v5105_v21, %v5104_v30 }
 0x42c   : > { %4956 = vst [vmem:[#allocation2 + $0xf1] sm:$0xff] %v4828_v61  ;;  %v4829_v34 = vmax.f32 %v4759_v42, 0.0  ;;  %9097 = vmatprep.subr.bf16.mxu1 %v9694_v32  ;;  %v5106_v22 = vld [vmem:[#allocation2 + $0x62] sm:$0xff] }
 0x42d   : > { %4954 = vst [vmem:[#allocation2 + $0xd9] sm:$0xff] %v4826_v31  ;;  %v4827_v24 = vmax.f32 %v4751_v53, 0.0  ;;  %v5172_v53 = vld [vmem:[#allocation2 + $0x90] sm:$0xff] }
 0x42e   : > { %4957 = vst [vmem:[#allocation2 + $0xf9] sm:$0xff] %v4829_v34  ;;  %v11504_v26 = vpack.c.bf16 %v4829_v34, %v4828_v61 }
 0x42f   : > { %4955 = vst [vmem:[#allocation2 + $0xe1] sm:$0xff] %v4827_v24  ;;  %v9333_v45 = vpop.f32.mrb[20].mxu1  ;;  %v11506_v46 = vpack.c.bf16 %v4827_v24, %v4826_v31  ;;  %9098 = vmatpush3.bf16.msra.mxu1 %v9695_v5  ;;  %v11525_v31 = vpack.c.bf16 %v5107_v10, %v5106_v22  ;;  %v5110_v22 = vld [vmem:[#allocation2 + $0x92] sm:$0xff]  ;;  %v5111_v10 = vld [vmem:[#allocation2 + $0x9a] sm:$0xff] }
 0x430   : > { %v4772_v54 = vadd.f32 %v9333_v45, %v11426_v17  ;;  %v4763_v7 = vpop.f32.mrb[21].mxu1  ;;  %9099 = vmatprep.subr.bf16.mxu1 %v9696_v52 }
 0x431   : > { %v4764_v3 = vadd.f32 %v4763_v7, %v11420_v57  ;;  %v9334_v25 = vpop.f32.mrb[22].mxu1  ;;  %6338 = vmatmul.mubr.bf16.gmra.mrb[48].mxu0 %v11497_v55  ;;  %v9700_v57 = vld [vmem:[#allocation6 + $0x1b8] sm:$0xff]   ;;  %v5175_v7 = vld [vmem:[#allocation2 + $0xb0] sm:$0xff] }
 0x432   : > { %v4832_v9 = vmax.f32 %v4772_v54, 0.0  ;;  %v4775_v47 = vadd.f32 %v9334_v25, %v11429_v11  ;;  %v4766_v33 = vpop.f32.mrb[23].mxu1  ;;  %6491 = vmatmul.mubr.bf16.gmra.mrb[44].mxu1 %v11509_v39  ;;  %6345 = vmatprep.mubr.bf16.mxu0 %v11475_v18  ;;  %v5173_v11 = vld [vmem:[#allocation2 + $0x98] sm:$0xff]  ;;  %v5109_v54 = vld [vmem:[#allocation2 + $0x82] sm:$0xff] }
 0x433   : > { %v4830_v17 = vmax.f32 %v4764_v3, 0.0  ;;  %v4767_v56 = vadd.f32 %v4766_v33, %v11423_v63  ;;  %6498 = vmatprep.mubr.bf16.mxu1 %v11513_v29  ;;  %9100 = vmatpush3.bf16.msra.mxu1 %v9698_v16  ;;  %v11529_v52 = vpack.c.bf16 %v5173_v11, %v5172_v53  ;;  %v5108_v16 = vld [vmem:[#allocation2 + $0x7a] sm:$0xff]  ;;  %v5174_v25 = vld [vmem:[#allocation2 + $0xa8] sm:$0xff] }
 0x434   : > { %4960 = vst [vmem:[#allocation2 + $0x121] sm:$0xff] %v4832_v9  ;;  %v4833_v50 = vmax.f32 %v4775_v47, 0.0  ;;  %9101 = vmatprep.subr.bf16.mxu1 %v9699_v0  ;;  %v11545_v33 = vpack.c.bf16 %v5175_v7, %v5174_v25  ;;  %v5177_v11 = vld [vmem:[#allocation2 + $0xc8] sm:$0xff] }
 0x435   : > { %4958 = vst [vmem:[#allocation2 + $0x109] sm:$0xff] %v4830_v17  ;;  %v4831_v32 = vmax.f32 %v4767_v56, 0.0 }
 0x436   : > { %4961 = vst [vmem:[#allocation2 + $0x129] sm:$0xff] %v4833_v50  ;;  %v11520_v61 = vpack.c.bf16 %v4833_v50, %v4832_v9  ;;  %v5179_v53 = vld [vmem:[#allocation2 + $0xe0] sm:$0xff] }
 0x437   : > { %4959 = vst [vmem:[#allocation2 + $0x111] sm:$0xff] %v4831_v32  ;;  %v9337_v18 = vpop.f32.mrb[24].mxu1  ;;  %v11522_v42 = vpack.c.bf16 %v4831_v32, %v4830_v17  ;;  %9102 = vmatpush3.bf16.msra.mxu1 %v9700_v57 }
 0x438   : > { %v4788_v63 = vadd.f32 %v9337_v18, %v11438_v44  ;;  %v4779_v20 = vpop.f32.mrb[25].mxu1  ;;  %v11554_v18 = vpack.c.bf16 %v5111_v10, %v5110_v22 }
 0x439   : > { %v4780_v5 = vadd.f32 %v4779_v20, %v11432_v36  ;;  %v9338_v34 = vpop.f32.mrb[26].mxu1  ;;  %6346 = vmatmul.mubr.bf16.gmra.mrb[52].mxu0 %v11513_v29  ;;  %v5113_v20 = vld [vmem:[#allocation2 + $0xb2] sm:$0xff] }
 0x43a   : > { %v4836_v24 = vmax.f32 %v4788_v63, 0.0  ;;  %v4791_v30 = vadd.f32 %v9338_v34, %v11441_v41  ;;  %v4782_v21 = vpop.f32.mrb[27].mxu1  ;;  %6499 = vmatmul.mubr.bf16.gmra.mrb[48].mxu1 %v11525_v31  ;;  %6353 = vmatprep.mubr.bf16.mxu0 %v11473_v51  ;;  %v5176_v63 = vld [vmem:[#allocation2 + $0xc0] sm:$0xff]  ;;  %v5178_v34 = vld [vmem:[#allocation2 + $0xd8] sm:$0xff] }
 0x43b   : > { %v4834_v44 = vmax.f32 %v4780_v5, 0.0  ;;  %v4783_v62 = vadd.f32 %v4782_v21, %v11435_v19  ;;  %6506 = vmatprep.mubr.bf16.mxu1 %v11529_v52  ;;  %v11541_v19 = vpack.c.bf16 %v5109_v54, %v5108_v16  ;;  %v5181_v21 = vld [vmem:[#allocation2 + $0xf8] sm:$0xff] }
 0x43c   : > { %4964 = vst [vmem:[#allocation2 + $0x151] sm:$0xff] %v4836_v24  ;;  %v4837_v36 = vmax.f32 %v4791_v30, 0.0  ;;  %v5114_v30 = vld [vmem:[#allocation2 + $0xc2] sm:$0xff] }
 0x43d   : > { %4962 = vst [vmem:[#allocation2 + $0x139] sm:$0xff] %v4834_v44  ;;  %v4835_v45 = vmax.f32 %v4783_v62, 0.0  ;;  %v5180_v62 = vld [vmem:[#allocation2 + $0xf0] sm:$0xff]  ;;  %v5182_v7 = vld [vmem:[#allocation2 + $0x108] sm:$0xff] }
 0x43e   : > { %4965 = vst [vmem:[#allocation2 + $0x159] sm:$0xff] %v4837_v36  ;;  %v11536_v14 = vpack.c.bf16 %v4837_v36, %v4836_v24  ;;  %v11565_v24 = vpack.c.bf16 %v5179_v53, %v5178_v34  ;;  %v11573_v36 = vpack.c.bf16 %v5181_v21, %v5180_v62  ;;  %v5183_v16 = vld [vmem:[#allocation2 + $0x110] sm:$0xff] }
 0x43f   : > { %4963 = vst [vmem:[#allocation2 + $0x141] sm:$0xff] %v4835_v45  ;;  %v9341_v41 = vpop.f32.mrb[28].mxu1  ;;  %v11538_v0 = vpack.c.bf16 %v4835_v45, %v4834_v44  ;;  %v5116_v45 = vld [vmem:[#allocation2 + $0xda] sm:$0xff] }
 0x440   : > { %v4804_v51 = vadd.f32 %v9341_v41, %v11453_v38  ;;  %v4795_v3 = vpop.f32.mrb[29].mxu1  ;;  %v11581_v41 = vpack.c.bf16 %v5183_v16, %v5182_v7 }
 0x441   : > { %v4796_v9 = vadd.f32 %v4795_v3, %v11444_v15  ;;  %v9342_v47 = vpop.f32.mrb[30].mxu1  ;;  %6354 = vmatmul.mubr.bf16.gmra.mrb[56].mxu0 %v11529_v52  ;;  %v5185_v3 = vld [vmem:[#allocation2 + $0x128] sm:$0xff] }
 0x442   : > { %v4840_v17 = vmax.f32 %v4804_v51, 0.0  ;;  %v4807_v56 = vadd.f32 %v9342_v47, %v11455_v12  ;;  %v4798_v57 = vpop.f32.mrb[31].mxu1  ;;  %6507 = vmatmul.mubr.bf16.gmra.mrb[52].mxu1 %v11541_v19  ;;  %6361 = vmatprep.mubr.bf16.mxu0 %v11490_v49  ;;  %v11557_v49 = vpack.c.bf16 %v5177_v11, %v5176_v63  ;;  %v5118_v51 = vld [vmem:[#allocation2 + $0xf2] sm:$0xff] }
 0x443   : > { %v4838_v38 = vmax.f32 %v4796_v9, 0.0  ;;  %v4799_v50 = vadd.f32 %v4798_v57, %v11447_v8  ;;  %6514 = vmatprep.mubr.bf16.mxu1 %v11545_v33  ;;  %v5112_v8 = vld [vmem:[#allocation2 + $0xaa] sm:$0xff]  ;;  %v5184_v9 = vld [vmem:[#allocation2 + $0x120] sm:$0xff] }
 0x444   : > { %4968 = vst [vmem:[#allocation2 + $0x181] sm:$0xff] %v4840_v17  ;;  %v4841_v15 = vmax.f32 %v4807_v56, 0.0  ;;  %v11562_v5 = vpack.c.bf16 %v5113_v20, %v5112_v8  ;;  %v11589_v17 = vpack.c.bf16 %v5185_v3, %v5184_v9  ;;  %v5186_v11 = vld [vmem:[#allocation2 + $0x138] sm:$0xff]  ;;  %v5123_v8 = vld [vmem:[#allocation2 + $0x12a] sm:$0xff]  ;;  %v5227_v9 = vld [vmem:[#allocation2 + $0x21] sm:$0xff] }
 0x445   : > { %4966 = vst [vmem:[#allocation2 + $0x169] sm:$0xff] %v4838_v38  ;;  %v4839_v32 = vmax.f32 %v4799_v50, 0.0  ;;  %v5189_v20 = vld [vmem:[#allocation2 + $0x158] sm:$0xff]  ;;  %v5188_v34 = vld [vmem:[#allocation2 + $0x150] sm:$0xff] }
 0x446   : > { %4969 = vst [vmem:[#allocation2 + $0x189] sm:$0xff] %v4841_v15  ;;  %v5120_v15 = vld [vmem:[#allocation2 + $0x10a] sm:$0xff]  ;;  %v5187_v22 = vld [vmem:[#allocation2 + $0x140] sm:$0xff]  ;;  %v5126_v16 = vld [vmem:[#allocation2 + $0x152] sm:$0xff] }
 0x447   : > { %4967 = vst [vmem:[#allocation2 + $0x171] sm:$0xff] %v4839_v32  ;;  %v11552_v12 = vpack.c.bf16 %v4839_v32, %v4838_v38  ;;  %v5121_v32 = vld [vmem:[#allocation2 + $0x112] sm:$0xff]  ;;  %v11601_v63 = vpack.c.bf16 %v5187_v22, %v5186_v11 }
 0x448   : > { %v11598_v10 = vpack.c.bf16 %v5121_v32, %v5120_v15  ;;  %v5418_v32 = vld [vmem:[#allocation2 + $0x31] sm:$0xff] }
 0x449   : > { %6362 = vmatmul.mubr.bf16.gmra.mrb[60].mxu0 %v11545_v33  ;;  %v9701_v22 = vld [vmem:[#allocation6 + $0x208] sm:$0xff]  }
 0x44a   : > { %6515 = vmatmul.mubr.bf16.gmra.mrb[56].mxu1 %v11554_v18  ;;  %6369 = vmatprep.mubr.bf16.mxu0 %v11488_v27  ;;  %v5115_v27 = vld [vmem:[#allocation2 + $0xca] sm:$0xff] }
 0x44b   : > { %6522 = vmatprep.mubr.bf16.mxu1 %v11557_v49  ;;  %v11570_v44 = vpack.c.bf16 %v5115_v27, %v5114_v30  ;;  %v11609_v30 = vpack.c.bf16 %v5189_v20, %v5188_v34  ;;  %v5124_v27 = vld [vmem:[#allocation2 + $0x13a] sm:$0xff]  ;;  %v9703_v20 = vld [vmem:[#allocation6 + $0x218] sm:$0xff]  }
 0x44d   : > { %v5193_v7 = vld [vmem:[#allocation2 + $0x188] sm:$0xff] }
 0x44e   : > { %v5191_v21 = vld [vmem:[#allocation2 + $0x170] sm:$0xff] }
 0x451   : > { %6370 = vmatmul.mubr.bf16.gmra.mrb[64].mxu0 %v11557_v49 }
 0x452   : > { %6523 = vmatmul.mubr.bf16.gmra.mrb[60].mxu1 %v11562_v5  ;;  %6377 = vmatprep.mubr.bf16.mxu0 %v11506_v46  ;;  %v5117_v46 = vld [vmem:[#allocation2 + $0xe2] sm:$0xff] }
 0x453   : > { %6530 = vmatprep.mubr.bf16.mxu1 %v11565_v24  ;;  %v11578_v54 = vpack.c.bf16 %v5117_v46, %v5116_v45  ;;  %v5190_v45 = vld [vmem:[#allocation2 + $0x168] sm:$0xff] }
 0x454   : > { %v11617_v46 = vpack.c.bf16 %v5191_v21, %v5190_v45  ;;  %v5424_v45 = vld [vmem:[#allocation2 + $0x79] sm:$0xff] }
 0x459   : > { %6378 = vmatmul.mubr.bf16.gmra.mrb[68].mxu0 %v11565_v24 }
 0x45a   : > { %6531 = vmatmul.mubr.bf16.gmra.mrb[64].mxu1 %v11570_v44  ;;  %6385 = vmatprep.mubr.bf16.mxu0 %v11504_v26  ;;  %v5119_v26 = vld [vmem:[#allocation2 + $0xfa] sm:$0xff] }
 0x45b   : > { %6538 = vmatprep.mubr.bf16.mxu1 %v11573_v36  ;;  %v11586_v25 = vpack.c.bf16 %v5119_v26, %v5118_v51  ;;  %v5192_v26 = vld [vmem:[#allocation2 + $0x180] sm:$0xff] }
 0x45c   : > { %v11625_v3 = vpack.c.bf16 %v5193_v7, %v5192_v26  ;;  %v5429_v26 = vld [vmem:[#allocation2 + $0xb1] sm:$0xff] }
 0x461   : > { %6386 = vmatmul.mubr.bf16.gmra.mrb[72].mxu0 %v11573_v36 }
 0x462   : > { %6539 = vmatmul.mubr.bf16.gmra.mrb[68].mxu1 %v11578_v54  ;;  %6393 = vmatprep.mubr.bf16.mxu0 %v11522_v42 }
 0x463   : > { %6546 = vmatprep.mubr.bf16.mxu1 %v11581_v41  ;;  %v8767_v47 = vpop.f32.mrb[32].mxu0 }
 0x464   : > { %v8768_v56 = vpop.f32.mrb[33].mxu0 }
 0x465   : > { %v11593_v57 = vadd.f32 %v8768_v56, %v8767_v47  ;;  %v8770_v42 = vpop.f32.mrb[34].mxu0  ;;  %v5129_v47 = vld [vmem:[#allocation2 + $0x172] sm:$0xff] }
 0x466   : > { %v8771_v38 = vpop.f32.mrb[35].mxu0  ;;  %v5226_v56 = vld [vmem:[#allocation2 + $0x19] sm:$0xff] }
 0x467   : > { %v11596_v50 = vadd.f32 %v8771_v38, %v8770_v42  ;;  %v5419_v42 = vld [vmem:[#allocation2 + $0x39] sm:$0xff]  ;;  %v5258_v38 = vpack.c.bf16 %v5227_v9, %v5226_v56  ;;  %v5428_v9 = vld [vmem:[#allocation2 + $0xa9] sm:$0xff] }
 0x468   : > { %v5450_v11 = vpack.c.bf16 %v5419_v42, %v5418_v32 }
 0x469   : > { %6394 = vmatmul.mubr.bf16.gmra.mrb[76].mxu0 %v11581_v41 }
 0x46a   : > { %6547 = vmatmul.mubr.bf16.gmra.mrb[72].mxu1 %v11586_v25  ;;  %6401 = vmatprep.mubr.bf16.mxu0 %v11520_v61  ;;  %v5122_v61 = vld [vmem:[#allocation2 + $0x122] sm:$0xff] }
 0x46b   : > { %6554 = vmatprep.mubr.bf16.mxu1 %v11589_v17  ;;  %v11606_v53 = vpack.c.bf16 %v5123_v8, %v5122_v61  ;;  %v5421_v61 = vld [vmem:[#allocation2 + $0x51] sm:$0xff]  ;;  %v5420_v8 = vld [vmem:[#allocation2 + $0x49] sm:$0xff] }
 0x46c   : > { %v5451_v34 = vpack.c.bf16 %v5421_v61, %v5420_v8  ;;  %v5443_v8 = vld [vmem:[#allocation2 + $0x159] sm:$0xff] }
 0x471   : > { %6402 = vmatmul.mubr.bf16.gmra.mrb[80].mxu0 %v11589_v17 }
 0x472   : > { %6555 = vmatmul.mubr.bf16.gmra.mrb[76].mxu1 %v11598_v10  ;;  %6409 = vmatprep.mubr.bf16.mxu0 %v11538_v0  ;;  %v5125_v0 = vld [vmem:[#allocation2 + $0x142] sm:$0xff] }
 0x473   : > { %6562 = vmatprep.mubr.bf16.mxu1 %v11601_v63  ;;  %v11614_v62 = vpack.c.bf16 %v5125_v0, %v5124_v27  ;;  %v5423_v27 = vld [vmem:[#allocation2 + $0x69] sm:$0xff]  ;;  %v9705_v0 = vld [vmem:[#allocation6 + $0x228] sm:$0xff]  }
 0x479   : > { %6410 = vmatmul.mubr.bf16.gmra.mrb[84].mxu0 %v11601_v63 }
 0x47a   : > { %6563 = vmatmul.mubr.bf16.gmra.mrb[80].mxu1 %v11606_v53  ;;  %6417 = vmatprep.mubr.bf16.mxu0 %v11536_v14  ;;  %v5127_v14 = vld [vmem:[#allocation2 + $0x15a] sm:$0xff] }
 0x47b   : > { %6570 = vmatprep.mubr.bf16.mxu1 %v11609_v30  ;;  %v11622_v51 = vpack.c.bf16 %v5127_v14, %v5126_v16  ;;  %v9707_v16 = vld [vmem:[#allocation6 + $0x238] sm:$0xff]  }
 0x481   : > { %6418 = vmatmul.mubr.bf16.gmra.mrb[88].mxu0 %v11609_v30 }
 0x482   : > { %6571 = vmatmul.mubr.bf16.gmra.mrb[84].mxu1 %v11614_v62  ;;  %6425 = vmatprep.mubr.bf16.mxu0 %v11552_v12  ;;  %v5128_v12 = vld [vmem:[#allocation2 + $0x16a] sm:$0xff] }
 0x483   : > { %6578 = vmatprep.mubr.bf16.mxu1 %v11617_v46  ;;  %v11630_v15 = vpack.c.bf16 %v5129_v47, %v5128_v12  ;;  %v5455_v12 = vpack.c.bf16 %v5429_v26, %v5428_v9  ;;  %v5445_v26 = vld [vmem:[#allocation2 + $0x171] sm:$0xff] }
 0x489   : > { %6426 = vmatmul.mubr.bf16.gmra.mrb[92].mxu0 %v11617_v46 }
 0x48a   : > { %6579 = vmatmul.mubr.bf16.gmra.mrb[88].mxu1 %v11622_v51  ;;  %6627 = vmatprep.mubr.bf16.mxu0 %v11478_v48  ;;  %v9702_v48 = vld [vmem:[#allocation6 + $0x210] sm:$0xff]  }
 0x48b   : > { %6586 = vmatprep.mubr.bf16.mxu1 %v11625_v3 }
 0x491   : > { %6628 = vmatmul.mubr.bf16.vlgmr.msra.gmra.mrb[96].mxu0 %v5258_v38 }
 0x492   : > { %6587 = vmatmul.mubr.bf16.gmra.mrb[92].mxu1 %v11630_v15  ;;  %6635 = vmatprep.mubr.bf16.mxu0 %v11493_v1  ;;  %v9704_v1 = vld [vmem:[#allocation6 + $0x220] sm:$0xff]  }
 0x493   : > { %6788 = vmatprep.mubr.bf16.mxu1 %v5450_v11  ;;  %9344 = vmatpush3.bf16.msra.mxu0 %v11460_v23  ;;  %v5422_v23 = vld [vmem:[#allocation2 + $0x61] sm:$0xff] }
 0x494   : > { %9345 = vmatprep.subr.bf16.mxu0 %v9701_v22  ;;  %v5452_v21 = vpack.c.bf16 %v5423_v27, %v5422_v23  ;;  %v5442_v23 = vld [vmem:[#allocation2 + $0x151] sm:$0xff] }
 0x497   : > { %9346 = vmatpush3.bf16.msra.mxu0 %v9701_v22 }
 0x498   : > { %9347 = vmatprep.subr.bf16.mxu0 %v9702_v48 }
 0x499   : > { %6636 = vmatmul.mubr.bf16.gmra.mrb[100].mxu0 %v5450_v11 }
 0x49a   : > { %6789 = vmatmul.mubr.bf16.vlgmr.msra.gmra.mrb[96].mxu1 %v11468_v13  ;;  %6643 = vmatprep.mubr.bf16.mxu0 %v11509_v39  ;;  %v9706_v13 = vld [vmem:[#allocation6 + $0x230] sm:$0xff]  }
 0x49b   : > { %6796 = vmatprep.mubr.bf16.mxu1 %v5451_v34  ;;  %9348 = vmatpush3.bf16.msra.mxu0 %v9702_v48  ;;  %v5425_v39 = vld [vmem:[#allocation2 + $0x81] sm:$0xff] }
 0x49c   : > { %9349 = vmatprep.subr.bf16.mxu0 %v9703_v20  ;;  %v5453_v14 = vpack.c.bf16 %v5425_v39, %v5424_v45  ;;  %v5462_v39 = vpack.c.bf16 %v5443_v8, %v5442_v23  ;;  %v5449_v23 = vld [vmem:[#allocation2 + $0x1a1] sm:$0xff] }
 0x49f   : > { %9350 = vmatpush3.bf16.msra.mxu0 %v9703_v20 }
 0x4a0   : > { %9351 = vmatprep.subr.bf16.mxu0 %v9704_v1 }
 0x4a1   : > { %6644 = vmatmul.mubr.bf16.gmra.mrb[104].mxu0 %v5451_v34 }
 0x4a2   : > { %6797 = vmatmul.mubr.bf16.gmra.mrb[100].mxu1 %v11482_v37  ;;  %6651 = vmatprep.mubr.bf16.mxu0 %v11525_v31  ;;  %v5427_v37 = vld [vmem:[#allocation2 + $0x99] sm:$0xff]  ;;  %v5426_v31 = vld [vmem:[#allocation2 + $0x91] sm:$0xff] }
 0x4a3   : > { %6804 = vmatprep.mubr.bf16.mxu1 %v5452_v21  ;;  %9352 = vmatpush3.bf16.msra.mxu0 %v9704_v1  ;;  %v5454_v7 = vpack.c.bf16 %v5427_v37, %v5426_v31 }
 0x4a4   : > { %9353 = vmatprep.subr.bf16.mxu0 %v9705_v0 }
 0x4a7   : > { %9354 = vmatpush3.bf16.msra.mxu0 %v9705_v0 }
 0x4a8   : > { %9355 = vmatprep.subr.bf16.mxu0 %v9706_v13 }
 0x4a9   : > { %6652 = vmatmul.mubr.bf16.gmra.mrb[108].mxu0 %v5452_v21 }
 0x4aa   : > { %6805 = vmatmul.mubr.bf16.gmra.mrb[104].mxu1 %v11497_v55  ;;  %6659 = vmatprep.mubr.bf16.mxu0 %v11541_v19  ;;  %v5431_v55 = vld [vmem:[#allocation2 + $0xc9] sm:$0xff]  ;;  %v5430_v19 = vld [vmem:[#allocation2 + $0xc1] sm:$0xff] }
 0x4ab   : > { %6812 = vmatprep.mubr.bf16.mxu1 %v5453_v14  ;;  %9356 = vmatpush3.bf16.msra.mxu0 %v9706_v13  ;;  %v5456_v47 = vpack.c.bf16 %v5431_v55, %v5430_v19 }
 0x4ac   : > { %9357 = vmatprep.subr.bf16.mxu0 %v9707_v16 }
 0x4af   : > { %9358 = vmatpush3.bf16.msra.mxu0 %v9707_v16 }
 0x4b1   : > { %6660 = vmatmul.mubr.bf16.gmra.mrb[112].mxu0 %v5453_v14 }
 0x4b2   : > { %6813 = vmatmul.mubr.bf16.gmra.mrb[108].mxu1 %v11513_v29  ;;  %6667 = vmatprep.mubr.bf16.mxu0 %v11554_v18  ;;  %v5433_v29 = vld [vmem:[#allocation2 + $0xe1] sm:$0xff]  ;;  %v5432_v18 = vld [vmem:[#allocation2 + $0xd9] sm:$0xff] }
 0x4b3   : > { %6820 = vmatprep.mubr.bf16.mxu1 %v5454_v7  ;;  %v5457_v56 = vpack.c.bf16 %v5433_v29, %v5432_v18 }
 0x4b9   : > { %6668 = vmatmul.mubr.bf16.gmra.mrb[116].mxu0 %v5454_v7 }
 0x4ba   : > { %6821 = vmatmul.mubr.bf16.gmra.mrb[112].mxu1 %v11529_v52  ;;  %6675 = vmatprep.mubr.bf16.mxu0 %v11562_v5  ;;  %v5435_v52 = vld [vmem:[#allocation2 + $0xf9] sm:$0xff]  ;;  %v5434_v5 = vld [vmem:[#allocation2 + $0xf1] sm:$0xff] }
 0x4bb   : > { %6828 = vmatprep.mubr.bf16.mxu1 %v5455_v12  ;;  %v5458_v42 = vpack.c.bf16 %v5435_v52, %v5434_v5 }
 0x4c1   : > { %6676 = vmatmul.mubr.bf16.gmra.mrb[120].mxu0 %v5455_v12 }
 0x4c2   : > { %6829 = vmatmul.mubr.bf16.gmra.mrb[116].mxu1 %v11545_v33  ;;  %6683 = vmatprep.mubr.bf16.mxu0 %v11570_v44  ;;  %v5437_v33 = vld [vmem:[#allocation2 + $0x111] sm:$0xff]  ;;  %v5436_v44 = vld [vmem:[#allocation2 + $0x109] sm:$0xff] }
 0x4c3   : > { %6836 = vmatprep.mubr.bf16.mxu1 %v5456_v47  ;;  %v5459_v38 = vpack.c.bf16 %v5437_v33, %v5436_v44 }
 0x4c9   : > { %6684 = vmatmul.mubr.bf16.gmra.mrb[124].mxu0 %v5456_v47  ;;  %v5444_v47 = vld [vmem:[#allocation2 + $0x169] sm:$0xff] }
 0x4ca   : > { %6837 = vmatmul.mubr.bf16.gmra.mrb[120].mxu1 %v11557_v49  ;;  %6691 = vmatprep.mubr.bf16.mxu0 %v11578_v54  ;;  %v5439_v49 = vld [vmem:[#allocation2 + $0x129] sm:$0xff]  ;;  %v5438_v54 = vld [vmem:[#allocation2 + $0x121] sm:$0xff]  ;;  %v5463_v52 = vpack.c.bf16 %v5445_v26, %v5444_v47 }
 0x4cb   : > { %6844 = vmatprep.mubr.bf16.mxu1 %v5457_v56  ;;  %v5460_v32 = vpack.c.bf16 %v5439_v49, %v5438_v54  ;;  %v5321_v49 = vld [vmem:[#allocation2 + $0x18a] sm:$0xff] }
 0x4d1   : > { %6692 = vmatmul.mubr.bf16.gmra.mrb[128].mxu0 %v5457_v56 }
 0x4d2   : > { %6845 = vmatmul.mubr.bf16.gmra.mrb[124].mxu1 %v11565_v24  ;;  %6699 = vmatprep.mubr.bf16.mxu0 %v11586_v25  ;;  %v5441_v24 = vld [vmem:[#allocation2 + $0x141] sm:$0xff]  ;;  %v5440_v25 = vld [vmem:[#allocation2 + $0x139] sm:$0xff] }
 0x4d3   : > { %6852 = vmatprep.mubr.bf16.mxu1 %v5458_v42  ;;  %v5461_v22 = vpack.c.bf16 %v5441_v24, %v5440_v25  ;;  %v5447_v25 = vld [vmem:[#allocation2 + $0x189] sm:$0xff] }
 0x4d9   : > { %6700 = vmatmul.mubr.bf16.gmra.mrb[132].mxu0 %v5458_v42 }
 0x4da   : > { %6853 = vmatmul.mubr.bf16.gmra.mrb[128].mxu1 %v11573_v36  ;;  %6707 = vmatprep.mubr.bf16.mxu0 %v11598_v10  ;;  %v11660_v36 = vld [vmem:[%s12012_s6] ss:$0 sm:$0xff] }
 0x4db   : > { %6860 = vmatprep.mubr.bf16.mxu1 %v5459_v38  ;;  %v6308_v20 = vadd.f32 %v11593_v57, %v11660_v36  ;;  %v6311_v0 = vadd.f32 %v11596_v50, %v11660_v36  ;;  %v9708_v57 = vld [vmem:[%s12013_s7] sm:$0xff]  }
 0x4dc   : > { %9391 = vmatprep.subr.bf16.mxu1 %v9708_v57 }
 0x4dd   : > { %9392 = vmatpush3.bf16.msra.mxu1 %v9708_v57  ;;  %v5483_v57 = vld [vmem:[#allocation2 + $0x3a] sm:$0xff] }
 0x4e1   : > { %6708 = vmatmul.mubr.bf16.gmra.mrb[136].mxu0 %v5459_v38  ;;  %v5320_v38 = vld [vmem:[#allocation2 + $0x182] sm:$0xff] }
 0x4e2   : > { %6861 = vmatmul.mubr.bf16.gmra.mrb[132].mxu1 %v11581_v41  ;;  %6715 = vmatprep.mubr.bf16.mxu0 %v11606_v53 }
 0x4e3   : > { %6868 = vmatprep.mubr.bf16.mxu1 %v5460_v32 }
 0x4e9   : > { %6716 = vmatmul.mubr.bf16.gmra.mrb[140].mxu0 %v5460_v32 }
 0x4ea   : > { %6869 = vmatmul.mubr.bf16.gmra.mrb[136].mxu1 %v11589_v17  ;;  %6723 = vmatprep.mubr.bf16.mxu0 %v11614_v62 }
 0x4eb   : > { %6876 = vmatprep.mubr.bf16.mxu1 %v5461_v22 }
 0x4ec   : > { %v8773_v10 = vpop.f32.mrb[36].mxu0 }
 0x4ed   : > { %v8879_v11 = vpop.f32.mrb[32].mxu1  ;;  %v8774_v41 = vpop.f32.mrb[37].mxu0 }
 0x4ee   : > { %v8775_v48 = vadd.f32 %v8774_v41, %v8773_v10  ;;  %v8880_v53 = vpop.f32.mrb[33].mxu1  ;;  %v8776_v61 = vpop.f32.mrb[38].mxu0 }
 0x4ef   : > { %v8881_v34 = vadd.f32 %v8880_v53, %v8879_v11  ;;  %v8882_v17 = vpop.f32.mrb[34].mxu1  ;;  %v8777_v1 = vpop.f32.mrb[39].mxu0  ;;  %v5446_v53 = vld [vmem:[#allocation2 + $0x181] sm:$0xff] }
 0x4f0   : > { %v8778_v62 = vadd.f32 %v8777_v1, %v8776_v61  ;;  %v8883_v27 = vpop.f32.mrb[35].mxu1 }
 0x4f1   : > { %v11666_v21 = vadd.f32 %v8881_v34, %v6308_v20  ;;  %v8884_v13 = vadd.f32 %v8883_v27, %v8882_v17  ;;  %6724 = vmatmul.mubr.bf16.gmra.mrb[144].mxu0 %v5461_v22  ;;  %v5464_v34 = vpack.c.bf16 %v5447_v25, %v5446_v53  ;;  %v9709_v17 = vld [vmem:[%s12013_s7 + $0x8] sm:$0xff]   ;;  %v5448_v27 = vld [vmem:[#allocation2 + $0x199] sm:$0xff] }
 0x4f2   : > { %6877 = vmatmul.mubr.bf16.gmra.mrb[140].mxu1 %v11601_v63  ;;  %6731 = vmatprep.mubr.bf16.mxu0 %v11622_v51  ;;  %v6316_v63 = vadd.f32 %v8775_v48, %v11660_v36  ;;  %v6319_v29 = vadd.f32 %v8778_v62, %v11660_v36  ;;  %v5465_v26 = vpack.c.bf16 %v5449_v23, %v5448_v27  ;;  %v5488_v23 = vld [vmem:[#allocation2 + $0x7a] sm:$0xff] }
 0x4f3   : > { %v11673_v45 = vadd.f32 %v8884_v13, %v6311_v0  ;;  %6884 = vmatprep.mubr.bf16.mxu1 %v5462_v39  ;;  %9393 = vmatprep.subr.bf16.mxu1 %v9709_v17 }
 0x4f4   : > { %v8779_v16 = vpop.f32.mrb[40].mxu0  ;;  %9394 = vmatpush3.bf16.msra.mxu1 %v9709_v17  ;;  %v9710_v17 = vld [vmem:[%s12013_s7 + $0x10] sm:$0xff]  }
 0x4f5   : > { %v8885_v14 = vpop.f32.mrb[36].mxu1  ;;  %v8780_v50 = vpop.f32.mrb[41].mxu0  ;;  %9395 = vmatprep.subr.bf16.mxu1 %v9710_v17 }
 0x4f6   : > { %v8781_v37 = vadd.f32 %v8780_v50, %v8779_v16  ;;  %v8886_v31 = vpop.f32.mrb[37].mxu1  ;;  %v8782_v7 = vpop.f32.mrb[42].mxu0 }
 0x4f7   : > { %v8887_v9 = vadd.f32 %v8886_v31, %v8885_v14  ;;  %v8888_v51 = vpop.f32.mrb[38].mxu1  ;;  %v8783_v12 = vpop.f32.mrb[43].mxu0 }
 0x4f8   : > { %v8784_v55 = vadd.f32 %v8783_v12, %v8782_v7  ;;  %v8889_v19 = vpop.f32.mrb[39].mxu1  ;;  %v6324_v22 = vadd.f32 %v8781_v37, %v11660_v36  ;;  %9396 = vmatpush3.bf16.msra.mxu1 %v9710_v17 }
 0x4f9   : > { %v11677_v18 = vadd.f32 %v8887_v9, %v6316_v63  ;;  %v8890_v56 = vadd.f32 %v8889_v19, %v8888_v51  ;;  %6732 = vmatmul.mubr.bf16.gmra.mrb[148].mxu0 %v5462_v39  ;;  %v5482_v39 = vld [vmem:[#allocation2 + $0x32] sm:$0xff] }
 0x4fa   : > { %6885 = vmatmul.mubr.bf16.gmra.mrb[144].mxu1 %v11609_v30  ;;  %6739 = vmatprep.mubr.bf16.mxu0 %v11630_v15  ;;  %v11684_v15 = vpack.c.bf16 %v5321_v49, %v5320_v38  ;;  %v6327_v61 = vadd.f32 %v8784_v55, %v11660_v36  ;;  %v5514_v51 = vpack.c.bf16 %v5483_v57, %v5482_v39  ;;  %v5487_v38 = vld [vmem:[#allocation2 + $0x6a] sm:$0xff]  ;;  %v5490_v57 = vld [vmem:[#allocation2 + $0x92] sm:$0xff] }
 0x4fb   : > { %v11681_v5 = vadd.f32 %v8890_v56, %v6319_v29  ;;  %6892 = vmatprep.mubr.bf16.mxu1 %v5463_v52  ;;  %v5484_v56 = vld [vmem:[#allocation2 + $0x4a] sm:$0xff] }
 0x4fc   : > { %v8785_v42 = vpop.f32.mrb[44].mxu0 }
 0x4fd   : > { %v8891_v33 = vpop.f32.mrb[40].mxu1  ;;  %v8786_v44 = vpop.f32.mrb[45].mxu0 }
 0x4fe   : > { %v8787_v54 = vadd.f32 %v8786_v44, %v8785_v42  ;;  %v8892_v32 = vpop.f32.mrb[41].mxu1  ;;  %v8788_v24 = vpop.f32.mrb[46].mxu0  ;;  %v5486_v44 = vld [vmem:[#allocation2 + $0x62] sm:$0xff] }
 0x4ff   : > { %v8893_v10 = vadd.f32 %v8892_v32, %v8891_v33  ;;  %v8894_v11 = vpop.f32.mrb[42].mxu1  ;;  %v8789_v41 = vpop.f32.mrb[47].mxu0  ;;  %v5516_v53 = vpack.c.bf16 %v5487_v38, %v5486_v44  ;;  %v5493_v44 = vld [vmem:[#allocation2 + $0xb2] sm:$0xff] }
 0x500   : > { %v8790_v30 = vadd.f32 %v8789_v41, %v8788_v24  ;;  %v8895_v48 = vpop.f32.mrb[43].mxu1  ;;  %v6332_v50 = vadd.f32 %v8787_v54, %v11660_v36  ;;  %v9718_v24 = vld [vmem:[#allocation2] sm:$0xff] }
 0x501   : > { %v11687_v8 = vadd.f32 %v8893_v10, %v6324_v22  ;;  %v8896_v20 = vadd.f32 %v8895_v48, %v8894_v11  ;;  %6740 = vmatmul.mubr.bf16.gmra.mrb[152].mxu0 %v5463_v52  ;;  %v5485_v52 = vld [vmem:[#allocation2 + $0x52] sm:$0xff]  ;;  %v5401_v25 = vpack.c.bf16 %v9718_v24, %v9718_v24 }
 0x502   : > { %6893 = vmatmul.mubr.bf16.gmra.mrb[148].mxu1 %v11617_v46  ;;  %6747 = vmatprep.mubr.bf16.mxu0 %v11684_v15  ;;  %v6335_v12 = vadd.f32 %v8790_v30, %v11660_v36  ;;  %v5515_v41 = vpack.c.bf16 %v5485_v52, %v5484_v56 }
 0x503   : > { %v11694_v1 = vadd.f32 %v8896_v20, %v6327_v61  ;;  %6900 = vmatprep.mubr.bf16.mxu1 %v5464_v34 }
 0x504   : > { %v8791_v62 = vpop.f32.mrb[48].mxu0 }
 0x505   : > { %v8897_v0 = vpop.f32.mrb[44].mxu1  ;;  %v8792_v13 = vpop.f32.mrb[49].mxu0 }
 0x506   : > { %v8793_v16 = vadd.f32 %v8792_v13, %v8791_v62  ;;  %v8898_v46 = vpop.f32.mrb[45].mxu1  ;;  %v8794_v14 = vpop.f32.mrb[50].mxu0 }
 0x507   : > { %v8899_v37 = vadd.f32 %v8898_v46, %v8897_v0  ;;  %v8900_v31 = vpop.f32.mrb[46].mxu1  ;;  %v8795_v7 = vpop.f32.mrb[51].mxu0  ;;  %v5489_v0 = vld [vmem:[#allocation2 + $0x82] sm:$0xff] }
 0x508   : > { %v8796_v63 = vadd.f32 %v8795_v7, %v8794_v14  ;;  %v8901_v9 = vpop.f32.mrb[47].mxu1  ;;  %v6340_v22 = vadd.f32 %v8793_v16, %v11660_v36  ;;  %v5491_v16 = vld [vmem:[#allocation2 + $0x9a] sm:$0xff] }
 0x509   : > { %v11698_v55 = vadd.f32 %v8899_v37, %v6332_v50  ;;  %v8902_v19 = vadd.f32 %v8901_v9, %v8900_v31  ;;  %6748 = vmatmul.mubr.bf16.gmra.mrb[156].mxu0 %v5464_v34 }
 0x50a   : > { %6901 = vmatmul.mubr.bf16.gmra.mrb[152].mxu1 %v11625_v3  ;;  %9359 = vmatprep.mubr.bf16.mxu0 %v5514_v51  ;;  %v6343_v61 = vadd.f32 %v8796_v63, %v11660_v36  ;;  %v5517_v63 = vpack.c.bf16 %v5489_v0, %v5488_v23  ;;  %v9711_v23 = vld [vmem:[%s12013_s7 + $0x18] sm:$0xff]  }
 0x50b   : > { %v11701_v47 = vadd.f32 %v8902_v19, %v6335_v12  ;;  %6908 = vmatprep.mubr.bf16.mxu1 %v5465_v26  ;;  %v5518_v12 = vpack.c.bf16 %v5491_v16, %v5490_v57  ;;  %v5497_v57 = vld [vmem:[#allocation2 + $0xe2] sm:$0xff]  ;;  %9397 = vmatprep.subr.bf16.mxu1 %v9711_v23 }
 0x50c   : > { %v8797_v29 = vpop.f32.mrb[52].mxu0  ;;  %9398 = vmatpush3.bf16.msra.mxu1 %v9711_v23 }
 0x50d   : > { %v8903_v42 = vpop.f32.mrb[48].mxu1  ;;  %v8798_v33 = vpop.f32.mrb[53].mxu0 }
 0x50e   : > { %v8799_v49 = vadd.f32 %v8798_v33, %v8797_v29  ;;  %v8904_v54 = vpop.f32.mrb[49].mxu1  ;;  %v8800_v32 = vpop.f32.mrb[54].mxu0  ;;  %v5492_v33 = vld [vmem:[#allocation2 + $0xaa] sm:$0xff] }
 0x50f   : > { %v8905_v10 = vadd.f32 %v8904_v54, %v8903_v42  ;;  %v8906_v3 = vpop.f32.mrb[50].mxu1  ;;  %v8801_v11 = vpop.f32.mrb[55].mxu0  ;;  %v5494_v54 = vld [vmem:[#allocation2 + $0xc2] sm:$0xff] }
 0x510   : > { %v8802_v30 = vadd.f32 %v8801_v11, %v8800_v32  ;;  %v8907_v48 = vpop.f32.mrb[51].mxu1  ;;  %v6348_v37 = vadd.f32 %v8799_v49, %v11660_v36  ;;  %v5495_v32 = vld [vmem:[#allocation2 + $0xca] sm:$0xff] }
 0x511   : > { %v11705_v20 = vadd.f32 %v8905_v10, %v6340_v22  ;;  %v8908_v34 = vadd.f32 %v8907_v48, %v8906_v3  ;;  %9360 = vmatmul.mubr.bf16.vlgmr.msra.gmra.mrb[160].mxu0 %v5515_v41 }
 0x512   : > { %6909 = vmatmul.mubr.bf16.gmra.mrb[156].mxu1 %v5401_v25  ;;  %9363 = vmatprep.mubr.bf16.mxu0 %v5516_v53  ;;  %v6351_v19 = vadd.f32 %v8802_v30, %v11660_v36  ;;  %v5519_v30 = vpack.c.bf16 %v5493_v44, %v5492_v33 }
 0x513   : > { %v11710_v62 = vadd.f32 %v8908_v34, %v6343_v61  ;;  %v5520_v61 = vpack.c.bf16 %v5495_v32, %v5494_v54  ;;  %v5500_v32 = vld [vmem:[#allocation2 + $0x10a] sm:$0xff] }
 0x514   : > { %v8803_v27 = vpop.f32.mrb[56].mxu0 }
 0x515   : > { %v8909_v13 = vpop.f32.mrb[52].mxu1  ;;  %v8804_v39 = vpop.f32.mrb[57].mxu0 }
 0x516   : > { %v8805_v46 = vadd.f32 %v8804_v39, %v8803_v27  ;;  %v8910_v14 = vpop.f32.mrb[53].mxu1  ;;  %v8806_v50 = vpop.f32.mrb[58].mxu0  ;;  %v5496_v39 = vld [vmem:[#allocation2 + $0xda] sm:$0xff] }
 0x517   : > { %v8911_v31 = vadd.f32 %v8910_v14, %v8909_v13  ;;  %v8912_v7 = vpop.f32.mrb[54].mxu1  ;;  %v8807_v26 = vpop.f32.mrb[59].mxu0  ;;  %v5498_v14 = vld [vmem:[#allocation2 + $0xf2] sm:$0xff] }
 0x518   : > { %v8808_v9 = vadd.f32 %v8807_v26, %v8806_v50  ;;  %v8913_v51 = vpop.f32.mrb[55].mxu1  ;;  %v6356_v10 = vadd.f32 %v8805_v46, %v11660_v36  ;;  %v5499_v50 = vld [vmem:[#allocation2 + $0xfa] sm:$0xff] }
 0x519   : > { %v11714_v29 = vadd.f32 %v8911_v31, %v6348_v37  ;;  %v8914_v56 = vadd.f32 %v8913_v51, %v8912_v7  ;;  %9364 = vmatmul.mubr.bf16.gmra.mrb[164].mxu0 %v5517_v63 }
 0x51a   : > { %9367 = vmatprep.mubr.bf16.mxu0 %v5518_v12  ;;  %v6359_v34 = vadd.f32 %v8808_v9, %v11660_v36  ;;  %v5521_v12 = vpack.c.bf16 %v5497_v57, %v5496_v39 }
 0x51b   : > { %v11716_v52 = vadd.f32 %v8914_v56, %v6351_v19 }
 0x51c   : > { %v8809_v42 = vpop.f32.mrb[60].mxu0 }
 0x51d   : > { %v8915_v38 = vpop.f32.mrb[56].mxu1  ;;  %v8810_v49 = vpop.f32.mrb[61].mxu0 }
 0x51e   : > { %v8811_v24 = vadd.f32 %v8810_v49, %v8809_v42  ;;  %v8916_v25 = vpop.f32.mrb[57].mxu1  ;;  %v8812_v22 = vpop.f32.mrb[62].mxu0  ;;  %v5522_v42 = vpack.c.bf16 %v5499_v50, %v5498_v14  ;;  %v9712_v14 = vld [vmem:[%s12013_s7 + $0x20] sm:$0xff]  }
 0x51f   : > { %v8917_v3 = vadd.f32 %v8916_v25, %v8915_v38  ;;  %v8918_v11 = vpop.f32.mrb[58].mxu1  ;;  %v8813_v41 = vpop.f32.mrb[63].mxu0  ;;  %v5501_v25 = vld [vmem:[#allocation2 + $0x112] sm:$0xff]  ;;  %9399 = vmatprep.subr.bf16.mxu1 %v9712_v14 }
 0x520   : > { %v8814_v48 = vadd.f32 %v8813_v41, %v8812_v22  ;;  %v8919_v53 = vpop.f32.mrb[59].mxu1  ;;  %v6364_v26 = vadd.f32 %v8811_v24, %v11660_v36  ;;  %9400 = vmatpush3.bf16.msra.mxu1 %v9712_v14 }
 0x521   : > { %v11720_v17 = vadd.f32 %v8917_v3, %v6356_v10  ;;  %v8920_v27 = vadd.f32 %v8919_v53, %v8918_v11  ;;  %9368 = vmatmul.mubr.bf16.gmra.mrb[168].mxu0 %v5519_v30  ;;  %v5502_v10 = vld [vmem:[#allocation2 + $0x122] sm:$0xff]  ;;  %v5503_v3 = vld [vmem:[#allocation2 + $0x12a] sm:$0xff] }
 0x522   : > { %9371 = vmatprep.mubr.bf16.mxu0 %v5520_v61  ;;  %v6367_v33 = vadd.f32 %v8814_v48, %v11660_v36  ;;  %v5524_v39 = vpack.c.bf16 %v5503_v3, %v5502_v10 }
 0x523   : > { %v11725_v0 = vadd.f32 %v8920_v27, %v6359_v34  ;;  %v5523_v27 = vpack.c.bf16 %v5501_v25, %v5500_v32 }
 0x524   : > { %v8815_v13 = vpop.f32.mrb[64].mxu0 }
 0x525   : > { %v8921_v16 = vpop.f32.mrb[60].mxu1  ;;  %v8816_v46 = vpop.f32.mrb[65].mxu0 }
 0x526   : > { %v8817_v37 = vadd.f32 %v8816_v46, %v8815_v13  ;;  %v8922_v31 = vpop.f32.mrb[61].mxu1  ;;  %v8818_v7 = vpop.f32.mrb[66].mxu0 }
 0x527   : > { %v8923_v63 = vadd.f32 %v8922_v31, %v8921_v16  ;;  %v8924_v9 = vpop.f32.mrb[62].mxu1  ;;  %v8819_v51 = vpop.f32.mrb[67].mxu0  ;;  %v5504_v31 = vld [vmem:[#allocation2 + $0x13a] sm:$0xff] }
 0x528   : > { %v8820_v19 = vadd.f32 %v8819_v51, %v8818_v7  ;;  %v8925_v56 = vpop.f32.mrb[63].mxu1  ;;  %v6372_v53 = vadd.f32 %v8817_v37, %v11660_v36  ;;  %v5505_v7 = vld [vmem:[#allocation2 + $0x142] sm:$0xff]  ;;  %v5507_v51 = vld [vmem:[#allocation2 + $0x15a] sm:$0xff] }
 0x529   : > { %v11729_v44 = vadd.f32 %v8923_v63, %v6364_v26  ;;  %v8926_v38 = vadd.f32 %v8925_v56, %v8924_v9  ;;  %9372 = vmatmul.mubr.bf16.gmra.mrb[172].mxu0 %v5521_v12  ;;  %v5506_v9 = vld [vmem:[#allocation2 + $0x152] sm:$0xff]  ;;  %v5525_v32 = vpack.c.bf16 %v5505_v7, %v5504_v31 }
 0x52a   : > { %9375 = vmatprep.mubr.bf16.mxu0 %v5522_v42  ;;  %v6375_v57 = vadd.f32 %v8820_v19, %v11660_v36 }
 0x52b   : > { %v11731_v49 = vadd.f32 %v8926_v38, %v6367_v33 }
 0x52c   : > { %v8821_v54 = vpop.f32.mrb[68].mxu0 }
 0x52d   : > { %v8927_v24 = vpop.f32.mrb[64].mxu1  ;;  %v8822_v22 = vpop.f32.mrb[69].mxu0 }
 0x52e   : > { %v8823_v11 = vadd.f32 %v8822_v22, %v8821_v54  ;;  %v8928_v41 = vpop.f32.mrb[65].mxu1  ;;  %v8824_v30 = vpop.f32.mrb[70].mxu0  ;;  %v5526_v22 = vpack.c.bf16 %v5507_v51, %v5506_v9  ;;  %v5512_v51 = vld [vmem:[#allocation2 + $0x19a] sm:$0xff] }
 0x52f   : > { %v8929_v48 = vadd.f32 %v8928_v41, %v8927_v24  ;;  %v8930_v61 = vpop.f32.mrb[66].mxu1  ;;  %v8825_v34 = vpop.f32.mrb[71].mxu0 }
 0x530   : > { %v8826_v23 = vadd.f32 %v8825_v34, %v8824_v30  ;;  %v8931_v13 = vpop.f32.mrb[67].mxu1  ;;  %v6380_v42 = vadd.f32 %v8823_v11, %v11660_v36 }
 0x531   : > { %v11735_v16 = vadd.f32 %v8929_v48, %v6372_v53  ;;  %v8932_v46 = vadd.f32 %v8931_v13, %v8930_v61  ;;  %9376 = vmatmul.mubr.bf16.gmra.mrb[176].mxu0 %v5523_v27  ;;  %v5508_v48 = vld [vmem:[#allocation2 + $0x16a] sm:$0xff]  ;;  %v5509_v61 = vld [vmem:[#allocation2 + $0x172] sm:$0xff] }
 0x532   : > { %9379 = vmatprep.mubr.bf16.mxu0 %v5524_v39  ;;  %v6383_v10 = vadd.f32 %v8826_v23, %v11660_v36 }
 0x533   : > { %v11740_v50 = vadd.f32 %v8932_v46, %v6375_v57 }
 0x534   : > { %v8827_v37 = vpop.f32.mrb[72].mxu0 }
 0x535   : > { %v8933_v26 = vpop.f32.mrb[68].mxu1  ;;  %v8828_v63 = vpop.f32.mrb[73].mxu0 }
 0x536   : > { %v8829_v12 = vadd.f32 %v8828_v63, %v8827_v37  ;;  %v8934_v19 = vpop.f32.mrb[69].mxu1  ;;  %v8830_v56 = vpop.f32.mrb[74].mxu0  ;;  %v5527_v37 = vpack.c.bf16 %v5509_v61, %v5508_v48 }
 0x537   : > { %v8935_v33 = vadd.f32 %v8934_v19, %v8933_v26  ;;  %v8936_v38 = vpop.f32.mrb[70].mxu1  ;;  %v8831_v54 = vpop.f32.mrb[75].mxu0  ;;  %v5513_v19 = vld [vmem:[#allocation2 + $0x1a2] sm:$0xff] }
 0x538   : > { %v8832_v25 = vadd.f32 %v8831_v54, %v8830_v56  ;;  %v8937_v24 = vpop.f32.mrb[71].mxu1  ;;  %v6388_v57 = vadd.f32 %v8829_v12, %v11660_v36  ;;  %v9713_v12 = vld [vmem:[%s12013_s7 + $0x28] sm:$0xff]   ;;  %v5529_v54 = vpack.c.bf16 %v5513_v19, %v5512_v51 }
 0x539   : > { %v11744_v3 = vadd.f32 %v8935_v33, %v6380_v42  ;;  %v8938_v41 = vadd.f32 %v8937_v24, %v8936_v38  ;;  %9380 = vmatmul.mubr.bf16.gmra.mrb[180].mxu0 %v5525_v32  ;;  %9401 = vmatprep.subr.bf16.mxu1 %v9713_v12 }
 0x53a   : > { %9383 = vmatprep.mubr.bf16.mxu0 %v5526_v22  ;;  %v6391_v26 = vadd.f32 %v8832_v25, %v11660_v36  ;;  %9402 = vmatpush3.bf16.msra.mxu1 %v9713_v12 }
 0x53b   : > { %v11746_v30 = vadd.f32 %v8938_v41, %v6383_v10 }
 0x53c   : > { %v8833_v53 = vpop.f32.mrb[76].mxu0 }
 0x53d   : > { %v8939_v11 = vpop.f32.mrb[72].mxu1  ;;  %v8834_v34 = vpop.f32.mrb[77].mxu0 }
 0x53e   : > { %v8835_v27 = vadd.f32 %v8834_v34, %v8833_v53  ;;  %v8940_v13 = vpop.f32.mrb[73].mxu1  ;;  %v8836_v39 = vpop.f32.mrb[78].mxu0 }
 0x53f   : > { %v8941_v46 = vadd.f32 %v8940_v13, %v8939_v11  ;;  %v8942_v14 = vpop.f32.mrb[74].mxu1  ;;  %v8837_v23 = vpop.f32.mrb[79].mxu0 }
 0x540   : > { %v8838_v31 = vadd.f32 %v8837_v23, %v8836_v39  ;;  %v8943_v7 = vpop.f32.mrb[75].mxu1  ;;  %v6396_v22 = vadd.f32 %v8835_v27, %v11660_v36 }
 0x541   : > { %v11750_v63 = vadd.f32 %v8941_v46, %v6388_v57  ;;  %v8944_v9 = vadd.f32 %v8943_v7, %v8942_v14  ;;  %9384 = vmatmul.mubr.bf16.gmra.mrb[184].mxu0 %v5527_v37 }
 0x542   : > { %9387 = vmatprep.mubr.bf16.mxu0 %v11684_v15  ;;  %v6399_v61 = vadd.f32 %v8838_v31, %v11660_v36 }
 0x543   : > { %v11756_v56 = vadd.f32 %v8944_v9, %v6391_v26 }
 0x544   : > { %v8839_v42 = vpop.f32.mrb[80].mxu0 }
 0x545   : > { %v8945_v33 = vpop.f32.mrb[76].mxu1  ;;  %v8840_v38 = vpop.f32.mrb[81].mxu0 }
 0x546   : > { %v8841_v32 = vadd.f32 %v8840_v38, %v8839_v42  ;;  %v8946_v25 = vpop.f32.mrb[77].mxu1  ;;  %v8842_v24 = vpop.f32.mrb[82].mxu0 }
 0x547   : > { %v8947_v15 = vadd.f32 %v8946_v25, %v8945_v33  ;;  %v8948_v10 = vpop.f32.mrb[78].mxu1  ;;  %v8843_v41 = vpop.f32.mrb[83].mxu0  ;;  %v9714_v33 = vld [vmem:[%s12013_s7 + $0x30] sm:$0xff]  }
 0x548   : > { %v8844_v53 = vadd.f32 %v8843_v41, %v8842_v24  ;;  %v8949_v48 = vpop.f32.mrb[79].mxu1  ;;  %v6404_v27 = vadd.f32 %v8841_v32, %v11660_v36  ;;  %9403 = vmatprep.subr.bf16.mxu1 %v9714_v33 }
 0x549   : > { %v11760_v11 = vadd.f32 %v8947_v15, %v6396_v22  ;;  %v8950_v34 = vadd.f32 %v8949_v48, %v8948_v10  ;;  %9388 = vmatmul.mubr.bf16.gmra.mrb[188].mxu0 %v5529_v54  ;;  %9404 = vmatpush3.bf16.msra.mxu1 %v9714_v33 }
 0x54a   : > { %v6407_v31 = vadd.f32 %v8844_v53, %v11660_v36 }
 0x54b   : > { %v11762_v13 = vadd.f32 %v8950_v34, %v6399_v61 }
 0x54c   : > { %v8845_v39 = vpop.f32.mrb[84].mxu0 }
 0x54d   : > { %v8951_v57 = vpop.f32.mrb[80].mxu1  ;;  %v8846_v46 = vpop.f32.mrb[85].mxu0 }
 0x54e   : > { %v8847_v14 = vadd.f32 %v8846_v46, %v8845_v39  ;;  %v8952_v23 = vpop.f32.mrb[81].mxu1  ;;  %v8848_v37 = vpop.f32.mrb[86].mxu0 }
 0x54f   : > { %v8953_v7 = vadd.f32 %v8952_v23, %v8951_v57  ;;  %v8954_v26 = vpop.f32.mrb[82].mxu1  ;;  %v8849_v9 = vpop.f32.mrb[87].mxu0 }
 0x550   : > { %v8850_v51 = vadd.f32 %v8849_v9, %v8848_v37  ;;  %v8955_v19 = vpop.f32.mrb[83].mxu1  ;;  %v6412_v10 = vadd.f32 %v8847_v14, %v11660_v36 }
 0x551   : > { %v11766_v12 = vadd.f32 %v8953_v7, %v6404_v27  ;;  %v8956_v42 = vadd.f32 %v8955_v19, %v8954_v26 }
 0x552   : > { %v6415_v39 = vadd.f32 %v8850_v51, %v11660_v36 }
 0x553   : > { %v11771_v38 = vadd.f32 %v8956_v42, %v6407_v31 }
 0x554   : > { %v8851_v54 = vpop.f32.mrb[88].mxu0 }
 0x555   : > { %v8957_v25 = vpop.f32.mrb[84].mxu1  ;;  %v8852_v32 = vpop.f32.mrb[89].mxu0 }
 0x556   : > { %v8853_v24 = vadd.f32 %v8852_v32, %v8851_v54  ;;  %v8958_v22 = vpop.f32.mrb[85].mxu1  ;;  %v8854_v15 = vpop.f32.mrb[90].mxu0 }
 0x557   : > { %v8959_v41 = vadd.f32 %v8958_v22, %v8957_v25  ;;  %v8960_v53 = vpop.f32.mrb[86].mxu1  ;;  %v8855_v48 = vpop.f32.mrb[91].mxu0 }
 0x558   : > { %v8856_v61 = vadd.f32 %v8855_v48, %v8854_v15  ;;  %v8961_v34 = vpop.f32.mrb[87].mxu1  ;;  %v6420_v14 = vadd.f32 %v8853_v24, %v11660_v36  ;;  %v9715_v15 = vld [vmem:[%s12013_s7 + $0x38] sm:$0xff]  }
 0x559   : > { %v11775_v57 = vadd.f32 %v8959_v41, %v6412_v10  ;;  %v8962_v46 = vadd.f32 %v8961_v34, %v8960_v53  ;;  %9405 = vmatprep.subr.bf16.mxu1 %v9715_v15 }
 0x55a   : > { %v6423_v51 = vadd.f32 %v8856_v61, %v11660_v36  ;;  %9406 = vmatpush3.bf16.msra.mxu1 %v9715_v15 }
 0x55b   : > { %v11777_v23 = vadd.f32 %v8962_v46, %v6415_v39 }
 0x55c   : > { %v8857_v37 = vpop.f32.mrb[92].mxu0 }
 0x55d   : > { %v8963_v27 = vpop.f32.mrb[88].mxu1  ;;  %v8858_v7 = vpop.f32.mrb[93].mxu0 }
 0x55e   : > { %v8859_v26 = vadd.f32 %v8858_v7, %v8857_v37  ;;  %v8964_v9 = vpop.f32.mrb[89].mxu1  ;;  %v8860_v19 = vpop.f32.mrb[94].mxu0 }
 0x55f   : > { %v8965_v31 = vadd.f32 %v8964_v9, %v8963_v27  ;;  %v8966_v42 = vpop.f32.mrb[90].mxu1  ;;  %v8861_v33 = vpop.f32.mrb[95].mxu0 }
 0x560   : > { %v8862_v54 = vadd.f32 %v8861_v33, %v8860_v19  ;;  %v8967_v25 = vpop.f32.mrb[91].mxu1  ;;  %v6428_v46 = vadd.f32 %v8859_v26, %v11660_v36 }
 0x561   : > { %v11781_v32 = vadd.f32 %v8965_v31, %v6420_v14  ;;  %v8968_v22 = vadd.f32 %v8967_v25, %v8966_v42 }
 0x562   : > { %v6431_v14 = vadd.f32 %v8862_v54, %v11660_v36 }
 0x563   : > { %v11786_v10 = vadd.f32 %v8968_v22, %v6423_v51 }
 0x564   : > { %v8991_v41 = vpop.f32.mrb[96].mxu0 }
 0x565   : > { %v8969_v53 = vpop.f32.mrb[92].mxu1  ;;  %v8992_v24 = vpop.f32.mrb[97].mxu0 }
 0x566   : > { %v8970_v48 = vpop.f32.mrb[93].mxu1  ;;  %v8993_v34 = vadd.f32 %v8992_v24, %v8991_v41  ;;  %v8994_v39 = vpop.f32.mrb[98].mxu0 }
 0x567   : > { %v8971_v61 = vadd.f32 %v8970_v48, %v8969_v53  ;;  %v8972_v37 = vpop.f32.mrb[94].mxu1  ;;  %v8995_v27 = vpop.f32.mrb[99].mxu0 }
 0x568   : > { %v6630_v7 = vadd.f32 %v8993_v34, %v11666_v21  ;;  %v8973_v9 = vpop.f32.mrb[95].mxu1  ;;  %v8996_v19 = vadd.f32 %v8995_v27, %v8994_v39 }
 0x569   : > { %v11791_v31 = vadd.f32 %v8971_v61, %v6428_v46  ;;  %v8974_v42 = vadd.f32 %v8973_v9, %v8972_v37 }
 0x56a   : > { %v6633_v33 = vadd.f32 %v8996_v19, %v11673_v45 }
 0x56b   : > { %v11794_v25 = vadd.f32 %v8974_v42, %v6431_v14 }
 0x56c   : > { %v8997_v51 = vpop.f32.mrb[100].mxu0 }
 0x56d   : > { %v9103_v22 = vpop.f32.mrb[96].mxu1  ;;  %v8998_v15 = vpop.f32.mrb[101].mxu0 }
 0x56e   : > { %v8999_v26 = vadd.f32 %v8998_v15, %v8997_v51  ;;  %v9104_v41 = vpop.f32.mrb[97].mxu1  ;;  %v9000_v53 = vpop.f32.mrb[102].mxu0 }
 0x56f   : > { %v9105_v24 = vadd.f32 %v9104_v41, %v9103_v22  ;;  %v9106_v48 = vpop.f32.mrb[98].mxu1  ;;  %v9001_v21 = vpop.f32.mrb[103].mxu0 }
 0x570   : > { %v6638_v34 = vadd.f32 %v8999_v26, %v11677_v18  ;;  %v9002_v39 = vadd.f32 %v9001_v21, %v9000_v53  ;;  %v9107_v36 = vpop.f32.mrb[99].mxu1 }
 0x571   : > { %v9108_v54 = vadd.f32 %v9107_v36, %v9106_v48  ;;  %v11797_v46 = vadd.f32 %v9105_v24, %v6630_v7 }
 0x572   : > { %v6641_v45 = vadd.f32 %v9002_v39, %v11681_v5 }
 0x573   : > { %v11800_v61 = vadd.f32 %v9108_v54, %v6633_v33 }
 0x574   : > { %v9003_v37 = vpop.f32.mrb[104].mxu0 }
 0x575   : > { %v9109_v27 = vpop.f32.mrb[100].mxu1  ;;  %v9004_v9 = vpop.f32.mrb[105].mxu0 }
 0x576   : > { %v9005_v19 = vadd.f32 %v9004_v9, %v9003_v37  ;;  %v9110_v14 = vpop.f32.mrb[101].mxu1  ;;  %v9006_v42 = vpop.f32.mrb[106].mxu0 }
 0x577   : > { %v9111_v51 = vadd.f32 %v9110_v14, %v9109_v27  ;;  %v9112_v22 = vpop.f32.mrb[102].mxu1  ;;  %v9007_v15 = vpop.f32.mrb[107].mxu0 }
 0x578   : > { %v6646_v18 = vadd.f32 %v9005_v19, %v11687_v8  ;;  %v9008_v26 = vadd.f32 %v9007_v15, %v9006_v42  ;;  %v9113_v41 = vpop.f32.mrb[103].mxu1 }
 0x579   : > { %v9114_v53 = vadd.f32 %v9113_v41, %v9112_v22  ;;  %v11803_v7 = vadd.f32 %v9111_v51, %v6638_v34 }
 0x57a   : > { %v6649_v5 = vadd.f32 %v9008_v26, %v11694_v1 }
 0x57b   : > { %v11806_v33 = vadd.f32 %v9114_v53, %v6641_v45 }
 0x57c   : > { %v9009_v24 = vpop.f32.mrb[108].mxu0 }
 0x57d   : > { %v9115_v48 = vpop.f32.mrb[104].mxu1  ;;  %v9010_v21 = vpop.f32.mrb[109].mxu0 }
 0x57e   : > { %v9011_v39 = vadd.f32 %v9010_v21, %v9009_v24  ;;  %v9116_v36 = vpop.f32.mrb[105].mxu1  ;;  %v9012_v54 = vpop.f32.mrb[110].mxu0 }
 0x57f   : > { %v9117_v37 = vadd.f32 %v9116_v36, %v9115_v48  ;;  %v9118_v27 = vpop.f32.mrb[106].mxu1  ;;  %v9013_v9 = vpop.f32.mrb[111].mxu0 }
 0x580   : > { %v6654_v8 = vadd.f32 %v9011_v39, %v11698_v55  ;;  %v9014_v19 = vadd.f32 %v9013_v9, %v9012_v54  ;;  %v9119_v14 = vpop.f32.mrb[107].mxu1 }
 0x581   : > { %v9120_v42 = vadd.f32 %v9119_v14, %v9118_v27  ;;  %v11809_v34 = vadd.f32 %v9117_v37, %v6646_v18 }
 0x582   : > { %v6657_v1 = vadd.f32 %v9014_v19, %v11701_v47 }
 0x583   : > { %v11812_v45 = vadd.f32 %v9120_v42, %v6649_v5 }
 0x584   : > { %v9015_v51 = vpop.f32.mrb[112].mxu0 }
 0x585   : > { %v9121_v22 = vpop.f32.mrb[108].mxu1  ;;  %v9016_v15 = vpop.f32.mrb[113].mxu0 }
 0x586   : > { %v9017_v26 = vadd.f32 %v9016_v15, %v9015_v51  ;;  %v9122_v41 = vpop.f32.mrb[109].mxu1  ;;  %v9018_v53 = vpop.f32.mrb[114].mxu0 }
 0x587   : > { %v9123_v24 = vadd.f32 %v9122_v41, %v9121_v22  ;;  %v9124_v48 = vpop.f32.mrb[110].mxu1  ;;  %v9019_v21 = vpop.f32.mrb[115].mxu0 }
 0x588   : > { %v6662_v55 = vadd.f32 %v9017_v26, %v11705_v20  ;;  %v9020_v39 = vadd.f32 %v9019_v21, %v9018_v53  ;;  %v9125_v36 = vpop.f32.mrb[111].mxu1 }
 0x589   : > { %v9126_v54 = vadd.f32 %v9125_v36, %v9124_v48  ;;  %v11815_v18 = vadd.f32 %v9123_v24, %v6654_v8 }
 0x58a   : > { %v6665_v47 = vadd.f32 %v9020_v39, %v11710_v62 }
 0x58b   : > { %v11818_v5 = vadd.f32 %v9126_v54, %v6657_v1 }
 0x58c   : > { %v9021_v37 = vpop.f32.mrb[116].mxu0 }
 0x58d   : > { %v9127_v27 = vpop.f32.mrb[112].mxu1  ;;  %v9022_v9 = vpop.f32.mrb[117].mxu0 }
 0x58e   : > { %v9023_v19 = vadd.f32 %v9022_v9, %v9021_v37  ;;  %v9128_v14 = vpop.f32.mrb[113].mxu1  ;;  %v9024_v42 = vpop.f32.mrb[118].mxu0 }
 0x58f   : > { %v9129_v51 = vadd.f32 %v9128_v14, %v9127_v27  ;;  %v9130_v22 = vpop.f32.mrb[114].mxu1  ;;  %v9025_v15 = vpop.f32.mrb[119].mxu0 }
 0x590   : > { %v6670_v20 = vadd.f32 %v9023_v19, %v11714_v29  ;;  %v9026_v26 = vadd.f32 %v9025_v15, %v9024_v42  ;;  %v9131_v41 = vpop.f32.mrb[115].mxu1 }
 0x591   : > { %v9132_v53 = vadd.f32 %v9131_v41, %v9130_v22  ;;  %v11821_v8 = vadd.f32 %v9129_v51, %v6662_v55 }
 0x592   : > { %v6673_v62 = vadd.f32 %v9026_v26, %v11716_v52 }
 0x593   : > { %v11824_v1 = vadd.f32 %v9132_v53, %v6665_v47 }
 0x594   : > { %v9027_v24 = vpop.f32.mrb[120].mxu0 }
 0x595   : > { %v9133_v48 = vpop.f32.mrb[116].mxu1  ;;  %v9028_v21 = vpop.f32.mrb[121].mxu0 }
 0x596   : > { %v9029_v39 = vadd.f32 %v9028_v21, %v9027_v24  ;;  %v9134_v36 = vpop.f32.mrb[117].mxu1  ;;  %v9030_v54 = vpop.f32.mrb[122].mxu0 }
 0x597   : > { %v9135_v37 = vadd.f32 %v9134_v36, %v9133_v48  ;;  %v9136_v27 = vpop.f32.mrb[118].mxu1  ;;  %v9031_v9 = vpop.f32.mrb[123].mxu0 }
 0x598   : > { %v6678_v29 = vadd.f32 %v9029_v39, %v11720_v17  ;;  %v9032_v19 = vadd.f32 %v9031_v9, %v9030_v54  ;;  %v9137_v14 = vpop.f32.mrb[119].mxu1 }
 0x599   : > { %v9138_v42 = vadd.f32 %v9137_v14, %v9136_v27  ;;  %v11827_v55 = vadd.f32 %v9135_v37, %v6670_v20 }
 0x59a   : > { %v6681_v52 = vadd.f32 %v9032_v19, %v11725_v0 }
 0x59b   : > { %v11830_v47 = vadd.f32 %v9138_v42, %v6673_v62 }
 0x59c   : > { %v9033_v51 = vpop.f32.mrb[124].mxu0 }
 0x59d   : > { %v9139_v22 = vpop.f32.mrb[120].mxu1  ;;  %v9034_v15 = vpop.f32.mrb[125].mxu0 }
 0x59e   : > { %v9035_v26 = vadd.f32 %v9034_v15, %v9033_v51  ;;  %v9140_v41 = vpop.f32.mrb[121].mxu1  ;;  %v9036_v53 = vpop.f32.mrb[126].mxu0 }
 0x59f   : > { %v9141_v24 = vadd.f32 %v9140_v41, %v9139_v22  ;;  %v9142_v48 = vpop.f32.mrb[122].mxu1  ;;  %v9037_v21 = vpop.f32.mrb[127].mxu0 }
 0x5a0   : > { %v6686_v17 = vadd.f32 %v9035_v26, %v11729_v44  ;;  %v9038_v39 = vadd.f32 %v9037_v21, %v9036_v53  ;;  %v9143_v36 = vpop.f32.mrb[123].mxu1 }
 0x5a1   : > { %v9144_v54 = vadd.f32 %v9143_v36, %v9142_v48  ;;  %v11833_v20 = vadd.f32 %v9141_v24, %v6678_v29 }
 0x5a2   : > { %v6689_v0 = vadd.f32 %v9038_v39, %v11731_v49 }
 0x5a3   : > { %v11836_v62 = vadd.f32 %v9144_v54, %v6681_v52 }
 0x5a4   : > { %v9039_v37 = vpop.f32.mrb[128].mxu0 }
 0x5a5   : > { %v9145_v27 = vpop.f32.mrb[124].mxu1  ;;  %v9040_v9 = vpop.f32.mrb[129].mxu0 }
 0x5a6   : > { %v9041_v19 = vadd.f32 %v9040_v9, %v9039_v37  ;;  %v9146_v14 = vpop.f32.mrb[125].mxu1  ;;  %v9042_v42 = vpop.f32.mrb[130].mxu0 }
 0x5a7   : > { %v9147_v51 = vadd.f32 %v9146_v14, %v9145_v27  ;;  %v9148_v22 = vpop.f32.mrb[126].mxu1  ;;  %v9043_v15 = vpop.f32.mrb[131].mxu0 }
 0x5a8   : > { %v6694_v44 = vadd.f32 %v9041_v19, %v11735_v16  ;;  %v9044_v26 = vadd.f32 %v9043_v15, %v9042_v42  ;;  %v9149_v41 = vpop.f32.mrb[127].mxu1 }
 0x5a9   : > { %v9150_v53 = vadd.f32 %v9149_v41, %v9148_v22  ;;  %v11839_v29 = vadd.f32 %v9147_v51, %v6686_v17 }
 0x5aa   : > { %v6697_v49 = vadd.f32 %v9044_v26, %v11740_v50 }
 0x5ab   : > { %v11842_v52 = vadd.f32 %v9150_v53, %v6689_v0 }
 0x5ac   : > { %v9045_v24 = vpop.f32.mrb[132].mxu0 }
 0x5ad   : > { %v9151_v48 = vpop.f32.mrb[128].mxu1  ;;  %v9046_v21 = vpop.f32.mrb[133].mxu0 }
 0x5ae   : > { %v9047_v39 = vadd.f32 %v9046_v21, %v9045_v24  ;;  %v9152_v36 = vpop.f32.mrb[129].mxu1  ;;  %v9048_v54 = vpop.f32.mrb[134].mxu0 }
 0x5af   : > { %v9153_v37 = vadd.f32 %v9152_v36, %v9151_v48  ;;  %v9154_v27 = vpop.f32.mrb[130].mxu1  ;;  %v9049_v9 = vpop.f32.mrb[135].mxu0 }
 0x5b0   : > { %v6702_v16 = vadd.f32 %v9047_v39, %v11744_v3  ;;  %v9050_v19 = vadd.f32 %v9049_v9, %v9048_v54  ;;  %v9155_v14 = vpop.f32.mrb[131].mxu1 }
 0x5b1   : > { %v9156_v42 = vadd.f32 %v9155_v14, %v9154_v27  ;;  %v11845_v17 = vadd.f32 %v9153_v37, %v6694_v44 }
 0x5b2   : > { %v6705_v50 = vadd.f32 %v9050_v19, %v11746_v30 }
 0x5b3   : > { %v11848_v0 = vadd.f32 %v9156_v42, %v6697_v49 }
 0x5b4   : > { %v9051_v51 = vpop.f32.mrb[136].mxu0 }
 0x5b5   : > { %v9157_v22 = vpop.f32.mrb[132].mxu1  ;;  %v9052_v15 = vpop.f32.mrb[137].mxu0 }
 0x5b6   : > { %v9053_v26 = vadd.f32 %v9052_v15, %v9051_v51  ;;  %v9158_v41 = vpop.f32.mrb[133].mxu1  ;;  %v9054_v53 = vpop.f32.mrb[138].mxu0 }
 0x5b7   : > { %v9159_v24 = vadd.f32 %v9158_v41, %v9157_v22  ;;  %v9160_v48 = vpop.f32.mrb[134].mxu1  ;;  %v9055_v21 = vpop.f32.mrb[139].mxu0 }
 0x5b8   : > { %v6710_v3 = vadd.f32 %v9053_v26, %v11750_v63  ;;  %v9056_v39 = vadd.f32 %v9055_v21, %v9054_v53  ;;  %v9161_v36 = vpop.f32.mrb[135].mxu1 }
 0x5b9   : > { %v9162_v54 = vadd.f32 %v9161_v36, %v9160_v48  ;;  %v11851_v44 = vadd.f32 %v9159_v24, %v6702_v16 }
 0x5ba   : > { %v6713_v30 = vadd.f32 %v9056_v39, %v11756_v56 }
 0x5bb   : > { %v11854_v49 = vadd.f32 %v9162_v54, %v6705_v50 }
 0x5bc   : > { %v9057_v37 = vpop.f32.mrb[140].mxu0 }
 0x5bd   : > { %v9163_v27 = vpop.f32.mrb[136].mxu1  ;;  %v9058_v9 = vpop.f32.mrb[141].mxu0 }
 0x5be   : > { %v9059_v19 = vadd.f32 %v9058_v9, %v9057_v37  ;;  %v9164_v14 = vpop.f32.mrb[137].mxu1  ;;  %v9060_v42 = vpop.f32.mrb[142].mxu0 }
 0x5bf   : > { %v9165_v51 = vadd.f32 %v9164_v14, %v9163_v27  ;;  %v9166_v22 = vpop.f32.mrb[138].mxu1  ;;  %v9061_v15 = vpop.f32.mrb[143].mxu0 }
 0x5c0   : > { %v6718_v63 = vadd.f32 %v9059_v19, %v11760_v11  ;;  %v9062_v26 = vadd.f32 %v9061_v15, %v9060_v42  ;;  %v9167_v41 = vpop.f32.mrb[139].mxu1 }
 0x5c1   : > { %v9168_v53 = vadd.f32 %v9167_v41, %v9166_v22  ;;  %v11857_v16 = vadd.f32 %v9165_v51, %v6710_v3 }
 0x5c2   : > { %v6721_v56 = vadd.f32 %v9062_v26, %v11762_v13 }
 0x5c3   : > { %v11860_v50 = vadd.f32 %v9168_v53, %v6713_v30 }
 0x5c4   : > { %v9063_v24 = vpop.f32.mrb[144].mxu0 }
 0x5c5   : > { %v9169_v48 = vpop.f32.mrb[140].mxu1  ;;  %v9064_v21 = vpop.f32.mrb[145].mxu0 }
 0x5c6   : > { %v9065_v39 = vadd.f32 %v9064_v21, %v9063_v24  ;;  %v9170_v36 = vpop.f32.mrb[141].mxu1  ;;  %v9066_v54 = vpop.f32.mrb[146].mxu0 }
 0x5c7   : > { %v9171_v37 = vadd.f32 %v9170_v36, %v9169_v48  ;;  %v9172_v27 = vpop.f32.mrb[142].mxu1  ;;  %v9067_v9 = vpop.f32.mrb[147].mxu0 }
 0x5c8   : > { %v6726_v11 = vadd.f32 %v9065_v39, %v11766_v12  ;;  %v9068_v19 = vadd.f32 %v9067_v9, %v9066_v54  ;;  %v9173_v14 = vpop.f32.mrb[143].mxu1 }
 0x5c9   : > { %v9174_v42 = vadd.f32 %v9173_v14, %v9172_v27  ;;  %v11863_v3 = vadd.f32 %v9171_v37, %v6718_v63 }
 0x5ca   : > { %v6729_v13 = vadd.f32 %v9068_v19, %v11771_v38 }
 0x5cb   : > { %v11866_v30 = vadd.f32 %v9174_v42, %v6721_v56 }
 0x5cc   : > { %v9069_v51 = vpop.f32.mrb[148].mxu0 }
 0x5cd   : > { %v9175_v22 = vpop.f32.mrb[144].mxu1  ;;  %v9070_v15 = vpop.f32.mrb[149].mxu0 }
 0x5ce   : > { %v9071_v26 = vadd.f32 %v9070_v15, %v9069_v51  ;;  %v9176_v41 = vpop.f32.mrb[145].mxu1  ;;  %v9072_v53 = vpop.f32.mrb[150].mxu0 }
 0x5cf   : > { %v9177_v24 = vadd.f32 %v9176_v41, %v9175_v22  ;;  %v9178_v48 = vpop.f32.mrb[146].mxu1  ;;  %v9073_v21 = vpop.f32.mrb[151].mxu0 }
 0x5d0   : > { %v6734_v12 = vadd.f32 %v9071_v26, %v11775_v57  ;;  %v9074_v39 = vadd.f32 %v9073_v21, %v9072_v53  ;;  %v9179_v36 = vpop.f32.mrb[147].mxu1 }
 0x5d1   : > { %v9180_v54 = vadd.f32 %v9179_v36, %v9178_v48  ;;  %v11869_v63 = vadd.f32 %v9177_v24, %v6726_v11 }
 0x5d2   : > { %v6737_v38 = vadd.f32 %v9074_v39, %v11777_v23 }
 0x5d3   : > { %v11872_v56 = vadd.f32 %v9180_v54, %v6729_v13 }
 0x5d4   : > { %v9075_v37 = vpop.f32.mrb[152].mxu0 }
 0x5d5   : > { %v9181_v27 = vpop.f32.mrb[148].mxu1  ;;  %v9076_v9 = vpop.f32.mrb[153].mxu0 }
 0x5d6   : > { %v9077_v19 = vadd.f32 %v9076_v9, %v9075_v37  ;;  %v9182_v14 = vpop.f32.mrb[149].mxu1  ;;  %v9078_v42 = vpop.f32.mrb[154].mxu0 }
 0x5d7   : > { %v9183_v51 = vadd.f32 %v9182_v14, %v9181_v27  ;;  %v9184_v22 = vpop.f32.mrb[150].mxu1  ;;  %v9079_v15 = vpop.f32.mrb[155].mxu0 }
 0x5d8   : > { %v6742_v57 = vadd.f32 %v9077_v19, %v11781_v32  ;;  %v9080_v26 = vadd.f32 %v9079_v15, %v9078_v42  ;;  %v9185_v41 = vpop.f32.mrb[151].mxu1 }
 0x5d9   : > { %v9186_v53 = vadd.f32 %v9185_v41, %v9184_v22  ;;  %v11875_v11 = vadd.f32 %v9183_v51, %v6734_v12 }
 0x5da   : > { %v6745_v23 = vadd.f32 %v9080_v26, %v11786_v10 }
 0x5db   : > { %v11878_v13 = vadd.f32 %v9186_v53, %v6737_v38 }
 0x5dc   : > { %v9081_v24 = vpop.f32.mrb[156].mxu0 }
 0x5dd   : > { %v9187_v48 = vpop.f32.mrb[152].mxu1  ;;  %v9082_v21 = vpop.f32.mrb[157].mxu0 }
 0x5de   : > { %v9083_v39 = vadd.f32 %v9082_v21, %v9081_v24  ;;  %v9188_v36 = vpop.f32.mrb[153].mxu1  ;;  %v9084_v54 = vpop.f32.mrb[158].mxu0 }
 0x5df   : > { %v9189_v37 = vadd.f32 %v9188_v36, %v9187_v48  ;;  %v9190_v27 = vpop.f32.mrb[154].mxu1  ;;  %v9085_v9 = vpop.f32.mrb[159].mxu0 }
 0x5e0   : > { %v6750_v32 = vadd.f32 %v9083_v39, %v11791_v31  ;;  %v9086_v19 = vadd.f32 %v9085_v9, %v9084_v54  ;;  %v9191_v14 = vpop.f32.mrb[155].mxu1 }
 0x5e1   : > { %v9192_v42 = vadd.f32 %v9191_v14, %v9190_v27  ;;  %v11881_v12 = vadd.f32 %v9189_v37, %v6742_v57 }
 0x5e2   : > { %v6753_v10 = vadd.f32 %v9086_v19, %v11794_v25 }
 0x5e3   : > { %v11884_v38 = vadd.f32 %v9192_v42, %v6745_v23 }
 0x5e4   : > { %v9361_v51 = vpop.f32.mrb[160].mxu0 }
 0x5e5   : > { %v9193_v22 = vpop.f32.mrb[156].mxu1  ;;  %v6960_v15 = vadd.f32 %v9361_v51, %v11803_v7  ;;  %v6951_v26 = vpop.f32.mrb[161].mxu0 }
 0x5e6   : > { %v9194_v41 = vpop.f32.mrb[157].mxu1  ;;  %v6952_v53 = vadd.f32 %v6951_v26, %v11797_v46  ;;  %v9362_v24 = vpop.f32.mrb[162].mxu0 }
 0x5e7   : > { %v7080_v31 = vadd.f32 %v6960_v15, %v10871_v6  ;;  %v9195_v48 = vadd.f32 %v9194_v41, %v9193_v22  ;;  %v9196_v21 = vpop.f32.mrb[158].mxu1  ;;  %v6963_v57 = vadd.f32 %v9362_v24, %v11806_v33  ;;  %v6954_v39 = vpop.f32.mrb[163].mxu0 }
 0x5e8   : > { %v7078_v25 = vadd.f32 %v6952_v53, %v10874_v58  ;;  %v9197_v23 = vpop.f32.mrb[159].mxu1  ;;  %v6955_v36 = vadd.f32 %v6954_v39, %v11800_v61 }
 0x5e9   : > { %v7081_v54 = vadd.f32 %v6963_v57, %v10878_v4  ;;  %v9198_v7 = vadd.f32 %v9197_v23, %v9196_v21  ;;  %v11893_v37 = vadd.f32 %v9195_v48, %v6750_v32  ;;  %v7112_v27 = vmax.f32 %v7080_v31, 0.0 }
 0x5ea   : > { %v7079_v46 = vadd.f32 %v6955_v36, %v10883_v43  ;;  %v7110_v19 = vmax.f32 %v7078_v25, 0.0  ;;  %v12072_v36 = vld [vmem:[#allocation12_spill] sm:$0xff] }
 0x5eb   : > { %v7113_v9 = vmax.f32 %v7081_v54, 0.0  ;;  %v11896_v6 = vadd.f32 %v9198_v7, %v6753_v10  ;;  %v12073_v7 = vld [vmem:[#allocation13_spill] sm:$0xff] }
 0x5ec   : > { %v7111_v14 = vmax.f32 %v7079_v46, 0.0  ;;  %v9365_v33 = vpop.f32.mrb[164].mxu0 }
 0x5ed   : > { %v7207_v42 = vpack.c.bf16 %v7113_v9, %v7112_v27  ;;  %v6976_v58 = vadd.f32 %v9365_v33, %v11815_v18  ;;  %v6967_v51 = vpop.f32.mrb[165].mxu0 }
 0x5ee   : > { %v6968_v61 = vadd.f32 %v6967_v51, %v11809_v34  ;;  %v9366_v22 = vpop.f32.mrb[166].mxu0  ;;  %v7206_v4 = vpack.c.bf16 %v7111_v14, %v7110_v19 }
 0x5ef   : > { %v7084_v32 = vadd.f32 %v6976_v58, %v10893_v40  ;;  %v6979_v15 = vadd.f32 %v9366_v22, %v11818_v5  ;;  %v6970_v43 = vpop.f32.mrb[167].mxu0  ;;  %v12075_v22 = vld [vmem:[#allocation15_spill] sm:$0xff] }
 0x5f0   : > { %v7082_v26 = vadd.f32 %v6968_v61, %v10901_v59  ;;  %v6971_v10 = vadd.f32 %v6970_v43, %v11812_v45  ;;  %9407 = vmatprep.mubr.bf16.mxu1 %v7206_v4 }
 0x5f1   : > { %v7085_v41 = vadd.f32 %v6979_v15, %v10905_v2  ;;  %9408 = vmatmul.mubr.bf16.vlgmr.msra.gmra.mrb[160].mxu1 %v7207_v42  ;;  %v7116_v53 = vmax.f32 %v7084_v32, 0.0  ;;  %v12076_v15 = vld [vmem:[#allocation16_spill] sm:$0xff] }
 0x5f2   : > { %v7083_v18 = vadd.f32 %v6971_v10, %v10909_v60  ;;  %v7114_v34 = vmax.f32 %v7082_v26, 0.0  ;;  %v12077_v26 = vld [vmem:[#allocation17_spill] sm:$0xff] }
 0x5f3   : > { %v7117_v24 = vmax.f32 %v7085_v41, 0.0 }
 0x5f4   : > { %v7115_v31 = vmax.f32 %v7083_v18, 0.0  ;;  %v9369_v48 = vpop.f32.mrb[168].mxu0 }
 0x5f5   : > { %v7209_v21 = vpack.c.bf16 %v7117_v24, %v7116_v53  ;;  %v6992_v40 = vadd.f32 %v9369_v48, %v11827_v55  ;;  %v6983_v5 = vpop.f32.mrb[169].mxu0 }
 0x5f6   : > { %v6984_v57 = vadd.f32 %v6983_v5, %v11821_v8  ;;  %v9370_v59 = vpop.f32.mrb[170].mxu0  ;;  %v7208_v39 = vpack.c.bf16 %v7115_v31, %v7114_v34 }
 0x5f7   : > { %v7088_v45 = vadd.f32 %v6992_v40, %v10925_v28  ;;  %v6995_v2 = vadd.f32 %v9370_v59, %v11830_v47  ;;  %v6986_v25 = vpop.f32.mrb[171].mxu0  ;;  %v12079_v59 = vld [vmem:[#allocation19_spill] sm:$0xff] }
 0x5f8   : > { %v7086_v60 = vadd.f32 %v6984_v57, %v10928_v35  ;;  %v6987_v23 = vadd.f32 %v6986_v25, %v11824_v1  ;;  %9411 = vmatprep.mubr.bf16.mxu1 %v7208_v39  ;;  %v12074_v1 = vld [vmem:[#allocation14_spill] sm:$0xff] }
 0x5f9   : > { %v7089_v54 = vadd.f32 %v6995_v2, %v12072_v36  ;;  %9412 = vmatmul.mubr.bf16.gmra.mrb[164].mxu1 %v7209_v21  ;;  %v7120_v46 = vmax.f32 %v7088_v45, 0.0  ;;  %v12080_v2 = vld [vmem:[#allocation20_spill] sm:$0xff] }
 0x5fa   : > { %v7087_v55 = vadd.f32 %v6987_v23, %v12073_v7  ;;  %v7118_v8 = vmax.f32 %v7086_v60, 0.0  ;;  %v12081_v60 = vld [vmem:[#allocation21_spill] sm:$0xff] }
 0x5fb   : > { %v7121_v27 = vmax.f32 %v7089_v54, 0.0 }
 0x5fc   : > { %v7119_v9 = vmax.f32 %v7087_v55, 0.0  ;;  %v9373_v19 = vpop.f32.mrb[172].mxu0 }
 0x5fd   : > { %v7211_v14 = vpack.c.bf16 %v7121_v27, %v7120_v46  ;;  %v7008_v28 = vadd.f32 %v9373_v19, %v11839_v29  ;;  %v6999_v47 = vpop.f32.mrb[173].mxu0 }
 0x5fe   : > { %v7000_v33 = vadd.f32 %v6999_v47, %v11833_v20  ;;  %v9374_v35 = vpop.f32.mrb[174].mxu0  ;;  %v7210_v42 = vpack.c.bf16 %v7119_v9, %v7118_v8  ;;  %v12083_v47 = vld [vmem:[#allocation23_spill] sm:$0xff] }
 0x5ff   : > { %v7092_v58 = vadd.f32 %v7008_v28, %v12074_v1  ;;  %v7011_v51 = vadd.f32 %v9374_v35, %v11842_v52  ;;  %v7002_v61 = vpop.f32.mrb[175].mxu0 }
 0x600   : > { %v7090_v4 = vadd.f32 %v7000_v33, %v12075_v22  ;;  %v7003_v32 = vadd.f32 %v7002_v61, %v11836_v62  ;;  %9415 = vmatprep.mubr.bf16.mxu1 %v7210_v42  ;;  %v12078_v62 = vld [vmem:[#allocation18_spill] sm:$0xff]  ;;  %v12084_v42 = vld [vmem:[#allocation24_spill] sm:$0xff] }
 0x601   : > { %v7093_v43 = vadd.f32 %v7011_v51, %v12076_v15  ;;  %9416 = vmatmul.mubr.bf16.gmra.mrb[168].mxu1 %v7211_v14  ;;  %v7124_v10 = vmax.f32 %v7092_v58, 0.0  ;;  %v12085_v58 = vld [vmem:[#allocation25_spill] sm:$0xff] }
 0x602   : > { %v7091_v29 = vadd.f32 %v7003_v32, %v12077_v26  ;;  %v7122_v20 = vmax.f32 %v7090_v4, 0.0 }
 0x603   : > { %v7125_v41 = vmax.f32 %v7093_v43, 0.0 }
 0x604   : > { %v7123_v18 = vmax.f32 %v7091_v29, 0.0  ;;  %v9377_v53 = vpop.f32.mrb[176].mxu0 }
 0x605   : > { %v7213_v24 = vpack.c.bf16 %v7125_v41, %v7124_v10  ;;  %v7024_v34 = vadd.f32 %v9377_v53, %v11851_v44  ;;  %v7015_v52 = vpop.f32.mrb[177].mxu0 }
 0x606   : > { %v7016_v31 = vadd.f32 %v7015_v52, %v11845_v17  ;;  %v9378_v48 = vpop.f32.mrb[178].mxu0  ;;  %v7212_v21 = vpack.c.bf16 %v7123_v18, %v7122_v20  ;;  %v12087_v18 = vld [vmem:[#allocation27_spill] sm:$0xff] }
 0x607   : > { %v7096_v40 = vadd.f32 %v7024_v34, %v12078_v62  ;;  %v7027_v5 = vadd.f32 %v9378_v48, %v11854_v49  ;;  %v7018_v57 = vpop.f32.mrb[179].mxu0  ;;  %v12088_v34 = vld [vmem:[#allocation28_spill] sm:$0xff] }
 0x608   : > { %v7094_v39 = vadd.f32 %v7016_v31, %v12079_v59  ;;  %v7019_v45 = vadd.f32 %v7018_v57, %v11848_v0  ;;  %9419 = vmatprep.mubr.bf16.mxu1 %v7212_v21  ;;  %v12082_v0 = vld [vmem:[#allocation22_spill] sm:$0xff]  ;;  %v12089_v31 = vld [vmem:[#allocation29_spill] sm:$0xff] }
 0x609   : > { %v7097_v25 = vadd.f32 %v7027_v5, %v12080_v2  ;;  %9420 = vmatmul.mubr.bf16.gmra.mrb[172].mxu1 %v7213_v24  ;;  %v7128_v23 = vmax.f32 %v7096_v40, 0.0 }
 0x60a   : > { %v7095_v44 = vadd.f32 %v7019_v45, %v12081_v60  ;;  %v7126_v17 = vmax.f32 %v7094_v39, 0.0 }
 0x60b   : > { %v7129_v36 = vmax.f32 %v7097_v25, 0.0 }
 0x60c   : > { %v7127_v54 = vmax.f32 %v7095_v44, 0.0  ;;  %v9381_v7 = vpop.f32.mrb[180].mxu0 }
 0x60d   : > { %v7215_v55 = vpack.c.bf16 %v7129_v36, %v7128_v23  ;;  %v7040_v46 = vadd.f32 %v9381_v7, %v11863_v3  ;;  %v7031_v49 = vpop.f32.mrb[181].mxu0  ;;  %v12092_v23 = vld [vmem:[#allocation32_spill] sm:$0xff] }
 0x60e   : > { %v7032_v27 = vadd.f32 %v7031_v49, %v11857_v16  ;;  %v9382_v8 = vpop.f32.mrb[182].mxu0  ;;  %v7214_v9 = vpack.c.bf16 %v7127_v54, %v7126_v17  ;;  %v12093_v54 = vld [vmem:[#allocation31_spill] sm:$0xff] }
 0x60f   : > { %v7100_v19 = vadd.f32 %v7040_v46, %v12082_v0  ;;  %v7043_v14 = vadd.f32 %v9382_v8, %v11866_v30  ;;  %v7034_v28 = vpop.f32.mrb[183].mxu0  ;;  %v12094_v7 = vmax.f32 %v12093_v54, 0.0 }
 0x610   : > { %v7098_v33 = vadd.f32 %v7032_v27, %v12083_v47  ;;  %v7035_v35 = vadd.f32 %v7034_v28, %v11860_v50  ;;  %9423 = vmatprep.mubr.bf16.mxu1 %v7214_v9  ;;  %v12086_v50 = vld [vmem:[#allocation26_spill] sm:$0xff] }
 0x611   : > { %v7101_v1 = vadd.f32 %v7043_v14, %v12084_v42  ;;  %9424 = vmatmul.mubr.bf16.gmra.mrb[176].mxu1 %v7215_v55  ;;  %v7132_v51 = vmax.f32 %v7100_v19, 0.0 }
 0x612   : > { %v7099_v3 = vadd.f32 %v7035_v35, %v12085_v58  ;;  %v7130_v16 = vmax.f32 %v7098_v33, 0.0 }
 0x613   : > { %v7133_v61 = vmax.f32 %v7101_v1, 0.0 }
 0x614   : > { %v7131_v22 = vmax.f32 %v7099_v3, 0.0  ;;  %v9385_v4 = vpop.f32.mrb[184].mxu0 }
 0x615   : > { %v7217_v32 = vpack.c.bf16 %v7133_v61, %v7132_v51  ;;  %v7056_v15 = vadd.f32 %v9385_v4, %v11875_v11  ;;  %v7047_v30 = vpop.f32.mrb[185].mxu0 }
 0x616   : > { %v7048_v43 = vadd.f32 %v7047_v30, %v11869_v63  ;;  %v9386_v26 = vpop.f32.mrb[186].mxu0  ;;  %v7216_v29 = vpack.c.bf16 %v7131_v22, %v7130_v16 }
 0x617   : > { %v7104_v10 = vadd.f32 %v7056_v15, %v12086_v50  ;;  %v7059_v41 = vadd.f32 %v9386_v26, %v11878_v13  ;;  %v7050_v20 = vpop.f32.mrb[187].mxu0 }
 0x618   : > { %v7102_v53 = vadd.f32 %v7048_v43, %v12087_v18  ;;  %v7051_v24 = vadd.f32 %v7050_v20, %v11872_v56  ;;  %9427 = vmatprep.mubr.bf16.mxu1 %v7216_v29  ;;  %v12090_v56 = vld [vmem:[#allocation30_spill] sm:$0xff] }
 0x619   : > { %v7105_v52 = vadd.f32 %v7059_v41, %v12088_v34  ;;  %9428 = vmatmul.mubr.bf16.gmra.mrb[180].mxu1 %v7217_v32  ;;  %v7136_v48 = vmax.f32 %v7104_v10, 0.0  ;;  %v12091_v2 = vmax.f32 %v12090_v56, 0.0 }
 0x61a   : > { %v7103_v11 = vadd.f32 %v7051_v24, %v12089_v31  ;;  %v7134_v63 = vmax.f32 %v7102_v53, 0.0 }
 0x61b   : > { %v7137_v21 = vmax.f32 %v7105_v52, 0.0 }
 0x61c   : > { %v7135_v62 = vmax.f32 %v7103_v11, 0.0  ;;  %v9389_v40 = vpop.f32.mrb[188].mxu0 }
 0x61d   : > { %v7219_v5 = vpack.c.bf16 %v7137_v21, %v7136_v48  ;;  %v7072_v57 = vadd.f32 %v9389_v40, %v11893_v37  ;;  %v7063_v13 = vpop.f32.mrb[189].mxu0  ;;  %v12095_v37 = vld [vmem:[#allocation33_spill] sm:$0xff] }
 0x61e   : > { %v7064_v59 = vadd.f32 %v7063_v13, %v11881_v12  ;;  %v9390_v39 = vpop.f32.mrb[190].mxu0  ;;  %v7218_v45 = vpack.c.bf16 %v7135_v62, %v7134_v63 }
 0x61f   : > { %v7108_v25 = vadd.f32 %v7072_v57, %v12091_v2  ;;  %v7075_v60 = vadd.f32 %v9390_v39, %v11896_v6  ;;  %v7066_v44 = vpop.f32.mrb[191].mxu0 }
 0x620   : > { %v7106_v36 = vadd.f32 %v7064_v59, %v12092_v23  ;;  %v7067_v17 = vadd.f32 %v7066_v44, %v11884_v38  ;;  %9431 = vmatprep.mubr.bf16.mxu1 %v7218_v45 }
 0x621   : > { %v7109_v55 = vadd.f32 %v7075_v60, %v12094_v7  ;;  %9432 = vmatmul.mubr.bf16.gmra.mrb[184].mxu1 %v7219_v5  ;;  %v7140_v12 = vmax.f32 %v7108_v25, 0.0 }
 0x622   : > { %v7107_v46 = vadd.f32 %v7067_v17, %v12095_v37  ;;  %v7138_v27 = vmax.f32 %v7106_v36, 0.0 }
 0x623   : > { %v7141_v49 = vmax.f32 %v7109_v55, 0.0 }
 0x624   : > { %v7139_v8 = vmax.f32 %v7107_v46, 0.0 }
 0x625   : > { %v7221_v9 = vpack.c.bf16 %v7141_v49, %v7140_v12 }
 0x626   : > { %v7220_v0 = vpack.c.bf16 %v7139_v8, %v7138_v27 }
 0x628   : > { %9435 = vmatprep.mubr.bf16.mxu1 %v7220_v0 }
 0x629   : > { %9436 = vmatmul.mubr.bf16.gmra.mrb[188].mxu1 %v7221_v9 }
 0x6c4   : > { %v9409_v6 = vpop.f32.mrb[160].mxu1 }
 0x6c5   : > { %v7320_v19 = vpop.f32.mrb[161].mxu1 }
 0x6c6   : > { %v9410_v14 = vpop.f32.mrb[162].mxu1 }
 0x6c7   : > { %v7323_v28 = vpop.f32.mrb[163].mxu1 }
 0x6c8   : > { %v7447_v38 = vadd.f32 %v7323_v28, %v7320_v19 }
 0x6ca   : > { %v7448_v47 = vadd.f32 %v9409_v6, %v7447_v38 }
 0x6cc   : > { %v9413_v33 = vpop.f32.mrb[164].mxu1  ;;  %v7449_v35 = vadd.f32 %v9410_v14, %v7448_v47  ;;  %v7485_v47 = vld [vmem:[%s12014_s8] sm:$0x1] }
 0x6cd   : > { %v7336_v42 = vpop.f32.mrb[165].mxu1 }
 0x6ce   : > { %v7450_v1 = vadd.f32 %v7449_v35, %v7336_v42  ;;  %v9414_v58 = vpop.f32.mrb[166].mxu1 }
 0x6cf   : > { %v7339_v3 = vpop.f32.mrb[167].mxu1 }
 0x6d0   : > { %v7451_v51 = vadd.f32 %v7450_v1, %v7339_v3 }
 0x6d2   : > { %v7452_v61 = vadd.f32 %v9413_v33, %v7451_v51 }
 0x6d4   : > { %v9417_v16 = vpop.f32.mrb[168].mxu1  ;;  %v7453_v22 = vadd.f32 %v9414_v58, %v7452_v61 }
 0x6d5   : > { %v7352_v4 = vpop.f32.mrb[169].mxu1 }
 0x6d6   : > { %v7454_v32 = vadd.f32 %v7453_v22, %v7352_v4  ;;  %v9418_v15 = vpop.f32.mrb[170].mxu1 }
 0x6d7   : > { %v7355_v30 = vpop.f32.mrb[171].mxu1 }
 0x6d8   : > { %v7455_v43 = vadd.f32 %v7454_v32, %v7355_v30 }
 0x6da   : > { %v7456_v26 = vadd.f32 %v9417_v16, %v7455_v43 }
 0x6dc   : > { %v9421_v29 = vpop.f32.mrb[172].mxu1  ;;  %v7457_v50 = vadd.f32 %v9418_v15, %v7456_v26 }
 0x6dd   : > { %v7368_v10 = vpop.f32.mrb[173].mxu1 }
 0x6de   : > { %v7458_v41 = vadd.f32 %v7457_v50, %v7368_v10  ;;  %v9422_v20 = vpop.f32.mrb[174].mxu1 }
 0x6df   : > { %v7371_v18 = vpop.f32.mrb[175].mxu1 }
 0x6e0   : > { %v7459_v53 = vadd.f32 %v7458_v41, %v7371_v18 }
 0x6e2   : > { %v7460_v24 = vadd.f32 %v9421_v29, %v7459_v53 }
 0x6e4   : > { %v9425_v34 = vpop.f32.mrb[176].mxu1  ;;  %v7461_v52 = vadd.f32 %v9422_v20, %v7460_v24 }
 0x6e5   : > { %v7384_v31 = vpop.f32.mrb[177].mxu1 }
 0x6e6   : > { %v7462_v11 = vadd.f32 %v7461_v52, %v7384_v31  ;;  %v9426_v48 = vpop.f32.mrb[178].mxu1 }
 0x6e7   : > { %v7387_v21 = vpop.f32.mrb[179].mxu1 }
 0x6e8   : > { %v7463_v63 = vadd.f32 %v7462_v11, %v7387_v21 }
 0x6ea   : > { %v7464_v62 = vadd.f32 %v9425_v34, %v7463_v63 }
 0x6ec   : > { %v9429_v40 = vpop.f32.mrb[180].mxu1  ;;  %v7465_v5 = vadd.f32 %v9426_v48, %v7464_v62 }
 0x6ed   : > { %v7400_v57 = vpop.f32.mrb[181].mxu1 }
 0x6ee   : > { %v7466_v13 = vadd.f32 %v7465_v5, %v7400_v57  ;;  %v9430_v59 = vpop.f32.mrb[182].mxu1 }
 0x6ef   : > { %v7403_v39 = vpop.f32.mrb[183].mxu1 }
 0x6f0   : > { %v7467_v45 = vadd.f32 %v7466_v13, %v7403_v39 }
 0x6f2   : > { %v7468_v56 = vadd.f32 %v9429_v40, %v7467_v45 }
 0x6f4   : > { %v9433_v2 = vpop.f32.mrb[184].mxu1  ;;  %v7469_v25 = vadd.f32 %v9430_v59, %v7468_v56 }
 0x6f5   : > { %v7416_v60 = vpop.f32.mrb[185].mxu1 }
 0x6f6   : > { %v7470_v44 = vadd.f32 %v7469_v25, %v7416_v60  ;;  %v9434_v23 = vpop.f32.mrb[186].mxu1 }
 0x6f7   : > { %v7419_v36 = vpop.f32.mrb[187].mxu1 }
 0x6f8   : > { %v7471_v17 = vadd.f32 %v7470_v44, %v7419_v36 }
 0x6fa   : > { %v7472_v54 = vadd.f32 %v9433_v2, %v7471_v17 }
 0x6fc   : > { %v9437_v7 = vpop.f32.mrb[188].mxu1  ;;  %v7473_v55 = vadd.f32 %v9434_v23, %v7472_v54 }
 0x6fd   : > { %v7432_v37 = vpop.f32.mrb[189].mxu1 }
 0x6fe   : > { %v7474_v46 = vadd.f32 %v7473_v55, %v7432_v37  ;;  %v9438_v12 = vpop.f32.mrb[190].mxu1 }
 0x6ff   : > { %v7435_v49 = vpop.f32.mrb[191].mxu1 }
 0x700   : > { %v7475_v27 = vadd.f32 %v7474_v46, %v7435_v49 }
 0x702   : > { %v7476_v8 = vadd.f32 %v9437_v7, %v7475_v27 }
 0x704   : > { %v7477_v9 = vadd.f32 %v9438_v12, %v7476_v8 }
 0x706   : > { %v7478_v0 = vrot.slane %v7477_v9, 4 }
 0x708   : > { %v7479_v6 = vadd.f32 %v7478_v0, %v7477_v9 }
 0x70a   : > { %v7480_v19 = vrot.slane %v7479_v6, 2 }
 0x70c   : > { %v7481_v14 = vadd.f32 %v7480_v19, %v7479_v6 }
 0x70e   : > { %v7482_v28 = vrot.slane %v7481_v14, 1 }
 0x710   : > { %v7483_v38 = vadd.f32 %v7482_v28, %v7481_v14 }
 0x712   : > { %v7484_v33 = vmul.f32 0.00390625, %v7483_v38 }
 0x714   : > { %v7486_v35 = vadd.f32 %v7485_v47, %v7484_v33 }
 0x716   : > { %7487 = vst [vmem:[%s339_s17] sm:$0x1] %v7486_v35 }
 0x717   : > { %9760 = shalt.err (!%p9757_p7)
}
 0x718   : > { %s9761_s22 = scalar_lea.hbm %s11964_s29, 16  ;;  %s9765_s17 = scalar_lea.hbm %s12015_s9, 32 }
 0x719   : > { %p9762_p8 = scmp.ne.s32.totalorder %s11964_s29, %s9761_s22  ;;  %p9766_p1 = scmp.lt.u32.totalorder %s11964_s29, %s12015_s9 }
 0x71a   : > { %p9767_p0 = scmp.lt.u32.totalorder %s9765_s17, %s9761_s22  ;;  %p9769_p6 = scmp.lt.u32.totalorder %s9761_s22, %s11964_s29 }
 0x71b   : > { %p9763_p11 = pnand %p9762_p8, %p12096_p9 }
 0x71c   : > { %p9768_p5 = por %p9767_p0, %p9766_p1 }
 0x71d   : > { %p9764_p13 = pneg %p9763_p11 }
 0x71e   : > { %p9770_p10 = por %p9769_p6, %p9768_p5 }
 0x720   : > { %p9771_p12 = pnand %p9770_p10, %p9764_p13 }
 0x722   : > { %9774 = shalt.err (!%p9771_p12)
}
 0x723   : > { %9443 = dma.vmem_to_hbm [thread:$0]  (%p12096_p9), %s11966_s23, 16, %s11964_s29, %s7489_s14  }
 0x724 PF: > { %p9455_p2 = scmp.ge.s32.totalorder %s9813_s12, 2  ;;  %s7513_s16 = sand.u32 1, %s9801_s30  }
 0x725   : > { %p12097_p3 = scmp.ne.s32.totalorder %s12044_s20, 0  ;;  %s7514_s13 = scalar_lea.sflag [#allocation8], %s7513_s16 }
 0x727   : > { %p9450_p4 = pnand %p9455_p2, %p12097_p3 }
 0x729   : > { %9796 = dma.done.wait (!%p9450_p4), %s7514_s13, 16  }
 0x72a   : > { %9798 = vsyncadd (!%p9450_p4), %s7514_s13, 4294967280  ;;  %p20_p7 = scmp.ge.s32.totalorder %s9896_s15, 4   ;;  %s12098_s30 = smov %s9805_s10 }
 0x72b   : > { %s12099_s10 = smov %s9809_s11  ;;  %s12100_s11 = smov %s9907_s18 }
 0x72c   : > { %s12101_s12 = smov %s9896_s15  ;;  %22 = sbr.rel (!%p20_p7) target bundleno = 4 (0x4), region = 98 }
 0x733   :  { %7518 = vsyncpa [#allocation7], 1 }
 0x734   :  { %7520 = vsyncpa [#allocation7 + $0x1], 1 }
 0x735   :  { %7521 = vsyncpa [#allocation8], 1 }
 0x736   :  { %7523 = vsyncpa [#allocation8 + $0x1], 1 }

</bundles_post_ra>
